<compile_context>
chip_gen: v6e
topology: v6e:2x2x1
jax: 0.10.0
libtpu: 0.0.40
codegen_flags: <defaults>
</compile_context>

<pallas_src>
import functools

import jax
import jax.numpy as jnp
from jax.experimental import pallas as pl
from jax.experimental.pallas import tpu as pltpu

_VMEM_LIMIT = 48 * 1024 * 1024  # explicit scoped-VMEM budget (fits v5e/v6e/v7x)


# ------------------------------ small helpers -------------------------------

def _round_up(x, m):
    return (x + m - 1) // m * m


def _pick_tile(dim, cands=(512, 256, 128, 64, 32, 16, 8)):
    """Largest candidate tile that divides `dim` (fallback: the full dim)."""
    for c in cands:
        if dim % c == 0:
            return c
    return dim


def _pad_to(a, shape):
    return jnp.pad(a, [(0, t - s) for s, t in zip(a.shape, shape)])


def fold_bn(gamma, beta, mean, var, eps=1e-5):
    """Inference BatchNorm -> per-channel (scale, bias), both (C,) f32."""
    scale = gamma / jnp.sqrt(var + eps)
    bias = beta - mean * scale
    return scale.astype(jnp.float32), bias.astype(jnp.float32)


def _prep_1x1(w_oihw, scale, cin_p, cout_p):
    """1x1 conv weight -> (Cin_p, Cout_p) bf16 with BN scale folded in."""
    w = w_oihw[:, :, 0, 0].T * scale[None, :]
    return _pad_to(w, (cin_p, cout_p)).astype(jnp.bfloat16)


def _prep_3x3(w_oihw, scale, cin_p, cout_p):
    """3x3 conv weight -> (3, 3, Cin_p, Cout_p) bf16 with BN scale folded."""
    w = jnp.transpose(w_oihw, (2, 3, 1, 0)) * scale[None, None, None, :]
    return _pad_to(w, (3, 3, cin_p, cout_p)).astype(jnp.bfloat16)


def _prep_bias(bias, cout_p):
    return _pad_to(bias, (cout_p,)).reshape(1, cout_p).astype(jnp.float32)


# ----------------------------- Pallas kernels -------------------------------

def _mm_bias_kernel(x_ref, w_ref, b_ref, o_ref, acc_ref, *, nk, relu):
    k = pl.program_id(2)

    @pl.when(k == 0)
    def _():
        acc_ref[...] = jnp.zeros_like(acc_ref)

    acc_ref[...] += jnp.dot(x_ref[...], w_ref[...],
                            preferred_element_type=jnp.float32)

    @pl.when(k == nk - 1)
    def _():
        y = acc_ref[...] + b_ref[...]
        if relu:
            y = jnp.maximum(y, 0.0)
        o_ref[...] = y.astype(o_ref.dtype)


def _mm_bias_res_kernel(x_ref, w_ref, b_ref, res_ref, o_ref, acc_ref, *,
                        nk, relu):
    k = pl.program_id(2)

    @pl.when(k == 0)
    def _():
        acc_ref[...] = jnp.zeros_like(acc_ref)

    acc_ref[...] += jnp.dot(x_ref[...], w_ref[...],
                            preferred_element_type=jnp.float32)

    @pl.when(k == nk - 1)
    def _():
        y = acc_ref[...] + b_ref[...] + res_ref[...].astype(jnp.float32)
        if relu:
            y = jnp.maximum(y, 0.0)
        o_ref[...] = y.astype(o_ref.dtype)


def _dual_mm_bias_relu_kernel(a_ref, wa_ref, c_ref, wc_ref, b_ref, o_ref,
                              acc_ref, *, nka, nkb):
    # relu(a @ wa + c @ wc + bias): conv3 + fused 1x1-conv shortcut.
    k = pl.program_id(2)

    @pl.when(k == 0)
    def _():
        acc_ref[...] = jnp.zeros_like(acc_ref)

    @pl.when(k < nka)
    def _():
        acc_ref[...] += jnp.dot(a_ref[...], wa_ref[...],
                                preferred_element_type=jnp.float32)

    @pl.when(k >= nka)
    def _():
        acc_ref[...] += jnp.dot(c_ref[...], wc_ref[...],
                                preferred_element_type=jnp.float32)

    @pl.when(k == nka + nkb - 1)
    def _():
        y = acc_ref[...] + b_ref[...]
        o_ref[...] = jnp.maximum(y, 0.0).astype(o_ref.dtype)


def _conv3x3_kernel(x_ref, w_ref, b_ref, o_ref, *, stride):
    # x_ref: (1, Hp, Wp, Cin) spatially padded image (bf16, VMEM-resident)
    # w_ref: (3, 3, Cin, TN)  BN-scale-folded weights (bf16)
    # b_ref: (1, TN) f32 ; o_ref: (1, Ho, Wo, TN)
    _, ho, wo, tn = o_ref.shape
    cin = x_ref.shape[3]
    acc = jnp.zeros((ho * wo, tn), jnp.float32)
    for kh in range(3):              # 9 accumulated taps -- no im2col buffer
        for kw in range(3):
            if stride == 1:
                xs = x_ref[0, kh:kh + ho, kw:kw + wo, :]
            else:
                xs = x_ref[0, pl.ds(kh, ho, stride), pl.ds(kw, wo, stride), :]
            acc += jnp.dot(xs.reshape(ho * wo, cin), w_ref[kh, kw],
                           preferred_element_type=jnp.float32)
    y = jnp.maximum(acc + b_ref[...], 0.0)
    o_ref[...] = y.reshape(1, ho, wo, tn).astype(o_ref.dtype)


# ----------------------------- Pallas wrappers ------------------------------

def matmul_bias(x, w, bias, *, relu=True, res=None, out_dtype=jnp.bfloat16):
    """out = [relu]((x @ w) + bias [+ res]); bf16 operands, f32 accumulation."""
    M, K = x.shape
    N = w.shape[1]
    tm = _pick_tile(M)
    tn = _pick_tile(N, (256, 128))
    tk = _pick_tile(K, (512, 256, 128))
    nk = K // tk
    grid = (M // tm, N // tn, nk)

    in_specs = [
        pl.BlockSpec((tm, tk), lambda i, j, k: (i, k)),
        pl.BlockSpec((tk, tn), lambda i, j, k: (k, j)),
        pl.BlockSpec((1, tn), lambda i, j, k: (0, j)),
    ]
    args = [x, w, bias]
    if res is None:
        kern = functools.partial(_mm_bias_kernel, nk=nk, relu=relu)
    else:
        in_specs.append(pl.BlockSpec((tm, tn), lambda i, j, k: (i, j)))
        args.append(res)
        kern = functools.partial(_mm_bias_res_kernel, nk=nk, relu=relu)

    return pl.pallas_call(
        kern,
        out_shape=jax.ShapeDtypeStruct((M, N), out_dtype),
        grid=grid,
        in_specs=in_specs,
        out_specs=pl.BlockSpec((tm, tn), lambda i, j, k: (i, j)),
        scratch_shapes=[pltpu.VMEM((tm, tn), jnp.float32)],
        compiler_params=pltpu.CompilerParams(
            dimension_semantics=("parallel", "parallel", "arbitrary"),
            vmem_limit_bytes=_VMEM_LIMIT),
    )(*args)


def dual_matmul_bias_relu(a, wa, c, wc, bias, *, out_dtype=jnp.float32):
    """out = relu(a @ wa + c @ wc + bias) -- conv3 with fused conv-shortcut."""
    M, Ka = a.shape
    Kc = c.shape[1]
    N = wa.shape[1]
    tm = _pick_tile(M)
    tn = _pick_tile(N, (256, 128))
    tka = _pick_tile(Ka, (512, 256, 128))
    tkc = _pick_tile(Kc, (512, 256, 128))
    nka, nkb = Ka // tka, Kc // tkc
    grid = (M // tm, N // tn, nka + nkb)

    # One reduction axis covers both dots; the inactive stream's index_map is
    # clamped to its last-used block so consecutive equal indices skip the DMA.
    in_specs = [
        pl.BlockSpec((tm, tka), lambda i, j, k: (i, jnp.minimum(k, nka - 1))),
        pl.BlockSpec((tka, tn), lambda i, j, k: (jnp.minimum(k, nka - 1), j)),
        pl.BlockSpec((tm, tkc), lambda i, j, k: (i, jnp.maximum(k - nka, 0))),
        pl.BlockSpec((tkc, tn), lambda i, j, k: (jnp.maximum(k - nka, 0), j)),
        pl.BlockSpec((1, tn), lambda i, j, k: (0, j)),
    ]
    return pl.pallas_call(
        functools.partial(_dual_mm_bias_relu_kernel, nka=nka, nkb=nkb),
        out_shape=jax.ShapeDtypeStruct((M, N), out_dtype),
        grid=grid,
        in_specs=in_specs,
        out_specs=pl.BlockSpec((tm, tn), lambda i, j, k: (i, j)),
        scratch_shapes=[pltpu.VMEM((tm, tn), jnp.float32)],
        compiler_params=pltpu.CompilerParams(
            dimension_semantics=("parallel", "parallel", "arbitrary"),
            vmem_limit_bytes=_VMEM_LIMIT),
    )(a, wa, c, wc, bias)


def conv3x3_bias_relu(x_pad, w, bias, *, stride, out_dtype=jnp.bfloat16):
    """3x3 conv (input already spatially padded) + bias + relu, 9 fused taps."""
    n, hp, wp, cin = x_pad.shape
    cout = w.shape[3]
    ho = (hp - 3) // stride + 1
    wo = (wp - 3) // stride + 1
    tn = _pick_tile(cout, (256, 128))
    grid = (n, cout // tn)
    return pl.pallas_call(
        functools.partial(_conv3x3_kernel, stride=stride),
        out_shape=jax.ShapeDtypeStruct((n, ho, wo, cout), out_dtype),
        grid=grid,
        in_specs=[
            pl.BlockSpec((1, hp, wp, cin), lambda b, j: (b, 0, 0, 0)),
            pl.BlockSpec((3, 3, cin, tn), lambda b, j: (0, 0, 0, j)),
            pl.BlockSpec((1, tn), lambda b, j: (0, j)),
        ],
        out_specs=pl.BlockSpec((1, ho, wo, tn), lambda b, j: (b, 0, 0, j)),
        compiler_params=pltpu.CompilerParams(
            dimension_semantics=("parallel", "parallel"),
            vmem_limit_bytes=_VMEM_LIMIT),
    )(x_pad, w, bias)


# ---------------------------- parameter setup -------------------------------

def make_bn_params(key, c, affine=True):
    k1, k2, k3, k4 = jax.random.split(key, 4)
    if affine:
        gamma = 1.0 + 0.1 * jax.random.normal(k1, (c,), jnp.float32)
        beta = 0.1 * jax.random.normal(k2, (c,), jnp.float32)
    else:
        gamma = jnp.ones((c,), jnp.float32)
        beta = jnp.zeros((c,), jnp.float32)
    mean = 0.1 * jax.random.normal(k3, (c,), jnp.float32)
    var = jax.random.uniform(k4, (c,), jnp.float32, minval=0.5, maxval=1.5)
    return (gamma, beta, mean, var)


def init_bottleneck_params(key, in_planes, planes, stride):
    expansion = 4
    out_planes = expansion * planes
    ks = jax.random.split(key, 8)

    def conv_w(k, cout, cin, kh, kw):
        return 0.1 * jax.random.normal(k, (cout, cin, kh, kw), jnp.float32)

    params = {
        "w1": conv_w(ks[0], planes, in_planes, 1, 1),
        "bn1": make_bn_params(ks[1], planes),
        "w2": conv_w(ks[2], planes, planes, 3, 3),
        "bn2": make_bn_params(ks[3], planes),
        "w3": conv_w(ks[4], out_planes, planes, 1, 1),
        "bn3": make_bn_params(ks[5], out_planes),
    }
    if stride != 1 or in_planes != out_planes:
        params["ws"] = conv_w(ks[6], out_planes, in_planes, 1, 1)
        params["bns"] = make_bn_params(ks[7], out_planes, affine=False)
    return params


# ------------------------------ forward pass --------------------------------

def _bottleneck_forward(x_nchw, params, stride):
    """Pallas-backed Bottleneck forward.  Input/output NCHW (PyTorch layout)."""
    # TODO(synk): keep the surrounding model NHWC end-to-end; here we transpose
    # once at the block boundary because the module contract is NCHW.
    x = jnp.transpose(x_nchw, (0, 2, 3, 1)).astype(jnp.float32)      # NHWC
    n, h, w, cin = x.shape
    planes = params["w1"].shape[0]
    out_planes = params["w3"].shape[0]

    cin_p = _round_up(cin, 128)        # lane-dense channel padding
    mid_p = _round_up(planes, 128)
    out_p = _round_up(out_planes, 128)

    s1, b1 = fold_bn(*params["bn1"])
    s2, b2 = fold_bn(*params["bn2"])
    s3, b3 = fold_bn(*params["bn3"])
    w1 = _prep_1x1(params["w1"], s1, cin_p, mid_p)
    w2 = _prep_3x3(params["w2"], s2, mid_p, mid_p)
    w3 = _prep_1x1(params["w3"], s3, mid_p, out_p)
    b1p = _prep_bias(b1, mid_p)
    b2p = _prep_bias(b2, mid_p)
    b3p = _prep_bias(b3, out_p)

    xp = _pad_to(x, (n, h, w, cin_p)).astype(jnp.bfloat16)

    # conv1 (1x1) + bn1 + relu  -- tiled matmul, bf16 operands, f32 accum
    y1 = matmul_bias(xp.reshape(n * h * w, cin_p), w1, b1p, relu=True)

    # conv2 (3x3, stride, pad=1) + bn2 + relu -- 9 in-VMEM taps, no im2col
    y1p = jnp.pad(y1.reshape(n, h, w, mid_p), ((0, 0), (1, 1), (1, 1), (0, 0)))
    y2 = conv3x3_bias_relu(y1p, w2, b2p, stride=stride)
    ho, wo = y2.shape[1], y2.shape[2]
    y2f = y2.reshape(n * ho * wo, mid_p)

    # conv3 (1x1) + bn3 + shortcut + residual-add + relu, fused in one kernel
    if "ws" in params:
        ss, bs = fold_bn(*params["bns"])
        ws = _prep_1x1(params["ws"], ss, cin_p, out_p)
        bias_tot = b3p + _prep_bias(bs, out_p)
        # TODO(synk): fold this strided shortcut selection into the kernel's
        # BlockSpec/DMA (only materializes a copy when stride > 1).
        xs = xp[:, ::stride, ::stride, :].reshape(n * ho * wo, cin_p)
        out = dual_matmul_bias_relu(y2f, w3, xs, ws, bias_tot,
                                    out_dtype=jnp.float32)
    else:
        res = xp.reshape(n * ho * wo, cin_p)     # identity: cin_p == out_p
        out = matmul_bias(y2f, w3, b3p, relu=True, res=res,
                          out_dtype=jnp.float32)

    out = out.reshape(n, ho, wo, out_p)[:, :, :, :out_planes]
    return jnp.transpose(out, (0, 3, 1, 2))      # back to NCHW


bottleneck_forward = jax.jit(_bottleneck_forward, static_argnums=(2,))


# --------------------------- pure-JAX reference ------------------------------

def reference_forward(x, params, stride):
    def conv(x_, w, s=1, pad="VALID"):
        return jax.lax.conv_general_dilated(
            x_, w, (s, s), pad, dimension_numbers=("NCHW", "OIHW", "NCHW"))

    def bn(x_, p):
        sc, bi = fold_bn(*p)
        return x_ * sc.reshape(1, -1, 1, 1) + bi.reshape(1, -1, 1, 1)

    out = jax.nn.relu(bn(conv(x, params["w1"]), params["bn1"]))
    out = jax.nn.relu(bn(conv(out, params["w2"], stride, [(1, 1), (1, 1)]),
                         params["bn2"]))
    out = bn(conv(out, params["w3"]), params["bn3"])
    if "ws" in params:
        sc = bn(conv(x, params["ws"], stride), params["bns"])
    else:
        sc = x[:, :, ::stride, ::stride]
    return jax.nn.relu(out + sc)


# --------------------------------- main --------------------------------------

if __name__ == "__main__":
    # TODO(synk): training-mode BatchNorm (batch statistics) is not modelled;
    # inference-mode running stats are folded into scale/bias instead.
    key = jax.random.PRNGKey(0)
    kx, kp1, kp2 = jax.random.split(key, 3)

    # Config 1: projection shortcut (1x1 conv + BN), exercises the fused
    # dual-dot conv3 kernel.
    in_planes, planes, stride = 4, 4, 1
    x = jax.random.normal(kx, (2, in_planes, 16, 16), jnp.float32)   # NCHW
    params = init_bottleneck_params(kp1, in_planes, planes, stride)
    out = jax.block_until_ready(bottleneck_forward(x, params, stride))
    ref = jax.block_until_ready(reference_forward(x, params, stride))
    assert out.shape == ref.shape == (2, 4 * planes, 16, 16), out.shape
    assert jnp.allclose(out, ref, atol=5e-2, rtol=5e-2), float(
        jnp.max(jnp.abs(out - ref)))

    # Config 2: identity shortcut (in_planes == expansion*planes, stride=1),
    # exercises the matmul+bias+residual-add kernel.
    in_planes2, planes2 = 16, 4
    x2 = jax.random.normal(kx, (2, in_planes2, 16, 16), jnp.float32)
    params2 = init_bottleneck_params(kp2, in_planes2, planes2, 1)
    out2 = jax.block_until_ready(bottleneck_forward(x2, params2, 1))
    ref2 = jax.block_until_ready(reference_forward(x2, params2, 1))
    assert out2.shape == ref2.shape == (2, 4 * planes2, 16, 16), out2.shape
    assert jnp.allclose(out2, ref2, atol=5e-2, rtol=5e-2), float(
        jnp.max(jnp.abs(out2 - ref2)))

    print("KERNEL_OK")
</pallas_src>

<mosaic_0001>
module attributes {stable_mosaic.version = 11 : i64} {
  func.func @_mm_bias_kernel(%arg0: i32, %arg1: i32, %arg2: i32, %arg3: memref<512x128xbf16, #tpu.memory_space<vmem>>, %arg4: memref<128x128xbf16, #tpu.memory_space<vmem>>, %arg5: memref<1x128xf32, #tpu.memory_space<vmem>>, %arg6: memref<512x128xbf16, #tpu.memory_space<vmem>>, %arg7: memref<512x128xf32, #tpu.memory_space<vmem>>) attributes {dimension_semantics = [#tpu.dimension_semantics<parallel>, #tpu.dimension_semantics<parallel>, #tpu.dimension_semantics<arbitrary>], iteration_bounds = array<i64: 1, 1, 1>, scalar_prefetch = 0 : i64, scratch_operands = 1 : i64, tpu.core_type = #tpu.core_type<tc>, window_params = [{transform_indices = @transform_0, window_bounds = array<i64: 512, 128>}, {transform_indices = @transform_1, window_bounds = array<i64: 128, 128>}, {transform_indices = @transform_2, window_bounds = array<i64: 1, 128>}, {transform_indices = @transform_3, window_bounds = array<i64: 512, 128>}]} {
    %c0_i32 = arith.constant 0 : i32
    %0 = arith.cmpi eq, %arg2, %c0_i32 : i32
    %1 = arith.extui %0 : i1 to i32
    %c0_i32_0 = arith.constant 0 : i32
    %2 = arith.cmpi ne, %1, %c0_i32_0 : i32
    scf.if %2 {
      %cst_10 = arith.constant 0.000000e+00 : f32
      %12 = vector.broadcast %cst_10 : f32 to vector<512x128xf32>
      %c0_11 = arith.constant 0 : index
      %c0_12 = arith.constant 0 : index
      %13 = vector.load %arg7[%c0_11, %c0_12] : memref<512x128xf32, #tpu.memory_space<vmem>>, vector<512x128xf32>
      tpu.vector_store %arg7[%c0_11, %c0_12], %12 {strides = array<i32>} : memref<512x128xf32, #tpu.memory_space<vmem>>, vector<512x128xf32>,
    } else {
    }
    %c0 = arith.constant 0 : index
    %c0_1 = arith.constant 0 : index
    %3 = vector.load %arg7[%c0, %c0_1] : memref<512x128xf32, #tpu.memory_space<vmem>>, vector<512x128xf32>
    %c0_2 = arith.constant 0 : index
    %c0_3 = arith.constant 0 : index
    %4 = vector.load %arg3[%c0_2, %c0_3] : memref<512x128xbf16, #tpu.memory_space<vmem>>, vector<512x128xbf16>
    %c0_4 = arith.constant 0 : index
    %c0_5 = arith.constant 0 : index
    %5 = vector.load %arg4[%c0_4, %c0_5] : memref<128x128xbf16, #tpu.memory_space<vmem>>, vector<128x128xbf16>
    %cst = arith.constant dense<0.000000e+00> : vector<512x128xf32>
    %6 = tpu.matmul %4, %5, %cst {dimension_numbers = #tpu.dot_dimension_numbers<[1], [0], [0], [1], [0, 0, 1, 1], [], []>} : vector<512x128xbf16>, vector<128x128xbf16>, vector<512x128xf32> -> vector<512x128xf32>
    %7 = arith.addf %3, %6 : vector<512x128xf32>
    %c0_6 = arith.constant 0 : index
    %c0_7 = arith.constant 0 : index
    %8 = vector.load %arg7[%c0_6, %c0_7] : memref<512x128xf32, #tpu.memory_space<vmem>>, vector<512x128xf32>
    tpu.vector_store %arg7[%c0_6, %c0_7], %7 {strides = array<i32>} : memref<512x128xf32, #tpu.memory_space<vmem>>, vector<512x128xf32>,
    %c0_i32_8 = arith.constant 0 : i32
    %9 = arith.cmpi eq, %arg2, %c0_i32_8 : i32
    %10 = arith.extui %9 : i1 to i32
    %c0_i32_9 = arith.constant 0 : i32
    %11 = arith.cmpi ne, %10, %c0_i32_9 : i32
    scf.if %11 {
      %c0_10 = arith.constant 0 : index
      %c0_11 = arith.constant 0 : index
      %12 = vector.load %arg7[%c0_10, %c0_11] : memref<512x128xf32, #tpu.memory_space<vmem>>, vector<512x128xf32>
      %c0_12 = arith.constant 0 : index
      %c0_13 = arith.constant 0 : index
      %13 = vector.load %arg5[%c0_12, %c0_13] : memref<1x128xf32, #tpu.memory_space<vmem>>, vector<1x128xf32>
      %14 = vector.broadcast %13 : vector<1x128xf32> to vector<512x128xf32>
      %15 = arith.addf %12, %14 : vector<512x128xf32>
      %cst_14 = arith.constant 0.000000e+00 : f32
      %16 = vector.broadcast %cst_14 : f32 to vector<512x128xf32>
      %17 = arith.maximumf %15, %16 : vector<512x128xf32>
      %18 = arith.truncf %17 : vector<512x128xf32> to vector<512x128xbf16>
      %c0_15 = arith.constant 0 : index
      %c0_16 = arith.constant 0 : index
      %19 = vector.load %arg6[%c0_15, %c0_16] : memref<512x128xbf16, #tpu.memory_space<vmem>>, vector<512x128xbf16>
      tpu.vector_store %arg6[%c0_15, %c0_16], %18 {strides = array<i32>} : memref<512x128xbf16, #tpu.memory_space<vmem>>, vector<512x128xbf16>,
    } else {
    }
    return
  }
  func.func @transform_0(%arg0: i32, %arg1: i32, %arg2: i32) -> (i32, i32) {
    %c0_i32 = arith.constant 0 : i32
    return %arg0, %arg2 : i32, i32
  }
  func.func @transform_1(%arg0: i32, %arg1: i32, %arg2: i32) -> (i32, i32) {
    %c0_i32 = arith.constant 0 : i32
    return %arg2, %arg1 : i32, i32
  }
  func.func @transform_2(%arg0: i32, %arg1: i32, %arg2: i32) -> (i32, i32) {
    %c0_i32 = arith.constant 0 : i32
    %c0_i32_0 = arith.constant 0 : i32
    return %c0_i32, %arg1 : i32, i32
  }
  func.func @transform_3(%arg0: i32, %arg1: i32, %arg2: i32) -> (i32, i32) {
    %c0_i32 = arith.constant 0 : i32
    return %arg0, %arg1 : i32, i32
  }
}

module attributes {stable_mosaic.version = 11 : i64} {
  func.func @_conv3x3_kernel(%arg0: i32, %arg1: i32, %arg2: memref<1x18x18x128xbf16, #tpu.memory_space<vmem>>, %arg3: memref<3x3x128x128xbf16, #tpu.memory_space<vmem>>, %arg4: memref<1x128xf32, #tpu.memory_space<vmem>>, %arg5: memref<1x16x16x128xbf16, #tpu.memory_space<vmem>>) attributes {dimension_semantics = [#tpu.dimension_semantics<parallel>, #tpu.dimension_semantics<parallel>], iteration_bounds = array<i64: 2, 1>, scalar_prefetch = 0 : i64, scratch_operands = 0 : i64, tpu.core_type = #tpu.core_type<tc>, window_params = [{transform_indices = @transform_0, window_bounds = array<i64: 1, 18, 18, 128>}, {transform_indices = @transform_1, window_bounds = array<i64: 3, 3, 128, 128>}, {transform_indices = @transform_2, window_bounds = array<i64: 1, 128>}, {transform_indices = @transform_3, window_bounds = array<i64: 1, 16, 16, 128>}]} {
    %cst = arith.constant 0.000000e+00 : f32
    %0 = vector.broadcast %cst : f32 to vector<256x128xf32>
    %c0 = arith.constant 0 : index
    %c0_0 = arith.constant 0 : index
    %c0_1 = arith.constant 0 : index
    %c0_2 = arith.constant 0 : index
    %1 = vector.load %arg2[%c0, %c0_0, %c0_1, %c0_2] : memref<1x18x18x128xbf16, #tpu.memory_space<vmem>>, vector<1x16x16x128xbf16>
    %2 = vector.shape_cast %1 : vector<1x16x16x128xbf16> to vector<16x16x128xbf16>
    %3 = vector.shape_cast %2 : vector<16x16x128xbf16> to vector<256x128xbf16>
    %c0_3 = arith.constant 0 : index
    %c0_4 = arith.constant 0 : index
    %c0_5 = arith.constant 0 : index
    %c0_6 = arith.constant 0 : index
    %4 = vector.load %arg3[%c0_3, %c0_4, %c0_5, %c0_6] : memref<3x3x128x128xbf16, #tpu.memory_space<vmem>>, vector<1x1x128x128xbf16>
    %5 = vector.shape_cast %4 : vector<1x1x128x128xbf16> to vector<128x128xbf16>
    %cst_7 = arith.constant dense<0.000000e+00> : vector<256x128xf32>
    %6 = tpu.matmul %3, %5, %cst_7 {dimension_numbers = #tpu.dot_dimension_numbers<[1], [0], [0], [1], [0, 0, 1, 1], [], []>} : vector<256x128xbf16>, vector<128x128xbf16>, vector<256x128xf32> -> vector<256x128xf32>
    %7 = arith.addf %0, %6 : vector<256x128xf32>
    %c0_8 = arith.constant 0 : index
    %c0_9 = arith.constant 0 : index
    %c1 = arith.constant 1 : index
    %c0_10 = arith.constant 0 : index
    %8 = vector.load %arg2[%c0_8, %c0_9, %c1, %c0_10] : memref<1x18x18x128xbf16, #tpu.memory_space<vmem>>, vector<1x16x16x128xbf16>
    %9 = vector.shape_cast %8 : vector<1x16x16x128xbf16> to vector<16x16x128xbf16>
    %10 = vector.shape_cast %9 : vector<16x16x128xbf16> to vector<256x128xbf16>
    %c0_11 = arith.constant 0 : index
    %c1_12 = arith.constant 1 : index
    %c0_13 = arith.constant 0 : index
    %c0_14 = arith.constant 0 : index
    %11 = vector.load %arg3[%c0_11, %c1_12, %c0_13, %c0_14] : memref<3x3x128x128xbf16, #tpu.memory_space<vmem>>, vector<1x1x128x128xbf16>
    %12 = vector.shape_cast %11 : vector<1x1x128x128xbf16> to vector<128x128xbf16>
    %cst_15 = arith.constant dense<0.000000e+00> : vector<256x128xf32>
    %13 = tpu.matmul %10, %12, %cst_15 {dimension_numbers = #tpu.dot_dimension_numbers<[1], [0], [0], [1], [0, 0, 1, 1], [], []>} : vector<256x128xbf16>, vector<128x128xbf16>, vector<256x128xf32> -> vector<256x128xf32>
    %14 = arith.addf %7, %13 : vector<256x128xf32>
    %c0_16 = arith.constant 0 : index
    %c0_17 = arith.constant 0 : index
    %c2 = arith.constant 2 : index
    %c0_18 = arith.constant 0 : index
    %15 = vector.load %arg2[%c0_16, %c0_17, %c2, %c0_18] : memref<1x18x18x128xbf16, #tpu.memory_space<vmem>>, vector<1x16x16x128xbf16>
    %16 = vector.shape_cast %15 : vector<1x16x16x128xbf16> to vector<16x16x128xbf16>
    %17 = vector.shape_cast %16 : vector<16x16x128xbf16> to vector<256x128xbf16>
    %c0_19 = arith.constant 0 : index
    %c2_20 = arith.constant 2 : index
    %c0_21 = arith.constant 0 : index
    %c0_22 = arith.constant 0 : index
    %18 = vector.load %arg3[%c0_19, %c2_20, %c0_21, %c0_22] : memref<3x3x128x128xbf16, #tpu.memory_space<vmem>>, vector<1x1x128x128xbf16>
    %19 = vector.shape_cast %18 : vector<1x1x128x128xbf16> to vector<128x128xbf16>
    %cst_23 = arith.constant dense<0.000000e+00> : vector<256x128xf32>
    %20 = tpu.matmul %17, %19, %cst_23 {dimension_numbers = #tpu.dot_dimension_numbers<[1], [0], [0], [1], [0, 0, 1, 1], [], []>} : vector<256x128xbf16>, vector<128x128xbf16>, vector<256x128xf32> -> vector<256x128xf32>
    %21 = arith.addf %14, %20 : vector<256x128xf32>
    %c0_24 = arith.constant 0 : index
    %c1_25 = arith.constant 1 : index
    %c0_26 = arith.constant 0 : index
    %c0_27 = arith.constant 0 : index
    %22 = vector.load %arg2[%c0_24, %c1_25, %c0_26, %c0_27] : memref<1x18x18x128xbf16, #tpu.memory_space<vmem>>, vector<1x16x16x128xbf16>
    %23 = vector.shape_cast %22 : vector<1x16x16x128xbf16> to vector<16x16x128xbf16>
    %24 = vector.shape_cast %23 : vector<16x16x128xbf16> to vector<256x128xbf16>
    %c1_28 = arith.constant 1 : index
    %c0_29 = arith.constant 0 : index
    %c0_30 = arith.constant 0 : index
    %c0_31 = arith.constant 0 : index
    %25 = vector.load %arg3[%c1_28, %c0_29, %c0_30, %c0_31] : memref<3x3x128x128xbf16, #tpu.memory_space<vmem>>, vector<1x1x128x128xbf16>
    %26 = vector.shape_cast %25 : vector<1x1x128x128xbf16> to vector<128x128xbf16>
    %cst_32 = arith.constant dense<0.000000e+00> : vector<256x128xf32>
    %27 = tpu.matmul %24, %26, %cst_32 {dimension_numbers = #tpu.dot_dimension_numbers<[1], [0], [0], [1], [0, 0, 1, 1], [], []>} : vector<256x128xbf16>, vector<128x128xbf16>, vector<256x128xf32> -> vector<256x128xf32>
    %28 = arith.addf %21, %27 : vector<256x128xf32>
    %c0_33 = arith.constant 0 : index
    %c1_34 = arith.constant 1 : index
    %c1_35 = arith.constant 1 : index
    %c0_36 = arith.constant 0 : index
    %29 = vector.load %arg2[%c0_33, %c1_34, %c1_35, %c0_36] : memref<1x18x18x128xbf16, #tpu.memory_space<vmem>>, vector<1x16x16x128xbf16>
    %30 = vector.shape_cast %29 : vector<1x16x16x128xbf16> to vector<16x16x128xbf16>
    %31 = vector.shape_cast %30 : vector<16x16x128xbf16> to vector<256x128xbf16>
    %c1_37 = arith.constant 1 : index
    %c1_38 = arith.constant 1 : index
    %c0_39 = arith.constant 0 : index
    %c0_40 = arith.constant 0 : index
    %32 = vector.load %arg3[%c1_37, %c1_38, %c0_39, %c0_40] : memref<3x3x128x128xbf16, #tpu.memory_space<vmem>>, vector<1x1x128x128xbf16>
    %33 = vector.shape_cast %32 : vector<1x1x128x128xbf16> to vector<128x128xbf16>
    %cst_41 = arith.constant dense<0.000000e+00> : vector<256x128xf32>
    %34 = tpu.matmul %31, %33, %cst_41 {dimension_numbers = #tpu.dot_dimension_numbers<[1], [0], [0], [1], [0, 0, 1, 1], [], []>} : vector<256x128xbf16>, vector<128x128xbf16>, vector<256x128xf32> -> vector<256x128xf32>
    %35 = arith.addf %28, %34 : vector<256x128xf32>
    %c0_42 = arith.constant 0 : index
    %c1_43 = arith.constant 1 : index
    %c2_44 = arith.constant 2 : index
    %c0_45 = arith.constant 0 : index
    %36 = vector.load %arg2[%c0_42, %c1_43, %c2_44, %c0_45] : memref<1x18x18x128xbf16, #tpu.memory_space<vmem>>, vector<1x16x16x128xbf16>
    %37 = vector.shape_cast %36 : vector<1x16x16x128xbf16> to vector<16x16x128xbf16>
    %38 = vector.shape_cast %37 : vector<16x16x128xbf16> to vector<256x128xbf16>
    %c1_46 = arith.constant 1 : index
    %c2_47 = arith.constant 2 : index
    %c0_48 = arith.constant 0 : index
    %c0_49 = arith.constant 0 : index
    %39 = vector.load %arg3[%c1_46, %c2_47, %c0_48, %c0_49] : memref<3x3x128x128xbf16, #tpu.memory_space<vmem>>, vector<1x1x128x128xbf16>
    %40 = vector.shape_cast %39 : vector<1x1x128x128xbf16> to vector<128x128xbf16>
    %cst_50 = arith.constant dense<0.000000e+00> : vector<256x128xf32>
    %41 = tpu.matmul %38, %40, %cst_50 {dimension_numbers = #tpu.dot_dimension_numbers<[1], [0], [0], [1], [0, 0, 1, 1], [], []>} : vector<256x128xbf16>, vector<128x128xbf16>, vector<256x128xf32> -> vector<256x128xf32>
    %42 = arith.addf %35, %41 : vector<256x128xf32>
    %c0_51 = arith.constant 0 : index
    %c2_52 = arith.constant 2 : index
    %c0_53 = arith.constant 0 : index
    %c0_54 = arith.constant 0 : index
    %43 = vector.load %arg2[%c0_51, %c2_52, %c0_53, %c0_54] : memref<1x18x18x128xbf16, #tpu.memory_space<vmem>>, vector<1x16x16x128xbf16>
    %44 = vector.shape_cast %43 : vector<1x16x16x128xbf16> to vector<16x16x128xbf16>
    %45 = vector.shape_cast %44 : vector<16x16x128xbf16> to vector<256x128xbf16>
    %c2_55 = arith.constant 2 : index
    %c0_56 = arith.constant 0 : index
    %c0_57 = arith.constant 0 : index
    %c0_58 = arith.constant 0 : index
    %46 = vector.load %arg3[%c2_55, %c0_56, %c0_57, %c0_58] : memref<3x3x128x128xbf16, #tpu.memory_space<vmem>>, vector<1x1x128x128xbf16>
    %47 = vector.shape_cast %46 : vector<1x1x128x128xbf16> to vector<128x128xbf16>
    %cst_59 = arith.constant dense<0.000000e+00> : vector<256x128xf32>
    %48 = tpu.matmul %45, %47, %cst_59 {dimension_numbers = #tpu.dot_dimension_numbers<[1], [0], [0], [1], [0, 0, 1, 1], [], []>} : vector<256x128xbf16>, vector<128x128xbf16>, vector<256x128xf32> -> vector<256x128xf32>
    %49 = arith.addf %42, %48 : vector<256x128xf32>
    %c0_60 = arith.constant 0 : index
    %c2_61 = arith.constant 2 : index
    %c1_62 = arith.constant 1 : index
    %c0_63 = arith.constant 0 : index
    %50 = vector.load %arg2[%c0_60, %c2_61, %c1_62, %c0_63] : memref<1x18x18x128xbf16, #tpu.memory_space<vmem>>, vector<1x16x16x128xbf16>
    %51 = vector.shape_cast %50 : vector<1x16x16x128xbf16> to vector<16x16x128xbf16>
    %52 = vector.shape_cast %51 : vector<16x16x128xbf16> to vector<256x128xbf16>
    %c2_64 = arith.constant 2 : index
    %c1_65 = arith.constant 1 : index
    %c0_66 = arith.constant 0 : index
    %c0_67 = arith.constant 0 : index
    %53 = vector.load %arg3[%c2_64, %c1_65, %c0_66, %c0_67] : memref<3x3x128x128xbf16, #tpu.memory_space<vmem>>, vector<1x1x128x128xbf16>
    %54 = vector.shape_cast %53 : vector<1x1x128x128xbf16> to vector<128x128xbf16>
    %cst_68 = arith.constant dense<0.000000e+00> : vector<256x128xf32>
    %55 = tpu.matmul %52, %54, %cst_68 {dimension_numbers = #tpu.dot_dimension_numbers<[1], [0], [0], [1], [0, 0, 1, 1], [], []>} : vector<256x128xbf16>, vector<128x128xbf16>, vector<256x128xf32> -> vector<256x128xf32>
    %56 = arith.addf %49, %55 : vector<256x128xf32>
    %c0_69 = arith.constant 0 : index
    %c2_70 = arith.constant 2 : index
    %c2_71 = arith.constant 2 : index
    %c0_72 = arith.constant 0 : index
    %57 = vector.load %arg2[%c0_69, %c2_70, %c2_71, %c0_72] : memref<1x18x18x128xbf16, #tpu.memory_space<vmem>>, vector<1x16x16x128xbf16>
    %58 = vector.shape_cast %57 : vector<1x16x16x128xbf16> to vector<16x16x128xbf16>
    %59 = vector.shape_cast %58 : vector<16x16x128xbf16> to vector<256x128xbf16>
    %c2_73 = arith.constant 2 : index
    %c2_74 = arith.constant 2 : index
    %c0_75 = arith.constant 0 : index
    %c0_76 = arith.constant 0 : index
    %60 = vector.load %arg3[%c2_73, %c2_74, %c0_75, %c0_76] : memref<3x3x128x128xbf16, #tpu.memory_space<vmem>>, vector<1x1x128x128xbf16>
    %61 = vector.shape_cast %60 : vector<1x1x128x128xbf16> to vector<128x128xbf16>
    %cst_77 = arith.constant dense<0.000000e+00> : vector<256x128xf32>
    %62 = tpu.matmul %59, %61, %cst_77 {dimension_numbers = #tpu.dot_dimension_numbers<[1], [0], [0], [1], [0, 0, 1, 1], [], []>} : vector<256x128xbf16>, vector<128x128xbf16>, vector<256x128xf32> -> vector<256x128xf32>
    %63 = arith.addf %56, %62 : vector<256x128xf32>
    %c0_78 = arith.constant 0 : index
    %c0_79 = arith.constant 0 : index
    %64 = vector.load %arg4[%c0_78, %c0_79] : memref<1x128xf32, #tpu.memory_space<vmem>>, vector<1x128xf32>
    %65 = vector.broadcast %64 : vector<1x128xf32> to vector<256x128xf32>
    %66 = arith.addf %63, %65 : vector<256x128xf32>
    %cst_80 = arith.constant 0.000000e+00 : f32
    %67 = vector.broadcast %cst_80 : f32 to vector<256x128xf32>
    %68 = arith.maximumf %66, %67 : vector<256x128xf32>
    %69 = vector.shape_cast %68 : vector<256x128xf32> to vector<1x16x16x128xf32>
    %70 = arith.truncf %69 : vector<1x16x16x128xf32> to vector<1x16x16x128xbf16>
    %c0_81 = arith.constant 0 : index
    %c0_82 = arith.constant 0 : index
    %c0_83 = arith.constant 0 : index
    %c0_84 = arith.constant 0 : index
    %71 = vector.load %arg5[%c0_81, %c0_82, %c0_83, %c0_84] : memref<1x16x16x128xbf16, #tpu.memory_space<vmem>>, vector<1x16x16x128xbf16>
    tpu.vector_store %arg5[%c0_81, %c0_82, %c0_83, %c0_84], %70 {strides = array<i32>} : memref<1x16x16x128xbf16, #tpu.memory_space<vmem>>, vector<1x16x16x128xbf16>,
    return
  }
  func.func @transform_0(%arg0: i32, %arg1: i32) -> (i32, i32, i32, i32) {
    %c0_i32 = arith.constant 0 : i32
    %c0_i32_0 = arith.constant 0 : i32
    %c0_i32_1 = arith.constant 0 : i32
    %c0_i32_2 = arith.constant 0 : i32
    return %arg0, %c0_i32, %c0_i32_0, %c0_i32_1 : i32, i32, i32, i32
  }
  func.func @transform_1(%arg0: i32, %arg1: i32) -> (i32, i32, i32, i32) {
    %c0_i32 = arith.constant 0 : i32
    %c0_i32_0 = arith.constant 0 : i32
    %c0_i32_1 = arith.constant 0 : i32
    %c0_i32_2 = arith.constant 0 : i32
    return %c0_i32, %c0_i32_0, %c0_i32_1, %arg1 : i32, i32, i32, i32
  }
  func.func @transform_2(%arg0: i32, %arg1: i32) -> (i32, i32) {
    %c0_i32 = arith.constant 0 : i32
    %c0_i32_0 = arith.constant 0 : i32
    return %c0_i32, %arg1 : i32, i32
  }
  func.func @transform_3(%arg0: i32, %arg1: i32) -> (i32, i32, i32, i32) {
    %c0_i32 = arith.constant 0 : i32
    %c0_i32_0 = arith.constant 0 : i32
    %c0_i32_1 = arith.constant 0 : i32
    return %arg0, %c0_i32, %c0_i32_0, %arg1 : i32, i32, i32, i32
  }
}

module attributes {stable_mosaic.version = 11 : i64} {
  func.func @_dual_mm_bias_relu_kernel(%arg0: i32, %arg1: i32, %arg2: i32, %arg3: memref<512x128xbf16, #tpu.memory_space<vmem>>, %arg4: memref<128x128xbf16, #tpu.memory_space<vmem>>, %arg5: memref<512x128xbf16, #tpu.memory_space<vmem>>, %arg6: memref<128x128xbf16, #tpu.memory_space<vmem>>, %arg7: memref<1x128xf32, #tpu.memory_space<vmem>>, %arg8: memref<512x128xf32, #tpu.memory_space<vmem>>, %arg9: memref<512x128xf32, #tpu.memory_space<vmem>>) attributes {dimension_semantics = [#tpu.dimension_semantics<parallel>, #tpu.dimension_semantics<parallel>, #tpu.dimension_semantics<arbitrary>], iteration_bounds = array<i64: 1, 1, 2>, scalar_prefetch = 0 : i64, scratch_operands = 1 : i64, tpu.core_type = #tpu.core_type<tc>, window_params = [{transform_indices = @transform_0, window_bounds = array<i64: 512, 128>}, {transform_indices = @transform_1, window_bounds = array<i64: 128, 128>}, {transform_indices = @transform_2, window_bounds = array<i64: 512, 128>}, {transform_indices = @transform_3, window_bounds = array<i64: 128, 128>}, {transform_indices = @transform_4, window_bounds = array<i64: 1, 128>}, {transform_indices = @transform_5, window_bounds = array<i64: 512, 128>}]} {
    %c0_i32 = arith.constant 0 : i32
    %0 = arith.cmpi eq, %arg2, %c0_i32 : i32
    %1 = arith.extui %0 : i1 to i32
    %c0_i32_0 = arith.constant 0 : i32
    %2 = arith.cmpi ne, %1, %c0_i32_0 : i32
    scf.if %2 {
      %cst = arith.constant 0.000000e+00 : f32
      %12 = vector.broadcast %cst : f32 to vector<512x128xf32>
      %c0 = arith.constant 0 : index
      %c0_6 = arith.constant 0 : index
      %13 = vector.load %arg9[%c0, %c0_6] : memref<512x128xf32, #tpu.memory_space<vmem>>, vector<512x128xf32>
      tpu.vector_store %arg9[%c0, %c0_6], %12 {strides = array<i32>} : memref<512x128xf32, #tpu.memory_space<vmem>>, vector<512x128xf32>,
    } else {
    }
    %c1_i32 = arith.constant 1 : i32
    %3 = arith.cmpi slt, %arg2, %c1_i32 : i32
    %4 = arith.extui %3 : i1 to i32
    %c0_i32_1 = arith.constant 0 : i32
    %5 = arith.cmpi ne, %4, %c0_i32_1 : i32
    scf.if %5 {
      %c0 = arith.constant 0 : index
      %c0_6 = arith.constant 0 : index
      %12 = vector.load %arg9[%c0, %c0_6] : memref<512x128xf32, #tpu.memory_space<vmem>>, vector<512x128xf32>
      %c0_7 = arith.constant 0 : index
      %c0_8 = arith.constant 0 : index
      %13 = vector.load %arg3[%c0_7, %c0_8] : memref<512x128xbf16, #tpu.memory_space<vmem>>, vector<512x128xbf16>
      %c0_9 = arith.constant 0 : index
      %c0_10 = arith.constant 0 : index
      %14 = vector.load %arg4[%c0_9, %c0_10] : memref<128x128xbf16, #tpu.memory_space<vmem>>, vector<128x128xbf16>
      %cst = arith.constant dense<0.000000e+00> : vector<512x128xf32>
      %15 = tpu.matmul %13, %14, %cst {dimension_numbers = #tpu.dot_dimension_numbers<[1], [0], [0], [1], [0, 0, 1, 1], [], []>} : vector<512x128xbf16>, vector<128x128xbf16>, vector<512x128xf32> -> vector<512x128xf32>
      %16 = arith.addf %12, %15 : vector<512x128xf32>
      %c0_11 = arith.constant 0 : index
      %c0_12 = arith.constant 0 : index
      %17 = vector.load %arg9[%c0_11, %c0_12] : memref<512x128xf32, #tpu.memory_space<vmem>>, vector<512x128xf32>
      tpu.vector_store %arg9[%c0_11, %c0_12], %16 {strides = array<i32>} : memref<512x128xf32, #tpu.memory_space<vmem>>, vector<512x128xf32>,
    } else {
    }
    %c1_i32_2 = arith.constant 1 : i32
    %6 = arith.cmpi sge, %arg2, %c1_i32_2 : i32
    %7 = arith.extui %6 : i1 to i32
    %c0_i32_3 = arith.constant 0 : i32
    %8 = arith.cmpi ne, %7, %c0_i32_3 : i32
    scf.if %8 {
      %c0 = arith.constant 0 : index
      %c0_6 = arith.constant 0 : index
      %12 = vector.load %arg9[%c0, %c0_6] : memref<512x128xf32, #tpu.memory_space<vmem>>, vector<512x128xf32>
      %c0_7 = arith.constant 0 : index
      %c0_8 = arith.constant 0 : index
      %13 = vector.load %arg5[%c0_7, %c0_8] : memref<512x128xbf16, #tpu.memory_space<vmem>>, vector<512x128xbf16>
      %c0_9 = arith.constant 0 : index
      %c0_10 = arith.constant 0 : index
      %14 = vector.load %arg6[%c0_9, %c0_10] : memref<128x128xbf16, #tpu.memory_space<vmem>>, vector<128x128xbf16>
      %cst = arith.constant dense<0.000000e+00> : vector<512x128xf32>
      %15 = tpu.matmul %13, %14, %cst {dimension_numbers = #tpu.dot_dimension_numbers<[1], [0], [0], [1], [0, 0, 1, 1], [], []>} : vector<512x128xbf16>, vector<128x128xbf16>, vector<512x128xf32> -> vector<512x128xf32>
      %16 = arith.addf %12, %15 : vector<512x128xf32>
      %c0_11 = arith.constant 0 : index
      %c0_12 = arith.constant 0 : index
      %17 = vector.load %arg9[%c0_11, %c0_12] : memref<512x128xf32, #tpu.memory_space<vmem>>, vector<512x128xf32>
      tpu.vector_store %arg9[%c0_11, %c0_12], %16 {strides = array<i32>} : memref<512x128xf32, #tpu.memory_space<vmem>>, vector<512x128xf32>,
    } else {
    }
    %c1_i32_4 = arith.constant 1 : i32
    %9 = arith.cmpi eq, %arg2, %c1_i32_4 : i32
    %10 = arith.extui %9 : i1 to i32
    %c0_i32_5 = arith.constant 0 : i32
    %11 = arith.cmpi ne, %10, %c0_i32_5 : i32
    scf.if %11 {
      %c0 = arith.constant 0 : index
      %c0_6 = arith.constant 0 : index
      %12 = vector.load %arg9[%c0, %c0_6] : memref<512x128xf32, #tpu.memory_space<vmem>>, vector<512x128xf32>
      %c0_7 = arith.constant 0 : index
      %c0_8 = arith.constant 0 : index
      %13 = vector.load %arg7[%c0_7, %c0_8] : memref<1x128xf32, #tpu.memory_space<vmem>>, vector<1x128xf32>
      %14 = vector.broadcast %13 : vector<1x128xf32> to vector<512x128xf32>
      %15 = arith.addf %12, %14 : vector<512x128xf32>
      %cst = arith.constant 0.000000e+00 : f32
      %16 = vector.broadcast %cst : f32 to vector<512x128xf32>
      %17 = arith.maximumf %15, %16 : vector<512x128xf32>
      %c0_9 = arith.constant 0 : index
      %c0_10 = arith.constant 0 : index
      %18 = vector.load %arg8[%c0_9, %c0_10] : memref<512x128xf32, #tpu.memory_space<vmem>>, vector<512x128xf32>
      tpu.vector_store %arg8[%c0_9, %c0_10], %17 {strides = array<i32>} : memref<512x128xf32, #tpu.memory_space<vmem>>, vector<512x128xf32>,
    } else {
    }
    return
  }
  func.func @transform_0(%arg0: i32, %arg1: i32, %arg2: i32) -> (i32, i32) {
    %c0_i32 = arith.constant 0 : i32
    %0 = arith.minsi %arg2, %c0_i32 : i32
    %c0_i32_0 = arith.constant 0 : i32
    return %arg0, %0 : i32, i32
  }
  func.func @transform_1(%arg0: i32, %arg1: i32, %arg2: i32) -> (i32, i32) {
    %c0_i32 = arith.constant 0 : i32
    %0 = arith.minsi %arg2, %c0_i32 : i32
    %c0_i32_0 = arith.constant 0 : i32
    return %0, %arg1 : i32, i32
  }
  func.func @transform_2(%arg0: i32, %arg1: i32, %arg2: i32) -> (i32, i32) {
    %c1_i32 = arith.constant 1 : i32
    %0 = arith.subi %arg2, %c1_i32 : i32
    %c0_i32 = arith.constant 0 : i32
    %1 = arith.maxsi %0, %c0_i32 : i32
    %c0_i32_0 = arith.constant 0 : i32
    return %arg0, %1 : i32, i32
  }
  func.func @transform_3(%arg0: i32, %arg1: i32, %arg2: i32) -> (i32, i32) {
    %c1_i32 = arith.constant 1 : i32
    %0 = arith.subi %arg2, %c1_i32 : i32
    %c0_i32 = arith.constant 0 : i32
    %1 = arith.maxsi %0, %c0_i32 : i32
    %c0_i32_0 = arith.constant 0 : i32
    return %1, %arg1 : i32, i32
  }
  func.func @transform_4(%arg0: i32, %arg1: i32, %arg2: i32) -> (i32, i32) {
    %c0_i32 = arith.constant 0 : i32
    %c0_i32_0 = arith.constant 0 : i32
    return %c0_i32, %arg1 : i32, i32
  }
  func.func @transform_5(%arg0: i32, %arg1: i32, %arg2: i32) -> (i32, i32) {
    %c0_i32 = arith.constant 0 : i32
    return %arg0, %arg1 : i32, i32
  }
}

</mosaic_0001>

<bundles_post_ra>
// kernel: _bottleneck_forward.3
= control target key start
LH: loop header
LB: loop body
LE: loop exit
PB: predicated region body
PF: predicated region fallthrough
CT: control target
= control target key end

     0   :  { %s2251_s1 = inlined_call_operand.vmem [shape: bf16[128,128], index: 1, kind: input, shape index: {}]   ;;  %s2252_s0 = inlined_call_operand.vmem [shape: bf16[512,128], index: 0, kind: input, shape index: {}]   ;;  %s2253_s2 = inlined_call_operand.vmem [shape: f32[1,128], index: 2, kind: input, shape index: {}]   ;;  %s2254_s3 = inlined_call_operand.vmem [shape: bf16[512,128], index: 3, kind: output, shape index: {}]  }
   0x1   :  { %v1906_v0 = vld [vmem:[%s2251_s1 + $0x38] sm:$0xff]   ;;  %v1907_v1 = vld [vmem:[%s2251_s1 + $0x30] sm:$0xff]   ;;  %v1908_v2 = vld [vmem:[%s2251_s1 + $0x28] sm:$0xff]  }
   0x2   :  { %1810 = vmatprep.subr.bf16.mxu0 %v1906_v0  ;;  %1890 = vmatprep.subr.bf16.mxu1 %v1906_v0  ;;  %v1909_v3 = vld [vmem:[%s2251_s1 + $0x20] sm:$0xff]   ;;  %v1910_v6 = vld [vmem:[%s2251_s1 + $0x18] sm:$0xff]   ;;  %v1911_v7 = vld [vmem:[%s2251_s1 + $0x10] sm:$0xff]  }
   0x3   :  { %1811 = vmatpush3.bf16.msra.mxu0 %v1906_v0  ;;  %1898 = vmatpush3.bf16.msra.mxu1 %v1906_v0  ;;  %v1914_v4 = vld [vmem:[%s2252_s0] sm:$0xff]   ;;  %v1912_v8 = vld [vmem:[%s2251_s1 + $0x8] sm:$0xff]   ;;  %v1918_v12 = vld [vmem:[%s2252_s0 + $0x10] sm:$0xff]  }
   0x4   :  { %1812 = vmatprep.subr.bf16.mxu0 %v1907_v1  ;;  %1891 = vmatprep.subr.bf16.mxu1 %v1907_v1  ;;  %v1915_v5 = vld [vmem:[%s2252_s0 + $0x80] sm:$0xff]   ;;  %v1916_v10 = vld [vmem:[%s2252_s0 + $0x8] sm:$0xff]   ;;  %v1919_v13 = vld [vmem:[%s2252_s0 + $0x90] sm:$0xff]  }
   0x5   :  { %1826 = vmatprep.mubr.bf16.mxu0 %v1914_v4  ;;  %1858 = vmatprep.mubr.bf16.mxu1 %v1915_v5  ;;  %v1913_v9 = vld [vmem:[%s2251_s1] sm:$0xff]   ;;  %v1917_v11 = vld [vmem:[%s2252_s0 + $0x88] sm:$0xff]   ;;  %v1920_v14 = vld [vmem:[%s2252_s0 + $0x18] sm:$0xff]  }
   0x6   :  { %v1921_v15 = vld [vmem:[%s2252_s0 + $0x98] sm:$0xff]   ;;  %v1922_v16 = vld [vmem:[%s2252_s0 + $0x20] sm:$0xff]   ;;  %v1924_v18 = vld [vmem:[%s2252_s0 + $0x28] sm:$0xff]  }
   0x7   :  { %1813 = vmatpush3.bf16.msra.mxu0 %v1907_v1  ;;  %1899 = vmatpush3.bf16.msra.mxu1 %v1907_v1  ;;  %v1923_v17 = vld [vmem:[%s2252_s0 + $0xa0] sm:$0xff]   ;;  %v1925_v19 = vld [vmem:[%s2252_s0 + $0xa8] sm:$0xff]   ;;  %v1926_v20 = vld [vmem:[%s2252_s0 + $0x30] sm:$0xff]  }
   0x8   :  { %1814 = vmatprep.subr.bf16.mxu0 %v1908_v2  ;;  %1892 = vmatprep.subr.bf16.mxu1 %v1908_v2  ;;  %v1927_v21 = vld [vmem:[%s2252_s0 + $0xb0] sm:$0xff]   ;;  %v1928_v22 = vld [vmem:[%s2252_s0 + $0x38] sm:$0xff]   ;;  %v1930_v24 = vld [vmem:[%s2252_s0 + $0x40] sm:$0xff]  }
   0x9   :  { %v1929_v23 = vld [vmem:[%s2252_s0 + $0xb8] sm:$0xff]   ;;  %v1931_v25 = vld [vmem:[%s2252_s0 + $0xc0] sm:$0xff]   ;;  %v1932_v26 = vld [vmem:[%s2252_s0 + $0x48] sm:$0xff]  }
   0xa   :  { %v1933_v27 = vld [vmem:[%s2252_s0 + $0xc8] sm:$0xff]   ;;  %v1934_v28 = vld [vmem:[%s2252_s0 + $0x50] sm:$0xff]   ;;  %v1936_v30 = vld [vmem:[%s2252_s0 + $0x58] sm:$0xff]  }
   0xb   :  { %1815 = vmatpush3.bf16.msra.mxu0 %v1908_v2  ;;  %1900 = vmatpush3.bf16.msra.mxu1 %v1908_v2  ;;  %v1935_v29 = vld [vmem:[%s2252_s0 + $0xd0] sm:$0xff]   ;;  %v1937_v31 = vld [vmem:[%s2252_s0 + $0xd8] sm:$0xff]   ;;  %v1938_v32 = vld [vmem:[%s2252_s0 + $0x60] sm:$0xff]  }
   0xc   :  { %1816 = vmatprep.subr.bf16.mxu0 %v1909_v3  ;;  %1893 = vmatprep.subr.bf16.mxu1 %v1909_v3  ;;  %v1939_v33 = vld [vmem:[%s2252_s0 + $0xe0] sm:$0xff]   ;;  %v1940_v34 = vld [vmem:[%s2252_s0 + $0x68] sm:$0xff]   ;;  %v1942_v36 = vld [vmem:[%s2252_s0 + $0x70] sm:$0xff]  }
   0xd   :  { %v1941_v35 = vld [vmem:[%s2252_s0 + $0xe8] sm:$0xff]   ;;  %v1943_v37 = vld [vmem:[%s2252_s0 + $0xf0] sm:$0xff]   ;;  %v1944_v38 = vld [vmem:[%s2252_s0 + $0x78] sm:$0xff]  }
   0xe   :  { %v1945_v39 = vld [vmem:[%s2252_s0 + $0xf8] sm:$0xff]   ;;  %v2089_v40 = vld [vmem:[%s2253_s2] ss:$0 sm:$0xff] }
   0xf   :  { %1817 = vmatpush3.bf16.msra.mxu0 %v1909_v3  ;;  %1901 = vmatpush3.bf16.msra.mxu1 %v1909_v3 }
  0x10   :  { %1818 = vmatprep.subr.bf16.mxu0 %v1910_v6  ;;  %1894 = vmatprep.subr.bf16.mxu1 %v1910_v6 }
  0x13   :  { %1819 = vmatpush3.bf16.msra.mxu0 %v1910_v6  ;;  %1902 = vmatpush3.bf16.msra.mxu1 %v1910_v6 }
  0x14   :  { %1820 = vmatprep.subr.bf16.mxu0 %v1911_v7  ;;  %1895 = vmatprep.subr.bf16.mxu1 %v1911_v7 }
  0x17   :  { %1821 = vmatpush3.bf16.msra.mxu0 %v1911_v7  ;;  %1903 = vmatpush3.bf16.msra.mxu1 %v1911_v7 }
  0x18   :  { %1822 = vmatprep.subr.bf16.mxu0 %v1912_v8  ;;  %1896 = vmatprep.subr.bf16.mxu1 %v1912_v8 }
  0x1b   :  { %1823 = vmatpush3.bf16.msra.mxu0 %v1912_v8  ;;  %1904 = vmatpush3.bf16.msra.mxu1 %v1912_v8 }
  0x1c   :  { %1824 = vmatprep.subr.bf16.mxu0 %v1913_v9  ;;  %1897 = vmatprep.subr.bf16.mxu1 %v1913_v9 }
  0x1f   :  { %1825 = vmatpush3.bf16.msra.mxu0 %v1913_v9  ;;  %1905 = vmatpush3.bf16.msra.mxu1 %v1913_v9 }
  0x22   :  { %1827 = vmatmul.mubr.bf16.vlgmr.msra.gmra.mxu0 %v1916_v10  ;;  %1859 = vmatmul.mubr.bf16.vlgmr.msra.gmra.mxu1 %v1917_v11 }
  0x23   :  { %1830 = vmatprep.mubr.bf16.mxu0 %v1918_v12  ;;  %1862 = vmatprep.mubr.bf16.mxu1 %v1919_v13 }
  0x2a   :  { %1831 = vmatmul.mubr.bf16.gmra.mxu0 %v1920_v14  ;;  %1863 = vmatmul.mubr.bf16.gmra.mxu1 %v1921_v15 }
  0x2b   :  { %1834 = vmatprep.mubr.bf16.mxu0 %v1922_v16  ;;  %1866 = vmatprep.mubr.bf16.mxu1 %v1923_v17 }
  0x32   :  { %1835 = vmatmul.mubr.bf16.gmra.mxu0 %v1924_v18  ;;  %1867 = vmatmul.mubr.bf16.gmra.mxu1 %v1925_v19 }
  0x33   :  { %1838 = vmatprep.mubr.bf16.mxu0 %v1926_v20  ;;  %1870 = vmatprep.mubr.bf16.mxu1 %v1927_v21 }
  0x3a   :  { %1839 = vmatmul.mubr.bf16.gmra.mxu0 %v1928_v22  ;;  %1871 = vmatmul.mubr.bf16.gmra.mxu1 %v1929_v23 }
  0x3b   :  { %1842 = vmatprep.mubr.bf16.mxu0 %v1930_v24  ;;  %1874 = vmatprep.mubr.bf16.mxu1 %v1931_v25 }
  0x42   :  { %1843 = vmatmul.mubr.bf16.gmra.mxu0 %v1932_v26  ;;  %1875 = vmatmul.mubr.bf16.gmra.mxu1 %v1933_v27 }
  0x43   :  { %1846 = vmatprep.mubr.bf16.mxu0 %v1934_v28  ;;  %1878 = vmatprep.mubr.bf16.mxu1 %v1935_v29 }
  0x4a   :  { %1847 = vmatmul.mubr.bf16.gmra.mxu0 %v1936_v30  ;;  %1879 = vmatmul.mubr.bf16.gmra.mxu1 %v1937_v31 }
  0x4b   :  { %1850 = vmatprep.mubr.bf16.mxu0 %v1938_v32  ;;  %1882 = vmatprep.mubr.bf16.mxu1 %v1939_v33 }
  0x52   :  { %1851 = vmatmul.mubr.bf16.gmra.mxu0 %v1940_v34  ;;  %1883 = vmatmul.mubr.bf16.gmra.mxu1 %v1941_v35 }
  0x53   :  { %1854 = vmatprep.mubr.bf16.mxu0 %v1942_v36  ;;  %1886 = vmatprep.mubr.bf16.mxu1 %v1943_v37 }
  0x5a   :  { %1855 = vmatmul.mubr.bf16.gmra.mxu0 %v1944_v38  ;;  %1887 = vmatmul.mubr.bf16.gmra.mxu1 %v1945_v39 }
  0xe2   :  { %v1828_v41 = vpop.f32.mrf.mxu0  ;;  %v1860_v42 = vpop.f32.mrf.mxu1 }
  0xe3   :  { %v960_v43 = vadd.f32 %v1828_v41, %v2089_v40  ;;  %v992_v44 = vadd.f32 %v1860_v42, %v2089_v40 }
  0xe4   :  { %v501_v45 = vpop.f32.mrf.mxu0  ;;  %v629_v46 = vpop.f32.mrf.mxu1 }
  0xe5   :  { %v958_v47 = vadd.f32 %v2089_v40, %v501_v45  ;;  %v990_v48 = vadd.f32 %v2089_v40, %v629_v46  ;;  %v1024_v53 = vmax.f32 %v960_v43, 0.0  ;;  %v1056_v54 = vmax.f32 %v992_v44, 0.0 }
  0xe6   :  { %v1829_v49 = vpop.f32.mrf.mxu0  ;;  %v1861_v50 = vpop.f32.mrf.mxu1 }
  0xe7   :  { %v961_v51 = vadd.f32 %v1829_v49, %v2089_v40  ;;  %v993_v52 = vadd.f32 %v1861_v50, %v2089_v40  ;;  %v1022_v61 = vmax.f32 %v958_v47, 0.0  ;;  %v1054_v62 = vmax.f32 %v990_v48, 0.0 }
  0xe8   :  { %v504_v55 = vpop.f32.mrf.mxu0  ;;  %v632_v56 = vpop.f32.mrf.mxu1 }
  0xe9   :  { %v1025_v57 = vmax.f32 %v961_v51, 0.0  ;;  %v1057_v58 = vmax.f32 %v993_v52, 0.0  ;;  %v959_v59 = vadd.f32 %v2089_v40, %v504_v55  ;;  %v991_v60 = vadd.f32 %v2089_v40, %v632_v56 }
  0xea   :  { %v1832_v63 = vpop.f32.mrf.mxu0  ;;  %v1864_v0 = vpop.f32.mrf.mxu1 }
  0xeb   :  { %v1587_v1 = vpack.c.bf16 %v1025_v57, %v1024_v53  ;;  %v1667_v2 = vpack.c.bf16 %v1057_v58, %v1056_v54  ;;  %v1023_v3 = vmax.f32 %v959_v59, 0.0  ;;  %v1055_v4 = vmax.f32 %v991_v60, 0.0 }
  0xec   :  { %v964_v5 = vadd.f32 %v1832_v63, %v2089_v40  ;;  %v996_v6 = vadd.f32 %v1864_v0, %v2089_v40  ;;  %v517_v7 = vpop.f32.mrf.mxu0  ;;  %v645_v8 = vpop.f32.mrf.mxu1 }
  0xed   :  { %1739 = vst [vmem:[%s2254_s3 + $0x8] sm:$0xff] %v1587_v1   ;;  %1755 = vst [vmem:[%s2254_s3 + $0x88] sm:$0xff] %v1667_v2   ;;  %v1582_v9 = vpack.c.bf16 %v1023_v3, %v1022_v61  ;;  %v1662_v10 = vpack.c.bf16 %v1055_v4, %v1054_v62  ;;  %v962_v11 = vadd.f32 %v2089_v40, %v517_v7 }
  0xee   :  { %v994_v12 = vadd.f32 %v2089_v40, %v645_v8  ;;  %v1833_v13 = vpop.f32.mrf.mxu0  ;;  %v1865_v14 = vpop.f32.mrf.mxu1  ;;  %v1028_v17 = vmax.f32 %v964_v5, 0.0  ;;  %v1060_v18 = vmax.f32 %v996_v6, 0.0 }
  0xef   :  { %1583 = vst [vmem:[%s2254_s3] sm:$0xff] %v1582_v9   ;;  %1754 = vst [vmem:[%s2254_s3 + $0x80] sm:$0xff] %v1662_v10   ;;  %v965_v15 = vadd.f32 %v1833_v13, %v2089_v40  ;;  %v997_v16 = vadd.f32 %v1865_v14, %v2089_v40  ;;  %v1026_v25 = vmax.f32 %v962_v11, 0.0 }
  0xf0   :  { %v520_v19 = vpop.f32.mrf.mxu0  ;;  %v648_v20 = vpop.f32.mrf.mxu1  ;;  %v1058_v26 = vmax.f32 %v994_v12, 0.0 }
  0xf1   :  { %v1029_v21 = vmax.f32 %v965_v15, 0.0  ;;  %v1061_v22 = vmax.f32 %v997_v16, 0.0  ;;  %v963_v23 = vadd.f32 %v2089_v40, %v520_v19  ;;  %v995_v24 = vadd.f32 %v2089_v40, %v648_v20 }
  0xf2   :  { %v1836_v27 = vpop.f32.mrf.mxu0  ;;  %v1868_v28 = vpop.f32.mrf.mxu1 }
  0xf3   :  { %v1597_v29 = vpack.c.bf16 %v1029_v21, %v1028_v17  ;;  %v1677_v30 = vpack.c.bf16 %v1061_v22, %v1060_v18  ;;  %v1027_v31 = vmax.f32 %v963_v23, 0.0  ;;  %v1059_v32 = vmax.f32 %v995_v24, 0.0 }
  0xf4   :  { %v968_v33 = vadd.f32 %v1836_v27, %v2089_v40  ;;  %v1000_v34 = vadd.f32 %v1868_v28, %v2089_v40  ;;  %v533_v35 = vpop.f32.mrf.mxu0  ;;  %v661_v36 = vpop.f32.mrf.mxu1 }
  0xf5   :  { %1741 = vst [vmem:[%s2254_s3 + $0x18] sm:$0xff] %v1597_v29   ;;  %1757 = vst [vmem:[%s2254_s3 + $0x98] sm:$0xff] %v1677_v30   ;;  %v1592_v37 = vpack.c.bf16 %v1027_v31, %v1026_v25  ;;  %v1672_v38 = vpack.c.bf16 %v1059_v32, %v1058_v26  ;;  %v966_v39 = vadd.f32 %v2089_v40, %v533_v35 }
  0xf6   :  { %v998_v41 = vadd.f32 %v2089_v40, %v661_v36  ;;  %v1837_v42 = vpop.f32.mrf.mxu0  ;;  %v1869_v43 = vpop.f32.mrf.mxu1  ;;  %v1032_v46 = vmax.f32 %v968_v33, 0.0  ;;  %v1064_v47 = vmax.f32 %v1000_v34, 0.0 }
  0xf7   :  { %1740 = vst [vmem:[%s2254_s3 + $0x10] sm:$0xff] %v1592_v37   ;;  %1756 = vst [vmem:[%s2254_s3 + $0x90] sm:$0xff] %v1672_v38   ;;  %v969_v44 = vadd.f32 %v1837_v42, %v2089_v40  ;;  %v1001_v45 = vadd.f32 %v1869_v43, %v2089_v40  ;;  %v1030_v54 = vmax.f32 %v966_v39, 0.0 }
  0xf8   :  { %v536_v48 = vpop.f32.mrf.mxu0  ;;  %v664_v49 = vpop.f32.mrf.mxu1  ;;  %v1062_v55 = vmax.f32 %v998_v41, 0.0 }
  0xf9   :  { %v1033_v50 = vmax.f32 %v969_v44, 0.0  ;;  %v1065_v51 = vmax.f32 %v1001_v45, 0.0  ;;  %v967_v52 = vadd.f32 %v2089_v40, %v536_v48  ;;  %v999_v53 = vadd.f32 %v2089_v40, %v664_v49 }
  0xfa   :  { %v1840_v56 = vpop.f32.mrf.mxu0  ;;  %v1872_v57 = vpop.f32.mrf.mxu1 }
  0xfb   :  { %v1607_v58 = vpack.c.bf16 %v1033_v50, %v1032_v46  ;;  %v1687_v59 = vpack.c.bf16 %v1065_v51, %v1064_v47  ;;  %v1031_v60 = vmax.f32 %v967_v52, 0.0  ;;  %v1063_v61 = vmax.f32 %v999_v53, 0.0 }
  0xfc   :  { %v972_v62 = vadd.f32 %v1840_v56, %v2089_v40  ;;  %v1004_v63 = vadd.f32 %v1872_v57, %v2089_v40  ;;  %v549_v0 = vpop.f32.mrf.mxu0  ;;  %v677_v1 = vpop.f32.mrf.mxu1 }
  0xfd   :  { %1743 = vst [vmem:[%s2254_s3 + $0x28] sm:$0xff] %v1607_v58   ;;  %1759 = vst [vmem:[%s2254_s3 + $0xa8] sm:$0xff] %v1687_v59   ;;  %v1602_v2 = vpack.c.bf16 %v1031_v60, %v1030_v54  ;;  %v1682_v3 = vpack.c.bf16 %v1063_v61, %v1062_v55  ;;  %v970_v4 = vadd.f32 %v2089_v40, %v549_v0 }
  0xfe   :  { %v1002_v5 = vadd.f32 %v2089_v40, %v677_v1  ;;  %v1841_v6 = vpop.f32.mrf.mxu0  ;;  %v1873_v7 = vpop.f32.mrf.mxu1  ;;  %v1036_v10 = vmax.f32 %v972_v62, 0.0  ;;  %v1068_v11 = vmax.f32 %v1004_v63, 0.0 }
  0xff   :  { %1742 = vst [vmem:[%s2254_s3 + $0x20] sm:$0xff] %v1602_v2   ;;  %1758 = vst [vmem:[%s2254_s3 + $0xa0] sm:$0xff] %v1682_v3   ;;  %v973_v8 = vadd.f32 %v1841_v6, %v2089_v40  ;;  %v1005_v9 = vadd.f32 %v1873_v7, %v2089_v40  ;;  %v1034_v18 = vmax.f32 %v970_v4, 0.0 }
 0x100   :  { %v552_v12 = vpop.f32.mrf.mxu0  ;;  %v680_v13 = vpop.f32.mrf.mxu1  ;;  %v1066_v19 = vmax.f32 %v1002_v5, 0.0 }
 0x101   :  { %v1037_v14 = vmax.f32 %v973_v8, 0.0  ;;  %v1069_v15 = vmax.f32 %v1005_v9, 0.0  ;;  %v971_v16 = vadd.f32 %v2089_v40, %v552_v12  ;;  %v1003_v17 = vadd.f32 %v2089_v40, %v680_v13 }
 0x102   :  { %v1844_v20 = vpop.f32.mrf.mxu0  ;;  %v1876_v21 = vpop.f32.mrf.mxu1 }
 0x103   :  { %v1617_v22 = vpack.c.bf16 %v1037_v14, %v1036_v10  ;;  %v1697_v23 = vpack.c.bf16 %v1069_v15, %v1068_v11  ;;  %v1035_v24 = vmax.f32 %v971_v16, 0.0  ;;  %v1067_v25 = vmax.f32 %v1003_v17, 0.0 }
 0x104   :  { %v976_v26 = vadd.f32 %v1844_v20, %v2089_v40  ;;  %v1008_v27 = vadd.f32 %v1876_v21, %v2089_v40  ;;  %v565_v28 = vpop.f32.mrf.mxu0  ;;  %v693_v29 = vpop.f32.mrf.mxu1 }
 0x105   :  { %1745 = vst [vmem:[%s2254_s3 + $0x38] sm:$0xff] %v1617_v22   ;;  %1761 = vst [vmem:[%s2254_s3 + $0xb8] sm:$0xff] %v1697_v23   ;;  %v1612_v30 = vpack.c.bf16 %v1035_v24, %v1034_v18  ;;  %v1692_v31 = vpack.c.bf16 %v1067_v25, %v1066_v19  ;;  %v974_v32 = vadd.f32 %v2089_v40, %v565_v28 }
 0x106   :  { %v1006_v33 = vadd.f32 %v2089_v40, %v693_v29  ;;  %v1845_v34 = vpop.f32.mrf.mxu0  ;;  %v1877_v35 = vpop.f32.mrf.mxu1  ;;  %v1040_v38 = vmax.f32 %v976_v26, 0.0  ;;  %v1072_v39 = vmax.f32 %v1008_v27, 0.0 }
 0x107   :  { %1744 = vst [vmem:[%s2254_s3 + $0x30] sm:$0xff] %v1612_v30   ;;  %1760 = vst [vmem:[%s2254_s3 + $0xb0] sm:$0xff] %v1692_v31   ;;  %v977_v36 = vadd.f32 %v1845_v34, %v2089_v40  ;;  %v1009_v37 = vadd.f32 %v1877_v35, %v2089_v40  ;;  %v1038_v47 = vmax.f32 %v974_v32, 0.0 }
 0x108   :  { %v568_v41 = vpop.f32.mrf.mxu0  ;;  %v696_v42 = vpop.f32.mrf.mxu1  ;;  %v1070_v48 = vmax.f32 %v1006_v33, 0.0 }
 0x109   :  { %v1041_v43 = vmax.f32 %v977_v36, 0.0  ;;  %v1073_v44 = vmax.f32 %v1009_v37, 0.0  ;;  %v975_v45 = vadd.f32 %v2089_v40, %v568_v41  ;;  %v1007_v46 = vadd.f32 %v2089_v40, %v696_v42 }
 0x10a   :  { %v1848_v49 = vpop.f32.mrf.mxu0  ;;  %v1880_v50 = vpop.f32.mrf.mxu1 }
 0x10b   :  { %v1627_v51 = vpack.c.bf16 %v1041_v43, %v1040_v38  ;;  %v1707_v52 = vpack.c.bf16 %v1073_v44, %v1072_v39  ;;  %v1039_v53 = vmax.f32 %v975_v45, 0.0  ;;  %v1071_v54 = vmax.f32 %v1007_v46, 0.0 }
 0x10c   :  { %v980_v55 = vadd.f32 %v1848_v49, %v2089_v40  ;;  %v1012_v56 = vadd.f32 %v1880_v50, %v2089_v40  ;;  %v581_v57 = vpop.f32.mrf.mxu0  ;;  %v709_v58 = vpop.f32.mrf.mxu1 }
 0x10d   :  { %1747 = vst [vmem:[%s2254_s3 + $0x48] sm:$0xff] %v1627_v51   ;;  %1763 = vst [vmem:[%s2254_s3 + $0xc8] sm:$0xff] %v1707_v52   ;;  %v1622_v59 = vpack.c.bf16 %v1039_v53, %v1038_v47  ;;  %v1702_v60 = vpack.c.bf16 %v1071_v54, %v1070_v48  ;;  %v978_v61 = vadd.f32 %v2089_v40, %v581_v57 }
 0x10e   :  { %v1010_v62 = vadd.f32 %v2089_v40, %v709_v58  ;;  %v1849_v63 = vpop.f32.mrf.mxu0  ;;  %v1881_v0 = vpop.f32.mrf.mxu1  ;;  %v1044_v3 = vmax.f32 %v980_v55, 0.0  ;;  %v1076_v4 = vmax.f32 %v1012_v56, 0.0 }
 0x10f   :  { %1746 = vst [vmem:[%s2254_s3 + $0x40] sm:$0xff] %v1622_v59   ;;  %1762 = vst [vmem:[%s2254_s3 + $0xc0] sm:$0xff] %v1702_v60   ;;  %v981_v1 = vadd.f32 %v1849_v63, %v2089_v40  ;;  %v1013_v2 = vadd.f32 %v1881_v0, %v2089_v40  ;;  %v1042_v11 = vmax.f32 %v978_v61, 0.0 }
 0x110   :  { %v584_v5 = vpop.f32.mrf.mxu0  ;;  %v712_v6 = vpop.f32.mrf.mxu1  ;;  %v1074_v12 = vmax.f32 %v1010_v62, 0.0 }
 0x111   :  { %v1045_v7 = vmax.f32 %v981_v1, 0.0  ;;  %v1077_v8 = vmax.f32 %v1013_v2, 0.0  ;;  %v979_v9 = vadd.f32 %v2089_v40, %v584_v5  ;;  %v1011_v10 = vadd.f32 %v2089_v40, %v712_v6 }
 0x112   :  { %v1852_v13 = vpop.f32.mrf.mxu0  ;;  %v1884_v14 = vpop.f32.mrf.mxu1 }
 0x113   :  { %v1637_v15 = vpack.c.bf16 %v1045_v7, %v1044_v3  ;;  %v1717_v16 = vpack.c.bf16 %v1077_v8, %v1076_v4  ;;  %v1043_v17 = vmax.f32 %v979_v9, 0.0  ;;  %v1075_v18 = vmax.f32 %v1011_v10, 0.0 }
 0x114   :  { %v984_v19 = vadd.f32 %v1852_v13, %v2089_v40  ;;  %v1016_v20 = vadd.f32 %v1884_v14, %v2089_v40  ;;  %v597_v21 = vpop.f32.mrf.mxu0  ;;  %v725_v22 = vpop.f32.mrf.mxu1 }
 0x115   :  { %1749 = vst [vmem:[%s2254_s3 + $0x58] sm:$0xff] %v1637_v15   ;;  %1765 = vst [vmem:[%s2254_s3 + $0xd8] sm:$0xff] %v1717_v16   ;;  %v1632_v23 = vpack.c.bf16 %v1043_v17, %v1042_v11  ;;  %v1712_v24 = vpack.c.bf16 %v1075_v18, %v1074_v12  ;;  %v982_v25 = vadd.f32 %v2089_v40, %v597_v21 }
 0x116   :  { %v1014_v26 = vadd.f32 %v2089_v40, %v725_v22  ;;  %v1853_v27 = vpop.f32.mrf.mxu0  ;;  %v1885_v28 = vpop.f32.mrf.mxu1  ;;  %v1048_v31 = vmax.f32 %v984_v19, 0.0  ;;  %v1080_v32 = vmax.f32 %v1016_v20, 0.0 }
 0x117   :  { %1748 = vst [vmem:[%s2254_s3 + $0x50] sm:$0xff] %v1632_v23   ;;  %1764 = vst [vmem:[%s2254_s3 + $0xd0] sm:$0xff] %v1712_v24   ;;  %v985_v29 = vadd.f32 %v1853_v27, %v2089_v40  ;;  %v1017_v30 = vadd.f32 %v1885_v28, %v2089_v40  ;;  %v1046_v39 = vmax.f32 %v982_v25, 0.0 }
 0x118   :  { %v600_v33 = vpop.f32.mrf.mxu0  ;;  %v728_v34 = vpop.f32.mrf.mxu1  ;;  %v1078_v41 = vmax.f32 %v1014_v26, 0.0 }
 0x119   :  { %v1049_v35 = vmax.f32 %v985_v29, 0.0  ;;  %v1081_v36 = vmax.f32 %v1017_v30, 0.0  ;;  %v983_v37 = vadd.f32 %v2089_v40, %v600_v33  ;;  %v1015_v38 = vadd.f32 %v2089_v40, %v728_v34 }
 0x11a   :  { %v1856_v42 = vpop.f32.mrf.mxu0  ;;  %v1888_v43 = vpop.f32.mrf.mxu1 }
 0x11b   :  { %v1647_v44 = vpack.c.bf16 %v1049_v35, %v1048_v31  ;;  %v1727_v45 = vpack.c.bf16 %v1081_v36, %v1080_v32  ;;  %v1047_v46 = vmax.f32 %v983_v37, 0.0  ;;  %v1079_v47 = vmax.f32 %v1015_v38, 0.0 }
 0x11c   :  { %v988_v48 = vadd.f32 %v1856_v42, %v2089_v40  ;;  %v1020_v49 = vadd.f32 %v1888_v43, %v2089_v40  ;;  %v613_v50 = vpop.f32.mrf.mxu0  ;;  %v741_v51 = vpop.f32.mrf.mxu1 }
 0x11d   :  { %1751 = vst [vmem:[%s2254_s3 + $0x68] sm:$0xff] %v1647_v44   ;;  %1767 = vst [vmem:[%s2254_s3 + $0xe8] sm:$0xff] %v1727_v45   ;;  %v1642_v52 = vpack.c.bf16 %v1047_v46, %v1046_v39  ;;  %v1722_v53 = vpack.c.bf16 %v1079_v47, %v1078_v41  ;;  %v986_v54 = vadd.f32 %v2089_v40, %v613_v50 }
 0x11e   :  { %v1018_v55 = vadd.f32 %v2089_v40, %v741_v51  ;;  %v1857_v56 = vpop.f32.mrf.mxu0  ;;  %v1889_v57 = vpop.f32.mrf.mxu1  ;;  %v1052_v60 = vmax.f32 %v988_v48, 0.0  ;;  %v1084_v61 = vmax.f32 %v1020_v49, 0.0 }
 0x11f   :  { %1750 = vst [vmem:[%s2254_s3 + $0x60] sm:$0xff] %v1642_v52   ;;  %1766 = vst [vmem:[%s2254_s3 + $0xe0] sm:$0xff] %v1722_v53   ;;  %v989_v58 = vadd.f32 %v1857_v56, %v2089_v40  ;;  %v1021_v59 = vadd.f32 %v1889_v57, %v2089_v40  ;;  %v1050_v4 = vmax.f32 %v986_v54, 0.0 }
 0x120   :  { %v616_v62 = vpop.f32.mrf.mxu0  ;;  %v744_v63 = vpop.f32.mrf.mxu1  ;;  %v1082_v5 = vmax.f32 %v1018_v55, 0.0 }
 0x121   :  { %v1053_v0 = vmax.f32 %v989_v58, 0.0  ;;  %v1085_v1 = vmax.f32 %v1021_v59, 0.0  ;;  %v987_v2 = vadd.f32 %v2089_v40, %v616_v62  ;;  %v1019_v3 = vadd.f32 %v2089_v40, %v744_v63 }
 0x123   :  { %v1657_v6 = vpack.c.bf16 %v1053_v0, %v1052_v60  ;;  %v1737_v7 = vpack.c.bf16 %v1085_v1, %v1084_v61  ;;  %v1051_v8 = vmax.f32 %v987_v2, 0.0  ;;  %v1083_v9 = vmax.f32 %v1019_v3, 0.0 }
 0x125   :  { %1753 = vst [vmem:[%s2254_s3 + $0x78] sm:$0xff] %v1657_v6   ;;  %1769 = vst [vmem:[%s2254_s3 + $0xf8] sm:$0xff] %v1737_v7   ;;  %v1652_v10 = vpack.c.bf16 %v1051_v8, %v1050_v4  ;;  %v1732_v11 = vpack.c.bf16 %v1083_v9, %v1082_v5 }
 0x127   :  { %1752 = vst [vmem:[%s2254_s3 + $0x70] sm:$0xff] %v1652_v10   ;;  %1768 = vst [vmem:[%s2254_s3 + $0xf0] sm:$0xff] %v1732_v11  }

// kernel: _bottleneck_forward.5
= control target key start
LH: loop header
LB: loop body
LE: loop exit
PB: predicated region body
PF: predicated region fallthrough
CT: control target
= control target key end

     0   :  { %s3076_s18 = smov 0   ;;  %s3078_s19 = smov 0   ;;  %s3596_s0 = inlined_call_operand.vmem [shape: bf16[512,128], index: 0, kind: input, shape index: {}]   ;;  %s3597_s1 = inlined_call_operand.vmem [shape: bf16[128,128], index: 1, kind: input, shape index: {}]   ;;  %s3598_s2 = inlined_call_operand.vmem [shape: bf16[512,128], index: 2, kind: input, shape index: {}]   ;;  %s3599_s3 = inlined_call_operand.vmem [shape: bf16[128,128], index: 3, kind: input, shape index: {}]   ;;  %s3600_s4 = inlined_call_operand.vmem [shape: f32[1,128], index: 4, kind: input, shape index: {}]   ;;  %s3601_s5 = inlined_call_operand.vmem [shape: f32[512,128], index: 5, kind: output, shape index: {}]  }
   0x1   :  { %s3080_s20 = smov 0  }
   0x2 LB: > { %s27_s21 = sadd.s32 1, %s3039_s19  ;;  %p2538_p0 = scmp.ge.s32.totalorder %s3043_s20, 1  ;;  %s3043_s20 = sphi %s3080_s20, %s15_s20   ;;  %s3039_s19 = sphi %s3078_s19, %s3603_s19   ;;  %s3035_s18 = sphi %s3076_s18, %s3602_s18  }
   0x3   : > { %p28_p1 = scmp.ge.s32.totalorder %s27_s21, 2  ;;  %p310_p2 = scmp.lt.s32.totalorder %s3043_s20, 3 }
   0x5   : > { %s3605_s21 = smov (%p28_p1, %s27_s21), 0  ;;  %p311_p3 = pnand %p2538_p0, %p310_p2 }
   0x6   : > { %p381_p4 = scmp.lt.s32.totalorder (!%p311_p3), %s3035_s18, 0  ;;  %s2552_s22 = sadd.s32 (!%p311_p3), 4294967295, %s3035_s18 }
   0x7   : > { %314 = sbr.rel (%p311_p3) target bundleno = 696 (0x2b8), region = 40  ;;  %p423_p5 = scmp.gt.s32.totalorder (!%p311_p3), %s2552_s22, 0 }
   0x8   : > { %p2555_p8 = scmp.ne.s32.totalorder (!%p311_p3), %s3035_s18, 0 }
   0xc   : > { %s382_s23 = scalar_select %p381_p4, %s3035_s18, 0 }
   0xd   : > { %s3607_s22 = smov (!%p423_p5, %s2552_s22), 0 }
   0xe   : > { %s387_s24 = scalar_select %p381_p4, %s382_s23, 0 }
   0xf   : > { %s2543_s25 = sshll.u32 %s382_s23, 4  ;;  %s2553_s26 = sshll.u32 %s3607_s22, 4 }
  0x10   : > { %s2542_s27 = sshll.u32 %s387_s24, 2  ;;  %p397_p6 = scmp.lt.s32.totalorder %s2543_s25, 15 }
  0x11   : > { %s3102_s30 = scalar_lea.vmem %s3596_s0, %s2542_s27  ;;  %p426_p7 = scmp.lt.s32.totalorder %s2553_s26, 15 }
  0x12   : > { %s3609_s25 = smov (!%p397_p6, %s2543_s25), 15  ;;  %453 = sbr.rel (%p2555_p8) target bundleno = 56 (0x38), region = 44 }
  0x13   : > { %s3611_s26 = smov (!%p426_p7, %s2553_s26), 15  ;;  %s2544_s6 = sshll.u32 %s3609_s25, 2 }
  0x14   : > { %s3107_s9 = scalar_lea.vmem %s3597_s1, %s2544_s6  ;;  %s2554_s10 = sshll.u32 %s3611_s26, 2 }
  0x15   : > { %s3112_s13 = scalar_lea.vmem %s3599_s3, %s2554_s10 }
  0x17   : > { %v3045_v0 = vmov 0.0  }
  0x18   : > { %454 = vst [vmem:[#allocation2 + $0xb0] sm:$0xff] %v3045_v0  ;;  %455 = vst [vmem:[#allocation2 + $0x1b0] sm:$0xff] %v3045_v0 }
  0x19   : > { %456 = vst [vmem:[#allocation2 + $0xd8] sm:$0xff] %v3045_v0  ;;  %457 = vst [vmem:[#allocation2 + $0x18] sm:$0xff] %v3045_v0 }
  0x1a   : > { %458 = vst [vmem:[#allocation2 + $0x50] sm:$0xff] %v3045_v0  ;;  %459 = vst [vmem:[#allocation2 + $0x168] sm:$0xff] %v3045_v0 }
  0x1b   : > { %460 = vst [vmem:[#allocation2 + $0x130] sm:$0xff] %v3045_v0  ;;  %461 = vst [vmem:[#allocation2 + $0x48] sm:$0xff] %v3045_v0 }
  0x1c   : > { %462 = vst [vmem:[#allocation2 + $0x180] sm:$0xff] %v3045_v0  ;;  %463 = vst [vmem:[#allocation2 + $0x110] sm:$0xff] %v3045_v0 }
  0x1d   : > { %464 = vst [vmem:[#allocation2 + $0x118] sm:$0xff] %v3045_v0  ;;  %465 = vst [vmem:[#allocation2 + $0x98] sm:$0xff] %v3045_v0 }
  0x1e   : > { %466 = vst [vmem:[#allocation2 + $0x120] sm:$0xff] %v3045_v0  ;;  %467 = vst [vmem:[#allocation2 + $0x150] sm:$0xff] %v3045_v0 }
  0x1f   : > { %468 = vst [vmem:[#allocation2 + $0x108] sm:$0xff] %v3045_v0  ;;  %469 = vst [vmem:[#allocation2 + $0x60] sm:$0xff] %v3045_v0 }
  0x20   : > { %470 = vst [vmem:[#allocation2 + $0xe0] sm:$0xff] %v3045_v0  ;;  %471 = vst [vmem:[#allocation2 + $0x188] sm:$0xff] %v3045_v0 }
  0x21   : > { %472 = vst [vmem:[#allocation2 + $0x138] sm:$0xff] %v3045_v0  ;;  %473 = vst [vmem:[#allocation2 + $0x140] sm:$0xff] %v3045_v0 }
  0x22   : > { %474 = vst [vmem:[#allocation2 + $0x80] sm:$0xff] %v3045_v0  ;;  %475 = vst [vmem:[#allocation2 + $0x1a8] sm:$0xff] %v3045_v0 }
  0x23   : > { %476 = vst [vmem:[#allocation2 + $0x1b8] sm:$0xff] %v3045_v0  ;;  %477 = vst [vmem:[#allocation2 + $0x28] sm:$0xff] %v3045_v0 }
  0x24   : > { %478 = vst [vmem:[#allocation2 + $0x1e8] sm:$0xff] %v3045_v0  ;;  %479 = vst [vmem:[#allocation2 + $0xf8] sm:$0xff] %v3045_v0 }
  0x25   : > { %480 = vst [vmem:[#allocation2 + $0x160] sm:$0xff] %v3045_v0  ;;  %481 = vst [vmem:[#allocation2 + $0x30] sm:$0xff] %v3045_v0 }
  0x26   : > { %482 = vst [vmem:[#allocation2 + $0x1e0] sm:$0xff] %v3045_v0  ;;  %483 = vst [vmem:[#allocation2] sm:$0xff] %v3045_v0 }
  0x27   : > { %484 = vst [vmem:[#allocation2 + $0xf0] sm:$0xff] %v3045_v0  ;;  %485 = vst [vmem:[#allocation2 + $0x8] sm:$0xff] %v3045_v0 }
  0x28   : > { %486 = vst [vmem:[#allocation2 + $0x148] sm:$0xff] %v3045_v0  ;;  %487 = vst [vmem:[#allocation2 + $0x1d0] sm:$0xff] %v3045_v0 }
  0x29   : > { %488 = vst [vmem:[#allocation2 + $0x100] sm:$0xff] %v3045_v0  ;;  %489 = vst [vmem:[#allocation2 + $0xc8] sm:$0xff] %v3045_v0 }
  0x2a   : > { %490 = vst [vmem:[#allocation2 + $0x40] sm:$0xff] %v3045_v0  ;;  %491 = vst [vmem:[#allocation2 + $0x1f8] sm:$0xff] %v3045_v0 }
  0x2b   : > { %492 = vst [vmem:[#allocation2 + $0x20] sm:$0xff] %v3045_v0  ;;  %493 = vst [vmem:[#allocation2 + $0x128] sm:$0xff] %v3045_v0 }
  0x2c   : > { %494 = vst [vmem:[#allocation2 + $0x1a0] sm:$0xff] %v3045_v0  ;;  %495 = vst [vmem:[#allocation2 + $0x1f0] sm:$0xff] %v3045_v0 }
  0x2d   : > { %496 = vst [vmem:[#allocation2 + $0xe8] sm:$0xff] %v3045_v0  ;;  %497 = vst [vmem:[#allocation2 + $0x78] sm:$0xff] %v3045_v0 }
  0x2e   : > { %498 = vst [vmem:[#allocation2 + $0x70] sm:$0xff] %v3045_v0  ;;  %499 = vst [vmem:[#allocation2 + $0x90] sm:$0xff] %v3045_v0 }
  0x2f   : > { %500 = vst [vmem:[#allocation2 + $0x1d8] sm:$0xff] %v3045_v0  ;;  %501 = vst [vmem:[#allocation2 + $0xd0] sm:$0xff] %v3045_v0 }
  0x30   : > { %502 = vst [vmem:[#allocation2 + $0xb8] sm:$0xff] %v3045_v0  ;;  %503 = vst [vmem:[#allocation2 + $0x88] sm:$0xff] %v3045_v0 }
  0x31   : > { %504 = vst [vmem:[#allocation2 + $0xa8] sm:$0xff] %v3045_v0  ;;  %505 = vst [vmem:[#allocation2 + $0x1c8] sm:$0xff] %v3045_v0 }
  0x32   : > { %506 = vst [vmem:[#allocation2 + $0x170] sm:$0xff] %v3045_v0  ;;  %507 = vst [vmem:[#allocation2 + $0x178] sm:$0xff] %v3045_v0 }
  0x33   : > { %508 = vst [vmem:[#allocation2 + $0x68] sm:$0xff] %v3045_v0  ;;  %509 = vst [vmem:[#allocation2 + $0x190] sm:$0xff] %v3045_v0 }
  0x34   : > { %510 = vst [vmem:[#allocation2 + $0x198] sm:$0xff] %v3045_v0  ;;  %511 = vst [vmem:[#allocation2 + $0x38] sm:$0xff] %v3045_v0 }
  0x35   : > { %512 = vst [vmem:[#allocation2 + $0xc0] sm:$0xff] %v3045_v0  ;;  %513 = vst [vmem:[#allocation2 + $0x1c0] sm:$0xff] %v3045_v0 }
  0x36   : > { %514 = vst [vmem:[#allocation2 + $0x158] sm:$0xff] %v3045_v0  ;;  %515 = vst [vmem:[#allocation2 + $0x10] sm:$0xff] %v3045_v0 }
  0x37   : > { %516 = vst [vmem:[#allocation2 + $0x58] sm:$0xff] %v3045_v0  ;;  %517 = vst [vmem:[#allocation2 + $0xa0] sm:$0xff] %v3045_v0 }
  0x38 PF: > { %p2556_p9 = scmp.ge.s32.totalorder %s3035_s18, 1 }
  0x3a   : > { %521 = sbr.rel (%p2556_p9) target bundleno = 354 (0x162), region = 48 }
  0x3f   : > { %v2941_v1 = vld [vmem:[%s3107_s9 + $0x38] sm:$0xff]   ;;  %v2942_v2 = vld [vmem:[%s3107_s9 + $0x30] sm:$0xff]   ;;  %v2943_v3 = vld [vmem:[%s3107_s9 + $0x28] sm:$0xff]  }
  0x40   : > { %2724 = vmatprep.subr.bf16.mxu0 %v2941_v1  ;;  %2884 = vmatprep.subr.bf16.mxu1 %v2941_v1  ;;  %v2944_v4 = vld [vmem:[%s3107_s9 + $0x20] sm:$0xff]   ;;  %v2945_v7 = vld [vmem:[%s3107_s9 + $0x18] sm:$0xff]   ;;  %v2946_v8 = vld [vmem:[%s3107_s9 + $0x10] sm:$0xff]  }
  0x41   : > { %2725 = vmatpush3.bf16.msra.mxu0 %v2941_v1  ;;  %2892 = vmatpush3.bf16.msra.mxu1 %v2941_v1  ;;  %v2949_v5 = vld [vmem:[%s3102_s30] sm:$0xff]   ;;  %v2947_v9 = vld [vmem:[%s3107_s9 + $0x8] sm:$0xff]   ;;  %v2953_v13 = vld [vmem:[%s3102_s30 + $0x10] sm:$0xff]  }
  0x42   : > { %2726 = vmatprep.subr.bf16.mxu0 %v2942_v2  ;;  %2885 = vmatprep.subr.bf16.mxu1 %v2942_v2  ;;  %v2950_v6 = vld [vmem:[%s3102_s30 + $0x80] sm:$0xff]   ;;  %v2951_v11 = vld [vmem:[%s3102_s30 + $0x8] sm:$0xff]   ;;  %v2954_v14 = vld [vmem:[%s3102_s30 + $0x90] sm:$0xff]  }
  0x43   : > { %2740 = vmatprep.mubr.bf16.mxu0 %v2949_v5  ;;  %2772 = vmatprep.mubr.bf16.mxu1 %v2950_v6  ;;  %v2948_v10 = vld [vmem:[%s3107_s9] sm:$0xff]   ;;  %v2952_v12 = vld [vmem:[%s3102_s30 + $0x88] sm:$0xff]   ;;  %v2955_v15 = vld [vmem:[%s3102_s30 + $0x18] sm:$0xff]  }
  0x44   : > { %v2956_v16 = vld [vmem:[%s3102_s30 + $0x98] sm:$0xff]   ;;  %v2957_v17 = vld [vmem:[%s3102_s30 + $0x20] sm:$0xff]   ;;  %v2959_v19 = vld [vmem:[%s3102_s30 + $0x28] sm:$0xff]  }
  0x45   : > { %2727 = vmatpush3.bf16.msra.mxu0 %v2942_v2  ;;  %2893 = vmatpush3.bf16.msra.mxu1 %v2942_v2  ;;  %v2958_v18 = vld [vmem:[%s3102_s30 + $0xa0] sm:$0xff]   ;;  %v2960_v20 = vld [vmem:[%s3102_s30 + $0xa8] sm:$0xff]   ;;  %v2961_v21 = vld [vmem:[%s3102_s30 + $0x30] sm:$0xff]  }
  0x46   : > { %2728 = vmatprep.subr.bf16.mxu0 %v2943_v3  ;;  %2886 = vmatprep.subr.bf16.mxu1 %v2943_v3  ;;  %v2962_v22 = vld [vmem:[%s3102_s30 + $0xb0] sm:$0xff]   ;;  %v2963_v23 = vld [vmem:[%s3102_s30 + $0x38] sm:$0xff]   ;;  %v2965_v25 = vld [vmem:[%s3102_s30 + $0x40] sm:$0xff]  }
  0x47   : > { %v2964_v24 = vld [vmem:[%s3102_s30 + $0xb8] sm:$0xff]   ;;  %v2966_v26 = vld [vmem:[%s3102_s30 + $0xc0] sm:$0xff]   ;;  %v2967_v27 = vld [vmem:[%s3102_s30 + $0x48] sm:$0xff]  }
  0x48   : > { %v2968_v28 = vld [vmem:[%s3102_s30 + $0xc8] sm:$0xff]   ;;  %v2969_v29 = vld [vmem:[%s3102_s30 + $0x50] sm:$0xff]   ;;  %v2971_v31 = vld [vmem:[%s3102_s30 + $0x58] sm:$0xff]  }
  0x49   : > { %2729 = vmatpush3.bf16.msra.mxu0 %v2943_v3  ;;  %2894 = vmatpush3.bf16.msra.mxu1 %v2943_v3  ;;  %v2970_v30 = vld [vmem:[%s3102_s30 + $0xd0] sm:$0xff]   ;;  %v2972_v32 = vld [vmem:[%s3102_s30 + $0xd8] sm:$0xff]   ;;  %v2973_v33 = vld [vmem:[%s3102_s30 + $0x60] sm:$0xff]  }
  0x4a   : > { %2730 = vmatprep.subr.bf16.mxu0 %v2944_v4  ;;  %2887 = vmatprep.subr.bf16.mxu1 %v2944_v4  ;;  %v2974_v34 = vld [vmem:[%s3102_s30 + $0xe0] sm:$0xff]   ;;  %v2975_v35 = vld [vmem:[%s3102_s30 + $0x68] sm:$0xff]   ;;  %v2977_v37 = vld [vmem:[%s3102_s30 + $0x70] sm:$0xff]  }
  0x4b   : > { %v2976_v36 = vld [vmem:[%s3102_s30 + $0xe8] sm:$0xff]   ;;  %v2978_v38 = vld [vmem:[%s3102_s30 + $0xf0] sm:$0xff]   ;;  %v2979_v39 = vld [vmem:[%s3102_s30 + $0x78] sm:$0xff]  }
  0x4c   : > { %v2980_v40 = vld [vmem:[%s3102_s30 + $0xf8] sm:$0xff]   ;;  %v556_v42 = vld [vmem:[#allocation2 + $0x100] sm:$0xff]  ;;  %v522_v45 = vld [vmem:[#allocation2 + $0xb0] sm:$0xff] }
  0x4d   : > { %2731 = vmatpush3.bf16.msra.mxu0 %v2944_v4  ;;  %2895 = vmatpush3.bf16.msra.mxu1 %v2944_v4  ;;  %v524_v41 = vld [vmem:[#allocation2 + $0xd8] sm:$0xff]  ;;  %v554_v46 = vld [vmem:[#allocation2 + $0x148] sm:$0xff]  ;;  %v523_v57 = vld [vmem:[#allocation2 + $0x1b0] sm:$0xff] }
  0x4e   : > { %2732 = vmatprep.subr.bf16.mxu0 %v2945_v7  ;;  %2888 = vmatprep.subr.bf16.mxu1 %v2945_v7  ;;  %v525_v51 = vld [vmem:[#allocation2 + $0x18] sm:$0xff]  ;;  %v557_v52 = vld [vmem:[#allocation2 + $0xc8] sm:$0xff]  ;;  %v555_v58 = vld [vmem:[#allocation2 + $0x1d0] sm:$0xff] }
  0x4f   : > { %v528_v63 = vld [vmem:[#allocation2 + $0x130] sm:$0xff]  ;;  %v560_v0 = vld [vmem:[#allocation2 + $0x20] sm:$0xff] }
  0x50   : > { %v526_v5 = vld [vmem:[#allocation2 + $0x50] sm:$0xff]  ;;  %v558_v6 = vld [vmem:[#allocation2 + $0x40] sm:$0xff] }
  0x51   : > { %2733 = vmatpush3.bf16.msra.mxu0 %v2945_v7  ;;  %2896 = vmatpush3.bf16.msra.mxu1 %v2945_v7 }
  0x52   : > { %2734 = vmatprep.subr.bf16.mxu0 %v2946_v8  ;;  %2889 = vmatprep.subr.bf16.mxu1 %v2946_v8 }
  0x55   : > { %2735 = vmatpush3.bf16.msra.mxu0 %v2946_v8  ;;  %2897 = vmatpush3.bf16.msra.mxu1 %v2946_v8 }
  0x56   : > { %2736 = vmatprep.subr.bf16.mxu0 %v2947_v9  ;;  %2890 = vmatprep.subr.bf16.mxu1 %v2947_v9 }
  0x59   : > { %2737 = vmatpush3.bf16.msra.mxu0 %v2947_v9  ;;  %2898 = vmatpush3.bf16.msra.mxu1 %v2947_v9 }
  0x5a   : > { %2738 = vmatprep.subr.bf16.mxu0 %v2948_v10  ;;  %2891 = vmatprep.subr.bf16.mxu1 %v2948_v10 }
  0x5d   : > { %2739 = vmatpush3.bf16.msra.mxu0 %v2948_v10  ;;  %2899 = vmatpush3.bf16.msra.mxu1 %v2948_v10 }
  0x60   : > { %2741 = vmatmul.mubr.bf16.vlgmr.msra.gmra.mxu0 %v2951_v11  ;;  %2773 = vmatmul.mubr.bf16.vlgmr.msra.gmra.mxu1 %v2952_v12  ;;  %v529_v11 = vld [vmem:[#allocation2 + $0x48] sm:$0xff] }
  0x61   : > { %2744 = vmatprep.mubr.bf16.mxu0 %v2953_v13  ;;  %2776 = vmatprep.mubr.bf16.mxu1 %v2954_v14  ;;  %v561_v12 = vld [vmem:[#allocation2 + $0x128] sm:$0xff] }
  0x68   : > { %2745 = vmatmul.mubr.bf16.gmra.mxu0 %v2955_v15  ;;  %2777 = vmatmul.mubr.bf16.gmra.mxu1 %v2956_v16 }
  0x69   : > { %2748 = vmatprep.mubr.bf16.mxu0 %v2957_v17  ;;  %2780 = vmatprep.mubr.bf16.mxu1 %v2958_v18  ;;  %v527_v17 = vld [vmem:[#allocation2 + $0x168] sm:$0xff]  ;;  %v559_v18 = vld [vmem:[#allocation2 + $0x1f8] sm:$0xff] }
  0x70   : > { %2749 = vmatmul.mubr.bf16.gmra.mxu0 %v2959_v19  ;;  %2781 = vmatmul.mubr.bf16.gmra.mxu1 %v2960_v20 }
  0x71   : > { %2752 = vmatprep.mubr.bf16.mxu0 %v2961_v21  ;;  %2784 = vmatprep.mubr.bf16.mxu1 %v2962_v22 }
  0x78   : > { %2753 = vmatmul.mubr.bf16.gmra.mxu0 %v2963_v23  ;;  %2785 = vmatmul.mubr.bf16.gmra.mxu1 %v2964_v24  ;;  %v532_v23 = vld [vmem:[#allocation2 + $0x118] sm:$0xff]  ;;  %v564_v24 = vld [vmem:[#allocation2 + $0xe8] sm:$0xff] }
  0x79   : > { %2756 = vmatprep.mubr.bf16.mxu0 %v2965_v25  ;;  %2788 = vmatprep.mubr.bf16.mxu1 %v2966_v26 }
  0x80   : > { %2757 = vmatmul.mubr.bf16.gmra.mxu0 %v2967_v27  ;;  %2789 = vmatmul.mubr.bf16.gmra.mxu1 %v2968_v28 }
  0x81   : > { %2760 = vmatprep.mubr.bf16.mxu0 %v2969_v29  ;;  %2792 = vmatprep.mubr.bf16.mxu1 %v2970_v30  ;;  %v530_v29 = vld [vmem:[#allocation2 + $0x180] sm:$0xff] }
  0x82   : > { %v562_v30 = vld [vmem:[#allocation2 + $0x1a0] sm:$0xff] }
  0x88   : > { %2761 = vmatmul.mubr.bf16.gmra.mxu0 %v2971_v31  ;;  %2793 = vmatmul.mubr.bf16.gmra.mxu1 %v2972_v32 }
  0x89   : > { %2764 = vmatprep.mubr.bf16.mxu0 %v2973_v33  ;;  %2796 = vmatprep.mubr.bf16.mxu1 %v2974_v34 }
  0x90   : > { %2765 = vmatmul.mubr.bf16.gmra.mxu0 %v2975_v35  ;;  %2797 = vmatmul.mubr.bf16.gmra.mxu1 %v2976_v36  ;;  %v533_v35 = vld [vmem:[#allocation2 + $0x98] sm:$0xff] }
  0x91   : > { %2768 = vmatprep.mubr.bf16.mxu0 %v2977_v37  ;;  %2800 = vmatprep.mubr.bf16.mxu1 %v2978_v38  ;;  %v565_v36 = vld [vmem:[#allocation2 + $0x78] sm:$0xff] }
  0x98   : > { %2769 = vmatmul.mubr.bf16.gmra.mxu0 %v2979_v39  ;;  %2801 = vmatmul.mubr.bf16.gmra.mxu1 %v2980_v40 }
 0x120   : > { %v2742_v43 = vpop.f32.mrf.mxu0  ;;  %v2774_v44 = vpop.f32.mrf.mxu1 }
 0x121   : > { %v1197_v47 = vadd.f32 %v2742_v43, %v524_v41  ;;  %v1229_v48 = vadd.f32 %v2774_v44, %v556_v42  ;;  %v531_v41 = vld [vmem:[#allocation2 + $0x110] sm:$0xff] }
 0x122   : > { %v940_v49 = vpop.f32.mrf.mxu0  ;;  %v1068_v50 = vpop.f32.mrf.mxu1  ;;  %v563_v42 = vld [vmem:[#allocation2 + $0x1f0] sm:$0xff] }
 0x123   : > { %1261 = vst [vmem:[#allocation2 + $0xd8] sm:$0xff] %v1197_v47  ;;  %1293 = vst [vmem:[#allocation2 + $0x100] sm:$0xff] %v1229_v48  ;;  %v1195_v53 = vadd.f32 %v940_v49, %v522_v45  ;;  %v1227_v54 = vadd.f32 %v1068_v50, %v554_v46  ;;  %v536_v47 = vld [vmem:[#allocation2 + $0x108] sm:$0xff]  ;;  %v568_v48 = vld [vmem:[#allocation2 + $0x1d8] sm:$0xff] }
 0x124   : > { %v2743_v55 = vpop.f32.mrf.mxu0  ;;  %v2775_v56 = vpop.f32.mrf.mxu1 }
 0x125   : > { %1259 = vst [vmem:[#allocation2 + $0xb0] sm:$0xff] %v1195_v53  ;;  %1291 = vst [vmem:[#allocation2 + $0x148] sm:$0xff] %v1227_v54  ;;  %v1198_v59 = vadd.f32 %v2743_v55, %v525_v51  ;;  %v1230_v60 = vadd.f32 %v2775_v56, %v557_v52  ;;  %v534_v53 = vld [vmem:[#allocation2 + $0x120] sm:$0xff]  ;;  %v566_v54 = vld [vmem:[#allocation2 + $0x70] sm:$0xff] }
 0x126   : > { %v943_v61 = vpop.f32.mrf.mxu0  ;;  %v1071_v62 = vpop.f32.mrf.mxu1 }
 0x127   : > { %1262 = vst [vmem:[#allocation2 + $0x18] sm:$0xff] %v1198_v59  ;;  %1294 = vst [vmem:[#allocation2 + $0xc8] sm:$0xff] %v1230_v60  ;;  %v1196_v1 = vadd.f32 %v943_v61, %v523_v57  ;;  %v1228_v2 = vadd.f32 %v1071_v62, %v555_v58  ;;  %v537_v59 = vld [vmem:[#allocation2 + $0x60] sm:$0xff]  ;;  %v569_v60 = vld [vmem:[#allocation2 + $0xd0] sm:$0xff] }
 0x128   : > { %v2746_v3 = vpop.f32.mrf.mxu0  ;;  %v2778_v4 = vpop.f32.mrf.mxu1 }
 0x129   : > { %1260 = vst [vmem:[#allocation2 + $0x1b0] sm:$0xff] %v1196_v1  ;;  %1292 = vst [vmem:[#allocation2 + $0x1d0] sm:$0xff] %v1228_v2  ;;  %v1201_v7 = vadd.f32 %v2746_v3, %v528_v63  ;;  %v1233_v8 = vadd.f32 %v2778_v4, %v560_v0  ;;  %v535_v1 = vld [vmem:[#allocation2 + $0x150] sm:$0xff] }
 0x12a   : > { %v956_v9 = vpop.f32.mrf.mxu0  ;;  %v1084_v10 = vpop.f32.mrf.mxu1  ;;  %v567_v2 = vld [vmem:[#allocation2 + $0x90] sm:$0xff] }
 0x12b   : > { %1265 = vst [vmem:[#allocation2 + $0x130] sm:$0xff] %v1201_v7  ;;  %1297 = vst [vmem:[#allocation2 + $0x20] sm:$0xff] %v1233_v8  ;;  %v1199_v13 = vadd.f32 %v956_v9, %v526_v5  ;;  %v1231_v14 = vadd.f32 %v1084_v10, %v558_v6  ;;  %v540_v7 = vld [vmem:[#allocation2 + $0x138] sm:$0xff]  ;;  %v572_v8 = vld [vmem:[#allocation2 + $0xa8] sm:$0xff] }
 0x12c   : > { %v2747_v15 = vpop.f32.mrf.mxu0  ;;  %v2779_v16 = vpop.f32.mrf.mxu1 }
 0x12d   : > { %1263 = vst [vmem:[#allocation2 + $0x50] sm:$0xff] %v1199_v13  ;;  %1295 = vst [vmem:[#allocation2 + $0x40] sm:$0xff] %v1231_v14  ;;  %v1202_v19 = vadd.f32 %v2747_v15, %v529_v11  ;;  %v1234_v20 = vadd.f32 %v2779_v16, %v561_v12  ;;  %v538_v13 = vld [vmem:[#allocation2 + $0xe0] sm:$0xff]  ;;  %v570_v14 = vld [vmem:[#allocation2 + $0xb8] sm:$0xff] }
 0x12e   : > { %v959_v21 = vpop.f32.mrf.mxu0  ;;  %v1087_v22 = vpop.f32.mrf.mxu1 }
 0x12f   : > { %1266 = vst [vmem:[#allocation2 + $0x48] sm:$0xff] %v1202_v19  ;;  %1298 = vst [vmem:[#allocation2 + $0x128] sm:$0xff] %v1234_v20  ;;  %v1200_v25 = vadd.f32 %v959_v21, %v527_v17  ;;  %v1232_v26 = vadd.f32 %v1087_v22, %v559_v18  ;;  %v541_v19 = vld [vmem:[#allocation2 + $0x140] sm:$0xff]  ;;  %v573_v20 = vld [vmem:[#allocation2 + $0x1c8] sm:$0xff] }
 0x130   : > { %v2750_v27 = vpop.f32.mrf.mxu0  ;;  %v2782_v28 = vpop.f32.mrf.mxu1 }
 0x131   : > { %1264 = vst [vmem:[#allocation2 + $0x168] sm:$0xff] %v1200_v25  ;;  %1296 = vst [vmem:[#allocation2 + $0x1f8] sm:$0xff] %v1232_v26  ;;  %v1205_v31 = vadd.f32 %v2750_v27, %v532_v23  ;;  %v1237_v32 = vadd.f32 %v2782_v28, %v564_v24  ;;  %v539_v25 = vld [vmem:[#allocation2 + $0x188] sm:$0xff] }
 0x132   : > { %v972_v33 = vpop.f32.mrf.mxu0  ;;  %v1100_v34 = vpop.f32.mrf.mxu1  ;;  %v571_v26 = vld [vmem:[#allocation2 + $0x88] sm:$0xff] }
 0x133   : > { %1269 = vst [vmem:[#allocation2 + $0x118] sm:$0xff] %v1205_v31  ;;  %1301 = vst [vmem:[#allocation2 + $0xe8] sm:$0xff] %v1237_v32  ;;  %v1203_v37 = vadd.f32 %v972_v33, %v530_v29  ;;  %v1235_v38 = vadd.f32 %v1100_v34, %v562_v30  ;;  %v544_v31 = vld [vmem:[#allocation2 + $0x1b8] sm:$0xff]  ;;  %v576_v32 = vld [vmem:[#allocation2 + $0x68] sm:$0xff] }
 0x134   : > { %v2751_v39 = vpop.f32.mrf.mxu0  ;;  %v2783_v40 = vpop.f32.mrf.mxu1 }
 0x135   : > { %1267 = vst [vmem:[#allocation2 + $0x180] sm:$0xff] %v1203_v37  ;;  %1299 = vst [vmem:[#allocation2 + $0x1a0] sm:$0xff] %v1235_v38  ;;  %v1206_v43 = vadd.f32 %v2751_v39, %v533_v35  ;;  %v1238_v44 = vadd.f32 %v2783_v40, %v565_v36  ;;  %v542_v37 = vld [vmem:[#allocation2 + $0x80] sm:$0xff]  ;;  %v574_v38 = vld [vmem:[#allocation2 + $0x170] sm:$0xff] }
 0x136   : > { %v975_v45 = vpop.f32.mrf.mxu0  ;;  %v1103_v46 = vpop.f32.mrf.mxu1 }
 0x137   : > { %1270 = vst [vmem:[#allocation2 + $0x98] sm:$0xff] %v1206_v43  ;;  %1302 = vst [vmem:[#allocation2 + $0x78] sm:$0xff] %v1238_v44  ;;  %v1204_v49 = vadd.f32 %v975_v45, %v531_v41  ;;  %v1236_v50 = vadd.f32 %v1103_v46, %v563_v42  ;;  %v545_v43 = vld [vmem:[#allocation2 + $0x28] sm:$0xff]  ;;  %v577_v44 = vld [vmem:[#allocation2 + $0x190] sm:$0xff] }
 0x138   : > { %v2754_v51 = vpop.f32.mrf.mxu0  ;;  %v2786_v52 = vpop.f32.mrf.mxu1 }
 0x139   : > { %1268 = vst [vmem:[#allocation2 + $0x110] sm:$0xff] %v1204_v49  ;;  %1300 = vst [vmem:[#allocation2 + $0x1f0] sm:$0xff] %v1236_v50  ;;  %v1209_v55 = vadd.f32 %v2754_v51, %v536_v47  ;;  %v1241_v56 = vadd.f32 %v2786_v52, %v568_v48  ;;  %v543_v49 = vld [vmem:[#allocation2 + $0x1a8] sm:$0xff]  ;;  %v575_v50 = vld [vmem:[#allocation2 + $0x178] sm:$0xff] }
 0x13a   : > { %v988_v57 = vpop.f32.mrf.mxu0  ;;  %v1116_v58 = vpop.f32.mrf.mxu1 }
 0x13b   : > { %1273 = vst [vmem:[#allocation2 + $0x108] sm:$0xff] %v1209_v55  ;;  %1305 = vst [vmem:[#allocation2 + $0x1d8] sm:$0xff] %v1241_v56  ;;  %v1207_v61 = vadd.f32 %v988_v57, %v534_v53  ;;  %v1239_v62 = vadd.f32 %v1116_v58, %v566_v54  ;;  %v548_v55 = vld [vmem:[#allocation2 + $0x160] sm:$0xff] }
 0x13c   : > { %v2755_v63 = vpop.f32.mrf.mxu0  ;;  %v2787_v0 = vpop.f32.mrf.mxu1  ;;  %v580_v56 = vld [vmem:[#allocation2 + $0xc0] sm:$0xff] }
 0x13d   : > { %1271 = vst [vmem:[#allocation2 + $0x120] sm:$0xff] %v1207_v61  ;;  %1303 = vst [vmem:[#allocation2 + $0x70] sm:$0xff] %v1239_v62  ;;  %v1210_v3 = vadd.f32 %v2755_v63, %v537_v59  ;;  %v1242_v4 = vadd.f32 %v2787_v0, %v569_v60  ;;  %v546_v61 = vld [vmem:[#allocation2 + $0x1e8] sm:$0xff]  ;;  %v578_v62 = vld [vmem:[#allocation2 + $0x198] sm:$0xff] }
 0x13e   : > { %v991_v5 = vpop.f32.mrf.mxu0  ;;  %v1119_v6 = vpop.f32.mrf.mxu1 }
 0x13f   : > { %1274 = vst [vmem:[#allocation2 + $0x60] sm:$0xff] %v1210_v3  ;;  %1306 = vst [vmem:[#allocation2 + $0xd0] sm:$0xff] %v1242_v4  ;;  %v1208_v9 = vadd.f32 %v991_v5, %v535_v1  ;;  %v1240_v10 = vadd.f32 %v1119_v6, %v567_v2  ;;  %v549_v3 = vld [vmem:[#allocation2 + $0x30] sm:$0xff]  ;;  %v581_v4 = vld [vmem:[#allocation2 + $0x1c0] sm:$0xff] }
 0x140   : > { %v2758_v11 = vpop.f32.mrf.mxu0  ;;  %v2790_v12 = vpop.f32.mrf.mxu1 }
 0x141   : > { %1272 = vst [vmem:[#allocation2 + $0x150] sm:$0xff] %v1208_v9  ;;  %1304 = vst [vmem:[#allocation2 + $0x90] sm:$0xff] %v1240_v10  ;;  %v1213_v15 = vadd.f32 %v2758_v11, %v540_v7  ;;  %v1245_v16 = vadd.f32 %v2790_v12, %v572_v8  ;;  %v547_v9 = vld [vmem:[#allocation2 + $0xf8] sm:$0xff] }
 0x142   : > { %v1004_v17 = vpop.f32.mrf.mxu0  ;;  %v1132_v18 = vpop.f32.mrf.mxu1  ;;  %v579_v10 = vld [vmem:[#allocation2 + $0x38] sm:$0xff] }
 0x143   : > { %1277 = vst [vmem:[#allocation2 + $0x138] sm:$0xff] %v1213_v15  ;;  %1309 = vst [vmem:[#allocation2 + $0xa8] sm:$0xff] %v1245_v16  ;;  %v1211_v21 = vadd.f32 %v1004_v17, %v538_v13  ;;  %v1243_v22 = vadd.f32 %v1132_v18, %v570_v14  ;;  %v552_v15 = vld [vmem:[#allocation2 + $0xf0] sm:$0xff]  ;;  %v584_v16 = vld [vmem:[#allocation2 + $0x58] sm:$0xff] }
 0x144   : > { %v2759_v23 = vpop.f32.mrf.mxu0  ;;  %v2791_v24 = vpop.f32.mrf.mxu1 }
 0x145   : > { %1275 = vst [vmem:[#allocation2 + $0xe0] sm:$0xff] %v1211_v21  ;;  %1307 = vst [vmem:[#allocation2 + $0xb8] sm:$0xff] %v1243_v22  ;;  %v1214_v27 = vadd.f32 %v2759_v23, %v541_v19  ;;  %v1246_v28 = vadd.f32 %v2791_v24, %v573_v20  ;;  %v550_v21 = vld [vmem:[#allocation2 + $0x1e0] sm:$0xff]  ;;  %v582_v22 = vld [vmem:[#allocation2 + $0x158] sm:$0xff] }
 0x146   : > { %v1007_v29 = vpop.f32.mrf.mxu0  ;;  %v1135_v30 = vpop.f32.mrf.mxu1 }
 0x147   : > { %1278 = vst [vmem:[#allocation2 + $0x140] sm:$0xff] %v1214_v27  ;;  %1310 = vst [vmem:[#allocation2 + $0x1c8] sm:$0xff] %v1246_v28  ;;  %v1212_v33 = vadd.f32 %v1007_v29, %v539_v25  ;;  %v1244_v34 = vadd.f32 %v1135_v30, %v571_v26  ;;  %v553_v27 = vld [vmem:[#allocation2 + $0x8] sm:$0xff]  ;;  %v585_v28 = vld [vmem:[#allocation2 + $0xa0] sm:$0xff] }
 0x148   : > { %v2762_v35 = vpop.f32.mrf.mxu0  ;;  %v2794_v36 = vpop.f32.mrf.mxu1 }
 0x149   : > { %1276 = vst [vmem:[#allocation2 + $0x188] sm:$0xff] %v1212_v33  ;;  %1308 = vst [vmem:[#allocation2 + $0x88] sm:$0xff] %v1244_v34  ;;  %v1217_v39 = vadd.f32 %v2762_v35, %v544_v31  ;;  %v1249_v40 = vadd.f32 %v2794_v36, %v576_v32  ;;  %v551_v33 = vld [vmem:[#allocation2] sm:$0xff]  ;;  %v583_v34 = vld [vmem:[#allocation2 + $0x10] sm:$0xff] }
 0x14a   : > { %v1020_v41 = vpop.f32.mrf.mxu0  ;;  %v1148_v42 = vpop.f32.mrf.mxu1 }
 0x14b   : > { %1281 = vst [vmem:[#allocation2 + $0x1b8] sm:$0xff] %v1217_v39  ;;  %1313 = vst [vmem:[#allocation2 + $0x68] sm:$0xff] %v1249_v40  ;;  %v1215_v45 = vadd.f32 %v1020_v41, %v542_v37  ;;  %v1247_v46 = vadd.f32 %v1148_v42, %v574_v38 }
 0x14c   : > { %v2763_v47 = vpop.f32.mrf.mxu0  ;;  %v2795_v48 = vpop.f32.mrf.mxu1 }
 0x14d   : > { %1279 = vst [vmem:[#allocation2 + $0x80] sm:$0xff] %v1215_v45  ;;  %1311 = vst [vmem:[#allocation2 + $0x170] sm:$0xff] %v1247_v46  ;;  %v1218_v51 = vadd.f32 %v2763_v47, %v545_v43  ;;  %v1250_v52 = vadd.f32 %v2795_v48, %v577_v44 }
 0x14e   : > { %v1023_v53 = vpop.f32.mrf.mxu0  ;;  %v1151_v54 = vpop.f32.mrf.mxu1 }
 0x14f   : > { %1282 = vst [vmem:[#allocation2 + $0x28] sm:$0xff] %v1218_v51  ;;  %1314 = vst [vmem:[#allocation2 + $0x190] sm:$0xff] %v1250_v52  ;;  %v1216_v57 = vadd.f32 %v1023_v53, %v543_v49  ;;  %v1248_v58 = vadd.f32 %v1151_v54, %v575_v50 }
 0x150   : > { %v2766_v59 = vpop.f32.mrf.mxu0  ;;  %v2798_v60 = vpop.f32.mrf.mxu1 }
 0x151   : > { %1280 = vst [vmem:[#allocation2 + $0x1a8] sm:$0xff] %v1216_v57  ;;  %1312 = vst [vmem:[#allocation2 + $0x178] sm:$0xff] %v1248_v58  ;;  %v1221_v63 = vadd.f32 %v2766_v59, %v548_v55  ;;  %v1253_v0 = vadd.f32 %v2798_v60, %v580_v56 }
 0x152   : > { %v1036_v1 = vpop.f32.mrf.mxu0  ;;  %v1164_v2 = vpop.f32.mrf.mxu1 }
 0x153   : > { %1285 = vst [vmem:[#allocation2 + $0x160] sm:$0xff] %v1221_v63  ;;  %1317 = vst [vmem:[#allocation2 + $0xc0] sm:$0xff] %v1253_v0  ;;  %v1219_v5 = vadd.f32 %v1036_v1, %v546_v61  ;;  %v1251_v6 = vadd.f32 %v1164_v2, %v578_v62 }
 0x154   : > { %v2767_v7 = vpop.f32.mrf.mxu0  ;;  %v2799_v8 = vpop.f32.mrf.mxu1 }
 0x155   : > { %1283 = vst [vmem:[#allocation2 + $0x1e8] sm:$0xff] %v1219_v5  ;;  %1315 = vst [vmem:[#allocation2 + $0x198] sm:$0xff] %v1251_v6  ;;  %v1222_v11 = vadd.f32 %v2767_v7, %v549_v3  ;;  %v1254_v12 = vadd.f32 %v2799_v8, %v581_v4 }
 0x156   : > { %v1039_v13 = vpop.f32.mrf.mxu0  ;;  %v1167_v14 = vpop.f32.mrf.mxu1 }
 0x157   : > { %1286 = vst [vmem:[#allocation2 + $0x30] sm:$0xff] %v1222_v11  ;;  %1318 = vst [vmem:[#allocation2 + $0x1c0] sm:$0xff] %v1254_v12  ;;  %v1220_v17 = vadd.f32 %v1039_v13, %v547_v9  ;;  %v1252_v18 = vadd.f32 %v1167_v14, %v579_v10 }
 0x158   : > { %v2770_v19 = vpop.f32.mrf.mxu0  ;;  %v2802_v20 = vpop.f32.mrf.mxu1 }
 0x159   : > { %1284 = vst [vmem:[#allocation2 + $0xf8] sm:$0xff] %v1220_v17  ;;  %1316 = vst [vmem:[#allocation2 + $0x38] sm:$0xff] %v1252_v18  ;;  %v1225_v23 = vadd.f32 %v2770_v19, %v552_v15  ;;  %v1257_v24 = vadd.f32 %v2802_v20, %v584_v16 }
 0x15a   : > { %v1052_v25 = vpop.f32.mrf.mxu0  ;;  %v1180_v26 = vpop.f32.mrf.mxu1 }
 0x15b   : > { %1289 = vst [vmem:[#allocation2 + $0xf0] sm:$0xff] %v1225_v23  ;;  %1321 = vst [vmem:[#allocation2 + $0x58] sm:$0xff] %v1257_v24  ;;  %v1223_v29 = vadd.f32 %v1052_v25, %v550_v21  ;;  %v1255_v30 = vadd.f32 %v1180_v26, %v582_v22 }
 0x15c   : > { %v2771_v31 = vpop.f32.mrf.mxu0  ;;  %v2803_v32 = vpop.f32.mrf.mxu1 }
 0x15d   : > { %1287 = vst [vmem:[#allocation2 + $0x1e0] sm:$0xff] %v1223_v29  ;;  %1319 = vst [vmem:[#allocation2 + $0x158] sm:$0xff] %v1255_v30  ;;  %v1226_v35 = vadd.f32 %v2771_v31, %v553_v27  ;;  %v1258_v36 = vadd.f32 %v2803_v32, %v585_v28 }
 0x15e   : > { %v1055_v37 = vpop.f32.mrf.mxu0  ;;  %v1183_v38 = vpop.f32.mrf.mxu1 }
 0x15f   : > { %1290 = vst [vmem:[#allocation2 + $0x8] sm:$0xff] %v1226_v35  ;;  %1322 = vst [vmem:[#allocation2 + $0xa0] sm:$0xff] %v1258_v36  ;;  %v1224_v39 = vadd.f32 %v1055_v37, %v551_v33  ;;  %v1256_v40 = vadd.f32 %v1183_v38, %v583_v34 }
 0x161   : > { %1288 = vst [vmem:[#allocation2] sm:$0xff] %v1224_v39  ;;  %1320 = vst [vmem:[#allocation2 + $0x10] sm:$0xff] %v1256_v40 }
 0x162 PF: > { %p2597_p10 = scmp.lt.s32.totalorder %s3035_s18, 1 }
 0x164   : > { %1326 = sbr.rel (%p2597_p10) target bundleno = 652 (0x28c), region = 52 }
 0x169   : > { %v2981_v41 = vld [vmem:[%s3112_s13 + $0x38] sm:$0xff]   ;;  %v2982_v42 = vld [vmem:[%s3112_s13 + $0x30] sm:$0xff]   ;;  %v2983_v43 = vld [vmem:[%s3112_s13 + $0x28] sm:$0xff]  }
 0x16a   : > { %2804 = vmatprep.subr.bf16.mxu0 %v2981_v41  ;;  %2900 = vmatprep.subr.bf16.mxu1 %v2981_v41  ;;  %v2984_v44 = vld [vmem:[%s3112_s13 + $0x20] sm:$0xff]   ;;  %v2985_v47 = vld [vmem:[%s3112_s13 + $0x18] sm:$0xff]   ;;  %v2986_v48 = vld [vmem:[%s3112_s13 + $0x10] sm:$0xff]  }
 0x16b   : > { %2805 = vmatpush3.bf16.msra.mxu0 %v2981_v41  ;;  %2908 = vmatpush3.bf16.msra.mxu1 %v2981_v41  ;;  %v2989_v45 = vld [vmem:[%s3598_s2] sm:$0xff]   ;;  %v2987_v49 = vld [vmem:[%s3112_s13 + $0x8] sm:$0xff]   ;;  %v2993_v53 = vld [vmem:[%s3598_s2 + $0x10] sm:$0xff]  }
 0x16c   : > { %2806 = vmatprep.subr.bf16.mxu0 %v2982_v42  ;;  %2901 = vmatprep.subr.bf16.mxu1 %v2982_v42  ;;  %v2990_v46 = vld [vmem:[%s3598_s2 + $0x80] sm:$0xff]   ;;  %v2991_v51 = vld [vmem:[%s3598_s2 + $0x8] sm:$0xff]   ;;  %v2994_v54 = vld [vmem:[%s3598_s2 + $0x90] sm:$0xff]  }
 0x16d   : > { %2820 = vmatprep.mubr.bf16.mxu0 %v2989_v45  ;;  %2852 = vmatprep.mubr.bf16.mxu1 %v2990_v46  ;;  %v2988_v50 = vld [vmem:[%s3112_s13] sm:$0xff]   ;;  %v2992_v52 = vld [vmem:[%s3598_s2 + $0x88] sm:$0xff]   ;;  %v2995_v55 = vld [vmem:[%s3598_s2 + $0x18] sm:$0xff]  }
 0x16e   : > { %v2996_v56 = vld [vmem:[%s3598_s2 + $0x98] sm:$0xff]   ;;  %v2997_v57 = vld [vmem:[%s3598_s2 + $0x20] sm:$0xff]   ;;  %v2999_v59 = vld [vmem:[%s3598_s2 + $0x28] sm:$0xff]  }
 0x16f   : > { %2807 = vmatpush3.bf16.msra.mxu0 %v2982_v42  ;;  %2909 = vmatpush3.bf16.msra.mxu1 %v2982_v42  ;;  %v2998_v58 = vld [vmem:[%s3598_s2 + $0xa0] sm:$0xff]   ;;  %v3000_v60 = vld [vmem:[%s3598_s2 + $0xa8] sm:$0xff]   ;;  %v3001_v61 = vld [vmem:[%s3598_s2 + $0x30] sm:$0xff]  }
 0x170   : > { %2808 = vmatprep.subr.bf16.mxu0 %v2983_v43  ;;  %2902 = vmatprep.subr.bf16.mxu1 %v2983_v43  ;;  %v3002_v62 = vld [vmem:[%s3598_s2 + $0xb0] sm:$0xff]   ;;  %v3003_v63 = vld [vmem:[%s3598_s2 + $0x38] sm:$0xff]   ;;  %v3005_v1 = vld [vmem:[%s3598_s2 + $0x40] sm:$0xff]  }
 0x171   : > { %v3004_v0 = vld [vmem:[%s3598_s2 + $0xb8] sm:$0xff]   ;;  %v3006_v2 = vld [vmem:[%s3598_s2 + $0xc0] sm:$0xff]   ;;  %v3007_v3 = vld [vmem:[%s3598_s2 + $0x48] sm:$0xff]  }
 0x172   : > { %v3008_v4 = vld [vmem:[%s3598_s2 + $0xc8] sm:$0xff]   ;;  %v3009_v5 = vld [vmem:[%s3598_s2 + $0x50] sm:$0xff]   ;;  %v3011_v7 = vld [vmem:[%s3598_s2 + $0x58] sm:$0xff]  }
 0x173   : > { %2809 = vmatpush3.bf16.msra.mxu0 %v2983_v43  ;;  %2910 = vmatpush3.bf16.msra.mxu1 %v2983_v43  ;;  %v3010_v6 = vld [vmem:[%s3598_s2 + $0xd0] sm:$0xff]   ;;  %v3012_v8 = vld [vmem:[%s3598_s2 + $0xd8] sm:$0xff]   ;;  %v3013_v9 = vld [vmem:[%s3598_s2 + $0x60] sm:$0xff]  }
 0x174   : > { %2810 = vmatprep.subr.bf16.mxu0 %v2984_v44  ;;  %2903 = vmatprep.subr.bf16.mxu1 %v2984_v44  ;;  %v3014_v10 = vld [vmem:[%s3598_s2 + $0xe0] sm:$0xff]   ;;  %v3015_v11 = vld [vmem:[%s3598_s2 + $0x68] sm:$0xff]   ;;  %v3017_v13 = vld [vmem:[%s3598_s2 + $0x70] sm:$0xff]  }
 0x175   : > { %v3016_v12 = vld [vmem:[%s3598_s2 + $0xe8] sm:$0xff]   ;;  %v3018_v14 = vld [vmem:[%s3598_s2 + $0xf0] sm:$0xff]   ;;  %v3019_v15 = vld [vmem:[%s3598_s2 + $0x78] sm:$0xff]  }
 0x176   : > { %v3020_v16 = vld [vmem:[%s3598_s2 + $0xf8] sm:$0xff]   ;;  %v1361_v18 = vld [vmem:[#allocation2 + $0x100] sm:$0xff]  ;;  %v1327_v21 = vld [vmem:[#allocation2 + $0xb0] sm:$0xff] }
 0x177   : > { %2811 = vmatpush3.bf16.msra.mxu0 %v2984_v44  ;;  %2911 = vmatpush3.bf16.msra.mxu1 %v2984_v44  ;;  %v1329_v17 = vld [vmem:[#allocation2 + $0xd8] sm:$0xff]  ;;  %v1359_v22 = vld [vmem:[#allocation2 + $0x148] sm:$0xff]  ;;  %v1328_v33 = vld [vmem:[#allocation2 + $0x1b0] sm:$0xff] }
 0x178   : > { %2812 = vmatprep.subr.bf16.mxu0 %v2985_v47  ;;  %2904 = vmatprep.subr.bf16.mxu1 %v2985_v47  ;;  %v1330_v27 = vld [vmem:[#allocation2 + $0x18] sm:$0xff]  ;;  %v1362_v28 = vld [vmem:[#allocation2 + $0xc8] sm:$0xff]  ;;  %v1360_v34 = vld [vmem:[#allocation2 + $0x1d0] sm:$0xff] }
 0x179   : > { %v1333_v39 = vld [vmem:[#allocation2 + $0x130] sm:$0xff]  ;;  %v1365_v40 = vld [vmem:[#allocation2 + $0x20] sm:$0xff] }
 0x17a   : > { %v1331_v45 = vld [vmem:[#allocation2 + $0x50] sm:$0xff]  ;;  %v1363_v46 = vld [vmem:[#allocation2 + $0x40] sm:$0xff] }
 0x17b   : > { %2813 = vmatpush3.bf16.msra.mxu0 %v2985_v47  ;;  %2912 = vmatpush3.bf16.msra.mxu1 %v2985_v47 }
 0x17c   : > { %2814 = vmatprep.subr.bf16.mxu0 %v2986_v48  ;;  %2905 = vmatprep.subr.bf16.mxu1 %v2986_v48 }
 0x17f   : > { %2815 = vmatpush3.bf16.msra.mxu0 %v2986_v48  ;;  %2913 = vmatpush3.bf16.msra.mxu1 %v2986_v48 }
 0x180   : > { %2816 = vmatprep.subr.bf16.mxu0 %v2987_v49  ;;  %2906 = vmatprep.subr.bf16.mxu1 %v2987_v49 }
 0x183   : > { %2817 = vmatpush3.bf16.msra.mxu0 %v2987_v49  ;;  %2914 = vmatpush3.bf16.msra.mxu1 %v2987_v49 }
 0x184   : > { %2818 = vmatprep.subr.bf16.mxu0 %v2988_v50  ;;  %2907 = vmatprep.subr.bf16.mxu1 %v2988_v50 }
 0x187   : > { %2819 = vmatpush3.bf16.msra.mxu0 %v2988_v50  ;;  %2915 = vmatpush3.bf16.msra.mxu1 %v2988_v50 }
 0x18a   : > { %2821 = vmatmul.mubr.bf16.vlgmr.msra.gmra.mxu0 %v2991_v51  ;;  %2853 = vmatmul.mubr.bf16.vlgmr.msra.gmra.mxu1 %v2992_v52  ;;  %v1334_v51 = vld [vmem:[#allocation2 + $0x48] sm:$0xff] }
 0x18b   : > { %2824 = vmatprep.mubr.bf16.mxu0 %v2993_v53  ;;  %2856 = vmatprep.mubr.bf16.mxu1 %v2994_v54  ;;  %v1366_v52 = vld [vmem:[#allocation2 + $0x128] sm:$0xff] }
 0x192   : > { %2825 = vmatmul.mubr.bf16.gmra.mxu0 %v2995_v55  ;;  %2857 = vmatmul.mubr.bf16.gmra.mxu1 %v2996_v56 }
 0x193   : > { %2828 = vmatprep.mubr.bf16.mxu0 %v2997_v57  ;;  %2860 = vmatprep.mubr.bf16.mxu1 %v2998_v58  ;;  %v1332_v57 = vld [vmem:[#allocation2 + $0x168] sm:$0xff]  ;;  %v1364_v58 = vld [vmem:[#allocation2 + $0x1f8] sm:$0xff] }
 0x19a   : > { %2829 = vmatmul.mubr.bf16.gmra.mxu0 %v2999_v59  ;;  %2861 = vmatmul.mubr.bf16.gmra.mxu1 %v3000_v60 }
 0x19b   : > { %2832 = vmatprep.mubr.bf16.mxu0 %v3001_v61  ;;  %2864 = vmatprep.mubr.bf16.mxu1 %v3002_v62 }
 0x1a2   : > { %2833 = vmatmul.mubr.bf16.gmra.mxu0 %v3003_v63  ;;  %2865 = vmatmul.mubr.bf16.gmra.mxu1 %v3004_v0  ;;  %v1337_v63 = vld [vmem:[#allocation2 + $0x118] sm:$0xff]  ;;  %v1369_v0 = vld [vmem:[#allocation2 + $0xe8] sm:$0xff] }
 0x1a3   : > { %2836 = vmatprep.mubr.bf16.mxu0 %v3005_v1  ;;  %2868 = vmatprep.mubr.bf16.mxu1 %v3006_v2 }
 0x1aa   : > { %2837 = vmatmul.mubr.bf16.gmra.mxu0 %v3007_v3  ;;  %2869 = vmatmul.mubr.bf16.gmra.mxu1 %v3008_v4 }
 0x1ab   : > { %2840 = vmatprep.mubr.bf16.mxu0 %v3009_v5  ;;  %2872 = vmatprep.mubr.bf16.mxu1 %v3010_v6  ;;  %v1335_v5 = vld [vmem:[#allocation2 + $0x180] sm:$0xff] }
 0x1ac   : > { %v1367_v6 = vld [vmem:[#allocation2 + $0x1a0] sm:$0xff] }
 0x1b2   : > { %2841 = vmatmul.mubr.bf16.gmra.mxu0 %v3011_v7  ;;  %2873 = vmatmul.mubr.bf16.gmra.mxu1 %v3012_v8 }
 0x1b3   : > { %2844 = vmatprep.mubr.bf16.mxu0 %v3013_v9  ;;  %2876 = vmatprep.mubr.bf16.mxu1 %v3014_v10 }
 0x1ba   : > { %2845 = vmatmul.mubr.bf16.gmra.mxu0 %v3015_v11  ;;  %2877 = vmatmul.mubr.bf16.gmra.mxu1 %v3016_v12  ;;  %v1338_v11 = vld [vmem:[#allocation2 + $0x98] sm:$0xff] }
 0x1bb   : > { %2848 = vmatprep.mubr.bf16.mxu0 %v3017_v13  ;;  %2880 = vmatprep.mubr.bf16.mxu1 %v3018_v14  ;;  %v1370_v12 = vld [vmem:[#allocation2 + $0x78] sm:$0xff] }
 0x1c2   : > { %2849 = vmatmul.mubr.bf16.gmra.mxu0 %v3019_v15  ;;  %2881 = vmatmul.mubr.bf16.gmra.mxu1 %v3020_v16 }
 0x24a   : > { %v2822_v19 = vpop.f32.mrf.mxu0  ;;  %v2854_v20 = vpop.f32.mrf.mxu1 }
 0x24b   : > { %v2002_v23 = vadd.f32 %v2822_v19, %v1329_v17  ;;  %v2034_v24 = vadd.f32 %v2854_v20, %v1361_v18  ;;  %v1336_v17 = vld [vmem:[#allocation2 + $0x110] sm:$0xff] }
 0x24c   : > { %v1745_v25 = vpop.f32.mrf.mxu0  ;;  %v1873_v26 = vpop.f32.mrf.mxu1  ;;  %v1368_v18 = vld [vmem:[#allocation2 + $0x1f0] sm:$0xff] }
 0x24d   : > { %2066 = vst [vmem:[#allocation2 + $0xd8] sm:$0xff] %v2002_v23  ;;  %2098 = vst [vmem:[#allocation2 + $0x100] sm:$0xff] %v2034_v24  ;;  %v2000_v29 = vadd.f32 %v1745_v25, %v1327_v21  ;;  %v2032_v30 = vadd.f32 %v1873_v26, %v1359_v22  ;;  %v1341_v23 = vld [vmem:[#allocation2 + $0x108] sm:$0xff]  ;;  %v1373_v24 = vld [vmem:[#allocation2 + $0x1d8] sm:$0xff] }
 0x24e   : > { %v2823_v31 = vpop.f32.mrf.mxu0  ;;  %v2855_v32 = vpop.f32.mrf.mxu1 }
 0x24f   : > { %2064 = vst [vmem:[#allocation2 + $0xb0] sm:$0xff] %v2000_v29  ;;  %2096 = vst [vmem:[#allocation2 + $0x148] sm:$0xff] %v2032_v30  ;;  %v2003_v35 = vadd.f32 %v2823_v31, %v1330_v27  ;;  %v2035_v36 = vadd.f32 %v2855_v32, %v1362_v28  ;;  %v1339_v29 = vld [vmem:[#allocation2 + $0x120] sm:$0xff]  ;;  %v1371_v30 = vld [vmem:[#allocation2 + $0x70] sm:$0xff] }
 0x250   : > { %v1748_v37 = vpop.f32.mrf.mxu0  ;;  %v1876_v38 = vpop.f32.mrf.mxu1 }
 0x251   : > { %2067 = vst [vmem:[#allocation2 + $0x18] sm:$0xff] %v2003_v35  ;;  %2099 = vst [vmem:[#allocation2 + $0xc8] sm:$0xff] %v2035_v36  ;;  %v2001_v41 = vadd.f32 %v1748_v37, %v1328_v33  ;;  %v2033_v42 = vadd.f32 %v1876_v38, %v1360_v34  ;;  %v1342_v35 = vld [vmem:[#allocation2 + $0x60] sm:$0xff]  ;;  %v1374_v36 = vld [vmem:[#allocation2 + $0xd0] sm:$0xff] }
 0x252   : > { %v2826_v43 = vpop.f32.mrf.mxu0  ;;  %v2858_v44 = vpop.f32.mrf.mxu1 }
 0x253   : > { %2065 = vst [vmem:[#allocation2 + $0x1b0] sm:$0xff] %v2001_v41  ;;  %2097 = vst [vmem:[#allocation2 + $0x1d0] sm:$0xff] %v2033_v42  ;;  %v2006_v47 = vadd.f32 %v2826_v43, %v1333_v39  ;;  %v2038_v48 = vadd.f32 %v2858_v44, %v1365_v40  ;;  %v1340_v41 = vld [vmem:[#allocation2 + $0x150] sm:$0xff] }
 0x254   : > { %v1761_v49 = vpop.f32.mrf.mxu0  ;;  %v1889_v50 = vpop.f32.mrf.mxu1  ;;  %v1372_v42 = vld [vmem:[#allocation2 + $0x90] sm:$0xff] }
 0x255   : > { %2070 = vst [vmem:[#allocation2 + $0x130] sm:$0xff] %v2006_v47  ;;  %2102 = vst [vmem:[#allocation2 + $0x20] sm:$0xff] %v2038_v48  ;;  %v2004_v53 = vadd.f32 %v1761_v49, %v1331_v45  ;;  %v2036_v54 = vadd.f32 %v1889_v50, %v1363_v46  ;;  %v1345_v47 = vld [vmem:[#allocation2 + $0x138] sm:$0xff]  ;;  %v1377_v48 = vld [vmem:[#allocation2 + $0xa8] sm:$0xff] }
 0x256   : > { %v2827_v55 = vpop.f32.mrf.mxu0  ;;  %v2859_v56 = vpop.f32.mrf.mxu1 }
 0x257   : > { %2068 = vst [vmem:[#allocation2 + $0x50] sm:$0xff] %v2004_v53  ;;  %2100 = vst [vmem:[#allocation2 + $0x40] sm:$0xff] %v2036_v54  ;;  %v2007_v59 = vadd.f32 %v2827_v55, %v1334_v51  ;;  %v2039_v60 = vadd.f32 %v2859_v56, %v1366_v52  ;;  %v1343_v53 = vld [vmem:[#allocation2 + $0xe0] sm:$0xff]  ;;  %v1375_v54 = vld [vmem:[#allocation2 + $0xb8] sm:$0xff] }
 0x258   : > { %v1764_v61 = vpop.f32.mrf.mxu0  ;;  %v1892_v62 = vpop.f32.mrf.mxu1 }
 0x259   : > { %2071 = vst [vmem:[#allocation2 + $0x48] sm:$0xff] %v2007_v59  ;;  %2103 = vst [vmem:[#allocation2 + $0x128] sm:$0xff] %v2039_v60  ;;  %v2005_v1 = vadd.f32 %v1764_v61, %v1332_v57  ;;  %v2037_v2 = vadd.f32 %v1892_v62, %v1364_v58  ;;  %v1346_v59 = vld [vmem:[#allocation2 + $0x140] sm:$0xff]  ;;  %v1378_v60 = vld [vmem:[#allocation2 + $0x1c8] sm:$0xff] }
 0x25a   : > { %v2830_v3 = vpop.f32.mrf.mxu0  ;;  %v2862_v4 = vpop.f32.mrf.mxu1 }
 0x25b   : > { %2069 = vst [vmem:[#allocation2 + $0x168] sm:$0xff] %v2005_v1  ;;  %2101 = vst [vmem:[#allocation2 + $0x1f8] sm:$0xff] %v2037_v2  ;;  %v2010_v7 = vadd.f32 %v2830_v3, %v1337_v63  ;;  %v2042_v8 = vadd.f32 %v2862_v4, %v1369_v0  ;;  %v1344_v1 = vld [vmem:[#allocation2 + $0x188] sm:$0xff] }
 0x25c   : > { %v1777_v9 = vpop.f32.mrf.mxu0  ;;  %v1905_v10 = vpop.f32.mrf.mxu1  ;;  %v1376_v2 = vld [vmem:[#allocation2 + $0x88] sm:$0xff] }
 0x25d   : > { %2074 = vst [vmem:[#allocation2 + $0x118] sm:$0xff] %v2010_v7  ;;  %2106 = vst [vmem:[#allocation2 + $0xe8] sm:$0xff] %v2042_v8  ;;  %v2008_v13 = vadd.f32 %v1777_v9, %v1335_v5  ;;  %v2040_v14 = vadd.f32 %v1905_v10, %v1367_v6  ;;  %v1349_v7 = vld [vmem:[#allocation2 + $0x1b8] sm:$0xff]  ;;  %v1381_v8 = vld [vmem:[#allocation2 + $0x68] sm:$0xff] }
 0x25e   : > { %v2831_v15 = vpop.f32.mrf.mxu0  ;;  %v2863_v16 = vpop.f32.mrf.mxu1 }
 0x25f   : > { %2072 = vst [vmem:[#allocation2 + $0x180] sm:$0xff] %v2008_v13  ;;  %2104 = vst [vmem:[#allocation2 + $0x1a0] sm:$0xff] %v2040_v14  ;;  %v2011_v19 = vadd.f32 %v2831_v15, %v1338_v11  ;;  %v2043_v20 = vadd.f32 %v2863_v16, %v1370_v12  ;;  %v1347_v13 = vld [vmem:[#allocation2 + $0x80] sm:$0xff]  ;;  %v1379_v14 = vld [vmem:[#allocation2 + $0x170] sm:$0xff] }
 0x260   : > { %v1780_v21 = vpop.f32.mrf.mxu0  ;;  %v1908_v22 = vpop.f32.mrf.mxu1 }
 0x261   : > { %2075 = vst [vmem:[#allocation2 + $0x98] sm:$0xff] %v2011_v19  ;;  %2107 = vst [vmem:[#allocation2 + $0x78] sm:$0xff] %v2043_v20  ;;  %v2009_v25 = vadd.f32 %v1780_v21, %v1336_v17  ;;  %v2041_v26 = vadd.f32 %v1908_v22, %v1368_v18  ;;  %v1350_v19 = vld [vmem:[#allocation2 + $0x28] sm:$0xff]  ;;  %v1382_v20 = vld [vmem:[#allocation2 + $0x190] sm:$0xff] }
 0x262   : > { %v2834_v27 = vpop.f32.mrf.mxu0  ;;  %v2866_v28 = vpop.f32.mrf.mxu1 }
 0x263   : > { %2073 = vst [vmem:[#allocation2 + $0x110] sm:$0xff] %v2009_v25  ;;  %2105 = vst [vmem:[#allocation2 + $0x1f0] sm:$0xff] %v2041_v26  ;;  %v2014_v31 = vadd.f32 %v2834_v27, %v1341_v23  ;;  %v2046_v32 = vadd.f32 %v2866_v28, %v1373_v24  ;;  %v1348_v25 = vld [vmem:[#allocation2 + $0x1a8] sm:$0xff]  ;;  %v1380_v26 = vld [vmem:[#allocation2 + $0x178] sm:$0xff] }
 0x264   : > { %v1793_v33 = vpop.f32.mrf.mxu0  ;;  %v1921_v34 = vpop.f32.mrf.mxu1 }
 0x265   : > { %2078 = vst [vmem:[#allocation2 + $0x108] sm:$0xff] %v2014_v31  ;;  %2110 = vst [vmem:[#allocation2 + $0x1d8] sm:$0xff] %v2046_v32  ;;  %v2012_v37 = vadd.f32 %v1793_v33, %v1339_v29  ;;  %v2044_v38 = vadd.f32 %v1921_v34, %v1371_v30  ;;  %v1353_v31 = vld [vmem:[#allocation2 + $0x160] sm:$0xff] }
 0x266   : > { %v2835_v39 = vpop.f32.mrf.mxu0  ;;  %v2867_v40 = vpop.f32.mrf.mxu1  ;;  %v1385_v32 = vld [vmem:[#allocation2 + $0xc0] sm:$0xff] }
 0x267   : > { %2076 = vst [vmem:[#allocation2 + $0x120] sm:$0xff] %v2012_v37  ;;  %2108 = vst [vmem:[#allocation2 + $0x70] sm:$0xff] %v2044_v38  ;;  %v2015_v43 = vadd.f32 %v2835_v39, %v1342_v35  ;;  %v2047_v44 = vadd.f32 %v2867_v40, %v1374_v36  ;;  %v1351_v37 = vld [vmem:[#allocation2 + $0x1e8] sm:$0xff]  ;;  %v1383_v38 = vld [vmem:[#allocation2 + $0x198] sm:$0xff] }
 0x268   : > { %v1796_v45 = vpop.f32.mrf.mxu0  ;;  %v1924_v46 = vpop.f32.mrf.mxu1 }
 0x269   : > { %2079 = vst [vmem:[#allocation2 + $0x60] sm:$0xff] %v2015_v43  ;;  %2111 = vst [vmem:[#allocation2 + $0xd0] sm:$0xff] %v2047_v44  ;;  %v2013_v49 = vadd.f32 %v1796_v45, %v1340_v41  ;;  %v2045_v50 = vadd.f32 %v1924_v46, %v1372_v42  ;;  %v1354_v43 = vld [vmem:[#allocation2 + $0x30] sm:$0xff]  ;;  %v1386_v44 = vld [vmem:[#allocation2 + $0x1c0] sm:$0xff] }
 0x26a   : > { %v2838_v51 = vpop.f32.mrf.mxu0  ;;  %v2870_v52 = vpop.f32.mrf.mxu1 }
 0x26b   : > { %2077 = vst [vmem:[#allocation2 + $0x150] sm:$0xff] %v2013_v49  ;;  %2109 = vst [vmem:[#allocation2 + $0x90] sm:$0xff] %v2045_v50  ;;  %v2018_v55 = vadd.f32 %v2838_v51, %v1345_v47  ;;  %v2050_v56 = vadd.f32 %v2870_v52, %v1377_v48  ;;  %v1352_v49 = vld [vmem:[#allocation2 + $0xf8] sm:$0xff] }
 0x26c   : > { %v1809_v57 = vpop.f32.mrf.mxu0  ;;  %v1937_v58 = vpop.f32.mrf.mxu1  ;;  %v1384_v50 = vld [vmem:[#allocation2 + $0x38] sm:$0xff] }
 0x26d   : > { %2082 = vst [vmem:[#allocation2 + $0x138] sm:$0xff] %v2018_v55  ;;  %2114 = vst [vmem:[#allocation2 + $0xa8] sm:$0xff] %v2050_v56  ;;  %v2016_v61 = vadd.f32 %v1809_v57, %v1343_v53  ;;  %v2048_v62 = vadd.f32 %v1937_v58, %v1375_v54  ;;  %v1357_v55 = vld [vmem:[#allocation2 + $0xf0] sm:$0xff]  ;;  %v1389_v56 = vld [vmem:[#allocation2 + $0x58] sm:$0xff] }
 0x26e   : > { %v2839_v63 = vpop.f32.mrf.mxu0  ;;  %v2871_v0 = vpop.f32.mrf.mxu1 }
 0x26f   : > { %2080 = vst [vmem:[#allocation2 + $0xe0] sm:$0xff] %v2016_v61  ;;  %2112 = vst [vmem:[#allocation2 + $0xb8] sm:$0xff] %v2048_v62  ;;  %v2019_v3 = vadd.f32 %v2839_v63, %v1346_v59  ;;  %v2051_v4 = vadd.f32 %v2871_v0, %v1378_v60  ;;  %v1355_v61 = vld [vmem:[#allocation2 + $0x1e0] sm:$0xff]  ;;  %v1387_v62 = vld [vmem:[#allocation2 + $0x158] sm:$0xff] }
 0x270   : > { %v1812_v5 = vpop.f32.mrf.mxu0  ;;  %v1940_v6 = vpop.f32.mrf.mxu1 }
 0x271   : > { %2083 = vst [vmem:[#allocation2 + $0x140] sm:$0xff] %v2019_v3  ;;  %2115 = vst [vmem:[#allocation2 + $0x1c8] sm:$0xff] %v2051_v4  ;;  %v2017_v9 = vadd.f32 %v1812_v5, %v1344_v1  ;;  %v2049_v10 = vadd.f32 %v1940_v6, %v1376_v2  ;;  %v1358_v3 = vld [vmem:[#allocation2 + $0x8] sm:$0xff]  ;;  %v1390_v4 = vld [vmem:[#allocation2 + $0xa0] sm:$0xff] }
 0x272   : > { %v2842_v11 = vpop.f32.mrf.mxu0  ;;  %v2874_v12 = vpop.f32.mrf.mxu1 }
 0x273   : > { %2081 = vst [vmem:[#allocation2 + $0x188] sm:$0xff] %v2017_v9  ;;  %2113 = vst [vmem:[#allocation2 + $0x88] sm:$0xff] %v2049_v10  ;;  %v2022_v15 = vadd.f32 %v2842_v11, %v1349_v7  ;;  %v2054_v16 = vadd.f32 %v2874_v12, %v1381_v8  ;;  %v1356_v9 = vld [vmem:[#allocation2] sm:$0xff]  ;;  %v1388_v10 = vld [vmem:[#allocation2 + $0x10] sm:$0xff] }
 0x274   : > { %v1825_v17 = vpop.f32.mrf.mxu0  ;;  %v1953_v18 = vpop.f32.mrf.mxu1 }
 0x275   : > { %2086 = vst [vmem:[#allocation2 + $0x1b8] sm:$0xff] %v2022_v15  ;;  %2118 = vst [vmem:[#allocation2 + $0x68] sm:$0xff] %v2054_v16  ;;  %v2020_v21 = vadd.f32 %v1825_v17, %v1347_v13  ;;  %v2052_v22 = vadd.f32 %v1953_v18, %v1379_v14 }
 0x276   : > { %v2843_v23 = vpop.f32.mrf.mxu0  ;;  %v2875_v24 = vpop.f32.mrf.mxu1 }
 0x277   : > { %2084 = vst [vmem:[#allocation2 + $0x80] sm:$0xff] %v2020_v21  ;;  %2116 = vst [vmem:[#allocation2 + $0x170] sm:$0xff] %v2052_v22  ;;  %v2023_v27 = vadd.f32 %v2843_v23, %v1350_v19  ;;  %v2055_v28 = vadd.f32 %v2875_v24, %v1382_v20 }
 0x278   : > { %v1828_v29 = vpop.f32.mrf.mxu0  ;;  %v1956_v30 = vpop.f32.mrf.mxu1 }
 0x279   : > { %2087 = vst [vmem:[#allocation2 + $0x28] sm:$0xff] %v2023_v27  ;;  %2119 = vst [vmem:[#allocation2 + $0x190] sm:$0xff] %v2055_v28  ;;  %v2021_v33 = vadd.f32 %v1828_v29, %v1348_v25  ;;  %v2053_v34 = vadd.f32 %v1956_v30, %v1380_v26 }
 0x27a   : > { %v2846_v35 = vpop.f32.mrf.mxu0  ;;  %v2878_v36 = vpop.f32.mrf.mxu1 }
 0x27b   : > { %2085 = vst [vmem:[#allocation2 + $0x1a8] sm:$0xff] %v2021_v33  ;;  %2117 = vst [vmem:[#allocation2 + $0x178] sm:$0xff] %v2053_v34  ;;  %v2026_v39 = vadd.f32 %v2846_v35, %v1353_v31  ;;  %v2058_v40 = vadd.f32 %v2878_v36, %v1385_v32 }
 0x27c   : > { %v1841_v41 = vpop.f32.mrf.mxu0  ;;  %v1969_v42 = vpop.f32.mrf.mxu1 }
 0x27d   : > { %2090 = vst [vmem:[#allocation2 + $0x160] sm:$0xff] %v2026_v39  ;;  %2122 = vst [vmem:[#allocation2 + $0xc0] sm:$0xff] %v2058_v40  ;;  %v2024_v45 = vadd.f32 %v1841_v41, %v1351_v37  ;;  %v2056_v46 = vadd.f32 %v1969_v42, %v1383_v38 }
 0x27e   : > { %v2847_v47 = vpop.f32.mrf.mxu0  ;;  %v2879_v48 = vpop.f32.mrf.mxu1 }
 0x27f   : > { %2088 = vst [vmem:[#allocation2 + $0x1e8] sm:$0xff] %v2024_v45  ;;  %2120 = vst [vmem:[#allocation2 + $0x198] sm:$0xff] %v2056_v46  ;;  %v2027_v51 = vadd.f32 %v2847_v47, %v1354_v43  ;;  %v2059_v52 = vadd.f32 %v2879_v48, %v1386_v44 }
 0x280   : > { %v1844_v53 = vpop.f32.mrf.mxu0  ;;  %v1972_v54 = vpop.f32.mrf.mxu1 }
 0x281   : > { %2091 = vst [vmem:[#allocation2 + $0x30] sm:$0xff] %v2027_v51  ;;  %2123 = vst [vmem:[#allocation2 + $0x1c0] sm:$0xff] %v2059_v52  ;;  %v2025_v57 = vadd.f32 %v1844_v53, %v1352_v49  ;;  %v2057_v58 = vadd.f32 %v1972_v54, %v1384_v50 }
 0x282   : > { %v2850_v59 = vpop.f32.mrf.mxu0  ;;  %v2882_v60 = vpop.f32.mrf.mxu1 }
 0x283   : > { %2089 = vst [vmem:[#allocation2 + $0xf8] sm:$0xff] %v2025_v57  ;;  %2121 = vst [vmem:[#allocation2 + $0x38] sm:$0xff] %v2057_v58  ;;  %v2030_v63 = vadd.f32 %v2850_v59, %v1357_v55  ;;  %v2062_v0 = vadd.f32 %v2882_v60, %v1389_v56 }
 0x284   : > { %v1857_v1 = vpop.f32.mrf.mxu0  ;;  %v1985_v2 = vpop.f32.mrf.mxu1 }
 0x285   : > { %2094 = vst [vmem:[#allocation2 + $0xf0] sm:$0xff] %v2030_v63  ;;  %2126 = vst [vmem:[#allocation2 + $0x58] sm:$0xff] %v2062_v0  ;;  %v2028_v5 = vadd.f32 %v1857_v1, %v1355_v61  ;;  %v2060_v6 = vadd.f32 %v1985_v2, %v1387_v62 }
 0x286   : > { %v2851_v7 = vpop.f32.mrf.mxu0  ;;  %v2883_v8 = vpop.f32.mrf.mxu1 }
 0x287   : > { %2092 = vst [vmem:[#allocation2 + $0x1e0] sm:$0xff] %v2028_v5  ;;  %2124 = vst [vmem:[#allocation2 + $0x158] sm:$0xff] %v2060_v6  ;;  %v2031_v11 = vadd.f32 %v2851_v7, %v1358_v3  ;;  %v2063_v12 = vadd.f32 %v2883_v8, %v1390_v4 }
 0x288   : > { %v1860_v13 = vpop.f32.mrf.mxu0  ;;  %v1988_v14 = vpop.f32.mrf.mxu1 }
 0x289   : > { %2095 = vst [vmem:[#allocation2 + $0x8] sm:$0xff] %v2031_v11  ;;  %2127 = vst [vmem:[#allocation2 + $0xa0] sm:$0xff] %v2063_v12  ;;  %v2029_v15 = vadd.f32 %v1860_v13, %v1356_v9  ;;  %v2061_v16 = vadd.f32 %v1988_v14, %v1388_v10 }
 0x28b   : > { %2093 = vst [vmem:[#allocation2] sm:$0xff] %v2029_v15  ;;  %2125 = vst [vmem:[#allocation2 + $0x10] sm:$0xff] %v2061_v16 }
 0x28c PF: > { %p2638_p11 = scmp.ne.s32.totalorder %s3035_s18, 1 }
 0x28e   : > { %2131 = sbr.rel (%p2638_p11) target bundleno = 696 (0x2b8), region = 56 }
 0x293   : > { %v2132_v17 = vld [vmem:[#allocation2 + $0xb0] sm:$0xff]  ;;  %v3329_v18 = vld [vmem:[%s3600_s4] ss:$0 sm:$0xff]  ;;  %v2134_v22 = vld [vmem:[#allocation2 + $0xd8] sm:$0xff] }
 0x294   : > { %v2133_v19 = vld [vmem:[#allocation2 + $0x1b0] sm:$0xff]  ;;  %v2203_v20 = vadd.f32 %v3329_v18, %v2132_v17  ;;  %v2135_v23 = vld [vmem:[#allocation2 + $0x18] sm:$0xff]  ;;  %v2205_v25 = vadd.f32 %v3329_v18, %v2134_v22  ;;  %v2137_v28 = vld [vmem:[#allocation2 + $0x168] sm:$0xff] }
 0x295   : > { %v2204_v21 = vadd.f32 %v3329_v18, %v2133_v19  ;;  %v2136_v24 = vld [vmem:[#allocation2 + $0x50] sm:$0xff]  ;;  %v2206_v26 = vadd.f32 %v3329_v18, %v2135_v23  ;;  %v2139_v30 = vld [vmem:[#allocation2 + $0x48] sm:$0xff]  ;;  %v2208_v33 = vadd.f32 %v3329_v18, %v2137_v28  ;;  %v2140_v35 = vld [vmem:[#allocation2 + $0x180] sm:$0xff] }
 0x296   : > { %v2207_v27 = vadd.f32 %v3329_v18, %v2136_v24  ;;  %v2138_v29 = vld [vmem:[#allocation2 + $0x130] sm:$0xff]  ;;  %v2267_v31 = vmax.f32 %v2203_v20, 0.0  ;;  %v2142_v37 = vld [vmem:[#allocation2 + $0x118] sm:$0xff]  ;;  %v2269_v38 = vmax.f32 %v2205_v25, 0.0  ;;  %v2210_v41 = vadd.f32 %v3329_v18, %v2139_v30  ;;  %v2144_v43 = vld [vmem:[#allocation2 + $0x120] sm:$0xff] }
 0x297   : > { %v2268_v32 = vmax.f32 %v2204_v21, 0.0  ;;  %v2209_v34 = vadd.f32 %v3329_v18, %v2138_v29  ;;  %v2141_v36 = vld [vmem:[#allocation2 + $0x110] sm:$0xff]  ;;  %v2270_v39 = vmax.f32 %v2206_v26, 0.0  ;;  %v2143_v42 = vld [vmem:[#allocation2 + $0x98] sm:$0xff]  ;;  %v2272_v45 = vmax.f32 %v2208_v33, 0.0  ;;  %v2146_v49 = vld [vmem:[#allocation2 + $0x108] sm:$0xff] }
 0x298   : > { %v2271_v40 = vmax.f32 %v2207_v27, 0.0  ;;  %v2145_v44 = vld [vmem:[#allocation2 + $0x150] sm:$0xff]  ;;  %2331 = vst [vmem:[%s3601_s5] sm:$0xff] %v2267_v31  ;;  %v2211_v47 = vadd.f32 %v3329_v18, %v2140_v35  ;;  %v2212_v48 = vadd.f32 %v3329_v18, %v2141_v36  ;;  %v2147_v50 = vld [vmem:[#allocation2 + $0x60] sm:$0xff]  ;;  %2333 = vst [vmem:[%s3601_s5 + $0x10] sm:$0xff] %v2269_v38  ;;  %v2274_v51 = vmax.f32 %v2210_v41, 0.0 }
 0x299   : > { %2332 = vst [vmem:[%s3601_s5 + $0x8] sm:$0xff] %v2268_v32  ;;  %v2273_v46 = vmax.f32 %v2209_v34, 0.0  ;;  %2334 = vst [vmem:[%s3601_s5 + $0x18] sm:$0xff] %v2270_v39  ;;  %v2213_v52 = vadd.f32 %v3329_v18, %v2142_v37  ;;  %v2214_v53 = vadd.f32 %v3329_v18, %v2143_v42  ;;  %v2215_v54 = vadd.f32 %v3329_v18, %v2144_v43  ;;  %v2148_v55 = vld [vmem:[#allocation2 + $0xe0] sm:$0xff]  ;;  %v2149_v56 = vld [vmem:[#allocation2 + $0x188] sm:$0xff] }
 0x29a   : > { %2335 = vst [vmem:[%s3601_s5 + $0x20] sm:$0xff] %v2271_v40  ;;  %2336 = vst [vmem:[%s3601_s5 + $0x28] sm:$0xff] %v2272_v45  ;;  %v2275_v57 = vmax.f32 %v2211_v47, 0.0  ;;  %v2276_v58 = vmax.f32 %v2212_v48, 0.0  ;;  %v2216_v59 = vadd.f32 %v3329_v18, %v2145_v44  ;;  %v2217_v60 = vadd.f32 %v3329_v18, %v2146_v49  ;;  %v2150_v61 = vld [vmem:[#allocation2 + $0x138] sm:$0xff]  ;;  %v2151_v62 = vld [vmem:[#allocation2 + $0x140] sm:$0xff] }
 0x29b   : > { %2337 = vst [vmem:[%s3601_s5 + $0x30] sm:$0xff] %v2273_v46  ;;  %v2152_v63 = vld [vmem:[#allocation2 + $0x80] sm:$0xff]  ;;  %2338 = vst [vmem:[%s3601_s5 + $0x38] sm:$0xff] %v2274_v51  ;;  %v2277_v0 = vmax.f32 %v2213_v52, 0.0  ;;  %v2278_v1 = vmax.f32 %v2214_v53, 0.0  ;;  %v2279_v2 = vmax.f32 %v2215_v54, 0.0  ;;  %v2218_v3 = vadd.f32 %v3329_v18, %v2147_v50 }
 0x29c   : > { %v2153_v4 = vld [vmem:[#allocation2 + $0x1a8] sm:$0xff]  ;;  %v2154_v5 = vld [vmem:[#allocation2 + $0x1b8] sm:$0xff]  ;;  %2339 = vst [vmem:[%s3601_s5 + $0x40] sm:$0xff] %v2275_v57  ;;  %2340 = vst [vmem:[%s3601_s5 + $0x48] sm:$0xff] %v2276_v58  ;;  %v2280_v6 = vmax.f32 %v2216_v59, 0.0  ;;  %v2281_v7 = vmax.f32 %v2217_v60, 0.0  ;;  %v2219_v8 = vadd.f32 %v3329_v18, %v2148_v55  ;;  %v2220_v9 = vadd.f32 %v3329_v18, %v2149_v56 }
 0x29d   : > { %v2155_v10 = vld [vmem:[#allocation2 + $0x28] sm:$0xff]  ;;  %2341 = vst [vmem:[%s3601_s5 + $0x50] sm:$0xff] %v2277_v0  ;;  %2342 = vst [vmem:[%s3601_s5 + $0x58] sm:$0xff] %v2278_v1  ;;  %v2282_v11 = vmax.f32 %v2218_v3, 0.0  ;;  %v2221_v12 = vadd.f32 %v3329_v18, %v2150_v61  ;;  %v2222_v13 = vadd.f32 %v3329_v18, %v2151_v62  ;;  %v2223_v14 = vadd.f32 %v3329_v18, %v2152_v63  ;;  %v2157_v16 = vld [vmem:[#allocation2 + $0xf8] sm:$0xff] }
 0x29e   : > { %2343 = vst [vmem:[%s3601_s5 + $0x60] sm:$0xff] %v2279_v2  ;;  %v2156_v15 = vld [vmem:[#allocation2 + $0x1e8] sm:$0xff]  ;;  %2344 = vst [vmem:[%s3601_s5 + $0x68] sm:$0xff] %v2280_v6  ;;  %v2283_v17 = vmax.f32 %v2219_v8, 0.0  ;;  %v2284_v19 = vmax.f32 %v2220_v9, 0.0  ;;  %v2224_v20 = vadd.f32 %v3329_v18, %v2153_v4  ;;  %v2225_v21 = vadd.f32 %v3329_v18, %v2154_v5  ;;  %v2158_v22 = vld [vmem:[#allocation2 + $0x160] sm:$0xff] }
 0x29f   : > { %2345 = vst [vmem:[%s3601_s5 + $0x70] sm:$0xff] %v2281_v7  ;;  %v2159_v23 = vld [vmem:[#allocation2 + $0x30] sm:$0xff]  ;;  %v2160_v24 = vld [vmem:[#allocation2 + $0x1e0] sm:$0xff]  ;;  %2346 = vst [vmem:[%s3601_s5 + $0x78] sm:$0xff] %v2282_v11  ;;  %v2285_v25 = vmax.f32 %v2221_v12, 0.0  ;;  %v2286_v26 = vmax.f32 %v2222_v13, 0.0  ;;  %v2226_v28 = vadd.f32 %v3329_v18, %v2155_v10  ;;  %v2227_v33 = vadd.f32 %v3329_v18, %v2156_v15 }
 0x2a0   : > { %v2287_v27 = vmax.f32 %v2223_v14, 0.0  ;;  %v2161_v29 = vld [vmem:[#allocation2] sm:$0xff]  ;;  %v2162_v30 = vld [vmem:[#allocation2 + $0xf0] sm:$0xff]  ;;  %2347 = vst [vmem:[%s3601_s5 + $0x80] sm:$0xff] %v2283_v17  ;;  %2348 = vst [vmem:[%s3601_s5 + $0x88] sm:$0xff] %v2284_v19  ;;  %v2288_v31 = vmax.f32 %v2224_v20, 0.0  ;;  %v2228_v34 = vadd.f32 %v3329_v18, %v2157_v16  ;;  %v2229_v37 = vadd.f32 %v3329_v18, %v2158_v22 }
 0x2a1   : > { %v2289_v32 = vmax.f32 %v2225_v21, 0.0  ;;  %v2163_v35 = vld [vmem:[#allocation2 + $0x8] sm:$0xff]  ;;  %2349 = vst [vmem:[%s3601_s5 + $0x90] sm:$0xff] %v2285_v25  ;;  %2350 = vst [vmem:[%s3601_s5 + $0x98] sm:$0xff] %v2286_v26  ;;  %v2290_v36 = vmax.f32 %v2226_v28, 0.0  ;;  %v2230_v38 = vadd.f32 %v3329_v18, %v2159_v23  ;;  %v2231_v39 = vadd.f32 %v3329_v18, %v2160_v24  ;;  %v2165_v41 = vld [vmem:[#allocation2 + $0x1d0] sm:$0xff] }
 0x2a2   : > { %2351 = vst [vmem:[%s3601_s5 + $0xa0] sm:$0xff] %v2287_v27  ;;  %v2164_v40 = vld [vmem:[#allocation2 + $0x148] sm:$0xff]  ;;  %2352 = vst [vmem:[%s3601_s5 + $0xa8] sm:$0xff] %v2288_v31  ;;  %v2291_v42 = vmax.f32 %v2227_v33, 0.0  ;;  %v2292_v43 = vmax.f32 %v2228_v34, 0.0  ;;  %v2232_v44 = vadd.f32 %v3329_v18, %v2161_v29  ;;  %v2233_v45 = vadd.f32 %v3329_v18, %v2162_v30  ;;  %v2166_v46 = vld [vmem:[#allocation2 + $0x100] sm:$0xff] }
 0x2a3   : > { %2353 = vst [vmem:[%s3601_s5 + $0xb0] sm:$0xff] %v2289_v32  ;;  %v2167_v47 = vld [vmem:[#allocation2 + $0xc8] sm:$0xff]  ;;  %v2168_v48 = vld [vmem:[#allocation2 + $0x40] sm:$0xff]  ;;  %2354 = vst [vmem:[%s3601_s5 + $0xb8] sm:$0xff] %v2290_v36  ;;  %v2293_v49 = vmax.f32 %v2229_v37, 0.0  ;;  %v2294_v50 = vmax.f32 %v2230_v38, 0.0  ;;  %v2234_v52 = vadd.f32 %v3329_v18, %v2163_v35  ;;  %v2235_v57 = vadd.f32 %v3329_v18, %v2164_v40 }
 0x2a4   : > { %v2295_v51 = vmax.f32 %v2231_v39, 0.0  ;;  %v2169_v53 = vld [vmem:[#allocation2 + $0x1f8] sm:$0xff]  ;;  %v2170_v54 = vld [vmem:[#allocation2 + $0x20] sm:$0xff]  ;;  %2355 = vst [vmem:[%s3601_s5 + $0xc0] sm:$0xff] %v2291_v42  ;;  %2356 = vst [vmem:[%s3601_s5 + $0xc8] sm:$0xff] %v2292_v43  ;;  %v2296_v55 = vmax.f32 %v2232_v44, 0.0  ;;  %v2236_v58 = vadd.f32 %v3329_v18, %v2165_v41  ;;  %v2237_v61 = vadd.f32 %v3329_v18, %v2166_v46 }
 0x2a5   : > { %v2297_v56 = vmax.f32 %v2233_v45, 0.0  ;;  %v2171_v59 = vld [vmem:[#allocation2 + $0x128] sm:$0xff]  ;;  %2357 = vst [vmem:[%s3601_s5 + $0xd0] sm:$0xff] %v2293_v49  ;;  %2358 = vst [vmem:[%s3601_s5 + $0xd8] sm:$0xff] %v2294_v50  ;;  %v2298_v60 = vmax.f32 %v2234_v52, 0.0  ;;  %v2238_v62 = vadd.f32 %v3329_v18, %v2167_v47  ;;  %v2239_v63 = vadd.f32 %v3329_v18, %v2168_v48  ;;  %v2172_v0 = vld [vmem:[#allocation2 + $0x1a0] sm:$0xff] }
 0x2a6   : > { %2359 = vst [vmem:[%s3601_s5 + $0xe0] sm:$0xff] %v2295_v51  ;;  %v2173_v1 = vld [vmem:[#allocation2 + $0x1f0] sm:$0xff]  ;;  %2360 = vst [vmem:[%s3601_s5 + $0xe8] sm:$0xff] %v2296_v55  ;;  %v2299_v2 = vmax.f32 %v2235_v57, 0.0  ;;  %v2300_v3 = vmax.f32 %v2236_v58, 0.0  ;;  %v2240_v4 = vadd.f32 %v3329_v18, %v2169_v53  ;;  %v2241_v5 = vadd.f32 %v3329_v18, %v2170_v54  ;;  %v2174_v6 = vld [vmem:[#allocation2 + $0xe8] sm:$0xff] }
 0x2a7   : > { %2361 = vst [vmem:[%s3601_s5 + $0xf0] sm:$0xff] %v2297_v56  ;;  %v2175_v7 = vld [vmem:[#allocation2 + $0x78] sm:$0xff]  ;;  %v2176_v8 = vld [vmem:[#allocation2 + $0x70] sm:$0xff]  ;;  %2362 = vst [vmem:[%s3601_s5 + $0xf8] sm:$0xff] %v2298_v60  ;;  %v2301_v9 = vmax.f32 %v2237_v61, 0.0  ;;  %v2302_v10 = vmax.f32 %v2238_v62, 0.0  ;;  %v2242_v12 = vadd.f32 %v3329_v18, %v2171_v59  ;;  %v2243_v17 = vadd.f32 %v3329_v18, %v2172_v0 }
 0x2a8   : > { %v2303_v11 = vmax.f32 %v2239_v63, 0.0  ;;  %v2177_v13 = vld [vmem:[#allocation2 + $0x90] sm:$0xff]  ;;  %v2178_v14 = vld [vmem:[#allocation2 + $0x1d8] sm:$0xff]  ;;  %2363 = vst [vmem:[%s3601_s5 + $0x100] sm:$0xff] %v2299_v2  ;;  %2364 = vst [vmem:[%s3601_s5 + $0x108] sm:$0xff] %v2300_v3  ;;  %v2304_v15 = vmax.f32 %v2240_v4, 0.0  ;;  %v2244_v19 = vadd.f32 %v3329_v18, %v2173_v1  ;;  %v2245_v22 = vadd.f32 %v3329_v18, %v2174_v6 }
 0x2a9   : > { %v2305_v16 = vmax.f32 %v2241_v5, 0.0  ;;  %v2179_v20 = vld [vmem:[#allocation2 + $0xd0] sm:$0xff]  ;;  %2365 = vst [vmem:[%s3601_s5 + $0x110] sm:$0xff] %v2301_v9  ;;  %2366 = vst [vmem:[%s3601_s5 + $0x118] sm:$0xff] %v2302_v10  ;;  %v2306_v21 = vmax.f32 %v2242_v12, 0.0  ;;  %v2246_v23 = vadd.f32 %v3329_v18, %v2175_v7  ;;  %v2247_v24 = vadd.f32 %v3329_v18, %v2176_v8  ;;  %v2180_v25 = vld [vmem:[#allocation2 + $0xb8] sm:$0xff] }
 0x2aa   : > { %2367 = vst [vmem:[%s3601_s5 + $0x120] sm:$0xff] %v2303_v11  ;;  %v2181_v26 = vld [vmem:[#allocation2 + $0x88] sm:$0xff]  ;;  %2368 = vst [vmem:[%s3601_s5 + $0x128] sm:$0xff] %v2304_v15  ;;  %v2307_v27 = vmax.f32 %v2243_v17, 0.0  ;;  %v2308_v28 = vmax.f32 %v2244_v19, 0.0  ;;  %v2248_v29 = vadd.f32 %v3329_v18, %v2177_v13  ;;  %v2249_v30 = vadd.f32 %v3329_v18, %v2178_v14  ;;  %v2184_v33 = vld [vmem:[#allocation2 + $0x170] sm:$0xff] }
 0x2ab   : > { %2369 = vst [vmem:[%s3601_s5 + $0x130] sm:$0xff] %v2305_v16  ;;  %v2182_v31 = vld [vmem:[#allocation2 + $0xa8] sm:$0xff]  ;;  %2370 = vst [vmem:[%s3601_s5 + $0x138] sm:$0xff] %v2306_v21  ;;  %v2309_v34 = vmax.f32 %v2245_v22, 0.0  ;;  %v2310_v35 = vmax.f32 %v2246_v23, 0.0  ;;  %v2311_v36 = vmax.f32 %v2247_v24, 0.0  ;;  %v2250_v37 = vadd.f32 %v3329_v18, %v2179_v20 }
 0x2ac   : > { %v2183_v32 = vld [vmem:[#allocation2 + $0x1c8] sm:$0xff]  ;;  %v2185_v38 = vld [vmem:[#allocation2 + $0x178] sm:$0xff]  ;;  %2371 = vst [vmem:[%s3601_s5 + $0x140] sm:$0xff] %v2307_v27  ;;  %2372 = vst [vmem:[%s3601_s5 + $0x148] sm:$0xff] %v2308_v28  ;;  %v2312_v40 = vmax.f32 %v2248_v29, 0.0  ;;  %v2313_v41 = vmax.f32 %v2249_v30, 0.0  ;;  %v2251_v42 = vadd.f32 %v3329_v18, %v2180_v25  ;;  %v2252_v43 = vadd.f32 %v3329_v18, %v2181_v26 }
 0x2ad   : > { %v2186_v39 = vld [vmem:[#allocation2 + $0x68] sm:$0xff]  ;;  %v2187_v44 = vld [vmem:[#allocation2 + $0x190] sm:$0xff]  ;;  %2373 = vst [vmem:[%s3601_s5 + $0x150] sm:$0xff] %v2309_v34  ;;  %2374 = vst [vmem:[%s3601_s5 + $0x158] sm:$0xff] %v2310_v35  ;;  %v2314_v45 = vmax.f32 %v2250_v37, 0.0  ;;  %v2253_v46 = vadd.f32 %v3329_v18, %v2182_v31  ;;  %v2254_v47 = vadd.f32 %v3329_v18, %v2183_v32  ;;  %v2255_v48 = vadd.f32 %v3329_v18, %v2184_v33 }
 0x2ae   : > { %2375 = vst [vmem:[%s3601_s5 + $0x160] sm:$0xff] %v2311_v36  ;;  %v2188_v49 = vld [vmem:[#allocation2 + $0x198] sm:$0xff]  ;;  %2376 = vst [vmem:[%s3601_s5 + $0x168] sm:$0xff] %v2312_v40  ;;  %v2315_v51 = vmax.f32 %v2251_v42, 0.0  ;;  %v2316_v52 = vmax.f32 %v2252_v43, 0.0  ;;  %v2256_v53 = vadd.f32 %v3329_v18, %v2185_v38  ;;  %v2257_v54 = vadd.f32 %v3329_v18, %v2186_v39  ;;  %v2190_v55 = vld [vmem:[#allocation2 + $0xc0] sm:$0xff] }
 0x2af   : > { %v2189_v50 = vld [vmem:[#allocation2 + $0x38] sm:$0xff]  ;;  %2377 = vst [vmem:[%s3601_s5 + $0x170] sm:$0xff] %v2313_v41  ;;  %v2191_v56 = vld [vmem:[#allocation2 + $0x1c0] sm:$0xff]  ;;  %2378 = vst [vmem:[%s3601_s5 + $0x178] sm:$0xff] %v2314_v45  ;;  %v2317_v58 = vmax.f32 %v2253_v46, 0.0  ;;  %v2318_v59 = vmax.f32 %v2254_v47, 0.0  ;;  %v2258_v61 = vadd.f32 %v3329_v18, %v2187_v44  ;;  %v2259_v2 = vadd.f32 %v3329_v18, %v2188_v49 }
 0x2b0   : > { %v2192_v57 = vld [vmem:[#allocation2 + $0x158] sm:$0xff]  ;;  %v2319_v60 = vmax.f32 %v2255_v48, 0.0  ;;  %v2193_v62 = vld [vmem:[#allocation2 + $0x10] sm:$0xff]  ;;  %2379 = vst [vmem:[%s3601_s5 + $0x180] sm:$0xff] %v2315_v51  ;;  %2380 = vst [vmem:[%s3601_s5 + $0x188] sm:$0xff] %v2316_v52  ;;  %v2320_v0 = vmax.f32 %v2256_v53, 0.0  ;;  %v2260_v3 = vadd.f32 %v3329_v18, %v2189_v50  ;;  %v2261_v6 = vadd.f32 %v3329_v18, %v2190_v55 }
 0x2b1   : > { %v2194_v63 = vld [vmem:[#allocation2 + $0x58] sm:$0xff]  ;;  %v2321_v1 = vmax.f32 %v2257_v54, 0.0  ;;  %v2195_v4 = vld [vmem:[#allocation2 + $0xa0] sm:$0xff]  ;;  %2381 = vst [vmem:[%s3601_s5 + $0x190] sm:$0xff] %v2317_v58  ;;  %2382 = vst [vmem:[%s3601_s5 + $0x198] sm:$0xff] %v2318_v59  ;;  %v2322_v5 = vmax.f32 %v2258_v61, 0.0  ;;  %v2262_v7 = vadd.f32 %v3329_v18, %v2191_v56  ;;  %v2263_v8 = vadd.f32 %v3329_v18, %v2192_v57 }
 0x2b2   : > { %2383 = vst [vmem:[%s3601_s5 + $0x1a0] sm:$0xff] %v2319_v60  ;;  %2384 = vst [vmem:[%s3601_s5 + $0x1a8] sm:$0xff] %v2320_v0  ;;  %v2323_v9 = vmax.f32 %v2259_v2, 0.0  ;;  %v2324_v10 = vmax.f32 %v2260_v3, 0.0  ;;  %v2264_v11 = vadd.f32 %v3329_v18, %v2193_v62  ;;  %v2265_v12 = vadd.f32 %v3329_v18, %v2194_v63 }
 0x2b3   : > { %2385 = vst [vmem:[%s3601_s5 + $0x1b0] sm:$0xff] %v2321_v1  ;;  %2386 = vst [vmem:[%s3601_s5 + $0x1b8] sm:$0xff] %v2322_v5  ;;  %v2325_v13 = vmax.f32 %v2261_v6, 0.0  ;;  %v2326_v14 = vmax.f32 %v2262_v7, 0.0  ;;  %v2327_v15 = vmax.f32 %v2263_v8, 0.0  ;;  %v2266_v16 = vadd.f32 %v3329_v18, %v2195_v4 }
 0x2b4   : > { %2387 = vst [vmem:[%s3601_s5 + $0x1c0] sm:$0xff] %v2323_v9  ;;  %2388 = vst [vmem:[%s3601_s5 + $0x1c8] sm:$0xff] %v2324_v10  ;;  %v2328_v17 = vmax.f32 %v2264_v11, 0.0  ;;  %v2329_v19 = vmax.f32 %v2265_v12, 0.0 }
 0x2b5   : > { %2389 = vst [vmem:[%s3601_s5 + $0x1d0] sm:$0xff] %v2325_v13  ;;  %2390 = vst [vmem:[%s3601_s5 + $0x1d8] sm:$0xff] %v2326_v14  ;;  %v2330_v18 = vmax.f32 %v2266_v16, 0.0 }
 0x2b6   : > { %2391 = vst [vmem:[%s3601_s5 + $0x1e0] sm:$0xff] %v2327_v15  ;;  %2392 = vst [vmem:[%s3601_s5 + $0x1e8] sm:$0xff] %v2328_v17 }
 0x2b7   : > { %2393 = vst [vmem:[%s3601_s5 + $0x1f0] sm:$0xff] %v2329_v19  ;;  %2394 = vst [vmem:[%s3601_s5 + $0x1f8] sm:$0xff] %v2330_v18 }
 0x2b8 PF: > { %s15_s20 = sadd.s32 1, %s3043_s20   ;;  %s3602_s18 = smov %s3039_s19 }
 0x2b9   : > { %p12_p12 = scmp.ge.s32.totalorder %s15_s20, 4   ;;  %s3603_s19 = smov %s3605_s21 }
 0x2bb   :  { %14 = sbr.rel (!%p12_p12) target bundleno = 2 (0x2), region = 98 }

// kernel: _bottleneck_forward.4
= control target key start
LH: loop header
LB: loop body
LE: loop exit
PB: predicated region body
PF: predicated region fallthrough
CT: control target
= control target key end

     0   :  { %s6987_s12 = smov 0   ;;  %s6989_s13 = smov 0   ;;  %s9670_s0 = inlined_call_operand.vmem [shape: bf16[2,18,18,128], index: 0, kind: input, shape index: {}]   ;;  %s9671_s1 = inlined_call_operand.vmem [shape: bf16[3,3,128,128], index: 1, kind: input, shape index: {}]   ;;  %s9672_s2 = inlined_call_operand.vmem [shape: f32[1,128], index: 2, kind: input, shape index: {}]   ;;  %s9673_s3 = inlined_call_operand.vmem [shape: bf16[2,16,16,128], index: 3, kind: output, shape index: {}]  }
   0x1   :  { %s6991_s14 = smov 0  }
   0x2 LB: > { %s25_s15 = sadd.s32 1, %s6961_s13  ;;  %p5374_p0 = scmp.ge.s32.totalorder %s6965_s14, 1  ;;  %s6965_s14 = sphi %s6991_s14, %s13_s14   ;;  %s6961_s13 = sphi %s6989_s13, %s9866_s13   ;;  %s6957_s12 = sphi %s6987_s12, %s9865_s12  }
   0x3   : > { %p27_p1 = scmp.ge.s32.totalorder %s25_s15, 2  ;;  %p168_p2 = scmp.lt.s32.totalorder %s6965_s14, 3 }
   0x5   : > { %s9868_s15 = smov (%p27_p1, %s25_s15), 0  ;;  %p169_p3 = pnand %p5374_p0, %p168_p2 }
   0x7   : > { %172 = sbr.rel (%p169_p3) target bundleno = 559 (0x22f), region = 32 }
   0xc   : > { %v6814_v0 = vld [vmem:[%s9671_s1 + $0x78] sm:$0xff]   ;;  %p202_p4 = scmp.lt.s32.totalorder %s6957_s12, 1  ;;  %v6815_v1 = vld [vmem:[%s9671_s1 + $0x70] sm:$0xff]   ;;  %v6816_v2 = vld [vmem:[%s9671_s1 + $0x68] sm:$0xff]   ;;  %vm287_vm0 = vsmask.f32 3328 }
   0xd   : > { %6341 = vmatprep.subr.bf16.mxu0 %v6814_v0  ;;  %6773 = vmatprep.subr.bf16.mxu1 %v6814_v0  ;;  %v6817_v3 = vld [vmem:[%s9671_s1 + $0x60] sm:$0xff]   ;;  %vm288_vm1 = vsmask.f32 7440  ;;  %v6818_v17 = vld [vmem:[%s9671_s1 + $0x58] sm:$0xff]   ;;  %v6819_v33 = vld [vmem:[%s9671_s1 + $0x50] sm:$0xff]   ;;  %vm1317_vm3 = vcmask 1042432  }
   0xe   : > { %s9870_s12 = smov (!%p202_p4, %s6957_s12), 1  ;;  %6342 = vmatpush3.bf16.msra.mxu0 %v6814_v0  ;;  %6781 = vmatpush3.bf16.msra.mxu1 %v6814_v0  ;;  %vm7051_vm2 = vmor %vm287_vm0, %vm288_vm1  ;;  %v6820_v58 = vld [vmem:[%s9671_s1 + $0x48] sm:$0xff]   ;;  %vm1318_vm4 = vcmask 1046532  }
   0xf   : > { %6343 = vmatprep.subr.bf16.mxu0 %v6815_v1  ;;  %6774 = vmatprep.subr.bf16.mxu1 %v6815_v1  ;;  %s6789_s22 = smul.u32 216, %s9870_s12  ;;  %vm7362_vm5 = vmor %vm1317_vm3, %vm1318_vm4  ;;  %s5997_s6 = sshll.u32 %s9870_s12, 7 }
  0x10   : > { %s9567_s8 = scalar_lea.vmem %s9673_s3, %s5997_s6 }
  0x11   : > { %s7020_s25 = scalar_lea.vmem %s9670_s0, %s6789_s22 }
  0x12   : > { %6344 = vmatpush3.bf16.msra.mxu0 %v6815_v1  ;;  %6782 = vmatpush3.bf16.msra.mxu1 %v6815_v1  ;;  %v7026_v4 = vld [vmem:[%s7020_s25] sm:$0xf]  ;;  %v7029_v5 = vld [vmem:[%s7020_s25 + $0x4] sm:$0xf]  ;;  %v7032_v6 = vld [vmem:[%s7020_s25 + $0x8] sm:$0x1] }
  0x13   : > { %6345 = vmatprep.subr.bf16.mxu0 %v6816_v2  ;;  %6775 = vmatprep.subr.bf16.mxu1 %v6816_v2  ;;  %v291_v7 = vshrl.u32 %v7026_v4, 16  ;;  %v294_v8 = vshll.u32 %v7026_v4, 16  ;;  %v300_v9 = vshll.u32 %v7029_v5, 16  ;;  %v304_v10 = vshrl.u32 %v7029_v5, 16  ;;  %v239_v12 = vld [vmem:[%s7020_s25 + $0x60] sm:$0xf] }
  0x14   : > { %v310_v11 = vshll.u32 %v7032_v6, 16  ;;  %v240_v15 = vld [vmem:[%s7020_s25 + $0x64] sm:$0xf]  ;;  %v279_v16 = vld [vmem:[%s7020_s25 + $0x68] sm:$0x1]  ;;  %v483_v21 = vshrl.u32 %v239_v12, 16 }
  0x15   : > { %v293_v13 = vrot.slane %v291_v7, 4  ;;  %v296_v14 = vrot.slane %v294_v8, 5  ;;  %v302_v18 = vrot.slane %v300_v9, 5  ;;  %v306_v19 = vrot.slane %v304_v10, 4  ;;  %v7047_v26 = vld [vmem:[%s7020_s25 + $0xc] sm:$0xf] }
  0x16   : > { %6346 = vmatpush3.bf16.msra.mxu0 %v6816_v2  ;;  %6783 = vmatpush3.bf16.msra.mxu1 %v6816_v2  ;;  %v486_v23 = vshll.u32 %v239_v12, 16  ;;  %v492_v24 = vshll.u32 %v240_v15, 16  ;;  %v496_v25 = vshrl.u32 %v240_v15, 16  ;;  %v312_v29 = vrot.slane %v310_v11, 5  ;;  %v7056_v32 = vld [vmem:[%s7020_s25 + $0x10] sm:$0xf] }
  0x17   : > { %6347 = vmatprep.subr.bf16.mxu0 %v6817_v3  ;;  %6776 = vmatprep.subr.bf16.mxu1 %v6817_v3  ;;  %v297_v22 = vor.u32 %v296_v14, %v293_v13  ;;  %v307_v28 = vor.u32 %v306_v19, %v302_v18  ;;  %v485_v30 = vrot.slane %v483_v21, 4  ;;  %v502_v31 = vshll.u32 %v279_v16, 16  ;;  %v7062_v40 = vld [vmem:[%s7020_s25 + $0x14] sm:$0x1]  ;;  %v241_v47 = vld [vmem:[%s7020_s25 + $0x6c] sm:$0xf] }
  0x18   : > { %v488_v35 = vrot.slane %v486_v23, 5  ;;  %v494_v36 = vrot.slane %v492_v24, 5  ;;  %v498_v37 = vrot.slane %v496_v25, 4  ;;  %v315_v41 = vshrl.u32 %v7047_v26, 16  ;;  %v242_v52 = vld [vmem:[%s7020_s25 + $0x70] sm:$0xf] }
  0x19   : > { %v298_v34 = vrot.slane %v297_v22, 4  ;;  %v308_v38 = vrot.slane %v307_v28, 4  ;;  %v504_v39 = vrot.slane %v502_v31, 5  ;;  %v318_v42 = vshll.u32 %v7047_v26, 16  ;;  %v280_v57 = vld [vmem:[%s7020_s25 + $0x74] sm:$0x1] }
  0x1a   : > { %6348 = vmatpush3.bf16.msra.mxu0 %v6817_v3  ;;  %6784 = vmatpush3.bf16.msra.mxu1 %v6817_v3  ;;  %v489_v44 = vor.u32 %v488_v35, %v485_v30  ;;  %v499_v45 = vor.u32 %v498_v37, %v494_v36  ;;  %v324_v46 = vshll.u32 %v7056_v32, 16  ;;  %v317_v49 = vrot.slane %v315_v41, 4  ;;  %v7085_v14 = vld [vmem:[%s7020_s25 + $0x18] sm:$0xf]  ;;  %v6821_v15 = vld [vmem:[%s9671_s1 + $0x40] sm:$0xff]  }
  0x1b   : > { %6349 = vmatprep.subr.bf16.mxu0 %v6818_v17  ;;  %6777 = vmatprep.subr.bf16.mxu1 %v6818_v17  ;;  %v303_v43 = vsel %vm7051_vm2, %v298_v34, %v302_v18  ;;  %v313_v48 = vsel %vm7051_vm2, %v308_v38, %v312_v29  ;;  %v320_v50 = vrot.slane %v318_v42, 5  ;;  %v328_v51 = vshrl.u32 %v7056_v32, 16  ;;  %v7093_v19 = vld [vmem:[%s7020_s25 + $0x1c] sm:$0xf]  ;;  %v7098_v25 = vld [vmem:[%s7020_s25 + $0x20] sm:$0x1] }
  0x1c   : > { %v5394_v53 = vcombine.low %v303_v43, %v313_v48  ;;  %v490_v54 = vrot.slane %v489_v44, 4  ;;  %v500_v55 = vrot.slane %v499_v45, 4  ;;  %v326_v56 = vrot.slane %v324_v46, 5  ;;  %v243_v34 = vld [vmem:[%s7020_s25 + $0x78] sm:$0xf] }
  0x1d   : > { %v321_v59 = vor.u32 %v320_v50, %v317_v49  ;;  %v330_v60 = vrot.slane %v328_v51, 4  ;;  %v334_v61 = vshll.u32 %v7062_v40, 16  ;;  %v507_v1 = vshrl.u32 %v241_v47, 16  ;;  %v6822_v41 = vld [vmem:[%s9671_s1 + $0x38] sm:$0xff]   ;;  %v281_v49 = vld [vmem:[%s7020_s25 + $0x80] sm:$0x1] }
  0x1e   : > { %6350 = vmatpush3.bf16.msra.mxu0 %v6818_v17  ;;  %6785 = vmatpush3.bf16.msra.mxu1 %v6818_v17  ;;  %v495_v63 = vsel %vm7051_vm2, %v490_v54, %v494_v36  ;;  %v505_v0 = vsel %vm7051_vm2, %v500_v55, %v504_v39  ;;  %v510_v2 = vshll.u32 %v241_v47, 16  ;;  %v516_v12 = vshll.u32 %v242_v52, 16  ;;  %v7107_v39 = vld [vmem:[%s7020_s25 + $0x7c] sm:$0xf] }
  0x1f   : > { %6351 = vmatprep.subr.bf16.mxu0 %v6819_v33  ;;  %6778 = vmatprep.subr.bf16.mxu1 %v6819_v33  ;;  %v5402_v3 = vcombine.low %v495_v63, %v505_v0  ;;  %v322_v7 = vrot.slane %v321_v59, 4  ;;  %v331_v8 = vor.u32 %v330_v60, %v326_v56  ;;  %v336_v9 = vrot.slane %v334_v61, 5  ;;  %v6823_v42 = vld [vmem:[%s9671_s1 + $0xb8] sm:$0xff]   ;;  %v6825_v59 = vld [vmem:[%s9671_s1 + $0xb0] sm:$0xff]   ;;  %v7134_v0 = vld [vmem:[%s7020_s25 + $0x28] sm:$0xf] }
  0x20   : > { %6357 = vmatprep.mubr.bf16.mxu0 %v5394_v53  ;;  %v509_v10 = vrot.slane %v507_v1, 4  ;;  %v512_v11 = vrot.slane %v510_v2, 5  ;;  %v520_v13 = vshrl.u32 %v242_v52, 16  ;;  %v526_v18 = vshll.u32 %v280_v57, 16  ;;  %v6824_v52 = vld [vmem:[%s9671_s1 + $0x30] sm:$0xff]  }
  0x21   : > { %v327_v16 = vsel %vm7051_vm2, %v322_v7, %v326_v56  ;;  %v332_v17 = vrot.slane %v331_v8, 4  ;;  %6373 = vmatprep.mubr.bf16.mxu1 %v5402_v3  ;;  %v518_v23 = vrot.slane %v516_v12, 5  ;;  %v339_v28 = vshrl.u32 %v7085_v14, 16  ;;  %v7125_v57 = vld [vmem:[%s7020_s25 + $0x24] sm:$0xf] }
  0x22   : > { %6352 = vmatpush3.bf16.msra.mxu0 %v6819_v33  ;;  %6786 = vmatpush3.bf16.msra.mxu1 %v6819_v33  ;;  %v513_v22 = vor.u32 %v512_v11, %v509_v10  ;;  %v522_v24 = vrot.slane %v520_v13, 4  ;;  %v528_v30 = vrot.slane %v526_v18, 5  ;;  %v342_v31 = vshll.u32 %v7085_v14, 16  ;;  %v7137_v8 = vld [vmem:[%s7020_s25 + $0x2c] sm:$0x1] }
  0x23   : > { %6353 = vmatprep.subr.bf16.mxu0 %v6820_v58  ;;  %6779 = vmatprep.subr.bf16.mxu1 %v6820_v58  ;;  %v337_v29 = vsel %vm7051_vm2, %v332_v17, %v336_v9  ;;  %v348_v33 = vshll.u32 %v7093_v19, 16  ;;  %v341_v38 = vrot.slane %v339_v28, 4  ;;  %v352_v45 = vshrl.u32 %v7093_v19, 16  ;;  %v7141_v13 = vld [vmem:[%s7020_s25 + $0x84] sm:$0xf] }
  0x24   : > { %v5395_v35 = vcombine.low %v327_v16, %v337_v29  ;;  %v514_v36 = vrot.slane %v513_v22, 4  ;;  %v523_v37 = vor.u32 %v522_v24, %v518_v23  ;;  %v344_v43 = vrot.slane %v342_v31, 5  ;;  %v7148_v22 = vld [vmem:[%s7020_s25 + $0x88] sm:$0xf] }
  0x25   : > { %v350_v44 = vrot.slane %v348_v33, 5  ;;  %v358_v46 = vshll.u32 %v7098_v25, 16  ;;  %v531_v50 = vshrl.u32 %v243_v34, 16  ;;  %v534_v51 = vshll.u32 %v243_v34, 16 }
  0x26   : > { %6354 = vmatpush3.bf16.msra.mxu0 %v6820_v58  ;;  %6787 = vmatpush3.bf16.msra.mxu1 %v6820_v58  ;;  %v519_v47 = vsel %vm7051_vm2, %v514_v36, %v518_v23  ;;  %v524_v48 = vrot.slane %v523_v37, 4  ;;  %v345_v53 = vor.u32 %v344_v43, %v341_v38  ;;  %v354_v54 = vrot.slane %v352_v45, 4  ;;  %v7157_v36 = vld [vmem:[%s7020_s25 + $0x8c] sm:$0x1] }
  0x27   : > { %6355 = vmatprep.subr.bf16.mxu0 %v6821_v15  ;;  %6780 = vmatprep.subr.bf16.mxu1 %v6821_v15  ;;  %v360_v55 = vrot.slane %v358_v46, 5  ;;  %v540_v56 = vshll.u32 %v7107_v39, 16  ;;  %v533_v60 = vrot.slane %v531_v50, 4  ;;  %v536_v61 = vrot.slane %v534_v51, 5  ;;  %v6827_v37 = vld [vmem:[%s9671_s1 + $0xa8] sm:$0xff]  }
  0x28   : > { %v529_v58 = vsel %vm7051_vm2, %v524_v48, %v528_v30  ;;  %v544_v63 = vshrl.u32 %v7107_v39, 16  ;;  %v346_v2 = vrot.slane %v345_v53, 4  ;;  %v355_v3 = vor.u32 %v354_v54, %v350_v44  ;;  %v6826_v30 = vld [vmem:[%s9671_s1 + $0x28] sm:$0xff]   ;;  %v7172_v53 = vld [vmem:[%s7020_s25 + $0x30] sm:$0xf] }
  0x29   : > { %v5403_v1 = vcombine.low %v519_v47, %v529_v58  ;;  %v542_v7 = vrot.slane %v540_v56, 5  ;;  %v537_v9 = vor.u32 %v536_v61, %v533_v60  ;;  %v550_v11 = vshll.u32 %v281_v49, 16  ;;  %v7181_v60 = vld [vmem:[%s7020_s25 + $0x34] sm:$0xf] }
  0x2a   : > { %6356 = vmatpush3.bf16.msra.mxu0 %v6821_v15  ;;  %6788 = vmatpush3.bf16.msra.mxu1 %v6821_v15  ;;  %v546_v10 = vrot.slane %v544_v63, 4  ;;  %v363_v12 = vshrl.u32 %v7125_v57, 16  ;;  %v351_v15 = vsel %vm7051_vm2, %v346_v2, %v350_v44  ;;  %v356_v16 = vrot.slane %v355_v3, 4 }
  0x2b   : > { %6389 = vmatprep.subr.bf16.mxu1 %v6822_v41  ;;  %6437 = vmatprep.subr.bf16.mxu0 %v6823_v42  ;;  %v366_v17 = vshll.u32 %v7125_v57, 16  ;;  %v372_v18 = vshll.u32 %v7134_v0, 16  ;;  %v538_v23 = vrot.slane %v537_v9, 4  ;;  %v552_v28 = vrot.slane %v550_v11, 5 }
  0x2c   : > { %v547_v24 = vor.u32 %v546_v10, %v542_v7  ;;  %v365_v29 = vrot.slane %v363_v12, 4  ;;  %v361_v31 = vsel %vm7051_vm2, %v356_v16, %v360_v55  ;;  %v382_v43 = vshll.u32 %v7137_v8, 16  ;;  %v7189_v16 = vld [vmem:[%s7020_s25 + $0x38] sm:$0x1] }
  0x2d   : > { %6358 = vmatmul.mubr.bf16.vlgmr.msra.gmra.mxu0 %v5395_v35  ;;  %6374 = vmatmul.mubr.bf16.vlgmr.msra.gmra.mxu1 %v5403_v1  ;;  %v368_v33 = vrot.slane %v366_v17, 5  ;;  %v374_v34 = vrot.slane %v372_v18, 5  ;;  %v376_v35 = vshrl.u32 %v7134_v0, 16  ;;  %v5396_v38 = vcombine.low %v351_v15, %v361_v31  ;;  %v7193_v18 = vld [vmem:[%s7020_s25 + $0x90] sm:$0xf] }
  0x2e   : > { %6390 = vmatpush3.bf16.msra.mxu1 %v6822_v41  ;;  %6438 = vmatpush3.bf16.msra.mxu0 %v6823_v42  ;;  %v543_v41 = vsel %vm7051_vm2, %v538_v23, %v542_v7  ;;  %v548_v42 = vrot.slane %v547_v24, 4  ;;  %v555_v46 = vshrl.u32 %v7141_v13, 16  ;;  %v558_v47 = vshll.u32 %v7141_v13, 16  ;;  %v7199_v31 = vld [vmem:[%s7020_s25 + $0x94] sm:$0xf] }
  0x2f   : > { %6391 = vmatprep.subr.bf16.mxu1 %v6824_v52  ;;  %6439 = vmatprep.subr.bf16.mxu0 %v6825_v59  ;;  %v369_v44 = vor.u32 %v368_v33, %v365_v29  ;;  %v378_v45 = vrot.slane %v376_v35, 4  ;;  %v384_v49 = vrot.slane %v382_v43, 5  ;;  %v564_v50 = vshll.u32 %v7148_v22, 16 }
  0x30   : > { %v553_v48 = vsel %vm7051_vm2, %v548_v42, %v552_v28  ;;  %v568_v51 = vshrl.u32 %v7148_v22, 16  ;;  %6361 = vmatprep.mubr.bf16.mxu0 %v5396_v38  ;;  %v557_v58 = vrot.slane %v555_v46, 4  ;;  %v560_v61 = vrot.slane %v558_v47, 5  ;;  %v6831_v38 = vld [vmem:[%s9671_s1 + $0x98] sm:$0xff]   ;;  %v6832_v46 = vld [vmem:[%s9671_s1 + $0x10] sm:$0xff]  }
  0x31   : > { %v5404_v54 = vcombine.low %v543_v41, %v553_v48  ;;  %v370_v55 = vrot.slane %v369_v44, 4  ;;  %v379_v56 = vor.u32 %v378_v45, %v374_v34  ;;  %v566_v63 = vrot.slane %v564_v50, 5  ;;  %v7209_v44 = vld [vmem:[%s7020_s25 + $0x98] sm:$0x1] }
  0x32   : > { %6392 = vmatpush3.bf16.msra.mxu1 %v6824_v52  ;;  %6440 = vmatpush3.bf16.msra.mxu0 %v6825_v59  ;;  %v6828_v52 = vld [vmem:[%s9671_s1 + $0x20] sm:$0xff]   ;;  %v570_v1 = vrot.slane %v568_v51, 4  ;;  %v574_v2 = vshll.u32 %v7157_v36, 16  ;;  %v387_v9 = vshrl.u32 %v7172_v53, 16  ;;  %v390_v10 = vshll.u32 %v7172_v53, 16 }
  0x33   : > { %6393 = vmatprep.subr.bf16.mxu1 %v6826_v30  ;;  %v6829_v59 = vld [vmem:[%s9671_s1 + $0xa0] sm:$0xff]   ;;  %6441 = vmatprep.subr.bf16.mxu0 %v6827_v37  ;;  %v375_v3 = vsel %vm7051_vm2, %v370_v55, %v374_v34  ;;  %v380_v7 = vrot.slane %v379_v56, 4  ;;  %v561_v11 = vor.u32 %v560_v61, %v557_v58  ;;  %v396_v17 = vshll.u32 %v7181_v60, 16  ;;  %v7222_v51 = vld [vmem:[%s7020_s25 + $0x3c] sm:$0xf]  ;;  %v6833_v55 = vld [vmem:[%s9671_s1 + $0x90] sm:$0xff]  }
  0x34   : > { %6377 = vmatprep.mubr.bf16.mxu1 %v5404_v54  ;;  %v571_v12 = vor.u32 %v570_v1, %v566_v63  ;;  %v576_v15 = vrot.slane %v574_v2, 5  ;;  %v389_v24 = vrot.slane %v387_v9, 4  ;;  %v392_v28 = vrot.slane %v390_v10, 5  ;;  %v7225_v54 = vld [vmem:[%s7020_s25 + $0x40] sm:$0xf] }
  0x35   : > { %v385_v23 = vsel %vm7051_vm2, %v380_v7, %v384_v49  ;;  %v400_v29 = vshrl.u32 %v7181_v60, 16  ;;  %v562_v34 = vrot.slane %v561_v11, 4  ;;  %v406_v43 = vshll.u32 %v7189_v16, 16  ;;  %v7232_v7 = vld [vmem:[%s7020_s25 + $0x44] sm:$0x1] }
  0x36   : > { %6394 = vmatpush3.bf16.msra.mxu1 %v6826_v30  ;;  %6442 = vmatpush3.bf16.msra.mxu0 %v6827_v37  ;;  %v6830_v30 = vld [vmem:[%s9671_s1 + $0x18] sm:$0xff]   ;;  %v5397_v33 = vcombine.low %v375_v3, %v385_v23  ;;  %v572_v35 = vrot.slane %v571_v12, 4  ;;  %v398_v37 = vrot.slane %v396_v17, 5  ;;  %v393_v41 = vor.u32 %v392_v28, %v389_v24  ;;  %v7244_v28 = vld [vmem:[%s7020_s25 + $0xa0] sm:$0xf] }
  0x37   : > { %6395 = vmatprep.subr.bf16.mxu1 %v6828_v52  ;;  %6443 = vmatprep.subr.bf16.mxu0 %v6829_v59  ;;  %v402_v42 = vrot.slane %v400_v29, 4  ;;  %v579_v45 = vshrl.u32 %v7193_v18, 16  ;;  %v567_v47 = vsel %vm7051_vm2, %v562_v34, %v566_v63  ;;  %v582_v49 = vshll.u32 %v7193_v18, 16  ;;  %v7235_v9 = vld [vmem:[%s7020_s25 + $0x9c] sm:$0xf]  ;;  %v6834_v29 = vld [vmem:[%s9671_s1 + $0x8] sm:$0xff]  }
  0x38   : > { %6362 = vmatmul.mubr.bf16.gmra.mxu0 %v5397_v33  ;;  %v577_v48 = vsel %vm7051_vm2, %v572_v35, %v576_v15  ;;  %v588_v50 = vshll.u32 %v7199_v31, 16  ;;  %v394_v58 = vrot.slane %v393_v41, 4  ;;  %v408_v63 = vrot.slane %v406_v43, 5  ;;  %v6835_v41 = vld [vmem:[%s9671_s1 + $0x88] sm:$0xff]  }
  0x39   : > { %v5405_v56 = vcombine.low %v567_v47, %v577_v48  ;;  %v403_v61 = vor.u32 %v402_v42, %v398_v37  ;;  %v584_v1 = vrot.slane %v582_v49, 5  ;;  %v592_v3 = vshrl.u32 %v7199_v31, 16 }
  0x3a   : > { %6396 = vmatpush3.bf16.msra.mxu1 %v6828_v52  ;;  %6444 = vmatpush3.bf16.msra.mxu0 %v6829_v59  ;;  %v581_v52 = vrot.slane %v579_v45, 4  ;;  %v590_v2 = vrot.slane %v588_v50, 5  ;;  %v399_v10 = vsel %vm7051_vm2, %v394_v58, %v398_v37  ;;  %v598_v11 = vshll.u32 %v7209_v44, 16 }
  0x3b   : > { %6397 = vmatprep.subr.bf16.mxu1 %v6830_v30  ;;  %6445 = vmatprep.subr.bf16.mxu0 %v6831_v38  ;;  %v404_v59 = vrot.slane %v403_v61, 4  ;;  %v411_v12 = vshrl.u32 %v7222_v51, 16  ;;  %v594_v17 = vrot.slane %v592_v3, 4  ;;  %v414_v23 = vshll.u32 %v7222_v51, 16  ;;  %v7260_v61 = vld [vmem:[%s7020_s25 + $0xa4] sm:$0x1] }
  0x3c   : > { %6378 = vmatmul.mubr.bf16.gmra.mxu1 %v5405_v56  ;;  %v585_v15 = vor.u32 %v584_v1, %v581_v52  ;;  %v420_v24 = vshll.u32 %v7225_v54, 16  ;;  %v600_v34 = vrot.slane %v598_v11, 5  ;;  %v424_v37 = vshrl.u32 %v7225_v54, 16 }
  0x3d   : > { %v409_v33 = vsel %vm7051_vm2, %v404_v59, %v408_v63  ;;  %v413_v35 = vrot.slane %v411_v12, 4  ;;  %v595_v43 = vor.u32 %v594_v17, %v590_v2  ;;  %v416_v45 = vrot.slane %v414_v23, 5  ;;  %v7265_v59 = vld [vmem:[%s7020_s25 + $0x48] sm:$0xf]  ;;  %v7274_v17 = vld [vmem:[%s7020_s25 + $0x4c] sm:$0xf] }
  0x3e   : > { %6398 = vmatpush3.bf16.msra.mxu1 %v6830_v30  ;;  %6446 = vmatpush3.bf16.msra.mxu0 %v6831_v38  ;;  %v5398_v42 = vcombine.low %v399_v10, %v409_v33  ;;  %v586_v30 = vrot.slane %v585_v15, 4  ;;  %v422_v47 = vrot.slane %v420_v24, 5  ;;  %v426_v48 = vrot.slane %v424_v37, 4 }
  0x3f   : > { %6399 = vmatprep.subr.bf16.mxu1 %v6832_v46  ;;  %6447 = vmatprep.subr.bf16.mxu0 %v6833_v55  ;;  %v430_v49 = vshll.u32 %v7232_v7, 16  ;;  %v603_v50 = vshrl.u32 %v7235_v9, 16  ;;  %v596_v56 = vrot.slane %v595_v43, 4  ;;  %v417_v58 = vor.u32 %v416_v45, %v413_v35 }
  0x40   : > { %6365 = vmatprep.mubr.bf16.mxu0 %v5398_v42  ;;  %v591_v38 = vsel %vm7051_vm2, %v586_v30, %v590_v2  ;;  %v606_v63 = vshll.u32 %v7235_v9, 16  ;;  %v427_v52 = vor.u32 %v426_v48, %v422_v47  ;;  %v612_v10 = vshll.u32 %v7244_v28, 16  ;;  %v6836_v2 = vld [vmem:[%s9671_s1] sm:$0xff]   ;;  %v7283_v30 = vld [vmem:[%s7020_s25 + $0x50] sm:$0x1] }
  0x41   : > { %v432_v1 = vrot.slane %v430_v49, 5  ;;  %v605_v3 = vrot.slane %v603_v50, 4  ;;  %v601_v11 = vsel %vm7051_vm2, %v596_v56, %v600_v34  ;;  %v418_v12 = vrot.slane %v417_v58, 4 }
  0x42   : > { %6400 = vmatpush3.bf16.msra.mxu1 %v6832_v46  ;;  %6448 = vmatpush3.bf16.msra.mxu0 %v6833_v55  ;;  %v608_v15 = vrot.slane %v606_v63, 5  ;;  %v616_v46 = vshrl.u32 %v7244_v28, 16  ;;  %v6837_v55 = vld [vmem:[%s9671_s1 + $0x80] sm:$0xff]   ;;  %v5406_v23 = vcombine.low %v591_v38, %v601_v11  ;;  %v428_v24 = vrot.slane %v427_v52, 4  ;;  %v7291_v38 = vld [vmem:[%s7020_s25 + $0xa8] sm:$0xf] }
  0x43   : > { %6401 = vmatprep.subr.bf16.mxu1 %v6834_v29  ;;  %6449 = vmatprep.subr.bf16.mxu0 %v6835_v41  ;;  %v614_v33 = vrot.slane %v612_v10, 5  ;;  %v622_v35 = vshll.u32 %v7260_v61, 16  ;;  %v423_v34 = vsel %vm7051_vm2, %v418_v12, %v422_v47  ;;  %v435_v43 = vshrl.u32 %v7265_v59, 16  ;;  %9700 = vst [vmem:[#allocation2_spill] sm:$0xff] %v7291_v38  ;;  %v7296_v47 = vld [vmem:[%s9671_s1 + $0xf8] sm:$0xff]  }
  0x44   : > { %v609_v37 = vor.u32 %v608_v15, %v605_v3  ;;  %v618_v42 = vrot.slane %v616_v46, 4  ;;  %6381 = vmatprep.mubr.bf16.mxu1 %v5406_v23  ;;  %v433_v45 = vsel %vm7051_vm2, %v428_v24, %v432_v1  ;;  %v438_v49 = vshll.u32 %v7265_v59, 16  ;;  %v7299_v52 = vld [vmem:[%s7020_s25 + $0xac] sm:$0xf]  ;;  %v7304_v1 = vld [vmem:[%s9671_s1 + $0x138] sm:$0xff]  }
  0x45   : > { %v624_v48 = vrot.slane %v622_v35, 5  ;;  %v444_v50 = vshll.u32 %v7274_v17, 16  ;;  %v437_v63 = vrot.slane %v435_v43, 4  ;;  %v448_v10 = vshrl.u32 %v7274_v17, 16  ;;  %v7309_v12 = vld [vmem:[%s7020_s25 + $0xb0] sm:$0x1] }
  0x46   : > { %6402 = vmatpush3.bf16.msra.mxu1 %v6834_v29  ;;  %6450 = vmatpush3.bf16.msra.mxu0 %v6835_v41  ;;  %v5399_v29 = vcombine.low %v423_v34, %v433_v45  ;;  %v610_v56 = vrot.slane %v609_v37, 4  ;;  %v619_v58 = vor.u32 %v618_v42, %v614_v33  ;;  %v440_v41 = vrot.slane %v438_v49, 5  ;;  %9701 = vst [vmem:[#allocation3_spill] sm:$0xff] %v7309_v12  ;;  %v7312_v15 = vld [vmem:[%s7020_s25 + $0x54] sm:$0xf] }
  0x47   : > { %6403 = vmatprep.subr.bf16.mxu1 %v6836_v2  ;;  %6451 = vmatprep.subr.bf16.mxu0 %v6837_v55  ;;  %v446_v3 = vrot.slane %v444_v50, 5  ;;  %v454_v11 = vshll.u32 %v7283_v30, 16  ;;  %v627_v24 = vshrl.u32 %v7291_v38, 16  ;;  %v630_v35 = vshll.u32 %v7291_v38, 16  ;;  %v7319_v34 = vld [vmem:[%s7020_s25 + $0x58] sm:$0xf] }
  0x48   : > { %6366 = vmatmul.mubr.bf16.gmra.mxu0 %v5399_v29  ;;  %v615_v46 = vsel %vm7051_vm2, %v610_v56, %v614_v33  ;;  %v620_v23 = vrot.slane %v619_v58, 4  ;;  %v441_v37 = vor.u32 %v440_v41, %v437_v63  ;;  %v450_v42 = vrot.slane %v448_v10, 4 }
  0x49   : > { %v456_v43 = vrot.slane %v454_v11, 5  ;;  %v636_v45 = vshll.u32 %v7299_v52, 16  ;;  %v629_v49 = vrot.slane %v627_v24, 4  ;;  %v632_v50 = vrot.slane %v630_v35, 5 }
  0x4a   : > { %6404 = vmatpush3.bf16.msra.mxu1 %v6836_v2  ;;  %6452 = vmatpush3.bf16.msra.mxu0 %v6837_v55  ;;  %v625_v33 = vsel %vm7051_vm2, %v620_v23, %v624_v48  ;;  %v640_v29 = vshrl.u32 %v7299_v52, 16  ;;  %v442_v56 = vrot.slane %v441_v37, 4  ;;  %v451_v58 = vor.u32 %v450_v42, %v446_v3  ;;  %v7328_v55 = vld [vmem:[%s7020_s25 + $0x5c] sm:$0x1]  ;;  %v7333_v48 = vld [vmem:[%s7020_s25 + $0xb4] sm:$0xf] }
  0x4b   : > { %6485 = vmatprep.subr.bf16.mxu1 %v7296_v47  ;;  %6533 = vmatprep.subr.bf16.mxu0 %v7304_v1  ;;  %v5407_v2 = vcombine.low %v615_v46, %v625_v33  ;;  %v638_v63 = vrot.slane %v636_v45, 5  ;;  %v633_v41 = vor.u32 %v632_v50, %v629_v49  ;;  %v646_v11 = vshll.u32 %v7309_v12, 16  ;;  %9702 = vst [vmem:[#allocation4_spill] sm:$0xff] %v7333_v48  ;;  %v7340_v37 = vld [vmem:[%s7020_s25 + $0xb8] sm:$0xf] }
  0x4c   : > { %v642_v10 = vrot.slane %v640_v29, 4  ;;  %v459_v21 = vshrl.u32 %v7312_v15, 16  ;;  %v447_v23 = vsel %vm7051_vm2, %v442_v56, %v446_v3  ;;  %v452_v24 = vrot.slane %v451_v58, 4  ;;  %9703 = vst [vmem:[#allocation5_spill] sm:$0xff] %v7340_v37  ;;  %v7346_v3 = vld [vmem:[%s7020_s25 + $0xbc] sm:$0x1] }
  0x4d   : > { %6382 = vmatmul.mubr.bf16.gmra.mxu1 %v5407_v2  ;;  %v462_v46 = vshll.u32 %v7312_v15, 16  ;;  %v468_v35 = vshll.u32 %v7319_v34, 16  ;;  %v634_v42 = vrot.slane %v633_v41, 4  ;;  %v648_v33 = vrot.slane %v646_v11, 5  ;;  %9704 = vst [vmem:[#allocation6_spill] sm:$0xff] %v7346_v3 }
  0x4e   : > { %v643_v45 = vor.u32 %v642_v10, %v638_v63  ;;  %v461_v49 = vrot.slane %v459_v21, 4  ;;  %v457_v50 = vsel %vm7051_vm2, %v452_v24, %v456_v43  ;;  %v472_v62 = vshrl.u32 %v7319_v34, 16  ;;  %v1269_v10 = vld [vmem:[%s7020_s25] sm:$0xe] }
  0x4f   : > { %v464_v29 = vrot.slane %v462_v46, 5  ;;  %v470_v2 = vrot.slane %v468_v35, 5  ;;  %v5400_v56 = vcombine.low %v447_v23, %v457_v50  ;;  %v639_v58 = vsel %vm7051_vm2, %v634_v42, %v638_v63 }
  0x50   : > { %v644_v20 = vrot.slane %v643_v45, 4  ;;  %v478_v41 = vshll.u32 %v7328_v55, 16  ;;  %v474_v21 = vrot.slane %v472_v62, 4  ;;  %v651_v12 = vshrl.u32 %v7333_v48, 16 }
  0x51   : > { %v465_v11 = vor.u32 %v464_v29, %v461_v49  ;;  %v654_v43 = vshll.u32 %v7333_v48, 16  ;;  %6369 = vmatprep.mubr.bf16.mxu0 %v5400_v56  ;;  %v660_v46 = vshll.u32 %v7340_v37, 16  ;;  %v664_v63 = vshrl.u32 %v7340_v37, 16  ;;  %v1270_v49 = vld [vmem:[%s7020_s25 + $0xc] sm:$0xe] }
  0x52   : > { %v649_v24 = vsel %vm7051_vm2, %v644_v20, %v648_v33  ;;  %v480_v23 = vrot.slane %v478_v41, 5  ;;  %v475_v45 = vor.u32 %v474_v21, %v470_v2  ;;  %v653_v50 = vrot.slane %v651_v12, 4  ;;  %v1271_v20 = vld [vmem:[%s7020_s25 + $0x18] sm:$0xe] }
  0x53   : > { %v5408_v35 = vcombine.low %v639_v58, %v649_v24  ;;  %v466_v42 = vrot.slane %v465_v11, 4  ;;  %v656_v62 = vrot.slane %v654_v43, 5  ;;  %v662_v29 = vrot.slane %v660_v46, 5 }
  0x54   : > { %v666_v38 = vrot.slane %v664_v63, 4  ;;  %v670_v48 = vshll.u32 %v7346_v3, 16  ;;  %v476_v58 = vrot.slane %v475_v45, 4  ;;  %v5442_v41 = vrot.slane %v1269_v10, 9 }
  0x55   : > { %6385 = vmatprep.mubr.bf16.mxu1 %v5408_v35  ;;  %v471_v33 = vsel %vm7051_vm2, %v466_v42, %v470_v2  ;;  %v1322_v12 = vrot.slane %v7029_v5, 5  ;;  %v657_v11 = vor.u32 %v656_v62, %v653_v50  ;;  %v5443_v24 = vrot.slane %v1270_v49, 9 }
  0x56   : > { %v667_v21 = vor.u32 %v666_v38, %v662_v29  ;;  %v672_v43 = vrot.slane %v670_v48, 5  ;;  %v481_v46 = vsel %vm7051_vm2, %v476_v58, %v480_v23  ;;  %v1329_v35 = vrot.slane %v7056_v32, 5 }
  0x57   : > { %v1323_v63 = vsel %vm7362_vm5, %v5442_v41, %v1322_v12  ;;  %v1324_v3 = vrot.slane %v1322_v12, 4  ;;  %v5401_v37 = vcombine.low %v471_v33, %v481_v46  ;;  %v658_v2 = vrot.slane %v657_v11, 4  ;;  %v1273_v12 = vld [vmem:[%s7020_s25 + $0x30] sm:$0xe]  ;;  %v1275_v46 = vld [vmem:[%s7020_s25 + $0x48] sm:$0xe] }
  0x58   : > { %v668_v42 = vrot.slane %v667_v21, 4  ;;  %v5418_v10 = vcombine.low %v7026_v4, %v7029_v5  ;;  %v9707_v38 = vrot.slane %v7032_v6, 5  ;;  %v1331_v45 = vrot.slane %v1329_v35, 4 }
  0x59   : > { %v5444_v23 = vrot.slane %v1271_v20, 9  ;;  %6370 = vmatmul.mubr.bf16.gmra.mxu0 %v5401_v37  ;;  %v663_v50 = vsel %vm7051_vm2, %v658_v2, %v662_v29  ;;  %v1336_v33 = vrot.slane %v7093_v19, 5  ;;  %v1330_v4 = vsel %vm7362_vm5, %v5443_v24, %v1329_v35  ;;  %v1274_v24 = vld [vmem:[%s7020_s25 + $0x3c] sm:$0xe] }
  0x5a   : > { %v1326_v48 = vsel %vm7362_vm5, %v1324_v3, %v9707_v38  ;;  %v673_v49 = vsel %vm7051_vm2, %v668_v42, %v672_v43  ;;  %v9708_v5 = vrot.slane %v7062_v40, 5  ;;  %v1339_v37 = vrot.slane %v7098_v25, 5  ;;  %v1272_v3 = vld [vmem:[%s7020_s25 + $0x24] sm:$0xe]  ;;  %v6845_v25 = vld [vmem:[%s9671_s1 + $0x130] sm:$0xff]  }
  0x5b   : > { %v5474_v62 = vcombine.low %v1323_v63, %v1326_v48  ;;  %v5409_v58 = vcombine.low %v663_v50, %v673_v49  ;;  %v1337_v29 = vsel %vm7362_vm5, %v5444_v23, %v1336_v33  ;;  %v1338_v20 = vrot.slane %v1336_v33, 4  ;;  %v6844_v23 = vld [vmem:[%s9671_s1 + $0xf0] sm:$0xff]  }
  0x5c   : > { %v1333_v6 = vsel %vm7362_vm5, %v1331_v45, %v9708_v5  ;;  %v1343_v41 = vrot.slane %v7134_v0, 5  ;;  %v5445_v21 = vrot.slane %v1272_v3, 9  ;;  %v1350_v43 = vrot.slane %v7181_v60, 5  ;;  %v7437_v3 = vld [vmem:[%s7020_s25 + $0x68] sm:$0x1] }
  0x5d   : > { %6453 = vmatprep.mubr.bf16.mxu0 %v5474_v62  ;;  %6386 = vmatmul.mubr.bf16.gmra.mxu1 %v5409_v58  ;;  %v5475_v11 = vcombine.low %v1330_v4, %v1333_v6  ;;  %v1340_v40 = vsel %vm7362_vm5, %v1338_v20, %v1339_v37  ;;  %v1346_v2 = vrot.slane %v7137_v8, 5  ;;  %v5446_v42 = vrot.slane %v1273_v12, 9  ;;  %v1276_v37 = vld [vmem:[%s7020_s25 + $0x54] sm:$0xe]  ;;  %v7461_v12 = vld [vmem:[%s7020_s25 + $0x60] sm:$0xe] }
  0x5e   : > { %6405 = vmatprep.mubr.bf16.mxu1 %v5418_v10  ;;  %v5476_v63 = vcombine.low %v1337_v29, %v1340_v40  ;;  %v1345_v35 = vrot.slane %v1343_v41, 4  ;;  %v1352_v38 = vrot.slane %v1350_v43, 4  ;;  %v1353_v10 = vrot.slane %v7189_v16, 5 }
  0x5f   : > { %v1357_v48 = vrot.slane %v7225_v54, 5  ;;  %v5420_v45 = vcombine.low %v7085_v14, %v7093_v19  ;;  %v1364_v50 = vrot.slane %v7274_v17, 5  ;;  %v5447_v49 = vrot.slane %v1274_v24, 9  ;;  %v6853_v24 = vld [vmem:[%s9671_s1 + $0x120] sm:$0xff]  }
  0x60   : > { %v1360_v8 = vrot.slane %v7232_v7, 5  ;;  %v5448_v33 = vrot.slane %v1275_v46, 9  ;;  %v1344_v14 = vsel %vm7362_vm5, %v5445_v21, %v1343_v41  ;;  %v1347_v19 = vsel %vm7362_vm5, %v1345_v35, %v1346_v2  ;;  %v7473_v46 = vld [vmem:[%s7020_s25 + $0x78] sm:$0xe]  ;;  %v6852_v2 = vld [vmem:[%s9671_s1 + $0xe0] sm:$0xff]  }
  0x61   : > { %6454 = vmatmul.mubr.bf16.vlgmr.msra.gmra.mxu0 %v5475_v11  ;;  %v1359_v62 = vrot.slane %v1357_v48, 4  ;;  %v1366_v16 = vrot.slane %v1364_v50, 4  ;;  %v1367_v58 = vrot.slane %v7283_v30, 5  ;;  %v1351_v4 = vsel %vm7362_vm5, %v5446_v42, %v1350_v43  ;;  %v7464_v11 = vld [vmem:[%s7020_s25 + $0x6c] sm:$0xe] }
  0x62   : > { %6534 = vmatpush3.bf16.msra.mxu0 %v7304_v1  ;;  %6457 = vmatprep.mubr.bf16.mxu0 %v5476_v63  ;;  %v1354_v7 = vsel %vm7362_vm5, %v1352_v38, %v1353_v10  ;;  %v6849_v1 = vld [vmem:[%s9671_s1 + $0x128] sm:$0xff]   ;;  %v1371_v5 = vrot.slane %v7319_v34, 5  ;;  %v9709_v6 = vcombine.low %v7047_v26, %v7056_v32  ;;  %v5421_v30 = vcombine.low %v7125_v57, %v7134_v0  ;;  %v1280_v63 = vld [vmem:[%s7020_s25 + $0x84] sm:$0xe]  ;;  %v1281_v42 = vld [vmem:[%s7020_s25 + $0x90] sm:$0xe] }
  0x63   : > { %6535 = vmatprep.subr.bf16.mxu0 %v6845_v25  ;;  %v1381_v29 = vrot.slane %v7437_v3, 5  ;;  %v5477_v20 = vcombine.low %v1344_v14, %v1347_v19  ;;  %v7443_v41 = vsel %vm7362_vm5, %v5447_v49, %v1357_v48  ;;  %v7447_v26 = vsel %vm7362_vm5, %v1359_v62, %v1360_v8  ;;  %v6848_v32 = vld [vmem:[%s9671_s1 + $0xe8] sm:$0xff]   ;;  %v7492_v48 = vld [vmem:[%s7020_s25 + $0x64] sm:$0xf]  ;;  %v1282_v49 = vld [vmem:[%s7020_s25 + $0x9c] sm:$0xe] }
  0x64   : > { %v5478_v57 = vcombine.low %v1351_v4, %v1354_v7  ;;  %v7454_v0 = vsel %vm7362_vm5, %v5448_v33, %v1364_v50  ;;  %v5422_v40 = vcombine.low %v7172_v53, %v7181_v60  ;;  %v5449_v21 = vrot.slane %v1276_v37, 9  ;;  %v7514_v4 = vld [vmem:[%s7020_s25 + $0x74] sm:$0x1] }
  0x65   : > { %6406 = vmatmul.mubr.bf16.vlgmr.msra.gmra.mxu1 %v9709_v6  ;;  %v1374_v43 = vrot.slane %v7328_v55, 5  ;;  %v5423_v35 = vcombine.low %v7222_v51, %v7225_v54  ;;  %v5479_v53 = vcombine.low %v7443_v41, %v7447_v26  ;;  %v5424_v60 = vcombine.low %v7265_v59, %v7274_v17  ;;  %v6938_v54 = vld [vmem:[%s7020_s25 + $0x80] sm:$0x1] }
  0x66   : > { %6486 = vmatpush3.bf16.msra.mxu1 %v7296_v47  ;;  %6409 = vmatprep.mubr.bf16.mxu1 %v5420_v45  ;;  %v7458_v47 = vsel %vm7362_vm5, %v1366_v16, %v1367_v58  ;;  %v5425_v55 = vcombine.low %v7312_v15, %v7319_v34  ;;  %v5450_v10 = vrot.slane %v7461_v12, 9  ;;  %v1378_v45 = vrot.slane %v7492_v48, 5  ;;  %v7510_v16 = vld [vmem:[%s7020_s25 + $0x70] sm:$0xf]  ;;  %v6939_v17 = vld [vmem:[%s7020_s25 + $0x60] sm:$0xf] }
  0x67   : > { %6487 = vmatprep.subr.bf16.mxu1 %v6844_v23  ;;  %6536 = vmatpush3.bf16.msra.mxu0 %v6845_v25  ;;  %v1373_v25 = vrot.slane %v1371_v5, 4  ;;  %v5480_v38 = vcombine.low %v7454_v0, %v7458_v47  ;;  %v5451_v62 = vrot.slane %v7464_v11, 9  ;;  %v1399_v8 = vrot.slane %v7148_v22, 5  ;;  %v1283_v0 = vld [vmem:[%s7020_s25 + $0xa8] sm:$0xe]  ;;  %v7694_v15 = vld [vmem:[%s9671_s1 + $0x1b8] sm:$0xff]  }
  0x68   : > { %6537 = vmatprep.subr.bf16.mxu0 %v6849_v1  ;;  %v1402_v33 = vrot.slane %v7157_v36, 5  ;;  %v7503_v14 = vsel %vm7362_vm5, %v5449_v21, %v1371_v5  ;;  %v1385_v58 = vrot.slane %v7510_v16, 5  ;;  %v1388_v7 = vrot.slane %v7514_v4, 5  ;;  %v6856_v36 = vld [vmem:[%s9671_s1 + $0xd8] sm:$0xff]  }
  0x69   : > { %6458 = vmatmul.mubr.bf16.gmra.mxu0 %v5477_v20  ;;  %v7507_v19 = vsel %vm7362_vm5, %v1373_v25, %v1374_v43  ;;  %v5452_v5 = vrot.slane %v7473_v46, 9  ;;  %v1401_v37 = vrot.slane %v1399_v8, 4  ;;  %v5454_v41 = vrot.slane %v1281_v42, 9  ;;  %v5570_v42 = vld [vmem:[%s7020_s25 + $0xc] sm:$0xf] }
  0x6a   : > { %6488 = vmatpush3.bf16.msra.mxu1 %v6844_v23  ;;  %6461 = vmatprep.mubr.bf16.mxu0 %v5478_v57  ;;  %v5453_v23 = vrot.slane %v1280_v63, 9  ;;  %v1406_v26 = vrot.slane %v7199_v31, 5  ;;  %v1409_v57 = vrot.slane %v7209_v44, 5  ;;  %v1392_v47 = vrot.slane %v7107_v39, 5 }
  0x6b   : > { %6489 = vmatprep.subr.bf16.mxu1 %v6848_v32  ;;  %6538 = vmatpush3.bf16.msra.mxu0 %v6849_v1  ;;  %v6857_v1 = vld [vmem:[%s9671_s1 + $0x118] sm:$0xff]   ;;  %v7538_v21 = vsel %vm7362_vm5, %v1401_v37, %v1402_v33  ;;  %v1413_v63 = vrot.slane %v7244_v28, 5  ;;  %v5456_v33 = vrot.slane %v1283_v0, 9  ;;  %v1420_v37 = vrot.slane %v7299_v52, 5  ;;  %v6860_v0 = vld [vmem:[%s9671_s1 + $0xd0] sm:$0xff]  }
  0x6c   : > { %6539 = vmatprep.subr.bf16.mxu0 %v6853_v24  ;;  %v7526_v6 = vsel %vm7362_vm5, %v5453_v23, %v1399_v8  ;;  %v7546_v44 = vsel %vm7362_vm5, %v5454_v41, %v1406_v26  ;;  %v1408_v43 = vrot.slane %v1406_v26, 4  ;;  %v6861_v23 = vld [vmem:[%s9671_s1 + $0x110] sm:$0xff]   ;;  %v1416_v8 = vrot.slane %v7260_v61, 5  ;;  %v9711_v61 = vld [vmem:[#allocation3_spill] sm:$0xff] }
  0x6d   : > { %6410 = vmatmul.mubr.bf16.gmra.mxu1 %v5421_v30  ;;  %v1380_v30 = vrot.slane %v1378_v45, 4  ;;  %v1415_v20 = vrot.slane %v1413_v63, 4  ;;  %v1423_v50 = vrot.slane %v9711_v61, 5  ;;  %v1379_v61 = vsel %vm7362_vm5, %v5450_v10, %v1378_v45  ;;  %v5573_v45 = vld [vmem:[%s7020_s25 + $0x18] sm:$0xf] }
  0x6e   : > { %6413 = vmatprep.mubr.bf16.mxu1 %v5422_v40  ;;  %6490 = vmatpush3.bf16.msra.mxu1 %v6848_v32  ;;  %v5455_v40 = vrot.slane %v1282_v49, 9  ;;  %v7558_v32 = vld [vmem:[%s7020_s25 + $0x10] sm:$0xf]  ;;  %v7562_v41 = vsel %vm7362_vm5, %v1408_v43, %v1409_v57  ;;  %v1422_v57 = vrot.slane %v1420_v37, 4  ;;  %v2190_v12 = vshrl.u32 %v5570_v42, 16 }
  0x6f   : > { %6491 = vmatprep.subr.bf16.mxu1 %v6852_v2  ;;  %6540 = vmatpush3.bf16.msra.mxu0 %v6853_v24  ;;  %v9710_v24 = vld [vmem:[#allocation2_spill] sm:$0xff]  ;;  %v9713_v43 = vld [vmem:[#allocation4_spill] sm:$0xff]  ;;  %v2193_v10 = vshll.u32 %v5570_v42, 16  ;;  %v1387_v51 = vrot.slane %v1385_v58, 4  ;;  %v2199_v59 = vshll.u32 %v7558_v32, 16  ;;  %v1393_v4 = vsel %vm7362_vm5, %v5452_v5, %v1392_v47 }
  0x70   : > { %6541 = vmatprep.subr.bf16.mxu0 %v6857_v1  ;;  %v7566_v26 = vsel %vm7362_vm5, %v5455_v40, %v1413_v63  ;;  %v9712_v40 = vld [vmem:[#allocation5_spill] sm:$0xff]  ;;  %v7632_v42 = vld [vmem:[%s7020_s25 + $0x14] sm:$0x1]  ;;  %v2192_v63 = vrot.slane %v2190_v12, 4  ;;  %v9715_v5 = vld [vmem:[#allocation6_spill] sm:$0xff] }
  0x71   : > { %6462 = vmatmul.mubr.bf16.gmra.mxu0 %v5479_v53  ;;  %v2195_v49 = vrot.slane %v2193_v10, 5  ;;  %v5576_v53 = vld [vmem:[%s7020_s25 + $0x24] sm:$0xf]  ;;  %v1389_v11 = vsel %vm7362_vm5, %v1387_v51, %v1388_v7 }
  0x72   : > { %6492 = vmatpush3.bf16.msra.mxu1 %v6852_v2  ;;  %6465 = vmatprep.mubr.bf16.mxu0 %v5480_v38  ;;  %v7576_v2 = vsel %vm7362_vm5, %v5456_v33, %v1420_v37  ;;  %v5481_v38 = vcombine.low %v7503_v14, %v7507_v19  ;;  %v1382_v33 = vsel %vm7362_vm5, %v1380_v30, %v1381_v29  ;;  %v6865_v14 = vld [vmem:[%s9671_s1 + $0x108] sm:$0xff]   ;;  %v6869_v30 = vld [vmem:[%s9671_s1 + $0x100] sm:$0xff]   ;;  %v7651_v19 = vrot.slane %v2199_v59, 5 }
  0x73   : > { %6493 = vmatprep.subr.bf16.mxu1 %v6856_v36  ;;  %6542 = vmatpush3.bf16.msra.mxu0 %v6857_v1  ;;  %v7594_v37 = vsel %vm7362_vm5, %v1415_v20, %v1416_v8  ;;  %v7606_v29 = vsel %vm7362_vm5, %v1422_v57, %v1423_v50  ;;  %v6864_v50 = vld [vmem:[%s9671_s1 + $0xc8] sm:$0xff]   ;;  %v7621_v1 = vld [vmem:[%s7020_s25 + $0xb4] sm:$0xe]  ;;  %v5482_v20 = vcombine.low %v1379_v61, %v1382_v33  ;;  %v2203_v8 = vshrl.u32 %v7558_v32, 16  ;;  %v7649_v61 = vld [vmem:[%s7020_s25 + $0x1c] sm:$0xf] }
  0x74   : > { %6543 = vmatprep.subr.bf16.mxu0 %v6861_v23  ;;  %v7636_v57 = vld [vmem:[%s7020_s25 + $0x6c] sm:$0xf]  ;;  %v2214_v33 = vshrl.u32 %v5573_v45, 16  ;;  %v2223_v51 = vshll.u32 %v7649_v61, 16  ;;  %v2227_v39 = vshrl.u32 %v7649_v61, 16  ;;  %v2238_v59 = vshrl.u32 %v5576_v53, 16 }
  0x75   : > { %6414 = vmatmul.mubr.bf16.gmra.mxu1 %v5423_v35  ;;  %v1395_v35 = vrot.slane %v6938_v54, 5  ;;  %v5427_v54 = vcombine.low %v7636_v57, %v7510_v16  ;;  %v2205_v3 = vrot.slane %v2203_v8, 4  ;;  %v2241_v46 = vshll.u32 %v5576_v53, 16  ;;  %v6942_v8 = vld [vmem:[%s7020_s25 + $0x7c] sm:$0xf] }
  0x76   : > { %6417 = vmatprep.mubr.bf16.mxu1 %v5424_v60  ;;  %6494 = vmatpush3.bf16.msra.mxu1 %v6856_v36  ;;  %v5426_v60 = vcombine.low %v6939_v17, %v7492_v48  ;;  %v1394_v36 = vrot.slane %v1392_v47, 4  ;;  %v7646_v48 = vsel %vm7362_vm5, %v5451_v62, %v1385_v58  ;;  %v2217_v17 = vshll.u32 %v5573_v45, 16  ;;  %v6868_v58 = vld [vmem:[%s9671_s1 + $0xc0] sm:$0xff]   ;;  %v7676_v45 = vld [vmem:[%s7020_s25 + $0x28] sm:$0xf] }
  0x77   : > { %6495 = vmatprep.subr.bf16.mxu1 %v6860_v0  ;;  %6544 = vmatpush3.bf16.msra.mxu0 %v6861_v23  ;;  %v9683_v62 = vrot.slane %v9712_v40, 5  ;;  %v7663_v23 = vld [vmem:[%s7020_s25 + $0x20] sm:$0x1]  ;;  %v2216_v12 = vrot.slane %v2214_v33, 4  ;;  %9714 = vst [vmem:[#allocation2_spill] sm:$0xff] %v7676_v45  ;;  %v5483_v34 = vcombine.low %v7646_v48, %v1389_v11  ;;  %v2247_v53 = vshll.u32 %v7676_v45, 16 }
  0x78   : > { %6545 = vmatprep.subr.bf16.mxu0 %v6865_v14  ;;  %v2219_v10 = vrot.slane %v2217_v17, 5  ;;  %v1396_v7 = vsel %vm7362_vm5, %v1394_v36, %v1395_v35  ;;  %v2196_v35 = vor.u32 %v2195_v49, %v2192_v63  ;;  %v7689_v36 = vld [vmem:[%s9671_s1 + $0x178] sm:$0xff]   ;;  %v5579_v63 = vld [vmem:[%s7020_s25 + $0x30] sm:$0xf]  ;;  %v7710_v48 = vld [vmem:[%s7020_s25 + $0x34] sm:$0xf] }
  0x79   : > { %6466 = vmatmul.mubr.bf16.gmra.mxu0 %v5481_v38  ;;  %v2209_v38 = vshll.u32 %v7632_v42, 16  ;;  %v5484_v17 = vcombine.low %v1393_v4, %v1396_v7  ;;  %9717 = vst [vmem:[#allocation5_spill] sm:$0xff] %v7710_v48  ;;  %v7712_v11 = vrot.slane %v2223_v51, 5  ;;  %v2243_v47 = vrot.slane %v2241_v46, 5  ;;  %v7731_v46 = vld [vmem:[%s7020_s25 + $0x40] sm:$0xf] }
  0x7a   : > { %6496 = vmatpush3.bf16.msra.mxu1 %v6860_v0  ;;  %6469 = vmatprep.mubr.bf16.mxu0 %v5482_v20  ;;  %v2206_v20 = vor.u32 %v2205_v3, %v7651_v19  ;;  %v2220_v49 = vor.u32 %v2219_v10, %v2216_v12  ;;  %v6941_v3 = vld [vmem:[%s7020_s25 + $0x78] sm:$0xf]  ;;  %v2229_v12 = vrot.slane %v2227_v39, 4  ;;  %v2240_v10 = vrot.slane %v2238_v59, 4  ;;  %9718 = vst [vmem:[#allocation4_spill] sm:$0xff] %v7731_v46 }
  0x7b   : > { %6497 = vmatprep.subr.bf16.mxu1 %v6864_v50  ;;  %6546 = vmatpush3.bf16.msra.mxu0 %v6865_v14  ;;  %v2233_v14 = vshll.u32 %v7663_v23, 16  ;;  %v5428_v33 = vcombine.low %v6941_v3, %v6942_v8  ;;  %v7703_v25 = vrot.slane %v2209_v38, 5  ;;  %v7715_v0 = vld [vmem:[%s7020_s25 + $0x38] sm:$0x1]  ;;  %v7717_v4 = vrot.slane %v2196_v35, 4 }
  0x7c   : > { %6547 = vmatprep.subr.bf16.mxu0 %v6869_v30  ;;  %v7719_v7 = vrot.slane %v2206_v20, 4  ;;  %v2262_v3 = vshrl.u32 %v5579_v63, 16  ;;  %v5582_v8 = vld [vmem:[%s7020_s25 + $0x3c] sm:$0xf]  ;;  %v7727_v51 = vrot.slane %v2247_v53, 5  ;;  %v2265_v39 = vshll.u32 %v5579_v63, 16 }
  0x7d   : > { %6418 = vmatmul.mubr.bf16.gmra.mxu1 %v5425_v55  ;;  %v1429_v55 = vrot.slane %v9683_v62, 4  ;;  %v7721_v38 = vrot.slane %v2233_v14, 5  ;;  %v2271_v59 = vshll.u32 %v7710_v48, 16  ;;  %v2275_v20 = vshrl.u32 %v7710_v48, 16 }
  0x7e   : > { %6421 = vmatprep.mubr.bf16.mxu1 %v5426_v60  ;;  %6498 = vmatpush3.bf16.msra.mxu1 %v6864_v50  ;;  %v7706_v60 = vld [vmem:[%s7020_s25 + $0x2c] sm:$0x1]  ;;  %v2251_v50 = vshrl.u32 %v7676_v45, 16  ;;  %v2230_v14 = vor.u32 %v2229_v12, %v7712_v11  ;;  %v2264_v53 = vrot.slane %v2262_v3, 4  ;;  %v2267_v63 = vrot.slane %v2265_v39, 5 }
  0x7f   : > { %6499 = vmatprep.subr.bf16.mxu1 %v6868_v58  ;;  %9716 = vst [vmem:[#allocation3_spill] sm:$0xff] %v7706_v60  ;;  %6548 = vmatpush3.bf16.msra.mxu0 %v6869_v30  ;;  %v7725_v30 = vrot.slane %v2220_v49, 4  ;;  %v2286_v49 = vshrl.u32 %v5582_v8, 16  ;;  %v2289_v62 = vshll.u32 %v5582_v8, 16  ;;  %v2277_v48 = vrot.slane %v2275_v20, 4 }
  0x80   : > { %6629 = vmatprep.subr.bf16.mxu0 %v7694_v15  ;;  %v2253_v35 = vrot.slane %v2251_v50, 4  ;;  %v7741_v50 = vrot.slane %v2271_v59, 5  ;;  %v7744_v45 = vld [vmem:[%s7020_s25 + $0x44] sm:$0x1]  ;;  %v2299_v12 = vshrl.u32 %v7731_v46, 16  ;;  %v9719_v16 = vrot.slane %v9712_v40, 5 }
  0x81   : > { %6470 = vmatmul.mubr.bf16.gmra.mxu0 %v5483_v34  ;;  %v2257_v34 = vshll.u32 %v7706_v60, 16  ;;  %v9720_v57 = vrot.slane %v7621_v1, 9  ;;  %v7765_v39 = vld [vmem:[%s7020_s25 + $0x4c] sm:$0xf]  ;;  %v2288_v59 = vrot.slane %v2286_v49, 4  ;;  %v2291_v20 = vrot.slane %v2289_v62, 5 }
  0x82   : > { %6500 = vmatpush3.bf16.msra.mxu1 %v6868_v58  ;;  %6473 = vmatprep.mubr.bf16.mxu0 %v5484_v17  ;;  %v2244_v58 = vor.u32 %v2243_v47, %v2240_v10  ;;  %v2281_v17 = vshll.u32 %v7715_v0, 16  ;;  %v2295_v47 = vshll.u32 %v7731_v46, 16  ;;  %v5585_v10 = vld [vmem:[%s7020_s25 + $0x48] sm:$0xf]  ;;  %v2254_v8 = vor.u32 %v2253_v35, %v7727_v51 }
  0x83   : > { %6581 = vmatprep.subr.bf16.mxu1 %v7689_v36  ;;  %v2301_v1 = vrot.slane %v2299_v12, 4  ;;  %v7769_v46 = vrot.slane %v2230_v14, 4  ;;  %v2202_v62 = vsel %vm7051_vm2, %v7717_v4, %v7651_v19  ;;  %v2212_v35 = vsel %vm7051_vm2, %v7719_v7, %v7703_v25  ;;  %v5588_v4 = vld [vmem:[%s7020_s25 + $0x54] sm:$0xf] }
  0x84   : > { %v7767_v60 = vrot.slane %v2295_v47, 5  ;;  %v2313_v14 = vshll.u32 %v5585_v10, 16  ;;  %v2305_v49 = vshll.u32 %v7744_v45, 16  ;;  %v2323_v19 = vshrl.u32 %v7765_v39, 16 }
  0x85   : > { %6422 = vmatmul.mubr.bf16.gmra.mxu1 %v5427_v54  ;;  %v7755_v54 = vsel %vm7362_vm5, %v9720_v57, %v9719_v16  ;;  %v7771_v16 = vrot.slane %v2244_v58, 4  ;;  %v7773_v57 = vrot.slane %v2257_v34, 5  ;;  %v2319_v58 = vshll.u32 %v7765_v39, 16 }
  0x86   : > { %6425 = vmatprep.mubr.bf16.mxu1 %v5428_v33  ;;  %v9721_v33 = vrot.slane %v9715_v5, 5  ;;  %v2310_v5 = vshrl.u32 %v5585_v10, 16  ;;  %v9723_v34 = vcombine.low %v7546_v44, %v7562_v41  ;;  %v7794_v47 = vrot.slane %v2254_v8, 4  ;;  %v7800_v10 = vld [vmem:[%s7020_s25 + $0x58] sm:$0xf] }
  0x87   : > { %v7796_v12 = vrot.slane %v2281_v17, 5  ;;  %v2292_v25 = vor.u32 %v2291_v20, %v2288_v59  ;;  %v2302_v7 = vor.u32 %v2301_v1, %v7767_v60  ;;  %v9724_v44 = vcombine.low %v7141_v13, %v7148_v22  ;;  %v7806_v41 = vld [vmem:[%s7020_s25 + $0x50] sm:$0x1] }
  0x88   : > { %v7761_v3 = vsel %vm7362_vm5, %v1429_v55, %v9721_v33  ;;  %v9722_v55 = vcombine.low %v7526_v6, %v7538_v21  ;;  %v2268_v6 = vor.u32 %v2267_v63, %v2264_v53  ;;  %v2278_v21 = vor.u32 %v2277_v48, %v7741_v50 }
  0x89   : > { %v2312_v48 = vrot.slane %v2310_v5, 4  ;;  %v2315_v53 = vrot.slane %v2313_v14, 5  ;;  %v7808_v63 = vrot.slane %v2319_v58, 5  ;;  %v2325_v17 = vrot.slane %v2323_v19, 4  ;;  %v5591_v5 = vld [vmem:[%s7020_s25 + $0x60] sm:$0xf] }
  0x8a   : > { %6474 = vmatmul.mubr.bf16.gmra.mxu0 %v9722_v55  ;;  %v9725_v33 = vcombine.low %v7193_v18, %v7199_v31  ;;  %v2334_v8 = vshrl.u32 %v5588_v4, 16  ;;  %v2337_v59 = vshll.u32 %v5588_v4, 16  ;;  %v7813_v20 = vrot.slane %v2268_v6, 4  ;;  %v7830_v31 = vld [vmem:[%s7020_s25 + $0x64] sm:$0xf] }
  0x8b   : > { %6477 = vmatprep.mubr.bf16.mxu0 %v9723_v34  ;;  %v7815_v1 = vrot.slane %v2278_v21, 4  ;;  %v7817_v13 = vrot.slane %v2305_v49, 5  ;;  %v2343_v22 = vshll.u32 %v7800_v10, 16  ;;  %v5489_v55 = vcombine.low %v7755_v54, %v7761_v3  ;;  %v7826_v34 = vld [vmem:[%s7020_s25 + $0x5c] sm:$0x1] }
  0x8c   : > { %v5634_v14 = vcombine.low %v2202_v62, %v2212_v35  ;;  %v7823_v58 = vrot.slane %v2292_v25, 4  ;;  %v2347_v18 = vshrl.u32 %v7800_v10, 16  ;;  %v7832_v6 = vrot.slane %v2302_v7, 4 }
  0x8d   : > { %6426 = vmatmul.mubr.bf16.gmra.mxu1 %v9724_v44  ;;  %v2329_v21 = vshll.u32 %v7806_v41, 16  ;;  %v2358_v49 = vshrl.u32 %v5591_v5, 16  ;;  %v2361_v19 = vshll.u32 %v5591_v5, 16  ;;  %v9726_v4 = vcombine.low %v7566_v26, %v7594_v37 }
  0x8e   : > { %6429 = vmatprep.mubr.bf16.mxu1 %v9725_v33  ;;  %v2316_v54 = vor.u32 %v2315_v53, %v2312_v48  ;;  %v2326_v3 = vor.u32 %v2325_v17, %v7808_v63  ;;  %v2336_v62 = vrot.slane %v2334_v8, 4  ;;  %v2339_v35 = vrot.slane %v2337_v59, 5  ;;  %v7870_v8 = vld [vmem:[%s7020_s25 + $0x70] sm:$0xf] }
  0x8f   : > { %v9727_v25 = vcombine.low %v7576_v2, %v7606_v29  ;;  %v7842_v7 = vrot.slane %v2343_v22, 5  ;;  %v2349_v44 = vrot.slane %v2347_v18, 4  ;;  %v2353_v33 = vshll.u32 %v7826_v34, 16 }
  0x90   : > { %v2367_v26 = vshll.u32 %v7830_v31, 16  ;;  %v2226_v37 = vsel %vm7051_vm2, %v7725_v30, %v7712_v11  ;;  %v2236_v2 = vsel %vm7051_vm2, %v7769_v46, %v7721_v38  ;;  %v2360_v29 = vrot.slane %v2358_v49, 4  ;;  %v5594_v46 = vld [vmem:[%s7020_s25 + $0x6c] sm:$0xf] }
  0x91   : > { %v2363_v48 = vrot.slane %v2361_v19, 5  ;;  %v9728_v53 = vcombine.low %v7235_v9, %v7244_v28  ;;  %v2250_v17 = vsel %vm7051_vm2, %v7771_v16, %v7727_v51  ;;  %v2260_v11 = vsel %vm7051_vm2, %v7794_v47, %v7773_v57  ;;  %v7878_v16 = vld [vmem:[%s7020_s25 + $0x68] sm:$0x1] }
  0x92   : > { %6478 = vmatmul.mubr.bf16.gmra.mxu0 %v9726_v4  ;;  %v7865_v30 = vrot.slane %v2329_v21, 5  ;;  %v2371_v38 = vshrl.u32 %v7830_v31, 16  ;;  %v9729_v9 = vcombine.low %v9710_v24, %v7299_v52  ;;  %v7875_v28 = vrot.slane %v2316_v54, 4  ;;  %v6870_v52 = vld [vmem:[%s7020_s25 + $0xc] sm:$0xff]  }
  0x93   : > { %6481 = vmatprep.mubr.bf16.mxu0 %v9727_v25  ;;  %v2340_v51 = vor.u32 %v2339_v35, %v2336_v62  ;;  %v2382_v59 = vshrl.u32 %v5594_v46, 16  ;;  %v2385_v57 = vshll.u32 %v5594_v46, 16  ;;  %v7880_v47 = vrot.slane %v2326_v3, 4  ;;  %v7891_v62 = vld [vmem:[%s7020_s25 + $0x74] sm:$0x1] }
  0x94   : > { %v2350_v22 = vor.u32 %v2349_v44, %v7842_v7  ;;  %v7883_v5 = vrot.slane %v2353_v33, 5  ;;  %v2391_v18 = vshll.u32 %v7870_v8, 16  ;;  %v2364_v24 = vor.u32 %v2363_v48, %v2360_v29  ;;  %v5597_v25 = vld [vmem:[%s7020_s25 + $0x78] sm:$0xf]  ;;  %v7895_v44 = vld [vmem:[%s7020_s25 + $0x7c] sm:$0xf] }
  0x95   : > { %6430 = vmatmul.mubr.bf16.gmra.mxu1 %v9728_v53  ;;  %v7887_v21 = vrot.slane %v2367_v26, 5  ;;  %v2373_v49 = vrot.slane %v2371_v38, 4  ;;  %v2395_v19 = vshrl.u32 %v7870_v8, 16  ;;  %v5635_v4 = vcombine.low %v2226_v37, %v2236_v2  ;;  %v7902_v26 = vld [vmem:[%s7020_s25 + $0x80] sm:$0x1] }
  0x96   : > { %6433 = vmatprep.mubr.bf16.mxu1 %v9729_v9  ;;  %v5636_v54 = vcombine.low %v2250_v17, %v2260_v11  ;;  %v2384_v3 = vrot.slane %v2382_v59, 4  ;;  %v2387_v35 = vrot.slane %v2385_v57, 5  ;;  %v7897_v33 = vrot.slane %v2340_v51, 4 }
  0x97   : > { %v7899_v53 = vrot.slane %v2391_v18, 5  ;;  %v2397_v29 = vrot.slane %v2395_v19, 4  ;;  %v2406_v48 = vshrl.u32 %v5597_v25, 16  ;;  %v2377_v37 = vshll.u32 %v7878_v16, 16  ;;  %v5600_v19 = vld [vmem:[%s7020_s25 + $0x84] sm:$0xf] }
  0x98   : > { %v2409_v2 = vshll.u32 %v5597_v25, 16  ;;  %v2415_v17 = vshll.u32 %v7895_v44, 16  ;;  %v2419_v11 = vshrl.u32 %v7895_v44, 16  ;;  %v7907_v38 = vrot.slane %v2350_v22, 4  ;;  %v6874_v25 = vld [vmem:[%s7020_s25 + $0x24] sm:$0xff]  }
  0x99   : > { %v7909_v46 = vrot.slane %v2364_v24, 4  ;;  %v2408_v9 = vrot.slane %v2406_v48, 4  ;;  %v9730_v51 = vcombine.low %v9713_v43, %v9712_v40  ;;  %v2274_v22 = vsel %vm7051_vm2, %v7813_v20, %v7741_v50 }
  0x9a   : > { %6482 = vmatmul.mubr.bf16.gmra.mxu0 %v5489_v55  ;;  %v2374_v55 = vor.u32 %v2373_v49, %v7887_v21  ;;  %v2411_v59 = vrot.slane %v2409_v2, 5  ;;  %v7915_v57 = vrot.slane %v2415_v17, 5  ;;  %v2421_v18 = vrot.slane %v2419_v11, 4  ;;  %v7964_v17 = vld [vmem:[%s7020_s25 + $0x8c] sm:$0x1] }
  0x9b   : > { %6549 = vmatprep.mubr.bf16.mxu0 %v5634_v14  ;;  %v2388_v14 = vor.u32 %v2387_v35, %v2384_v3  ;;  %v2398_v24 = vor.u32 %v2397_v29, %v7899_v53  ;;  %v2401_v49 = vshll.u32 %v7891_v62, 16  ;;  %v2425_v40 = vshll.u32 %v7902_v26, 16  ;;  %v7938_v3 = vld [vmem:[%s7020_s25 + $0x88] sm:$0xf]  ;;  %v6871_v35 = vld [vmem:[%s7020_s25 + $0x18] sm:$0xff]  }
  0x9c   : > { %v2284_v43 = vsel %vm7051_vm2, %v7815_v1, %v7796_v12  ;;  %v2308_v50 = vsel %vm7051_vm2, %v7832_v6, %v7817_v13  ;;  %v2412_v20 = vor.u32 %v2411_v59, %v2408_v9  ;;  %v6877_v12 = vld [vmem:[%s9671_s1 + $0x1b0] sm:$0xff]   ;;  %v7945_v1 = vrot.slane %v2377_v37, 5  ;;  %v7969_v11 = vld [vmem:[%s9671_s1 + $0x1a8] sm:$0xff]  }
  0x9d   : > { %6434 = vmatmul.mubr.bf16.gmra.mxu1 %v9730_v51  ;;  %v2433_v29 = vshll.u32 %v5600_v19, 16  ;;  %v6876_v13 = vld [vmem:[%s9671_s1 + $0x170] sm:$0xff]   ;;  %v2322_v6 = vsel %vm7051_vm2, %v7875_v28, %v7808_v63  ;;  %v2332_v48 = vsel %vm7051_vm2, %v7880_v47, %v7865_v30  ;;  %v7959_v37 = vrot.slane %v2374_v55, 4 }
  0x9e   : > { %6501 = vmatprep.mubr.bf16.mxu1 %v6870_v52  ;;  %v2298_v52 = vsel %vm7051_vm2, %v7823_v58, %v7767_v60  ;;  %v2422_v60 = vor.u32 %v2421_v18, %v7915_v57  ;;  %v2430_v58 = vshrl.u32 %v5600_v19, 16  ;;  %v7961_v2 = vrot.slane %v2388_v14, 4  ;;  %v5603_v14 = vld [vmem:[%s7020_s25 + $0x90] sm:$0xf]  ;;  %v7992_v59 = vld [vmem:[%s7020_s25 + $0x94] sm:$0xf] }
  0x9f   : > { %v7971_v63 = vrot.slane %v2398_v24, 4  ;;  %v7973_v28 = vrot.slane %v2401_v49, 5  ;;  %v2439_v30 = vshll.u32 %v7938_v3, 16  ;;  %v2443_v47 = vshrl.u32 %v7938_v3, 16  ;;  %9731 = vst [vmem:[#allocation6_spill] sm:$0xff] %v7992_v59 }
  0xa0   : > { %v2356_v55 = vsel %vm7051_vm2, %v7907_v38, %v7883_v5  ;;  %v7986_v9 = vrot.slane %v2412_v20, 4  ;;  %v7988_v51 = vrot.slane %v2425_v40, 5  ;;  %v2435_v18 = vrot.slane %v2433_v29, 5  ;;  %v6880_v5 = vld [vmem:[%s9671_s1 + $0x168] sm:$0xff]  }
  0xa1   : > { %v2457_v38 = vshll.u32 %v5603_v14, 16  ;;  %v2463_v24 = vshll.u32 %v7992_v59, 16  ;;  %v2467_v49 = vshrl.u32 %v7992_v59, 16  ;;  %v5637_v40 = vcombine.low %v2274_v22, %v2284_v43 }
  0xa2   : > { %6550 = vmatmul.mubr.bf16.vlgmr.msra.gmra.mxu0 %v5635_v4  ;;  %v2346_v4 = vsel %vm7051_vm2, %v7897_v33, %v7842_v7  ;;  %v2449_v7 = vshll.u32 %v7964_v17, 16  ;;  %v2454_v33 = vshrl.u32 %v5603_v14, 16  ;;  %v5638_v20 = vcombine.low %v2298_v52, %v2308_v50 }
  0xa3   : > { %6630 = vmatpush3.bf16.msra.mxu0 %v7694_v15  ;;  %6553 = vmatprep.mubr.bf16.mxu0 %v5636_v54  ;;  %v7994_v15 = vrot.slane %v2422_v60, 4  ;;  %v2432_v54 = vrot.slane %v2430_v58, 4  ;;  %v8003_v19 = vrot.slane %v2439_v30, 5  ;;  %v6875_v60 = vld [vmem:[%s7020_s25 + $0x30] sm:$0xff]   ;;  %v6885_v58 = vld [vmem:[%s9671_s1 + $0x1a0] sm:$0xff]   ;;  %v2459_v14 = vrot.slane %v2457_v38, 5 }
  0xa4   : > { %6631 = vmatprep.subr.bf16.mxu0 %v6877_v12  ;;  %v2456_v29 = vrot.slane %v2454_v33, 4  ;;  %v2469_v22 = vrot.slane %v2467_v49, 4  ;;  %v8011_v43 = vcombine.low %v2322_v6, %v2332_v48  ;;  %v8014_v52 = vcombine.low %v2346_v4, %v2356_v55  ;;  %v5606_v30 = vld [vmem:[%s7020_s25 + $0x9c] sm:$0xf]  ;;  %v8036_v4 = vld [vmem:[%s7020_s25 + $0xa4] sm:$0x1] }
  0xa5   : > { %6502 = vmatmul.mubr.bf16.vlgmr.msra.gmra.mxu1 %v6871_v35  ;;  %v2445_v35 = vrot.slane %v2443_v47, 4  ;;  %v2436_v48 = vor.u32 %v2435_v18, %v2432_v54  ;;  %v8033_v47 = vld [vmem:[%s7020_s25 + $0xa0] sm:$0xf]  ;;  %9734 = vst [vmem:[#allocation9_spill] sm:$0xff] %v8036_v4  ;;  %v2478_v55 = vshrl.u32 %v5606_v30, 16  ;;  %v2481_v33 = vshll.u32 %v5606_v30, 16 }
  0xa6   : > { %6582 = vmatpush3.bf16.msra.mxu1 %v7689_v36  ;;  %6505 = vmatprep.mubr.bf16.mxu1 %v6874_v25  ;;  %v8009_v36 = vrot.slane %v2463_v24, 5  ;;  %v2380_v25 = vsel %vm7051_vm2, %v7959_v37, %v7945_v1  ;;  %9733 = vst [vmem:[#allocation8_spill] sm:$0xff] %v8033_v47  ;;  %v6878_v38 = vld [vmem:[%s7020_s25 + $0x3c] sm:$0xff]   ;;  %v2487_v37 = vshll.u32 %v8033_v47, 16  ;;  %v2491_v24 = vshrl.u32 %v8033_v47, 16 }
  0xa7   : > { %6583 = vmatprep.subr.bf16.mxu1 %v6876_v13  ;;  %6632 = vmatpush3.bf16.msra.mxu0 %v6877_v12  ;;  %v8025_v12 = vld [vmem:[%s7020_s25 + $0x98] sm:$0x1]  ;;  %v2446_v1 = vor.u32 %v2445_v35, %v8003_v19  ;;  %v6884_v54 = vld [vmem:[%s9671_s1 + $0x160] sm:$0xff]   ;;  %v2460_v18 = vor.u32 %v2459_v14, %v2456_v29  ;;  %v2480_v30 = vrot.slane %v2478_v55, 4  ;;  %v2483_v49 = vrot.slane %v2481_v33, 5 }
  0xa8   : > { %6633 = vmatprep.subr.bf16.mxu0 %v7969_v11  ;;  %9732 = vst [vmem:[#allocation7_spill] sm:$0xff] %v8025_v12  ;;  %v2473_v35 = vshll.u32 %v8025_v12, 16  ;;  %v2493_v6 = vrot.slane %v2491_v24, 4  ;;  %v2497_v50 = vshll.u32 %v8036_v4, 16  ;;  %v5609_v47 = vld [vmem:[%s7020_s25 + $0xa8] sm:$0xf] }
  0xa9   : > { %v6888_v29 = vld [vmem:[%s9671_s1 + $0x158] sm:$0xff]   ;;  %v8059_v14 = vrot.slane %v2436_v48, 4  ;;  %v2502_v55 = vshrl.u32 %v5609_v47, 16  ;;  %v2505_v33 = vshll.u32 %v5609_v47, 16  ;;  %v8072_v4 = vld [vmem:[%s7020_s25 + $0xb0] sm:$0x1] }
  0xaa   : > { %6554 = vmatmul.mubr.bf16.gmra.mxu0 %v5637_v40  ;;  %6584 = vmatpush3.bf16.msra.mxu1 %v6876_v13  ;;  %v6889_v13 = vld [vmem:[%s9671_s1 + $0x198] sm:$0xff]   ;;  %v2470_v40 = vor.u32 %v2469_v22, %v8009_v36  ;;  %v8061_v22 = vrot.slane %v2449_v7, 5  ;;  %v6879_v48 = vld [vmem:[%s7020_s25 + $0x48] sm:$0xff]   ;;  %v8075_v7 = vrot.slane %v2446_v1, 4  ;;  %v8077_v12 = vrot.slane %v2460_v18, 4 }
  0xab   : > { %6557 = vmatprep.mubr.bf16.mxu0 %v5638_v20  ;;  %6585 = vmatprep.subr.bf16.mxu1 %v6880_v5  ;;  %v8052_v20 = vrot.slane %v2487_v37, 5  ;;  %v2484_v37 = vor.u32 %v2483_v49, %v2480_v30  ;;  %v8079_v59 = vrot.slane %v2473_v35, 5  ;;  %v6892_v49 = vld [vmem:[%s9671_s1 + $0x150] sm:$0xff]   ;;  %v8096_v18 = vrot.slane %v2505_v33, 5 }
  0xac   : > { %6634 = vmatpush3.bf16.msra.mxu0 %v7969_v11  ;;  %v8064_v11 = vld [vmem:[%s7020_s25 + $0xac] sm:$0xf]  ;;  %v2521_v35 = vshll.u32 %v8072_v4, 16 }
  0xad   : > { %6506 = vmatmul.mubr.bf16.gmra.mxu1 %v6875_v60  ;;  %6635 = vmatprep.subr.bf16.mxu0 %v6885_v58  ;;  %9735 = vst [vmem:[#allocation10_spill] sm:$0xff] %v8064_v11  ;;  %v2404_v60 = vsel %vm7051_vm2, %v7971_v63, %v7973_v28  ;;  %v2494_v24 = vor.u32 %v2493_v6, %v8052_v20  ;;  %v2511_v47 = vshll.u32 %v8064_v11, 16  ;;  %v6882_v63 = vld [vmem:[%s7020_s25 + $0x54] sm:$0xff]   ;;  %v8086_v28 = vrot.slane %v2470_v40, 4 }
  0xae   : > { %6509 = vmatprep.mubr.bf16.mxu1 %v6878_v38  ;;  %6586 = vmatpush3.bf16.msra.mxu1 %v6880_v5  ;;  %v6893_v5 = vld [vmem:[%s9671_s1 + $0x190] sm:$0xff]   ;;  %v8088_v6 = vrot.slane %v2497_v50, 5  ;;  %v8090_v38 = vrot.slane %v2502_v55, 4  ;;  %v2515_v1 = vshrl.u32 %v8064_v11, 16  ;;  %v8105_v40 = vrot.slane %v2484_v37, 4 }
  0xaf   : > { %6587 = vmatprep.subr.bf16.mxu1 %v6884_v54  ;;  %v8107_v30 = vrot.slane %v2494_v24, 4  ;;  %v5612_v55 = vld [vmem:[%s7020_s25 + $0xb4] sm:$0xf]  ;;  %v8111_v11 = vld [vmem:[%s7020_s25 + $0xb8] sm:$0xf]  ;;  %v6896_v24 = vld [vmem:[%s9671_s1 + $0x148] sm:$0xff]  }
  0xb0   : > { %6636 = vmatpush3.bf16.msra.mxu0 %v6885_v58  ;;  %v9736_v58 = vsel %vm7051_vm2, %v7909_v46, %v7887_v21  ;;  %9737 = vst [vmem:[#allocation11_spill] sm:$0xff] %v8111_v11  ;;  %v2418_v21 = vsel %vm7051_vm2, %v7986_v9, %v7915_v57  ;;  %v8123_v46 = vrot.slane %v2511_v47, 5  ;;  %v5615_v37 = vld [vmem:[%s7020_s25 + $0xc0] sm:$0xf]  ;;  %v2428_v57 = vsel %vm7051_vm2, %v7994_v15, %v7988_v51  ;;  %v8150_v47 = vld [vmem:[%s7020_s25 + $0xc4] sm:$0xf] }
  0xb1   : > { %6637 = vmatprep.subr.bf16.mxu0 %v6889_v13  ;;  %v5641_v50 = vcombine.low %v9736_v58, %v2380_v25  ;;  %v2526_v25 = vshrl.u32 %v5612_v55, 16  ;;  %v2442_v9 = vsel %vm7051_vm2, %v8059_v14, %v8003_v19  ;;  %9740 = vst [vmem:[#allocation13_spill] sm:$0xff] %v8150_v47  ;;  %v8153_v51 = vld [vmem:[%s7020_s25 + $0xc8] sm:$0x1]  ;;  %v2559_v58 = vshll.u32 %v8150_v47, 16 }
  0xb2   : > { %6558 = vmatmul.mubr.bf16.gmra.mxu0 %v8011_v43  ;;  %6588 = vmatpush3.bf16.msra.mxu1 %v6884_v54  ;;  %v9738_v43 = vsel %vm7051_vm2, %v7961_v2, %v7899_v53  ;;  %v2517_v54 = vrot.slane %v2515_v1, 4  ;;  %v2529_v53 = vshll.u32 %v5612_v55, 16  ;;  %v2535_v2 = vshll.u32 %v8111_v11, 16 }
  0xb3   : > { %6561 = vmatprep.mubr.bf16.mxu0 %v8014_v52  ;;  %v5642_v33 = vcombine.low %v9738_v43, %v2404_v60  ;;  %6589 = vmatprep.subr.bf16.mxu1 %v6888_v29  ;;  %v6897_v52 = vld [vmem:[%s9671_s1 + $0x188] sm:$0xff]   ;;  %v2539_v60 = vshrl.u32 %v8111_v11, 16  ;;  %v2528_v15 = vrot.slane %v2526_v25, 4  ;;  %v9741_v55 = vrot.slane %v7558_v32, 5 }
  0xb4   : > { %6638 = vmatpush3.bf16.msra.mxu0 %v6889_v13  ;;  %v2452_v13 = vsel %vm7051_vm2, %v8075_v7, %v8061_v22  ;;  %v2531_v19 = vrot.slane %v2529_v53, 5  ;;  %v8155_v14 = vrot.slane %v2535_v2, 5  ;;  %v2550_v22 = vshrl.u32 %v5615_v37, 16  ;;  %v6883_v2 = vld [vmem:[%s7020_s25 + $0x60] sm:$0xff]  }
  0xb5   : > { %6510 = vmatmul.mubr.bf16.gmra.mxu1 %v6879_v48  ;;  %6639 = vmatprep.subr.bf16.mxu0 %v6893_v5  ;;  %v8147_v48 = vld [vmem:[%s7020_s25 + $0xbc] sm:$0x1]  ;;  %v2541_v1 = vrot.slane %v2539_v60, 4  ;;  %v2553_v7 = vshll.u32 %v5615_v37, 16  ;;  %v8160_v43 = vrot.slane %v9741_v55, 4  ;;  %v8165_v25 = vrot.slane %v2521_v35, 5 }
  0xb6   : > { %9739 = vst [vmem:[#allocation12_spill] sm:$0xff] %v8147_v48  ;;  %6513 = vmatprep.mubr.bf16.mxu1 %v6882_v63  ;;  %6590 = vmatpush3.bf16.msra.mxu1 %v6888_v29  ;;  %v2508_v63 = vor.u32 %v8096_v18, %v8090_v38  ;;  %v2518_v29 = vor.u32 %v2517_v54, %v8123_v46  ;;  %v2563_v53 = vshrl.u32 %v8150_v47, 16  ;;  %v2545_v60 = vshll.u32 %v8147_v48, 16  ;;  %v6886_v38 = vld [vmem:[%s7020_s25 + $0x6c] sm:$0xff]   ;;  %v8185_v48 = vld [vmem:[%s7020_s25 + $0x18] sm:$0xe] }
  0xb7   : > { %6591 = vmatprep.subr.bf16.mxu1 %v6892_v49  ;;  %v2552_v37 = vrot.slane %v2550_v22, 4  ;;  %v2555_v11 = vrot.slane %v2553_v7, 5  ;;  %v8170_v55 = vrot.slane %v2559_v58, 5  ;;  %v2532_v18 = vor.u32 %v2531_v19, %v2528_v15  ;;  %v6900_v22 = vld [vmem:[%s9671_s1 + $0x140] sm:$0xff]   ;;  %v8182_v58 = vld [vmem:[%s7020_s25 + $0xc] sm:$0xe] }
  0xb8   : > { %6640 = vmatpush3.bf16.msra.mxu0 %v6893_v5  ;;  %v6901_v5 = vld [vmem:[%s9671_s1 + $0x180] sm:$0xff]   ;;  %v2542_v35 = vor.u32 %v2541_v1, %v8155_v14  ;;  %v2565_v54 = vrot.slane %v2563_v53, 4  ;;  %v2569_v47 = vshll.u32 %v8153_v51, 16  ;;  %v5643_v15 = vcombine.low %v2418_v21, %v2428_v57 }
  0xb9   : > { %6641 = vmatprep.subr.bf16.mxu0 %v6897_v52  ;;  %v2556_v7 = vor.u32 %v2555_v11, %v2552_v37  ;;  %v5644_v19 = vcombine.low %v2442_v9, %v2452_v13  ;;  %v8193_v1 = vrot.slane %v2508_v63, 4  ;;  %v8195_v11 = vrot.slane %v2518_v29, 4  ;;  %v6887_v9 = vld [vmem:[%s7020_s25 + $0x78] sm:$0xff]   ;;  %v6890_v37 = vld [vmem:[%s7020_s25 + $0x84] sm:$0xff]  }
  0xba   : > { %6562 = vmatmul.mubr.bf16.gmra.mxu0 %v5641_v50  ;;  %6592 = vmatpush3.bf16.msra.mxu1 %v6892_v49  ;;  %v8190_v49 = vld [vmem:[%s9671_s1 + $0x238] sm:$0xff]   ;;  %v2566_v50 = vor.u32 %v2565_v54, %v8170_v55  ;;  %v8204_v53 = vrot.slane %v2542_v35, 4  ;;  %v8206_v21 = vrot.slane %v2545_v60, 5  ;;  %v8212_v63 = vrot.slane %v2569_v47, 5  ;;  %v5661_v60 = vld [vmem:[%s7020_s25 + $0x30] sm:$0xe] }
  0xbb   : > { %6565 = vmatprep.mubr.bf16.mxu0 %v5642_v33  ;;  %6593 = vmatprep.subr.bf16.mxu1 %v6896_v24  ;;  %v8200_v33 = vld [vmem:[%s9671_s1 + $0x1f8] sm:$0xff]   ;;  %v8210_v13 = vrot.slane %v2556_v7, 4  ;;  %v2964_v29 = vrot.slane %v7632_v42, 5  ;;  %v9742_v35 = vld [vmem:[#allocation2_spill] sm:$0xff]  ;;  %v5677_v47 = vrot.slane %v5661_v60, 9  ;;  %v9745_v60 = vld [vmem:[#allocation3_spill] sm:$0xff] }
  0xbc   : > { %6642 = vmatpush3.bf16.msra.mxu0 %v6897_v52  ;;  %v8202_v52 = vrot.slane %v2532_v18, 4  ;;  %v9743_v7 = vld [vmem:[#allocation5_spill] sm:$0xff]  ;;  %v2985_v18 = vrot.slane %v7715_v0, 5  ;;  %v2500_v0 = vsel %vm7051_vm2, %v8107_v30, %v8088_v6  ;;  %v2999_v30 = vrot.slane %v7806_v41, 5 }
  0xbd   : > { %6514 = vmatmul.mubr.bf16.gmra.mxu1 %v6883_v2  ;;  %6643 = vmatprep.subr.bf16.mxu0 %v6901_v5  ;;  %v2982_v57 = vrot.slane %v9743_v7, 5  ;;  %v9744_v2 = vld [vmem:[#allocation4_spill] sm:$0xff] }
  0xbe   : > { %6517 = vmatprep.mubr.bf16.mxu1 %v6886_v38  ;;  %6594 = vmatpush3.bf16.msra.mxu1 %v6896_v24  ;;  %v8217_v24 = vrot.slane %v2566_v50, 4  ;;  %v2968_v38 = vrot.slane %v7649_v61, 5  ;;  %v2466_v50 = vsel %vm7051_vm2, %v8077_v12, %v8009_v36  ;;  %v2989_v54 = vrot.slane %v9744_v2, 5  ;;  %v5662_v12 = vld [vmem:[%s7020_s25 + $0x3c] sm:$0xe] }
  0xbf   : > { %6595 = vmatprep.subr.bf16.mxu1 %v6900_v22  ;;  %v8239_v7 = vsel %vm7362_vm5, %v5677_v47, %v2982_v57  ;;  %v2984_v36 = vrot.slane %v2982_v57, 4  ;;  %v5678_v2 = vrot.slane %v5662_v12, 9  ;;  %v6891_v47 = vld [vmem:[%s7020_s25 + $0x90] sm:$0xff]   ;;  %v3006_v12 = vrot.slane %v7826_v34, 5 }
  0xc0   : > { %6644 = vmatpush3.bf16.msra.mxu0 %v6901_v5  ;;  %v2476_v5 = vsel %vm7051_vm2, %v8086_v28, %v8079_v59  ;;  %v2490_v59 = vsel %vm7051_vm2, %v8105_v40, %v8052_v20  ;;  %v2991_v28 = vrot.slane %v2989_v54, 4  ;;  %v2996_v20 = vrot.slane %v7765_v39, 5 }
  0xc1   : > { %6725 = vmatprep.subr.bf16.mxu0 %v8190_v49  ;;  %v8253_v57 = vsel %vm7362_vm5, %v2984_v36, %v2985_v18  ;;  %v5646_v18 = vcombine.low %v2490_v59, %v2500_v0  ;;  %v8268_v39 = vsel %vm7362_vm5, %v5678_v2, %v2989_v54  ;;  %v2514_v36 = vsel %vm7051_vm2, %v8193_v1, %v8123_v46  ;;  %v5664_v54 = vld [vmem:[%s7020_s25 + $0x54] sm:$0xe] }
  0xc2   : > { %6566 = vmatmul.mubr.bf16.gmra.mxu0 %v5643_v15  ;;  %6596 = vmatpush3.bf16.msra.mxu1 %v6900_v22  ;;  %v2978_v15 = vrot.slane %v9745_v60, 5  ;;  %v2992_v22 = vrot.slane %v7744_v45, 5  ;;  %v5709_v40 = vcombine.low %v8239_v7, %v8253_v57  ;;  %v5663_v45 = vld [vmem:[%s7020_s25 + $0x48] sm:$0xe]  ;;  %v2524_v46 = vsel %vm7051_vm2, %v8195_v11, %v8165_v25  ;;  %v6911_v7 = vld [vmem:[%s7020_s25 + $0x54] sm:$0xff]  }
  0xc3   : > { %6569 = vmatprep.mubr.bf16.mxu0 %v5644_v19  ;;  %6677 = vmatprep.subr.bf16.mxu1 %v8200_v33  ;;  %v5645_v19 = vcombine.low %v2466_v50, %v2476_v5  ;;  %v2998_v50 = vrot.slane %v2996_v20, 4  ;;  %v6894_v5 = vld [vmem:[%s7020_s25 + $0x9c] sm:$0xff]   ;;  %v3010_v2 = vrot.slane %v7830_v31, 5  ;;  %v2538_v34 = vsel %vm7051_vm2, %v8202_v52, %v8155_v14 }
  0xc4   : > { %v8260_v6 = vsel %vm7362_vm5, %v2991_v28, %v2992_v22  ;;  %v5680_v28 = vrot.slane %v5664_v54, 9  ;;  %v5665_v22 = vld [vmem:[%s7020_s25 + $0x60] sm:$0xe]  ;;  %v3013_v25 = vrot.slane %v7878_v16, 5  ;;  %v2548_v11 = vsel %vm7051_vm2, %v8204_v53, %v8206_v21 }
  0xc5   : > { %6518 = vmatmul.mubr.bf16.gmra.mxu1 %v6887_v9  ;;  %v3003_v9 = vrot.slane %v7800_v10, 5  ;;  %v5710_v41 = vcombine.low %v8268_v39, %v8260_v6  ;;  %v8283_v59 = vsel %vm7362_vm5, %v2998_v50, %v2999_v30  ;;  %v3017_v14 = vrot.slane %v7870_v8, 5  ;;  %v5891_v6 = vld [vmem:[%s7020_s25 + $0x24] sm:$0xe] }
  0xc6   : > { %6521 = vmatprep.mubr.bf16.mxu1 %v6890_v37  ;;  %v5679_v37 = vrot.slane %v5663_v45, 9  ;;  %v3012_v45 = vrot.slane %v3010_v2, 4  ;;  %v5647_v52 = vcombine.low %v2514_v36, %v2524_v46  ;;  %v3020_v8 = vrot.slane %v7891_v62, 5  ;;  %v5667_v36 = vld [vmem:[%s7020_s25 + $0x78] sm:$0xe] }
  0xc7   : > { %v3005_v0 = vrot.slane %v3003_v9, 4  ;;  %v8310_v31 = vsel %vm7362_vm5, %v5680_v28, %v3003_v9  ;;  %v3019_v9 = vrot.slane %v3017_v14, 4  ;;  %v3024_v54 = vrot.slane %v7895_v44, 5 }
  0xc8   : > { %v8279_v10 = vsel %vm7362_vm5, %v5679_v37, %v2996_v20  ;;  %v5681_v20 = vrot.slane %v5665_v22, 9  ;;  %v8322_v53 = vsel %vm7362_vm5, %v3012_v45, %v3013_v25  ;;  %v5648_v37 = vcombine.low %v2538_v34, %v2548_v11 }
  0xc9   : > { %v8338_v46 = vsel %vm7362_vm5, %v3019_v9, %v3020_v8  ;;  %v5683_v62 = vrot.slane %v5667_v36, 9  ;;  %v3031_v28 = vrot.slane %v7938_v3, 5  ;;  %v3026_v44 = vrot.slane %v3024_v54, 4  ;;  %v6902_v8 = vld [vmem:[%s7020_s25 + $0x18] sm:$0xff]   ;;  %v9750_v36 = vld [vmem:[#allocation8_spill] sm:$0xff] }
  0xca   : > { %6570 = vmatmul.mubr.bf16.gmra.mxu0 %v5645_v19  ;;  %v8301_v19 = vsel %vm7362_vm5, %v3005_v0, %v3006_v12  ;;  %v8317_v16 = vsel %vm7362_vm5, %v5681_v20, %v3010_v2  ;;  %v3027_v0 = vrot.slane %v7902_v26, 5  ;;  %v3034_v26 = vrot.slane %v7964_v17, 5  ;;  %v5668_v20 = vld [vmem:[%s7020_s25 + $0x84] sm:$0xe] }
  0xcb   : > { %6573 = vmatprep.mubr.bf16.mxu0 %v5646_v18  ;;  %v5666_v18 = vld [vmem:[%s7020_s25 + $0x6c] sm:$0xe]  ;;  %v2562_v2 = vsel %vm7051_vm2, %v8210_v13, %v8170_v55  ;;  %v8350_v34 = vsel %vm7362_vm5, %v5683_v62, %v3024_v54  ;;  %v2572_v3 = vsel %vm7051_vm2, %v8217_v24, %v8212_v63  ;;  %v5684_v25 = vrot.slane %v5668_v20, 9  ;;  %v9748_v63 = vld [vmem:[#allocation6_spill] sm:$0xff] }
  0xcc   : > { %v5682_v21 = vrot.slane %v5666_v18, 9  ;;  %v8359_v17 = vsel %vm7362_vm5, %v3026_v44, %v3027_v0  ;;  %v3033_v11 = vrot.slane %v3031_v28, 4  ;;  %v9746_v45 = vrot.slane %v7558_v32, 5  ;;  %v5669_v18 = vld [vmem:[%s7020_s25 + $0x90] sm:$0xe]  ;;  %v6914_v62 = vld [vmem:[%s7020_s25 + $0x60] sm:$0xff]  }
  0xcd   : > { %6522 = vmatmul.mubr.bf16.gmra.mxu1 %v6891_v47  ;;  %v6895_v47 = vld [vmem:[%s7020_s25 + $0xa8] sm:$0xff]   ;;  %v9747_v55 = vrot.slane %v8182_v58, 9  ;;  %v3038_v24 = vrot.slane %v9748_v63, 5  ;;  %v8376_v32 = vsel %vm7362_vm5, %v5684_v25, %v3031_v28  ;;  %v3045_v54 = vrot.slane %v9750_v36, 5 }
  0xce   : > { %6525 = vmatprep.mubr.bf16.mxu1 %v6894_v5  ;;  %v6898_v5 = vld [vmem:[%s7020_s25 + $0xb4] sm:$0xff]   ;;  %v8334_v12 = vsel %vm7362_vm5, %v5682_v21, %v3017_v14  ;;  %v5660_v14 = vld [vmem:[%s7020_s25 + $0x24] sm:$0xe]  ;;  %v9749_v21 = vld [vmem:[#allocation7_spill] sm:$0xff]  ;;  %v8380_v58 = vsel %vm7362_vm5, %v3033_v11, %v3034_v26  ;;  %v5649_v0 = vcombine.low %v2562_v2, %v2572_v3  ;;  %v2965_v28 = vsel %vm7362_vm5, %v8160_v43, %v2964_v29 }
  0xcf   : > { %v2962_v13 = vsel %vm7362_vm5, %v9747_v55, %v9746_v45  ;;  %v3041_v9 = vrot.slane %v9749_v21, 5  ;;  %v3040_v44 = vrot.slane %v3038_v24, 4  ;;  %v6899_v45 = vld [vmem:[%s7020_s25 + $0xc0] sm:$0xff]   ;;  %v2970_v26 = vrot.slane %v2968_v38, 4  ;;  %v5670_v2 = vld [vmem:[%s7020_s25 + $0x9c] sm:$0xe] }
  0xd0   : > { %v3047_v3 = vrot.slane %v3045_v54, 4  ;;  %v5686_v11 = vrot.slane %v5670_v2, 9  ;;  %v9752_v55 = vld [vmem:[#allocation10_spill] sm:$0xff]  ;;  %v5671_v63 = vld [vmem:[%s7020_s25 + $0xa8] sm:$0xe]  ;;  %v5706_v21 = vcombine.low %v2962_v13, %v2965_v28  ;;  %v9756_v28 = vrot.slane %v8185_v48, 9 }
  0xd1   : > { %v8401_v25 = vsel %vm7362_vm5, %v3040_v44, %v3041_v9  ;;  %v3052_v42 = vrot.slane %v9752_v55, 5  ;;  %v8524_v43 = vld [vmem:[%s7020_s25 + $0x34] sm:$0xf] }
  0xd2   : > { %6574 = vmatmul.mubr.bf16.gmra.mxu0 %v5647_v52  ;;  %v8414_v9 = vsel %vm7362_vm5, %v5686_v11, %v3045_v54  ;;  %v5672_v54 = vld [vmem:[%s7020_s25 + $0xb4] sm:$0xe]  ;;  %v3886_v39 = vshll.u32 %v8524_v43, 16 }
  0xd3   : > { %6577 = vmatprep.mubr.bf16.mxu0 %v5648_v37  ;;  %v5685_v37 = vrot.slane %v5669_v18, 9  ;;  %v5676_v18 = vrot.slane %v5660_v14, 9  ;;  %v3054_v36 = vrot.slane %v3052_v42, 4  ;;  %v9753_v14 = vrot.slane %v9742_v35, 5 }
  0xd4   : > { %v5688_v55 = vrot.slane %v5672_v54, 9 }
  0xd5   : > { %6526 = vmatmul.mubr.bf16.gmra.mxu1 %v6895_v47  ;;  %v9751_v47 = vld [vmem:[#allocation9_spill] sm:$0xff]  ;;  %v2977_v44 = vrot.slane %v9753_v14, 4  ;;  %v9758_v61 = vmov %v9753_v14  ;;  %v3069_v14 = vrot.slane %v8153_v51, 5  ;;  %v5808_v51 = vld [vmem:[%s7020_s25 + $0x30] sm:$0xf] }
  0xd6   : > { %6529 = vmatprep.mubr.bf16.mxu1 %v6898_v5  ;;  %v3048_v20 = vrot.slane %v9751_v47, 5  ;;  %v8396_v5 = vsel %vm7362_vm5, %v5685_v37, %v3038_v24  ;;  %v3055_v24 = vrot.slane %v8072_v4, 5  ;;  %v5687_v37 = vrot.slane %v5671_v63, 9 }
  0xd7   : > { %v9757_v63 = vrot.slane %v7663_v23, 5  ;;  %v2976_v48 = vsel %vm7362_vm5, %v5676_v18, %v9758_v61  ;;  %v2979_v23 = vsel %vm7362_vm5, %v2977_v44, %v2978_v15  ;;  %v8494_v61 = vld [vmem:[%s7020_s25 + $0x28] sm:$0xf] }
  0xd8   : > { %v8408_v29 = vsel %vm7362_vm5, %v3047_v3, %v3048_v20  ;;  %v9754_v20 = vld [vmem:[#allocation11_spill] sm:$0xff]  ;;  %v8423_v4 = vsel %vm7362_vm5, %v5687_v37, %v3052_v42  ;;  %v8427_v13 = vsel %vm7362_vm5, %v3054_v36, %v3055_v24  ;;  %v2969_v3 = vsel %vm7362_vm5, %v9756_v28, %v2968_v38  ;;  %v5673_v37 = vld [vmem:[%s7020_s25 + $0xc0] sm:$0xe]  ;;  %v9759_v38 = vld [vmem:[#allocation13_spill] sm:$0xff] }
  0xd9   : > { %v3059_v2 = vrot.slane %v9754_v20, 5  ;;  %v2972_v24 = vsel %vm7362_vm5, %v2970_v26, %v9757_v63  ;;  %v3066_v36 = vrot.slane %v9759_v38, 5  ;;  %v5689_v18 = vrot.slane %v5673_v37, 9  ;;  %v6909_v20 = vld [vmem:[%s9671_s1 + $0x230] sm:$0xff]   ;;  %v5805_v63 = vld [vmem:[%s7020_s25 + $0x24] sm:$0xf] }
  0xda   : > { %6578 = vmatmul.mubr.bf16.gmra.mxu0 %v5649_v0  ;;  %v5707_v15 = vcombine.low %v2969_v3, %v2972_v24  ;;  %v5708_v54 = vcombine.low %v2976_v48, %v2979_v23  ;;  %v6908_v28 = vld [vmem:[%s9671_s1 + $0x1f0] sm:$0xff]   ;;  %v6907_v48 = vld [vmem:[%s7020_s25 + $0x3c] sm:$0xff]   ;;  %v3853_v37 = vshrl.u32 %v5805_v63, 16  ;;  %v6910_v38 = vld [vmem:[%s7020_s25 + $0x48] sm:$0xff]   ;;  %v3862_v23 = vshll.u32 %v8494_v61, 16 }
  0xdb   : > { %6645 = vmatprep.mubr.bf16.mxu0 %v6902_v8  ;;  %v9755_v8 = vld [vmem:[#allocation12_spill] sm:$0xff]  ;;  %v3061_v42 = vrot.slane %v3059_v2, 4  ;;  %v8458_v26 = vsel %vm7362_vm5, %v5688_v55, %v3059_v2  ;;  %v3068_v60 = vrot.slane %v3066_v36, 4  ;;  %v8471_v44 = vsel %vm7362_vm5, %v5689_v18, %v3066_v36  ;;  %v5802_v2 = vld [vmem:[%s7020_s25 + $0x18] sm:$0xf]  ;;  %v6913_v55 = vld [vmem:[%s9671_s1 + $0x228] sm:$0xff]  }
  0xdc   : > { %v3062_v0 = vrot.slane %v9755_v8, 5  ;;  %v3832_v24 = vshll.u32 %v5802_v2, 16  ;;  %v6912_v36 = vld [vmem:[%s9671_s1 + $0x1e8] sm:$0xff]   ;;  %v5804_v18 = vld [vmem:[%s7020_s25 + $0x20] sm:$0x1]  ;;  %v3855_v11 = vrot.slane %v3853_v37, 4 }
  0xdd   : > { %6530 = vmatmul.mubr.bf16.gmra.mxu1 %v6899_v45  ;;  %v6903_v45 = vld [vmem:[%s7020_s25 + $0x24] sm:$0xff]   ;;  %v8476_v8 = vsel %vm7362_vm5, %v3068_v60, %v3069_v14  ;;  %v3856_v14 = vshll.u32 %v5805_v63, 16  ;;  %v8514_v63 = vld [vmem:[%s7020_s25 + $0x2c] sm:$0x1]  ;;  %v3877_v37 = vshrl.u32 %v5808_v51, 16 }
  0xde   : > { %6597 = vmatprep.mubr.bf16.mxu1 %v5706_v21  ;;  %v6906_v21 = vld [vmem:[%s7020_s25 + $0x30] sm:$0xff]   ;;  %v8462_v35 = vsel %vm7362_vm5, %v3061_v42, %v3062_v0  ;;  %v8479_v0 = vld [vmem:[%s7020_s25 + $0x1c] sm:$0xf]  ;;  %v3829_v42 = vshrl.u32 %v5802_v2, 16 }
  0xdf   : > { %v4600_v3 = vrot.slane %v8479_v0, 5  ;;  %v3858_v47 = vrot.slane %v3856_v14, 5 }
  0xe0   : > { %v3831_v60 = vrot.slane %v3829_v42, 4  ;;  %v6916_v42 = vld [vmem:[%s9671_s1 + $0x1e0] sm:$0xff]  }
  0xe2   : > { %6646 = vmatmul.mubr.bf16.vlgmr.msra.gmra.mxu0 %v6903_v45  ;;  %v3842_v45 = vshrl.u32 %v8479_v0, 16 }
  0xe3   : > { %6726 = vmatpush3.bf16.msra.mxu0 %v8190_v49  ;;  %6649 = vmatprep.mubr.bf16.mxu0 %v6906_v21  ;;  %v3838_v49 = vshll.u32 %v8479_v0, 16  ;;  %v3866_v21 = vshrl.u32 %v8494_v61, 16 }
  0xe4   : > { %6727 = vmatprep.subr.bf16.mxu0 %v6909_v20 }
  0xe5   : > { %6598 = vmatmul.mubr.bf16.vlgmr.msra.gmra.mxu1 %v5707_v15  ;;  %v5890_v15 = vld [vmem:[%s7020_s25 + $0x18] sm:$0xe]  ;;  %v8509_v2 = vrot.slane %v3838_v49, 5  ;;  %v3848_v49 = vshll.u32 %v5804_v18, 16  ;;  %v3868_v0 = vrot.slane %v3866_v21, 4 }
  0xe6   : > { %6678 = vmatpush3.bf16.msra.mxu1 %v8200_v33  ;;  %6601 = vmatprep.mubr.bf16.mxu1 %v5708_v54  ;;  %v6917_v33 = vld [vmem:[%s9671_s1 + $0x220] sm:$0xff]   ;;  %v3844_v54 = vrot.slane %v3842_v45, 4  ;;  %v8521_v45 = vrot.slane %v3862_v23, 5  ;;  %v6921_v23 = vld [vmem:[%s9671_s1 + $0x218] sm:$0xff]  }
  0xe7   : > { %6679 = vmatprep.subr.bf16.mxu1 %v6908_v28  ;;  %6728 = vmatpush3.bf16.msra.mxu0 %v6909_v20  ;;  %v3834_v20 = vrot.slane %v3832_v24, 5 }
  0xe8   : > { %6729 = vmatprep.subr.bf16.mxu0 %v6913_v55  ;;  %v3845_v21 = vor.u32 %v3844_v54, %v8509_v2  ;;  %v3869_v54 = vor.u32 %v3868_v0, %v8521_v45 }
  0xea   : > { %6650 = vmatmul.mubr.bf16.gmra.mxu0 %v6907_v48  ;;  %6680 = vmatpush3.bf16.msra.mxu1 %v6908_v28  ;;  %v5906_v48 = vrot.slane %v5890_v15, 9  ;;  %v4603_v28 = vrot.slane %v5804_v18, 5  ;;  %v4602_v18 = vrot.slane %v4600_v3, 4  ;;  %v3872_v15 = vshll.u32 %v8514_v63, 16 }
  0xeb   : > { %6653 = vmatprep.mubr.bf16.mxu0 %v6910_v38  ;;  %6681 = vmatprep.subr.bf16.mxu1 %v6912_v36  ;;  %v3880_v38 = vshll.u32 %v5808_v51, 16  ;;  %v4607_v51 = vrot.slane %v8494_v61, 5  ;;  %v3890_v61 = vshrl.u32 %v8524_v43, 16 }
  0xec   : > { %6730 = vmatpush3.bf16.msra.mxu0 %v6913_v55  ;;  %v3835_v55 = vor.u32 %v3834_v20, %v3831_v60  ;;  %v6920_v60 = vld [vmem:[%s9671_s1 + $0x1d8] sm:$0xff]   ;;  %v8547_v20 = vrot.slane %v3848_v49, 5  ;;  %v6925_v49 = vld [vmem:[%s9671_s1 + $0x210] sm:$0xff]  }
  0xed   : > { %v8519_v24 = vpop.f32.mrf.mxu0  ;;  %6602 = vmatmul.mubr.bf16.gmra.mxu1 %v5709_v40  ;;  %6731 = vmatprep.subr.bf16.mxu0 %v6917_v33  ;;  %v8529_v14 = vpop.f32.mrf.mxu1  ;;  %v3859_v40 = vor.u32 %v3858_v47, %v3855_v11  ;;  %v3879_v47 = vrot.slane %v3877_v37, 4  ;;  %v3882_v11 = vrot.slane %v3880_v38, 5  ;;  %v8574_v37 = vld [vmem:[%s7020_s25 + $0x40] sm:$0xf]  ;;  %v4609_v50 = vrot.slane %v4607_v51, 4 }
  0xee   : > { %9760 = vst [vmem:[#allocation2_spill] sm:$0xff] %v8529_v14  ;;  %6605 = vmatprep.mubr.bf16.mxu1 %v5710_v41  ;;  %6682 = vmatpush3.bf16.msra.mxu1 %v6912_v36  ;;  %v8554_v41 = vsel %vm7362_vm5, %v5906_v48, %v4600_v3  ;;  %v5811_v36 = vld [vmem:[%s7020_s25 + $0x3c] sm:$0xf]  ;;  %v8563_v0 = vrot.slane %v3835_v55, 4  ;;  %v8569_v3 = vsel %vm7362_vm5, %v4602_v18, %v4603_v28  ;;  %v8571_v48 = vrot.slane %v3872_v15, 5  ;;  %v6924_v55 = vld [vmem:[%s9671_s1 + $0x1d0] sm:$0xff]  }
  0xef   : > { %v8540_v57 = vpop.f32.mrf.mxu0  ;;  %6683 = vmatprep.subr.bf16.mxu1 %v6916_v42  ;;  %v8558_v52 = vpop.f32.mrf.mxu1  ;;  %v8581_v22 = vrot.slane %v3859_v40, 4  ;;  %v4610_v28 = vrot.slane %v8514_v63, 5  ;;  %v3870_v18 = vrot.slane %v3869_v54, 4  ;;  %v8585_v15 = vld [vmem:[%s7020_s25 + $0x38] sm:$0x1]  ;;  %v3904_v30 = vshll.u32 %v5811_v36, 16 }
  0xf0   : > { %6732 = vmatpush3.bf16.msra.mxu0 %v6917_v33  ;;  %9761 = vst [vmem:[#allocation5_spill] sm:$0xff] %v8558_v52  ;;  %v8565_v33 = vrot.slane %v3845_v21, 4  ;;  %v5907_v21 = vrot.slane %v5891_v6, 9  ;;  %v3883_v1 = vor.u32 %v3882_v11, %v3879_v47  ;;  %v8589_v52 = vrot.slane %v3890_v61, 4  ;;  %v5892_v40 = vld [vmem:[%s7020_s25 + $0x30] sm:$0xe] }
  0xf1   : > { %6733 = vmatprep.subr.bf16.mxu0 %v6921_v23  ;;  %v8576_v38 = vpop.f32.mrf.mxu0  ;;  %v3910_v6 = vshll.u32 %v8574_v37, 16  ;;  %v3914_v63 = vshrl.u32 %v8574_v37, 16  ;;  %v8597_v54 = vpop.f32.mrf.mxu1  ;;  %v9764_v11 = vcombine.low %v8310_v31, %v8301_v19  ;;  %v6915_v61 = vld [vmem:[%s7020_s25 + $0x6c] sm:$0xff]   ;;  %v8630_v19 = vsel %vm7362_vm5, %v4609_v50, %v4610_v28  ;;  %v8648_v28 = vld [vmem:[%s7020_s25 + $0x44] sm:$0x1] }
  0xf2   : > { %6654 = vmatmul.mubr.bf16.gmra.mxu0 %v6911_v7  ;;  %6684 = vmatpush3.bf16.msra.mxu1 %v6916_v42  ;;  %v8587_v7 = vrot.slane %v3886_v39, 5  ;;  %v3901_v42 = vshrl.u32 %v5811_v36, 16  ;;  %9763 = vst [vmem:[#allocation4_spill] sm:$0xff] %v8597_v54  ;;  %v3841_v39 = vsel %vm7051_vm2, %v8563_v0, %v8509_v2  ;;  %v3851_v47 = vsel %vm7051_vm2, %v8565_v33, %v8547_v20  ;;  %v6918_v36 = vld [vmem:[%s7020_s25 + $0x78] sm:$0xff]   ;;  %v8641_v33 = vld [vmem:[%s7020_s25 + $0x4c] sm:$0xf] }
  0xf3   : > { %6657 = vmatprep.mubr.bf16.mxu0 %v6914_v62  ;;  %6685 = vmatprep.subr.bf16.mxu1 %v6920_v60  ;;  %v9762_v62 = vcombine.low %v8279_v10, %v8283_v59  ;;  %v4614_v59 = vrot.slane %v8524_v43, 5  ;;  %v3865_v2 = vsel %vm7051_vm2, %v8581_v22, %v8521_v45  ;;  %v8626_v20 = vsel %vm7362_vm5, %v5907_v21, %v4607_v51  ;;  %v5814_v43 = vld [vmem:[%s7020_s25 + $0x48] sm:$0xf]  ;;  %v8652_v54 = vpop.f32.mrf.mxu1  ;;  %v5893_v14 = vld [vmem:[%s7020_s25 + $0x3c] sm:$0xe] }
  0xf4   : > { %6734 = vmatpush3.bf16.msra.mxu0 %v6921_v23  ;;  %v6929_v23 = vld [vmem:[%s9671_s1 + $0x208] sm:$0xff]   ;;  %v3896_v31 = vshll.u32 %v8585_v15, 16  ;;  %v3875_v22 = vsel %vm7051_vm2, %v3870_v18, %v8571_v48  ;;  %v5908_v45 = vrot.slane %v5892_v40, 9  ;;  %v3903_v0 = vrot.slane %v3901_v42, 4  ;;  %9766 = vst [vmem:[#allocation6_spill] sm:$0xff] %v8652_v54  ;;  %v6932_v42 = vld [vmem:[%s9671_s1 + $0x1c0] sm:$0xff]  }
  0xf5   : > { %6606 = vmatmul.mubr.bf16.gmra.mxu1 %v9762_v62  ;;  %6735 = vmatprep.subr.bf16.mxu0 %v6925_v49  ;;  %v8618_v62 = vpop.f32.mrf.mxu0  ;;  %v3906_v51 = vrot.slane %v3904_v30, 5  ;;  %v8643_v50 = vrot.slane %v3883_v1, 4  ;;  %v3893_v21 = vor.u32 %v8589_v52, %v8587_v7  ;;  %v3916_v10 = vrot.slane %v3914_v63, 4  ;;  %v6933_v30 = vld [vmem:[%s9671_s1 + $0x200] sm:$0xff]  }
  0xf6   : > { %6609 = vmatprep.mubr.bf16.mxu1 %v9764_v11  ;;  %6686 = vmatpush3.bf16.msra.mxu1 %v6920_v60  ;;  %9765 = vst [vmem:[#allocation3_spill] sm:$0xff] %v8618_v62  ;;  %v6928_v60 = vld [vmem:[%s9671_s1 + $0x1c8] sm:$0xff]   ;;  %v8650_v11 = vrot.slane %v3910_v6, 5  ;;  %v4616_v48 = vrot.slane %v4614_v59, 4  ;;  %v3925_v1 = vshrl.u32 %v5814_v43, 16  ;;  %v3928_v18 = vshll.u32 %v5814_v43, 16 }
  0xf7   : > { %6687 = vmatprep.subr.bf16.mxu1 %v6924_v55  ;;  %v8663_v40 = vcombine.low %v3841_v39, %v3851_v47  ;;  %v3938_v63 = vshrl.u32 %v8641_v33, 16  ;;  %v8671_v43 = vrot.slane %v3896_v31, 5  ;;  %v3920_v54 = vshll.u32 %v8648_v28, 16  ;;  %v5817_v39 = vld [vmem:[%s7020_s25 + $0x54] sm:$0xf]  ;;  %v6919_v6 = vld [vmem:[%s7020_s25 + $0x84] sm:$0xff]  }
  0xf8   : > { %6736 = vmatpush3.bf16.msra.mxu0 %v6925_v49  ;;  %v4617_v49 = vrot.slane %v8585_v15, 5  ;;  %v8658_v52 = vpop.f32.mrf.mxu0  ;;  %v3934_v15 = vshll.u32 %v8641_v33, 16  ;;  %v4621_v31 = vrot.slane %v8574_v37, 5  ;;  %v9770_v37 = vcombine.low %v8334_v12, %v8338_v46  ;;  %v6922_v47 = vld [vmem:[%s7020_s25 + $0x90] sm:$0xff]  }
  0xf9   : > { %6737 = vmatprep.subr.bf16.mxu0 %v6929_v23  ;;  %9767 = vst [vmem:[#allocation7_spill] sm:$0xff] %v8658_v52 }
  0xfa   : > { %6658 = vmatmul.mubr.bf16.gmra.mxu0 %v6915_v61  ;;  %6688 = vmatpush3.bf16.msra.mxu1 %v6924_v55  ;;  %v8669_v61 = vcombine.low %v3865_v2, %v3875_v22  ;;  %v3907_v55 = vor.u32 %v3906_v51, %v3903_v0  ;;  %v3917_v2 = vor.u32 %v3916_v10, %v8650_v11  ;;  %v8687_v22 = vld [vmem:[%s7020_s25 + $0x58] sm:$0xf]  ;;  %v8694_v51 = vrot.slane %v3893_v21, 4 }
  0xfb   : > { %6661 = vmatprep.mubr.bf16.mxu0 %v6918_v36  ;;  %6689 = vmatprep.subr.bf16.mxu1 %v6928_v60  ;;  %v8682_v36 = vsel %vm7362_vm5, %v5908_v45, %v4614_v59  ;;  %v9768_v0 = vcombine.low %v8317_v16, %v8322_v53  ;;  %v8698_v59 = vsel %vm7362_vm5, %v4616_v48, %v4617_v49  ;;  %v3927_v45 = vrot.slane %v3925_v1, 4  ;;  %v8705_v16 = vpop.f32.mrf.mxu0  ;;  %v5816_v1 = vld [vmem:[%s7020_s25 + $0x50] sm:$0x1] }
  0xfc   : > { %6738 = vmatpush3.bf16.msra.mxu0 %v6929_v23  ;;  %v8692_v23 = vpop.f32.mrf.mxu1  ;;  %v3930_v10 = vrot.slane %v3928_v18, 5  ;;  %9771 = vst [vmem:[#allocation9_spill] sm:$0xff] %v8705_v16  ;;  %v5909_v53 = vrot.slane %v5893_v14, 9  ;;  %v3940_v21 = vrot.slane %v3938_v63, 4  ;;  %v3908_v48 = vrot.slane %v3907_v55, 4 }
  0xfd   : > { %6610 = vmatmul.mubr.bf16.gmra.mxu1 %v9768_v0  ;;  %9769 = vst [vmem:[#allocation8_spill] sm:$0xff] %v8692_v23  ;;  %6739 = vmatprep.subr.bf16.mxu0 %v6933_v30  ;;  %v8707_v0 = vrot.slane %v3934_v15, 5  ;;  %v3949_v23 = vshrl.u32 %v5817_v39, 16  ;;  %v3922_v49 = vrot.slane %v3920_v54, 5  ;;  %v3952_v18 = vshll.u32 %v5817_v39, 16  ;;  %v8723_v39 = vpop.f32.mrf.mxu0 }
  0xfe   : > { %6613 = vmatprep.mubr.bf16.mxu1 %v9770_v37  ;;  %6690 = vmatpush3.bf16.msra.mxu1 %v6928_v60  ;;  %v3958_v52 = vshll.u32 %v8687_v22, 16  ;;  %v3918_v12 = vrot.slane %v3917_v2, 4  ;;  %v4623_v46 = vrot.slane %v4621_v31, 4  ;;  %v4624_v37 = vrot.slane %v8648_v28, 5  ;;  %v8713_v60 = vpop.f32.mrf.mxu1  ;;  %v5820_v55 = vld [vmem:[%s7020_s25 + $0x60] sm:$0xf] }
  0xff   : > { %6691 = vmatprep.subr.bf16.mxu1 %v6932_v42  ;;  %v3962_v14 = vshrl.u32 %v8687_v22, 16  ;;  %9772 = vst [vmem:[#allocation10_spill] sm:$0xff] %v8713_v60  ;;  %v3899_v15 = vsel %vm7051_vm2, %v8694_v51, %v8671_v43  ;;  %v3931_v63 = vor.u32 %v3930_v10, %v3927_v45  ;;  %v3941_v28 = vor.u32 %v3940_v21, %v8707_v0  ;;  %v5894_v60 = vld [vmem:[%s7020_s25 + $0x48] sm:$0xe] }
 0x100   : > { %6740 = vmatpush3.bf16.msra.mxu0 %v6933_v30  ;;  %v4628_v30 = vrot.slane %v8641_v33, 5  ;;  %v3944_v2 = vshll.u32 %v5816_v1, 16  ;;  %v3951_v16 = vrot.slane %v3949_v23, 4  ;;  %v3954_v62 = vrot.slane %v3952_v18, 5  ;;  %v8748_v10 = vpop.f32.mrf.mxu1 }
 0x101   : > { %v3913_v43 = vsel %vm7051_vm2, %v3908_v48, %v8650_v11  ;;  %v8732_v33 = vsel %vm7362_vm5, %v5909_v53, %v4621_v31  ;;  %v3923_v51 = vsel %vm7051_vm2, %v3918_v12, %v3922_v49  ;;  %v8740_v23 = vsel %vm7362_vm5, %v4623_v46, %v4624_v37  ;;  %9774 = vst [vmem:[#allocation11_spill] sm:$0xff] %v8748_v10  ;;  %v8751_v49 = vld [vmem:[%s7020_s25 + $0x64] sm:$0xf]  ;;  %v6923_v12 = vld [vmem:[%s7020_s25 + $0x9c] sm:$0xff]   ;;  %v8757_v46 = vpop.f32.mrf.mxu0 }
 0x102   : > { %6662 = vmatmul.mubr.bf16.gmra.mxu0 %v6919_v6  ;;  %6692 = vmatpush3.bf16.msra.mxu1 %v6932_v42  ;;  %v8734_v6 = vrot.slane %v3958_v52, 5  ;;  %v3964_v42 = vrot.slane %v3962_v14, 4  ;;  %v3973_v45 = vshrl.u32 %v5820_v55, 16  ;;  %v3976_v11 = vshll.u32 %v5820_v55, 16  ;;  %v6926_v55 = vld [vmem:[%s7020_s25 + $0xa8] sm:$0xff]  }
 0x103   : > { %6665 = vmatprep.mubr.bf16.mxu0 %v6922_v47  ;;  %v8743_v47 = vld [vmem:[%s7020_s25 + $0x5c] sm:$0x1]  ;;  %v9773_v31 = vcombine.low %v8350_v34, %v8359_v17  ;;  %v3932_v52 = vrot.slane %v3931_v63, 4  ;;  %v5910_v53 = vrot.slane %v5894_v60, 9  ;;  %v4630_v21 = vrot.slane %v4628_v30, 4 }
 0x104   : > { %v4631_v48 = vrot.slane %v5816_v1, 5  ;;  %v9775_v18 = vcombine.low %v8376_v32, %v8380_v58  ;;  %v3942_v37 = vrot.slane %v3941_v28, 4  ;;  %v3946_v14 = vrot.slane %v3944_v2, 5  ;;  %v5895_v63 = vld [vmem:[%s7020_s25 + $0x54] sm:$0xe]  ;;  %v8775_v28 = vpop.f32.mrf.mxu1 }
 0x105   : > { %6614 = vmatmul.mubr.bf16.gmra.mxu1 %v9773_v31  ;;  %v3955_v34 = vor.u32 %v3954_v62, %v3951_v16  ;;  %v4635_v17 = vrot.slane %v8687_v22, 5  ;;  %v3965_v60 = vor.u32 %v3964_v42, %v8734_v6  ;;  %v3968_v1 = vshll.u32 %v8743_v47, 16  ;;  %9777 = vst [vmem:[#allocation12_spill] sm:$0xff] %v8775_v28  ;;  %v5896_v62 = vld [vmem:[%s7020_s25 + $0x60] sm:$0xe] }
 0x106   : > { %6617 = vmatprep.mubr.bf16.mxu1 %v9775_v18  ;;  %v3975_v31 = vrot.slane %v3973_v45, 4  ;;  %v3978_v54 = vrot.slane %v3976_v11, 5  ;;  %v9776_v32 = vsel %vm7051_vm2, %v8643_v50, %v8587_v7  ;;  %v3982_v22 = vshll.u32 %v8751_v49, 16 }
 0x107   : > { %v8769_v58 = vcombine.low %v9776_v32, %v3899_v15  ;;  %v3986_v16 = vshrl.u32 %v8751_v49, 16  ;;  %v8777_v2 = vcombine.low %v3913_v43, %v3923_v51  ;;  %v3937_v42 = vsel %vm7051_vm2, %v3932_v52, %v8707_v0  ;;  %v5823_v15 = vld [vmem:[%s7020_s25 + $0x6c] sm:$0xf]  ;;  %v8795_v32 = vld [vmem:[%s7020_s25 + $0x70] sm:$0xf] }
 0x108   : > { %v8784_v7 = vsel %vm7362_vm5, %v5910_v53, %v4628_v30  ;;  %v8788_v50 = vsel %vm7362_vm5, %v4630_v21, %v4631_v48  ;;  %v8791_v45 = vpop.f32.mrf.mxu0  ;;  %v3956_v43 = vrot.slane %v3955_v34, 4  ;;  %v5911_v51 = vrot.slane %v5895_v63, 9  ;;  %v5822_v53 = vld [vmem:[%s7020_s25 + $0x68] sm:$0x1] }
 0x109   : > { %9778 = vst [vmem:[#allocation13_spill] sm:$0xff] %v8791_v45  ;;  %v4637_v11 = vrot.slane %v4635_v17, 4  ;;  %v4638_v18 = vrot.slane %v8743_v47, 5  ;;  %v3947_v0 = vsel %vm7051_vm2, %v3942_v37, %v3946_v14  ;;  %v3966_v30 = vrot.slane %v3965_v60, 4  ;;  %v5898_v45 = vld [vmem:[%s7020_s25 + $0x78] sm:$0xe] }
 0x10a   : > { %6666 = vmatmul.mubr.bf16.gmra.mxu0 %v6923_v12  ;;  %v3970_v52 = vrot.slane %v3968_v1, 5  ;;  %v3979_v21 = vor.u32 %v3978_v54, %v3975_v31  ;;  %v8800_v48 = vrot.slane %v3982_v22, 5  ;;  %v3988_v12 = vrot.slane %v3986_v16, 4  ;;  %v6927_v31 = vld [vmem:[%s7020_s25 + $0xb4] sm:$0xff]  }
 0x10b   : > { %6669 = vmatprep.mubr.bf16.mxu0 %v6926_v55  ;;  %v3997_v34 = vshrl.u32 %v5823_v15, 16  ;;  %v4000_v63 = vshll.u32 %v5823_v15, 16  ;;  %v9779_v47 = vcombine.low %v8396_v5, %v8401_v25  ;;  %v4642_v14 = vrot.slane %v8751_v49, 5  ;;  %v8817_v5 = vpop.f32.mrf.mxu0 }
 0x10c   : > { %v4006_v54 = vshll.u32 %v8795_v32, 16  ;;  %v4010_v60 = vshrl.u32 %v8795_v32, 16  ;;  %v9781_v1 = vcombine.low %v8414_v9, %v8408_v29  ;;  %9782 = vst [vmem:[#allocation15_spill] sm:$0xff] %v8817_v5  ;;  %v8819_v25 = vcombine.low %v3937_v42, %v3947_v0  ;;  %v5826_v29 = vld [vmem:[%s7020_s25 + $0x78] sm:$0xf]  ;;  %v6930_v9 = vld [vmem:[%s7020_s25 + $0xc0] sm:$0xff]  }
 0x10d   : > { %6618 = vmatmul.mubr.bf16.gmra.mxu1 %v9779_v47  ;;  %v8806_v55 = vpop.f32.mrf.mxu1  ;;  %v3961_v22 = vsel %vm7051_vm2, %v3956_v43, %v8734_v6  ;;  %v8826_v49 = vsel %vm7362_vm5, %v5911_v51, %v4635_v17  ;;  %v8830_v16 = vsel %vm7362_vm5, %v4637_v11, %v4638_v18  ;;  %v3971_v15 = vsel %vm7051_vm2, %v3966_v30, %v3970_v52  ;;  %v8843_v43 = vld [vmem:[%s7020_s25 + $0x74] sm:$0x1]  ;;  %v8900_v5 = vld [vmem:[%s7020_s25 + $0x8c] sm:$0x1] }
 0x10e   : > { %9780 = vst [vmem:[#allocation14_spill] sm:$0xff] %v8806_v55  ;;  %6621 = vmatprep.mubr.bf16.mxu1 %v9781_v1  ;;  %v8836_v47 = vrot.slane %v3979_v21, 4  ;;  %v3992_v42 = vshll.u32 %v5822_v53, 16  ;;  %v5912_v0 = vrot.slane %v5896_v62, 9  ;;  %v8839_v1 = vld [vmem:[%s7020_s25 + $0x7c] sm:$0xf]  ;;  %v3989_v6 = vor.u32 %v3988_v12, %v8800_v48  ;;  %v8849_v21 = vpop.f32.mrf.mxu0 }
 0x10f   : > { %v4645_v17 = vrot.slane %v5822_v53, 5  ;;  %v3999_v51 = vrot.slane %v3997_v34, 4  ;;  %v4002_v11 = vrot.slane %v4000_v63, 5  ;;  %v8845_v18 = vpop.f32.mrf.mxu1  ;;  %v4644_v37 = vrot.slane %v4642_v14, 4  ;;  %9784 = vst [vmem:[#allocation17_spill] sm:$0xff] %v8849_v21 }
 0x110   : > { %9783 = vst [vmem:[#allocation16_spill] sm:$0xff] %v8845_v18  ;;  %v8847_v55 = vrot.slane %v4006_v54, 5  ;;  %v4012_v30 = vrot.slane %v4010_v60, 4  ;;  %v4021_v52 = vshrl.u32 %v5826_v29, 16  ;;  %v5897_v53 = vld [vmem:[%s7020_s25 + $0x6c] sm:$0xe]  ;;  %v8856_v18 = vcombine.low %v3961_v22, %v3971_v15 }
 0x111   : > { %v4024_v12 = vshll.u32 %v5826_v29, 16  ;;  %v4030_v34 = vshll.u32 %v8839_v1, 16  ;;  %v4034_v63 = vshrl.u32 %v8839_v1, 16  ;;  %v8858_v54 = vrot.slane %v3992_v42, 5  ;;  %v5829_v62 = vld [vmem:[%s7020_s25 + $0x84] sm:$0xf]  ;;  %v8879_v42 = vpop.f32.mrf.mxu1 }
 0x112   : > { %6670 = vmatmul.mubr.bf16.gmra.mxu0 %v6927_v31  ;;  %9785 = vst [vmem:[#allocation18_spill] sm:$0xff] %v8856_v18  ;;  %v8862_v60 = vsel %vm7362_vm5, %v5912_v0, %v4642_v14  ;;  %v4016_v31 = vshll.u32 %v8843_v43, 16  ;;  %v8870_v28 = vrot.slane %v3989_v6, 4  ;;  %v4649_v22 = vrot.slane %v8795_v32, 5  ;;  %v8874_v15 = vld [vmem:[%s7020_s25 + $0x88] sm:$0xf] }
 0x113   : > { %6673 = vmatprep.mubr.bf16.mxu0 %v6930_v9  ;;  %v4003_v9 = vor.u32 %v4002_v11, %v3999_v51  ;;  %v9786_v14 = vcombine.low %v8423_v4, %v8427_v13  ;;  %9787 = vst [vmem:[#allocation19_spill] sm:$0xff] %v8879_v42  ;;  %v6931_v0 = vld [vmem:[%s7020_s25 + $0xcc] sm:$0xff]   ;;  %v8884_v10 = vsel %vm7362_vm5, %v4644_v37, %v4645_v17  ;;  %v5913_v6 = vrot.slane %v5897_v53, 9  ;;  %v8887_v11 = vpop.f32.mrf.mxu0  ;;  %v8893_v4 = vld [vmem:[%s7020_s25 + $0x80] sm:$0x1] }
 0x114   : > { %v4013_v29 = vor.u32 %v4012_v30, %v8847_v55  ;;  %v4023_v51 = vrot.slane %v4021_v52, 4  ;;  %9788 = vst [vmem:[#allocation20_spill] sm:$0xff] %v8887_v11  ;;  %v9789_v32 = vcombine.low %v8458_v26, %v8462_v35  ;;  %v4026_v13 = vrot.slane %v4024_v12, 5 }
 0x115   : > { %6622 = vmatmul.mubr.bf16.gmra.mxu1 %v9786_v14  ;;  %v8895_v14 = vrot.slane %v4030_v34, 5  ;;  %v4036_v42 = vrot.slane %v4034_v63, 4  ;;  %v4045_v21 = vshrl.u32 %v5829_v62, 16  ;;  %v4018_v37 = vrot.slane %v4016_v31, 5 }
 0x116   : > { %6625 = vmatprep.mubr.bf16.mxu1 %v9789_v32  ;;  %v4652_v17 = vrot.slane %v8843_v43, 5  ;;  %v4048_v30 = vshll.u32 %v5829_v62, 16  ;;  %v4054_v52 = vshll.u32 %v8874_v15, 16  ;;  %v4004_v53 = vrot.slane %v4003_v9, 4  ;;  %v8903_v32 = vpop.f32.mrf.mxu1 }
 0x117   : > { %v4651_v11 = vrot.slane %v4649_v22, 4  ;;  %v4047_v26 = vrot.slane %v4045_v21, 4  ;;  %v4058_v35 = vshrl.u32 %v8874_v15, 16  ;;  %v4014_v12 = vrot.slane %v4013_v29, 4 }
 0x118   : > { %v4040_v34 = vshll.u32 %v8893_v4, 16  ;;  %v4050_v63 = vrot.slane %v4048_v30, 5  ;;  %v8906_v31 = vrot.slane %v4054_v52, 5  ;;  %v4027_v62 = vor.u32 %v4026_v13, %v4023_v51  ;;  %v5899_v52 = vld [vmem:[%s7020_s25 + $0x84] sm:$0xe] }
 0x119   : > { %v8908_v43 = vpop.f32.mrf.mxu0  ;;  %v4037_v9 = vor.u32 %v4036_v42, %v8895_v14  ;;  %v4656_v21 = vrot.slane %v8839_v1, 5  ;;  %v4060_v18 = vrot.slane %v4058_v35, 4  ;;  %v9790_v29 = vcombine.low %v8554_v41, %v8569_v3 }
 0x11a   : > { %6674 = vmatmul.mubr.bf16.gmra.mxu0 %v6931_v0  ;;  %v3995_v30 = vsel %vm7051_vm2, %v8870_v28, %v8858_v54  ;;  %v8924_v51 = vsel %vm7362_vm5, %v5913_v6, %v4649_v22  ;;  %v4064_v42 = vshll.u32 %v8900_v5, 16  ;;  %v4009_v41 = vsel %vm7051_vm2, %v4004_v53, %v8847_v55  ;;  %v5832_v54 = vld [vmem:[%s7020_s25 + $0x90] sm:$0xf] }
 0x11b   : > { %6741 = vmatprep.mubr.bf16.mxu0 %v9790_v29  ;;  %v8927_v1 = vpop.f32.mrf.mxu0  ;;  %v4051_v3 = vor.u32 %v4050_v63, %v4047_v26  ;;  %v4061_v13 = vor.u32 %v4060_v18, %v8906_v31  ;;  %v4663_v28 = vrot.slane %v8874_v15, 5  ;;  %v9792_v22 = vcombine.low %v8471_v44, %v8476_v8 }
 0x11c   : > { %v4019_v6 = vsel %vm7051_vm2, %v4014_v12, %v4018_v37  ;;  %v8945_v55 = vsel %vm7362_vm5, %v4651_v11, %v4652_v17  ;;  %v4042_v53 = vrot.slane %v4040_v34, 5  ;;  %v5914_v18 = vrot.slane %v5898_v45, 9  ;;  %v8954_v12 = vld [vmem:[%s7020_s25 + $0x94] sm:$0xf] }
 0x11d   : > { %v8936_v35 = vpop.f32.mrf.mxu1  ;;  %6626 = vmatmul.mubr.bf16.gmra.mxu1 %v9792_v22  ;;  %v8947_v26 = vpop.f32.mrf.mxu0  ;;  %v4028_v15 = vrot.slane %v4027_v62, 4  ;;  %v4038_v63 = vrot.slane %v4037_v9, 4  ;;  %v4658_v29 = vrot.slane %v4656_v21, 4  ;;  %v4659_v0 = vrot.slane %v8893_v4, 5 }
 0x11e   : > { %9791 = vst [vmem:[#allocation21_spill] sm:$0xff] %v8936_v35  ;;  %6693 = vmatprep.mubr.bf16.mxu1 %v8663_v40  ;;  %v4066_v8 = vrot.slane %v4064_v42, 5  ;;  %v5915_v37 = vrot.slane %v5899_v52, 9  ;;  %v4069_v11 = vshrl.u32 %v5832_v54, 16  ;;  %v4072_v17 = vshll.u32 %v5832_v54, 16 }
 0x11f   : > { %v8951_v44 = vpop.f32.mrf.mxu1  ;;  %v8956_v34 = vpop.f32.mrf.mxu0  ;;  %v4052_v45 = vrot.slane %v4051_v3, 4  ;;  %v4062_v22 = vrot.slane %v4061_v13, 4  ;;  %v4665_v40 = vrot.slane %v4663_v28, 4  ;;  %v4666_v62 = vrot.slane %v8900_v5, 5  ;;  %v8977_v54 = vld [vmem:[%s7020_s25 + $0x98] sm:$0x1] }
 0x120   : > { %9793 = vst [vmem:[#allocation22_spill] sm:$0xff] %v8951_v44  ;;  %v9795_v4 = vsel %vm7051_vm2, %v8836_v47, %v8800_v48  ;;  %v8968_v52 = vcombine.low %v4009_v41, %v4019_v6  ;;  %v8974_v13 = vsel %vm7362_vm5, %v5914_v18, %v4656_v21  ;;  %v4033_v48 = vsel %vm7051_vm2, %v4028_v15, %v8895_v14  ;;  %v5835_v41 = vld [vmem:[%s7020_s25 + $0x9c] sm:$0xf]  ;;  %v8994_v6 = vld [vmem:[%s7020_s25 + $0xa0] sm:$0xf] }
 0x121   : > { %v8959_v9 = vpop.f32.mrf.mxu1  ;;  %v8966_v42 = vcombine.low %v9795_v4, %v3995_v30  ;;  %v6455_v5 = vpop.f32.mrf.mxu0  ;;  %v4043_v47 = vsel %vm7051_vm2, %v4038_v63, %v4042_v53  ;;  %v8989_v30 = vsel %vm7362_vm5, %v4658_v29, %v4659_v0  ;;  %v4078_v21 = vshll.u32 %v8954_v12, 16  ;;  %v9081_v35 = vld [vmem:[%s7020_s25 + $0xb0] sm:$0x1] }
 0x122   : > { %9794 = vst [vmem:[#allocation23_spill] sm:$0xff] %v8959_v9  ;;  %v9796_v9 = vcombine.low %v8626_v20, %v8630_v19  ;;  %v9798_v20 = vcombine.low %v8682_v36, %v8698_v59  ;;  %v9003_v19 = vsel %vm7362_vm5, %v5915_v37, %v4663_v28  ;;  %v4071_v14 = vrot.slane %v4069_v11, 4  ;;  %v9018_v37 = vld [vmem:[%s7020_s25 + $0x90] sm:$0xe] }
 0x123   : > { %v8996_v18 = vpop.f32.mrf.mxu1  ;;  %v4074_v53 = vrot.slane %v4072_v17, 5  ;;  %v4082_v0 = vshrl.u32 %v8954_v12, 16  ;;  %v1595_v15 = vpop.f32.mrf.mxu0  ;;  %v4057_v63 = vsel %vm7051_vm2, %v4052_v45, %v8906_v31  ;;  %v4067_v29 = vsel %vm7051_vm2, %v4062_v22, %v4066_v8 }
 0x124   : > { %6742 = vmatmul.mubr.bf16.vlgmr.msra.gmra.mxu0 %v9796_v9  ;;  %9797 = vst [vmem:[#allocation24_spill] sm:$0xff] %v8996_v18  ;;  %v9013_v36 = vsel %vm7362_vm5, %v4665_v40, %v4666_v62  ;;  %v4088_v59 = vshll.u32 %v8977_v54, 16  ;;  %v4093_v11 = vshrl.u32 %v5835_v41, 16  ;;  %v4096_v17 = vshll.u32 %v5835_v41, 16 }
 0x125   : > { %6745 = vmatprep.mubr.bf16.mxu0 %v9798_v20  ;;  %v6407_v28 = vpop.f32.mrf.mxu1  ;;  %6694 = vmatmul.mubr.bf16.vlgmr.msra.gmra.mxu1 %v8669_v61  ;;  %v4102_v9 = vshll.u32 %v8994_v6, 16  ;;  %v4106_v31 = vshrl.u32 %v8994_v6, 16  ;;  %v6456_v45 = vpop.f32.mrf.mxu0  ;;  %v9024_v22 = vcombine.low %v4033_v48, %v4043_v47  ;;  %v9028_v40 = vrot.slane %v4078_v21, 5  ;;  %v9042_v61 = vld [vmem:[%s7020_s25 + $0xa4] sm:$0x1] }
 0x126   : > { %v1151_v8 = vadd.f32 %v6407_v28, %v8519_v24  ;;  %6697 = vmatprep.mubr.bf16.mxu1 %v8769_v58  ;;  %v9030_v4 = vcombine.low %v4057_v63, %v4067_v29  ;;  %v4075_v20 = vor.u32 %v4074_v53, %v4071_v14  ;;  %v4084_v24 = vrot.slane %v4082_v0, 4  ;;  %v5838_v28 = vld [vmem:[%s7020_s25 + $0xa8] sm:$0xf]  ;;  %v9047_v14 = vld [vmem:[%s7020_s25 + $0xac] sm:$0xf] }
 0x127   : > { %v1142_v62 = vpop.f32.mrf.mxu1  ;;  %v1598_v48 = vpop.f32.mrf.mxu0  ;;  %v9038_v47 = vrot.slane %v4088_v59, 5  ;;  %v5916_v21 = vrot.slane %v9018_v37, 9  ;;  %v4095_v29 = vrot.slane %v4093_v11, 4  ;;  %v4098_v18 = vrot.slane %v4096_v17, 5 }
 0x128   : > { %v9035_v3 = vadd.f32 %v6455_v5, %v1151_v8  ;;  %v1143_v58 = vadd.f32 %v1142_v62, %v8540_v57  ;;  %v9044_v44 = vrot.slane %v4102_v9, 5  ;;  %v4108_v41 = vrot.slane %v4106_v31, 4  ;;  %v9804_v62 = vld [vmem:[#allocation3_spill] sm:$0xff] }
 0x129   : > { %v6408_v63 = vpop.f32.mrf.mxu1  ;;  %v6459_v5 = vpop.f32.mrf.mxu0  ;;  %v9801_v0 = vcombine.low %v8732_v33, %v8740_v23  ;;  %v4117_v59 = vshrl.u32 %v5838_v28, 16  ;;  %v4120_v37 = vshll.u32 %v5838_v28, 16  ;;  %v9802_v11 = vcombine.low %v8784_v7, %v8788_v50 }
 0x12a   : > { %9799 = vst [vmem:[#allocation25_spill] sm:$0xff] %v9035_v3  ;;  %v9049_v53 = vadd.f32 %v1595_v15, %v1143_v58  ;;  %v1154_v57 = vadd.f32 %v6408_v63, %v8576_v38  ;;  %v9058_v17 = vrot.slane %v4075_v20, 4  ;;  %v4085_v15 = vor.u32 %v4084_v24, %v9028_v40  ;;  %v5901_v58 = vld [vmem:[%s7020_s25 + $0x9c] sm:$0xe] }
 0x12b   : > { %v1145_v8 = vpop.f32.mrf.mxu1  ;;  %v4670_v9 = vrot.slane %v8954_v12, 5  ;;  %v4112_v38 = vshll.u32 %v9042_v61, 16  ;;  %v1611_v23 = vpop.f32.mrf.mxu0  ;;  %v4673_v28 = vrot.slane %v8977_v54, 5  ;;  %v4126_v63 = vshll.u32 %v9047_v14, 16 }
 0x12c   : > { %9800 = vst [vmem:[#allocation26_spill] sm:$0xff] %v9049_v53  ;;  %6746 = vmatmul.mubr.bf16.gmra.mxu0 %v9801_v0  ;;  %v9063_v31 = vadd.f32 %v6456_v45, %v1154_v57  ;;  %v1146_v33 = vadd.f32 %v1145_v8, %v9804_v62  ;;  %v4099_v50 = vor.u32 %v4098_v18, %v4095_v29  ;;  %v4677_v12 = vrot.slane %v8994_v6, 5  ;;  %v9805_v57 = vld [vmem:[#allocation7_spill] sm:$0xff]  ;;  %v9806_v6 = vld [vmem:[#allocation9_spill] sm:$0xff] }
 0x12d   : > { %6749 = vmatprep.mubr.bf16.mxu0 %v9802_v11  ;;  %v6411_v7 = vpop.f32.mrf.mxu1  ;;  %6698 = vmatmul.mubr.bf16.gmra.mxu1 %v8777_v2  ;;  %v4109_v20 = vor.u32 %v4108_v41, %v9044_v44  ;;  %v4130_v45 = vshrl.u32 %v9047_v14, 16  ;;  %v6460_v8 = vpop.f32.mrf.mxu0  ;;  %v4119_v54 = vrot.slane %v4117_v59, 4  ;;  %v4122_v11 = vrot.slane %v4120_v37, 5 }
 0x12e   : > { %9803 = vst [vmem:[#allocation27_spill] sm:$0xff] %v9063_v31  ;;  %v9073_v24 = vadd.f32 %v1598_v48, %v1146_v33  ;;  %v1167_v0 = vadd.f32 %v6411_v7, %v9805_v57  ;;  %6701 = vmatprep.mubr.bf16.mxu1 %v8819_v25  ;;  %v4086_v31 = vrot.slane %v4085_v15, 4  ;;  %v4672_v2 = vrot.slane %v4670_v9, 4 }
 0x12f   : > { %v1158_v62 = vpop.f32.mrf.mxu1  ;;  %v4114_v18 = vrot.slane %v4112_v38, 5  ;;  %v5917_v29 = vrot.slane %v5901_v58, 9  ;;  %v1614_v3 = vpop.f32.mrf.mxu0  ;;  %v9083_v48 = vrot.slane %v4126_v63, 5  ;;  %v4132_v33 = vrot.slane %v4130_v45, 4 }
 0x130   : > { %v9077_v41 = vadd.f32 %v6459_v5, %v1167_v0  ;;  %v1159_v53 = vadd.f32 %v1158_v62, %v9806_v6  ;;  %v4100_v57 = vrot.slane %v4099_v50, 4  ;;  %v4110_v25 = vrot.slane %v4109_v20, 4 }
 0x131   : > { %v6412_v7 = vpop.f32.mrf.mxu1  ;;  %v4679_v59 = vrot.slane %v4677_v12, 4  ;;  %v4680_v37 = vrot.slane %v9042_v61, 5  ;;  %v6463_v38 = vpop.f32.mrf.mxu0  ;;  %v9807_v58 = vcombine.low %v8826_v49, %v8830_v16  ;;  %v9094_v63 = vsel %vm7362_vm5, %v5916_v21, %v4670_v9  ;;  %v5902_v21 = vld [vmem:[%s7020_s25 + $0xa8] sm:$0xe] }
 0x132   : > { %v9086_v15 = vadd.f32 %v1611_v23, %v1159_v53  ;;  %v1170_v5 = vadd.f32 %v6412_v7, %v8723_v39  ;;  %v4123_v50 = vor.u32 %v4122_v11, %v4119_v54  ;;  %v9808_v20 = vcombine.low %v8862_v60, %v8884_v10 }
 0x133   : > { %v1161_v45 = vpop.f32.mrf.mxu1  ;;  %v4081_v39 = vsel %vm7051_vm2, %v9058_v17, %v9028_v40  ;;  %v4091_v49 = vsel %vm7051_vm2, %v4086_v31, %v9038_v47  ;;  %v9108_v16 = vsel %vm7362_vm5, %v4672_v2, %v4673_v28  ;;  %v4136_v61 = vshll.u32 %v9081_v35, 16  ;;  %v1627_v60 = vpop.f32.mrf.mxu0  ;;  %v5841_v17 = vld [vmem:[%s7020_s25 + $0xb4] sm:$0xf]  ;;  %v9809_v47 = vld [vmem:[#allocation18_spill] sm:$0xff]  ;;  %v9137_v2 = vld [vmem:[%s7020_s25 + $0xb8] sm:$0xf] }
 0x134   : > { %6750 = vmatmul.mubr.bf16.gmra.mxu0 %v9807_v58  ;;  %v9112_v53 = vadd.f32 %v6460_v8, %v1170_v5  ;;  %v1162_v10 = vadd.f32 %v1161_v45, %v8757_v46  ;;  %v4133_v9 = vor.u32 %v4132_v33, %v9083_v48  ;;  %v4684_v40 = vrot.slane %v9047_v14, 5  ;;  %v9810_v8 = vld [vmem:[#allocation13_spill] sm:$0xff] }
 0x135   : > { %6753 = vmatprep.mubr.bf16.mxu0 %v9808_v20  ;;  %v6415_v23 = vpop.f32.mrf.mxu1  ;;  %6702 = vmatmul.mubr.bf16.gmra.mxu1 %v9809_v47  ;;  %v4105_v31 = vsel %vm7051_vm2, %v4100_v57, %v9044_v44  ;;  %v4115_v28 = vsel %vm7051_vm2, %v4110_v25, %v4114_v18  ;;  %v9126_v46 = vsel %vm7362_vm5, %v5917_v29, %v4677_v12  ;;  %v6464_v11 = vpop.f32.mrf.mxu0  ;;  %v4124_v62 = vrot.slane %v4123_v50, 4  ;;  %v9811_v57 = vld [vmem:[#allocation15_spill] sm:$0xff]  ;;  %v9815_v47 = vld [vmem:[#allocation20_spill] sm:$0xff] }
 0x136   : > { %v9130_v0 = vsel %vm7362_vm5, %v4679_v59, %v4680_v37  ;;  %v9132_v14 = vadd.f32 %v1614_v3, %v1162_v10  ;;  %v1183_v54 = vadd.f32 %v6415_v23, %v9810_v8  ;;  %6705 = vmatprep.mubr.bf16.mxu1 %v8966_v42  ;;  %v5918_v44 = vrot.slane %v5902_v21, 9 }
 0x137   : > { %v1174_v18 = vpop.f32.mrf.mxu1  ;;  %v4138_v6 = vrot.slane %v4136_v61, 5  ;;  %v4687_v12 = vrot.slane %v9081_v35, 5  ;;  %v4141_v29 = vshrl.u32 %v5841_v17, 16  ;;  %v4144_v33 = vshll.u32 %v5841_v17, 16  ;;  %v1630_v25 = vpop.f32.mrf.mxu0 }
 0x138   : > { %v9140_v7 = vadd.f32 %v6463_v38, %v1183_v54  ;;  %v1175_v3 = vadd.f32 %v1174_v18, %v9811_v57  ;;  %v4134_v59 = vrot.slane %v4133_v9, 4  ;;  %v4686_v37 = vrot.slane %v4684_v40, 4  ;;  %v9812_v38 = vld [vmem:[#allocation17_spill] sm:$0xff] }
 0x139   : > { %v6416_v42 = vpop.f32.mrf.mxu1  ;;  %v9143_v5 = vcombine.low %v4081_v39, %v4091_v49  ;;  %v5948_v58 = vcombine.low %v9094_v63, %v9108_v16  ;;  %v9147_v50 = vcombine.low %v4105_v31, %v4115_v28  ;;  %v4150_v35 = vshll.u32 %v9137_v2, 16  ;;  %v6467_v61 = vpop.f32.mrf.mxu0  ;;  %v5844_v49 = vld [vmem:[%s7020_s25 + $0xc0] sm:$0xf]  ;;  %v9161_v16 = vld [vmem:[%s7020_s25 + $0xc4] sm:$0xf] }
 0x13a   : > { %v9150_v45 = vadd.f32 %v1627_v60, %v1175_v3  ;;  %v1186_v20 = vadd.f32 %v6416_v42, %v9812_v38  ;;  %v9813_v21 = vcombine.low %v8924_v51, %v8945_v55  ;;  %v5949_v39 = vcombine.low %v9126_v46, %v9130_v0  ;;  %v9820_v46 = vld [vmem:[#allocation6_spill] sm:$0xff] }
 0x13b   : > { %v4154_v63 = vshrl.u32 %v9137_v2, 16  ;;  %v1177_v10 = vpop.f32.mrf.mxu1  ;;  %v9814_v60 = vcombine.low %v8974_v13, %v8989_v30  ;;  %v4129_v51 = vsel %vm7051_vm2, %v4124_v62, %v9083_v48  ;;  %v9171_v55 = vsel %vm7362_vm5, %v5918_v44, %v4684_v40  ;;  %v1643_v28 = vpop.f32.mrf.mxu0  ;;  %v9183_v30 = vld [vmem:[%s7020_s25 + $0xbc] sm:$0x1]  ;;  %v5903_v48 = vld [vmem:[%s7020_s25 + $0xb4] sm:$0xe] }
 0x13c   : > { %6754 = vmatmul.mubr.bf16.gmra.mxu0 %v9813_v21  ;;  %v4143_v9 = vrot.slane %v4141_v29, 4  ;;  %v4146_v17 = vrot.slane %v4144_v33, 5  ;;  %v9173_v23 = vadd.f32 %v6464_v11, %v1186_v20  ;;  %v1178_v31 = vadd.f32 %v1177_v10, %v9815_v47  ;;  %v9205_v20 = vld [vmem:[%s7020_s25 + $0xc8] sm:$0x1] }
 0x13d   : > { %6757 = vmatprep.mubr.bf16.mxu0 %v9814_v60  ;;  %v4139_v8 = vsel %vm7051_vm2, %v4134_v59, %v4138_v6  ;;  %v9180_v13 = vsel %vm7362_vm5, %v4686_v37, %v4687_v12  ;;  %v6419_v54 = vpop.f32.mrf.mxu1  ;;  %6706 = vmatmul.mubr.bf16.gmra.mxu1 %v8968_v52  ;;  %v9187_v40 = vrot.slane %v4150_v35, 5  ;;  %v4165_v11 = vshrl.u32 %v5844_v49, 16  ;;  %v6468_v29 = vpop.f32.mrf.mxu0 }
 0x13e   : > { %v4168_v62 = vshll.u32 %v5844_v49, 16  ;;  %v4174_v44 = vshll.u32 %v9161_v16, 16  ;;  %v9190_v18 = vadd.f32 %v1630_v25, %v1178_v31  ;;  %v1199_v6 = vadd.f32 %v6419_v54, %v8908_v43  ;;  %6709 = vmatprep.mubr.bf16.mxu1 %v9024_v22 }
 0x13f   : > { %v4156_v12 = vrot.slane %v4154_v63, 4  ;;  %v4178_v33 = vshrl.u32 %v9161_v16, 16  ;;  %v1190_v57 = vpop.f32.mrf.mxu1  ;;  %v4147_v3 = vor.u32 %v4146_v17, %v4143_v9  ;;  %v4160_v52 = vshll.u32 %v9183_v30, 16  ;;  %v1646_v43 = vpop.f32.mrf.mxu0  ;;  %v5847_v9 = vld [vmem:[%s7020_s25 + $0xcc] sm:$0xf] }
 0x140   : > { %v5919_v59 = vrot.slane %v5903_v48, 9  ;;  %v4691_v37 = vrot.slane %v9137_v2, 5  ;;  %v9197_v42 = vadd.f32 %v6467_v61, %v1199_v6  ;;  %v1191_v25 = vadd.f32 %v1190_v57, %v8927_v1  ;;  %v5904_v48 = vld [vmem:[%s7020_s25 + $0xc0] sm:$0xe] }
 0x141   : > { %v9200_v35 = vcombine.low %v4129_v51, %v4139_v8  ;;  %v5950_v22 = vcombine.low %v9171_v55, %v9180_v13  ;;  %v6420_v38 = vpop.f32.mrf.mxu1  ;;  %v4167_v21 = vrot.slane %v4165_v11, 4  ;;  %v4170_v63 = vrot.slane %v4168_v62, 5  ;;  %v6471_v10 = vpop.f32.mrf.mxu0  ;;  %v9227_v8 = vld [vmem:[%s7020_s25 + $0xd0] sm:$0xf] }
 0x142   : > { %v9207_v49 = vrot.slane %v4174_v44, 5  ;;  %v4180_v2 = vrot.slane %v4178_v33, 4  ;;  %v9209_v61 = vadd.f32 %v1643_v28, %v1191_v25  ;;  %v1202_v1 = vadd.f32 %v6420_v38, %v8947_v26 }
 0x143   : > { %v9816_v60 = vcombine.low %v9003_v19, %v9013_v36  ;;  %v4157_v51 = vor.u32 %v4156_v12, %v9187_v40  ;;  %v4694_v55 = vrot.slane %v9183_v30, 5  ;;  %v1193_v17 = vpop.f32.mrf.mxu1  ;;  %v9218_v47 = vrot.slane %v4147_v3, 4  ;;  %v1659_v13 = vpop.f32.mrf.mxu0 }
 0x144   : > { %v9220_v31 = vrot.slane %v4160_v52, 5  ;;  %v9224_v26 = vsel %vm7362_vm5, %v5919_v59, %v4691_v37  ;;  %v4693_v28 = vrot.slane %v4691_v37, 4  ;;  %v9229_v19 = vadd.f32 %v6468_v29, %v1202_v1  ;;  %v9817_v29 = vld [vmem:[#allocation2_spill] sm:$0xff] }
 0x145   : > { %6758 = vmatmul.mubr.bf16.gmra.mxu0 %v9816_v60  ;;  %v1194_v36 = vadd.f32 %v1193_v17, %v8956_v34  ;;  %v4184_v30 = vshll.u32 %v9205_v20, 16  ;;  %v6423_v54 = vpop.f32.mrf.mxu1  ;;  %6710 = vmatmul.mubr.bf16.gmra.mxu1 %v9030_v4  ;;  %v4171_v11 = vor.u32 %v4170_v63, %v4167_v21  ;;  %v4181_v62 = vor.u32 %v4180_v2, %v9207_v49  ;;  %v6472_v57 = vpop.f32.mrf.mxu0 }
 0x146   : > { %6761 = vmatprep.mubr.bf16.mxu0 %v5948_v58  ;;  %v4698_v58 = vrot.slane %v9161_v16, 5  ;;  %v4189_v44 = vshrl.u32 %v5847_v9, 16  ;;  %v4192_v6 = vshll.u32 %v5847_v9, 16  ;;  %v1215_v33 = vadd.f32 %v6423_v54, %v9817_v29  ;;  %6713 = vmatprep.mubr.bf16.mxu1 %v9143_v5 }
 0x147   : > { %v9237_v12 = vadd.f32 %v1646_v43, %v1194_v36  ;;  %v4198_v34 = vshll.u32 %v9227_v8, 16  ;;  %v4202_v3 = vshrl.u32 %v9227_v8, 16  ;;  %v1206_v16 = vpop.f32.mrf.mxu1  ;;  %v4158_v52 = vrot.slane %v4157_v51, 4  ;;  %v9818_v43 = vld [vmem:[#allocation5_spill] sm:$0xff]  ;;  %v1662_v21 = vpop.f32.mrf.mxu0  ;;  %v9819_v36 = vld [vmem:[#allocation4_spill] sm:$0xff] }
 0x148   : > { %v4695_v4 = vsel %vm7362_vm5, %v4693_v28, %v4694_v55  ;;  %v5920_v59 = vrot.slane %v5904_v48, 9  ;;  %v4701_v37 = vrot.slane %v9205_v20, 5  ;;  %v9246_v25 = vadd.f32 %v6471_v10, %v1215_v33  ;;  %v5849_v20 = vld [vmem:[%s7020_s25 + $0xd4] sm:$0x1] }
 0x149   : > { %v1207_v38 = vadd.f32 %v1206_v16, %v9818_v43  ;;  %v4186_v63 = vrot.slane %v4184_v30, 5  ;;  %v4700_v5 = vrot.slane %v4698_v58, 4  ;;  %v6424_v2 = vpop.f32.mrf.mxu1  ;;  %v4172_v1 = vrot.slane %v4171_v11, 4 }
 0x14a   : > { %v4182_v60 = vrot.slane %v4181_v62, 4  ;;  %v4191_v9 = vrot.slane %v4189_v44, 4  ;;  %v4194_v17 = vrot.slane %v4192_v6, 5  ;;  %v1218_v55 = vadd.f32 %v6424_v2, %v9819_v36  ;;  %v6475_v28 = vpop.f32.mrf.mxu0  ;;  %v5905_v6 = vld [vmem:[%s7020_s25 + $0xcc] sm:$0xe] }
 0x14b   : > { %v9249_v51 = vadd.f32 %v1659_v13, %v1207_v38  ;;  %v9256_v10 = vrot.slane %v4198_v34, 5  ;;  %v4204_v30 = vrot.slane %v4202_v3, 4  ;;  %v1209_v48 = vpop.f32.mrf.mxu1  ;;  %v4153_v13 = vsel %vm7051_vm2, %v9218_v47, %v9187_v40 }
 0x14c   : > { %v4163_v54 = vsel %vm7051_vm2, %v4158_v52, %v9220_v31  ;;  %v4705_v11 = vrot.slane %v9227_v8, 5  ;;  %v9266_v62 = vadd.f32 %v6472_v57, %v1218_v55  ;;  %v1210_v0 = vadd.f32 %v1209_v48, %v9820_v46  ;;  %v9821_v57 = vld [vmem:[#allocation8_spill] sm:$0xff] }
 0x14d   : > { %6762 = vmatmul.mubr.bf16.gmra.mxu0 %v5949_v39  ;;  %v1675_v39 = vpop.f32.mrf.mxu0  ;;  %v4699_v44 = vsel %vm7362_vm5, %v5920_v59, %v4698_v58  ;;  %v6427_v29 = vpop.f32.mrf.mxu1  ;;  %6714 = vmatmul.mubr.bf16.gmra.mxu1 %v9147_v50  ;;  %v5951_v40 = vcombine.low %v9224_v26, %v4695_v4  ;;  %v4177_v47 = vsel %vm7051_vm2, %v4172_v1, %v9207_v49  ;;  %v4208_v8 = vshll.u32 %v5849_v20, 16  ;;  %v9824_v48 = vld [vmem:[#allocation12_spill] sm:$0xff] }
 0x14e   : > { %6765 = vmatprep.mubr.bf16.mxu0 %v5950_v22  ;;  %v4702_v22 = vsel %vm7362_vm5, %v4700_v5, %v4701_v37  ;;  %v4195_v31 = vor.u32 %v4194_v17, %v4191_v9  ;;  %v9279_v33 = vadd.f32 %v1662_v21, %v1210_v0  ;;  %v1231_v34 = vadd.f32 %v6427_v29, %v9821_v57  ;;  %v9822_v37 = vld [vmem:[#allocation10_spill] sm:$0xff]  ;;  %v9823_v9 = vld [vmem:[#allocation11_spill] sm:$0xff] }
 0x14f   : > { %v6476_v58 = vpop.f32.mrf.mxu0  ;;  %6717 = vmatprep.mubr.bf16.mxu1 %v9200_v35  ;;  %v4187_v3 = vsel %vm7051_vm2, %v4182_v60, %v4186_v63  ;;  %v4205_v50 = vor.u32 %v4204_v30, %v9256_v10  ;;  %v1222_v16 = vpop.f32.mrf.mxu1  ;;  %v5952_v26 = vcombine.low %v4699_v44, %v4702_v22  ;;  %v5921_v52 = vrot.slane %v5905_v6, 9  ;;  %v9825_v44 = vld [vmem:[#allocation14_spill] sm:$0xff] }
 0x150   : > { %v4707_v4 = vrot.slane %v4705_v11, 4  ;;  %v4708_v59 = vrot.slane %v5849_v20, 5  ;;  %v9286_v49 = vadd.f32 %v6475_v28, %v1231_v34  ;;  %v1223_v43 = vadd.f32 %v1222_v16, %v9822_v37  ;;  %v9828_v37 = vld [vmem:[#allocation21_spill] sm:$0xff] }
 0x151   : > { %v1678_v38 = vpop.f32.mrf.mxu0  ;;  %v6428_v21 = vpop.f32.mrf.mxu1  ;;  %v5879_v5 = vcombine.low %v4153_v13, %v4163_v54  ;;  %v5880_v2 = vcombine.low %v4177_v47, %v4187_v3  ;;  %v4196_v1 = vrot.slane %v4195_v31, 4  ;;  %v4206_v17 = vrot.slane %v4205_v50, 4  ;;  %v9826_v47 = vld [vmem:[#allocation16_spill] sm:$0xff] }
 0x152   : > { %v9289_v35 = vadd.f32 %v1675_v39, %v1223_v43  ;;  %v1234_v63 = vadd.f32 %v6428_v21, %v9823_v9  ;;  %v4210_v36 = vrot.slane %v4208_v8, 5  ;;  %v4706_v28 = vsel %vm7362_vm5, %v5921_v52, %v4705_v11 }
 0x153   : > { %v6479_v60 = vpop.f32.mrf.mxu0  ;;  %v1225_v55 = vpop.f32.mrf.mxu1  ;;  %v4709_v20 = vsel %vm7362_vm5, %v4707_v4, %v4708_v59  ;;  %v4201_v0 = vsel %vm7051_vm2, %v4196_v1, %v9256_v10  ;;  %v9827_v10 = vld [vmem:[#allocation19_spill] sm:$0xff] }
 0x154   : > { %v9296_v30 = vadd.f32 %v6476_v58, %v1234_v63  ;;  %v1226_v13 = vadd.f32 %v1225_v55, %v9824_v48  ;;  %v4211_v56 = vsel %vm7051_vm2, %v4206_v17, %v4210_v36  ;;  %v5953_v11 = vcombine.low %v4706_v28, %v4709_v20  ;;  %v9830_v17 = vld [vmem:[#allocation23_spill] sm:$0xff]  ;;  %v9831_v20 = vld [vmem:[#allocation24_spill] sm:$0xff] }
 0x155   : > { %6766 = vmatmul.mubr.bf16.gmra.mxu0 %v5951_v40  ;;  %v1691_v54 = vpop.f32.mrf.mxu0  ;;  %v6431_v46 = vpop.f32.mrf.mxu1  ;;  %6718 = vmatmul.mubr.bf16.gmra.mxu1 %v5879_v5  ;;  %v5881_v34 = vcombine.low %v4201_v0, %v4211_v56  ;;  %v9832_v0 = vld [vmem:[#allocation25_spill] sm:$0xff] }
 0x156   : > { %6769 = vmatprep.mubr.bf16.mxu0 %v5952_v26  ;;  %v9302_v39 = vadd.f32 %v1678_v38, %v1226_v13  ;;  %v1247_v22 = vadd.f32 %v6431_v46, %v9825_v44  ;;  %6721 = vmatprep.mubr.bf16.mxu1 %v5880_v2  ;;  %v9829_v2 = vld [vmem:[#allocation22_spill] sm:$0xff] }
 0x157   : > { %v6480_v6 = vpop.f32.mrf.mxu0  ;;  %v1238_v29 = vpop.f32.mrf.mxu1 }
 0x158   : > { %v9307_v40 = vadd.f32 %v6479_v60, %v1247_v22  ;;  %v1239_v31 = vadd.f32 %v1238_v29, %v9826_v47 }
 0x159   : > { %v1694_v8 = vpop.f32.mrf.mxu0  ;;  %v6432_v57 = vpop.f32.mrf.mxu1 }
 0x15a   : > { %v9310_v58 = vadd.f32 %v1691_v54, %v1239_v31  ;;  %v1250_v3 = vadd.f32 %v6432_v57, %v9827_v10  ;;  %v9834_v57 = vld [vmem:[#allocation27_spill] sm:$0xff] }
 0x15b   : > { %v6483_v50 = vpop.f32.mrf.mxu0  ;;  %v1241_v16 = vpop.f32.mrf.mxu1 }
 0x15c   : > { %v9313_v26 = vadd.f32 %v6480_v6, %v1250_v3  ;;  %v1242_v27 = vadd.f32 %v1241_v16, %v8903_v32 }
 0x15d   : > { %6770 = vmatmul.mubr.bf16.gmra.mxu0 %v5953_v11  ;;  %v1707_v52 = vpop.f32.mrf.mxu0  ;;  %v6435_v4 = vpop.f32.mrf.mxu1  ;;  %6722 = vmatmul.mubr.bf16.gmra.mxu1 %v5881_v34  ;;  %v9833_v11 = vld [vmem:[#allocation26_spill] sm:$0xff] }
 0x15e   : > { %v9316_v59 = vadd.f32 %v1694_v8, %v1242_v27  ;;  %v1263_v43 = vadd.f32 %v6435_v4, %v9828_v37 }
 0x15f   : > { %v6484_v38 = vpop.f32.mrf.mxu0  ;;  %v1254_v21 = vpop.f32.mrf.mxu1 }
 0x160   : > { %v9319_v5 = vadd.f32 %v6483_v50, %v1263_v43  ;;  %v1255_v1 = vadd.f32 %v1254_v21, %v9829_v2 }
 0x161   : > { %v1710_v9 = vpop.f32.mrf.mxu0  ;;  %v6436_v63 = vpop.f32.mrf.mxu1 }
 0x162   : > { %v9322_v60 = vadd.f32 %v1707_v52, %v1255_v1  ;;  %v1266_v36 = vadd.f32 %v6436_v63, %v9830_v17 }
 0x163   : > { %v6551_v32 = vpop.f32.mrf.mxu0  ;;  %v1257_v55 = vpop.f32.mrf.mxu1 }
 0x164   : > { %v9325_v28 = vadd.f32 %v6484_v38, %v1266_v36  ;;  %v1258_v48 = vadd.f32 %v1257_v55, %v9831_v20 }
 0x165   : > { %v2736_v13 = vpop.f32.mrf.mxu0  ;;  %v6503_v54 = vpop.f32.mrf.mxu1 }
 0x166   : > { %v9328_v46 = vadd.f32 %v1710_v9, %v1258_v48  ;;  %v2111_v44 = vadd.f32 %v6503_v54, %v9832_v0 }
 0x167   : > { %v6552_v22 = vpop.f32.mrf.mxu0  ;;  %v1982_v6 = vpop.f32.mrf.mxu1 }
 0x168   : > { %v9331_v56 = vadd.f32 %v6551_v32, %v2111_v44  ;;  %v2109_v29 = vadd.f32 %v1982_v6, %v9833_v11 }
 0x169   : > { %v2739_v47 = vpop.f32.mrf.mxu0  ;;  %v6504_v31 = vpop.f32.mrf.mxu1 }
 0x16a   : > { %v9334_v8 = vadd.f32 %v2736_v13, %v2109_v29  ;;  %v2112_v34 = vadd.f32 %v6504_v31, %v9834_v57 }
 0x16b   : > { %v6555_v10 = vpop.f32.mrf.mxu0  ;;  %v1985_v3 = vpop.f32.mrf.mxu1 }
 0x16c   : > { %v9337_v50 = vadd.f32 %v6552_v22, %v2112_v34  ;;  %v2110_v16 = vadd.f32 %v1985_v3, %v9073_v24 }
 0x16d   : > { %v2752_v27 = vpop.f32.mrf.mxu0  ;;  %v6507_v52 = vpop.f32.mrf.mxu1 }
 0x16e   : > { %v9340_v4 = vadd.f32 %v2739_v47, %v2110_v16  ;;  %v2115_v37 = vadd.f32 %v6507_v52, %v9077_v41 }
 0x16f   : > { %v6556_v43 = vpop.f32.mrf.mxu0  ;;  %v1998_v38 = vpop.f32.mrf.mxu1 }
 0x170   : > { %v9343_v21 = vadd.f32 %v6555_v10, %v2115_v37  ;;  %v2113_v2 = vadd.f32 %v1998_v38, %v9086_v15 }
 0x171   : > { %v2755_v1 = vpop.f32.mrf.mxu0  ;;  %v6508_v9 = vpop.f32.mrf.mxu1 }
 0x172   : > { %v9346_v63 = vadd.f32 %v2752_v27, %v2113_v2  ;;  %v2116_v17 = vadd.f32 %v6508_v9, %v9112_v53 }
 0x173   : > { %v6559_v36 = vpop.f32.mrf.mxu0  ;;  %v2001_v24 = vpop.f32.mrf.mxu1 }
 0x174   : > { %v9349_v32 = vadd.f32 %v6556_v43, %v2116_v17  ;;  %v2114_v55 = vadd.f32 %v2001_v24, %v9132_v14 }
 0x175   : > { %v2768_v20 = vpop.f32.mrf.mxu0  ;;  %v6511_v41 = vpop.f32.mrf.mxu1 }
 0x176   : > { %v9352_v48 = vadd.f32 %v2755_v1, %v2114_v55  ;;  %v2119_v13 = vadd.f32 %v6511_v41, %v9140_v7 }
 0x177   : > { %v6560_v54 = vpop.f32.mrf.mxu0  ;;  %v2014_v15 = vpop.f32.mrf.mxu1 }
 0x178   : > { %v9355_v0 = vadd.f32 %v6559_v36, %v2119_v13  ;;  %v2117_v44 = vadd.f32 %v2014_v15, %v9150_v45 }
 0x179   : > { %v2771_v22 = vpop.f32.mrf.mxu0  ;;  %v6512_v53 = vpop.f32.mrf.mxu1 }
 0x17a   : > { %v9358_v6 = vadd.f32 %v2768_v20, %v2117_v44  ;;  %v2120_v11 = vadd.f32 %v6512_v53, %v9173_v23 }
 0x17b   : > { %v6563_v29 = vpop.f32.mrf.mxu0  ;;  %v2017_v14 = vpop.f32.mrf.mxu1 }
 0x17c   : > { %v9361_v47 = vadd.f32 %v6560_v54, %v2120_v11  ;;  %v2118_v31 = vadd.f32 %v2017_v14, %v9190_v18 }
 0x17d   : > { %v2784_v57 = vpop.f32.mrf.mxu0  ;;  %v6515_v7 = vpop.f32.mrf.mxu1 }
 0x17e   : > { %v9364_v34 = vadd.f32 %v2771_v22, %v2118_v31  ;;  %v2123_v10 = vadd.f32 %v6515_v7, %v9197_v42 }
 0x17f   : > { %v6564_v3 = vpop.f32.mrf.mxu0  ;;  %v2030_v45 = vpop.f32.mrf.mxu1 }
 0x180   : > { %v9367_v16 = vadd.f32 %v6563_v29, %v2123_v10  ;;  %v2121_v27 = vadd.f32 %v2030_v45, %v9209_v61 }
 0x181   : > { %v2787_v52 = vpop.f32.mrf.mxu0  ;;  %v6516_v23 = vpop.f32.mrf.mxu1 }
 0x182   : > { %v9370_v37 = vadd.f32 %v2784_v57, %v2121_v27  ;;  %v2124_v43 = vadd.f32 %v6516_v23, %v9229_v19 }
 0x183   : > { %v6567_v38 = vpop.f32.mrf.mxu0  ;;  %v2033_v18 = vpop.f32.mrf.mxu1 }
 0x184   : > { %v9373_v2 = vadd.f32 %v6564_v3, %v2124_v43  ;;  %v2122_v1 = vadd.f32 %v2033_v18, %v9237_v12 }
 0x185   : > { %v2800_v9 = vpop.f32.mrf.mxu0  ;;  %v6519_v42 = vpop.f32.mrf.mxu1 }
 0x186   : > { %v9376_v17 = vadd.f32 %v2787_v52, %v2122_v1  ;;  %v2127_v36 = vadd.f32 %v6519_v42, %v9246_v25 }
 0x187   : > { %v6568_v24 = vpop.f32.mrf.mxu0  ;;  %v2046_v61 = vpop.f32.mrf.mxu1 }
 0x188   : > { %v9379_v55 = vadd.f32 %v6567_v38, %v2127_v36  ;;  %v2125_v20 = vadd.f32 %v2046_v61, %v9249_v51 }
 0x189   : > { %v2803_v41 = vpop.f32.mrf.mxu0  ;;  %v6520_v19 = vpop.f32.mrf.mxu1 }
 0x18a   : > { %v9382_v13 = vadd.f32 %v2800_v9, %v2125_v20  ;;  %v2128_v54 = vadd.f32 %v6520_v19, %v9266_v62 }
 0x18b   : > { %v6571_v15 = vpop.f32.mrf.mxu0  ;;  %v2049_v12 = vpop.f32.mrf.mxu1 }
 0x18c   : > { %v9385_v44 = vadd.f32 %v6568_v24, %v2128_v54  ;;  %v2126_v22 = vadd.f32 %v2049_v12, %v9279_v33 }
 0x18d   : > { %v2816_v53 = vpop.f32.mrf.mxu0  ;;  %v6523_v25 = vpop.f32.mrf.mxu1 }
 0x18e   : > { %v9388_v11 = vadd.f32 %v2803_v41, %v2126_v22  ;;  %v2131_v29 = vadd.f32 %v6523_v25, %v9286_v49 }
 0x18f   : > { %v6572_v14 = vpop.f32.mrf.mxu0  ;;  %v2062_v51 = vpop.f32.mrf.mxu1 }
 0x190   : > { %v9391_v31 = vadd.f32 %v6571_v15, %v2131_v29  ;;  %v2129_v57 = vadd.f32 %v2062_v51, %v9289_v35 }
 0x191   : > { %v2819_v7 = vpop.f32.mrf.mxu0  ;;  %v6524_v62 = vpop.f32.mrf.mxu1 }
 0x192   : > { %v9394_v10 = vadd.f32 %v2816_v53, %v2129_v57  ;;  %v2132_v3 = vadd.f32 %v6524_v62, %v9296_v30 }
 0x193   : > { %v6575_v45 = vpop.f32.mrf.mxu0  ;;  %v2065_v33 = vpop.f32.mrf.mxu1 }
 0x194   : > { %v9397_v27 = vadd.f32 %v6572_v14, %v2132_v3  ;;  %v2130_v52 = vadd.f32 %v2065_v33, %v9302_v39 }
 0x195   : > { %v2832_v23 = vpop.f32.mrf.mxu0  ;;  %v6527_v49 = vpop.f32.mrf.mxu1 }
 0x196   : > { %v9400_v43 = vadd.f32 %v2819_v7, %v2130_v52  ;;  %v2135_v38 = vadd.f32 %v6527_v49, %v9307_v40 }
 0x197   : > { %v6576_v18 = vpop.f32.mrf.mxu0  ;;  %v2078_v35 = vpop.f32.mrf.mxu1 }
 0x198   : > { %v9403_v1 = vadd.f32 %v6575_v45, %v2135_v38  ;;  %v2133_v9 = vadd.f32 %v2078_v35, %v9310_v58 }
 0x199   : > { %v2835_v42 = vpop.f32.mrf.mxu0  ;;  %v6528_v30 = vpop.f32.mrf.mxu1 }
 0x19a   : > { %v9406_v36 = vadd.f32 %v2832_v23, %v2133_v9  ;;  %v2136_v24 = vadd.f32 %v6528_v30, %v9313_v26 }
 0x19b   : > { %v6579_v61 = vpop.f32.mrf.mxu0  ;;  %v2081_v39 = vpop.f32.mrf.mxu1 }
 0x19c   : > { %v9409_v20 = vadd.f32 %v6576_v18, %v2136_v24  ;;  %v2134_v41 = vadd.f32 %v2081_v39, %v9316_v59 }
 0x19d   : > { %v2848_v19 = vpop.f32.mrf.mxu0  ;;  %v6531_v40 = vpop.f32.mrf.mxu1 }
 0x19e   : > { %9835 = vst [vmem:[#allocation3_spill] sm:$0xff] %v9409_v20  ;;  %v9412_v54 = vadd.f32 %v2835_v42, %v2134_v41  ;;  %v2139_v15 = vadd.f32 %v6531_v40, %v9319_v5 }
 0x19f   : > { %v6580_v12 = vpop.f32.mrf.mxu0  ;;  %v2094_v58 = vpop.f32.mrf.mxu1 }
 0x1a0   : > { %9836 = vst [vmem:[#allocation7_spill] sm:$0xff] %v9412_v54  ;;  %v9415_v22 = vadd.f32 %v6579_v61, %v2139_v15  ;;  %v2137_v53 = vadd.f32 %v2094_v58, %v9322_v60 }
 0x1a1   : > { %v2851_v25 = vpop.f32.mrf.mxu0  ;;  %v6532_v26 = vpop.f32.mrf.mxu1 }
 0x1a2   : > { %v9418_v29 = vadd.f32 %v2848_v19, %v2137_v53  ;;  %v2140_v14 = vadd.f32 %v6532_v26, %v9325_v28 }
 0x1a3   : > { %v6647_v51 = vpop.f32.mrf.mxu0  ;;  %v2097_v59 = vpop.f32.mrf.mxu1 }
 0x1a4   : > { %v9421_v57 = vadd.f32 %v6580_v12, %v2140_v14  ;;  %v2138_v7 = vadd.f32 %v2097_v59, %v9328_v46 }
 0x1a5   : > { %v3621_v62 = vpop.f32.mrf.mxu0  ;;  %v6599_v5 = vpop.f32.mrf.mxu1 }
 0x1a6   : > { %9837 = vst [vmem:[#allocation9_spill] sm:$0xff] %v9421_v57  ;;  %v9424_v3 = vadd.f32 %v2851_v25, %v2138_v7  ;;  %v3363_v45 = vadd.f32 %v6599_v5, %v9331_v56 }
 0x1a7   : > { %v9427_v33 = vpop.f32.mrf.mxu0  ;;  %v3234_v60 = vpop.f32.mrf.mxu1 }
 0x1a8   : > { %9838 = vst [vmem:[#allocation18_spill] sm:$0xff] %v9424_v3  ;;  %v9429_v52 = vadd.f32 %v6647_v51, %v3363_v45  ;;  %v3361_v23 = vadd.f32 %v3234_v60, %v9334_v8 }
 0x1a9   : > { %v9432_v28 = vpop.f32.mrf.mxu0  ;;  %v9434_v49 = vpop.f32.mrf.mxu1 }
 0x1aa   : > { %v9436_v38 = vadd.f32 %v3621_v62, %v3361_v23 }
 0x1ab   : > { %v6651_v46 = vpop.f32.mrf.mxu0  ;;  %v9438_v18 = vpop.f32.mrf.mxu1 }
 0x1ad   : > { %v3637_v35 = vpop.f32.mrf.mxu0  ;;  %v6603_v9 = vpop.f32.mrf.mxu1 }
 0x1ae   : > { %v3367_v56 = vadd.f32 %v6603_v9, %v9343_v21 }
 0x1af   : > { %v9441_v42 = vpop.f32.mrf.mxu0  ;;  %v3250_v30 = vpop.f32.mrf.mxu1 }
 0x1b0   : > { %v9443_v24 = vadd.f32 %v6651_v46, %v3367_v56  ;;  %v3365_v8 = vadd.f32 %v3250_v30, %v9346_v63 }
 0x1b1   : > { %v9446_v61 = vpop.f32.mrf.mxu0  ;;  %v9448_v39 = vpop.f32.mrf.mxu1 }
 0x1b2   : > { %v9450_v41 = vadd.f32 %v3637_v35, %v3365_v8 }
 0x1b3   : > { %v6655_v19 = vpop.f32.mrf.mxu0  ;;  %v9452_v40 = vpop.f32.mrf.mxu1 }
 0x1b5   : > { %v3653_v15 = vpop.f32.mrf.mxu0  ;;  %v6607_v12 = vpop.f32.mrf.mxu1 }
 0x1b6   : > { %v3371_v21 = vadd.f32 %v6607_v12, %v9355_v0 }
 0x1b7   : > { %v9455_v58 = vpop.f32.mrf.mxu0  ;;  %v3266_v53 = vpop.f32.mrf.mxu1 }
 0x1b8   : > { %v9457_v25 = vadd.f32 %v6655_v19, %v3371_v21  ;;  %v3369_v63 = vadd.f32 %v3266_v53, %v9358_v6 }
 0x1b9   : > { %v9460_v26 = vpop.f32.mrf.mxu0  ;;  %v9462_v14 = vpop.f32.mrf.mxu1 }
 0x1ba   : > { %v9464_v51 = vadd.f32 %v3653_v15, %v3369_v63 }
 0x1bb   : > { %v6659_v59 = vpop.f32.mrf.mxu0  ;;  %v9466_v7 = vpop.f32.mrf.mxu1 }
 0x1bd   : > { %v3669_v62 = vpop.f32.mrf.mxu0  ;;  %v6611_v5 = vpop.f32.mrf.mxu1 }
 0x1be   : > { %v3375_v0 = vadd.f32 %v6611_v5, %v9367_v16 }
 0x1bf   : > { %v9469_v45 = vpop.f32.mrf.mxu0  ;;  %v3282_v60 = vpop.f32.mrf.mxu1 }
 0x1c0   : > { %v9471_v23 = vadd.f32 %v6659_v59, %v3375_v0  ;;  %v3373_v6 = vadd.f32 %v3282_v60, %v9370_v37 }
 0x1c1   : > { %v9474_v46 = vpop.f32.mrf.mxu0  ;;  %v9476_v35 = vpop.f32.mrf.mxu1 }
 0x1c2   : > { %v9478_v9 = vadd.f32 %v3669_v62, %v3373_v6 }
 0x1c3   : > { %v6663_v56 = vpop.f32.mrf.mxu0  ;;  %v9480_v30 = vpop.f32.mrf.mxu1 }
 0x1c5   : > { %v3685_v8 = vpop.f32.mrf.mxu0  ;;  %v6615_v19 = vpop.f32.mrf.mxu1 }
 0x1c6   : > { %v3379_v16 = vadd.f32 %v6615_v19, %v9379_v55 }
 0x1c7   : > { %v9483_v15 = vpop.f32.mrf.mxu0  ;;  %v3298_v12 = vpop.f32.mrf.mxu1 }
 0x1c8   : > { %v9485_v21 = vadd.f32 %v6663_v56, %v3379_v16  ;;  %v3377_v37 = vadd.f32 %v3298_v12, %v9382_v13 }
 0x1c9   : > { %v9488_v53 = vpop.f32.mrf.mxu0  ;;  %v9490_v63 = vpop.f32.mrf.mxu1 }
 0x1ca   : > { %v9492_v59 = vadd.f32 %v3685_v8, %v3377_v37 }
 0x1cb   : > { %v6667_v62 = vpop.f32.mrf.mxu0  ;;  %v9494_v5 = vpop.f32.mrf.mxu1 }
 0x1cd   : > { %v3701_v0 = vpop.f32.mrf.mxu0  ;;  %v6619_v60 = vpop.f32.mrf.mxu1 }
 0x1ce   : > { %v3383_v55 = vadd.f32 %v6619_v60, %v9391_v31 }
 0x1cf   : > { %v9497_v6 = vpop.f32.mrf.mxu0  ;;  %v3314_v19 = vpop.f32.mrf.mxu1 }
 0x1d0   : > { %9839 = vst [vmem:[#allocation13_spill] sm:$0xff] %v9497_v6  ;;  %v9499_v56 = vadd.f32 %v6667_v62, %v3383_v55  ;;  %v3381_v13 = vadd.f32 %v3314_v19, %v9394_v10 }
 0x1d1   : > { %v9502_v16 = vpop.f32.mrf.mxu0  ;;  %v9504_v12 = vpop.f32.mrf.mxu1 }
 0x1d2   : > { %9840 = vst [vmem:[#allocation15_spill] sm:$0xff] %v9502_v16  ;;  %v9506_v8 = vadd.f32 %v3701_v0, %v3381_v13 }
 0x1d3   : > { %v6671_v37 = vpop.f32.mrf.mxu0  ;;  %v9508_v3 = vpop.f32.mrf.mxu1 }
 0x1d4   : > { %9841 = vst [vmem:[#allocation17_spill] sm:$0xff] %v9506_v8 }
 0x1d5   : > { %v3717_v57 = vpop.f32.mrf.mxu0  ;;  %v6623_v54 = vpop.f32.mrf.mxu1 }
 0x1d6   : > { %v3387_v31 = vadd.f32 %v6623_v54, %v9403_v1 }
 0x1d7   : > { %v9511_v60 = vpop.f32.mrf.mxu0  ;;  %v3330_v20 = vpop.f32.mrf.mxu1 }
 0x1d8   : > { %9842 = vst [vmem:[#allocation20_spill] sm:$0xff] %v9511_v60  ;;  %v9513_v62 = vadd.f32 %v6671_v37, %v3387_v31  ;;  %v3385_v10 = vadd.f32 %v3330_v20, %v9406_v36 }
 0x1d9   : > { %v9516_v55 = vpop.f32.mrf.mxu0  ;;  %v9518_v19 = vpop.f32.mrf.mxu1 }
 0x1da   : > { %9843 = vst [vmem:[#allocation2_spill] sm:$0xff] %v9516_v55  ;;  %v9520_v0 = vadd.f32 %v3717_v57, %v3385_v10 }
 0x1db   : > { %v6675_v13 = vpop.f32.mrf.mxu0  ;;  %v9522_v16 = vpop.f32.mrf.mxu1 }
 0x1dc   : > { %9844 = vst [vmem:[#allocation5_spill] sm:$0xff] %v9520_v0  ;;  %v3364_v0 = vadd.f32 %v9434_v49, %v9337_v50  ;;  %v9548_v50 = vld [vmem:[%s9672_s2] ss:$0 sm:$0xff] }
 0x1dd   : > { %v3733_v8 = vpop.f32.mrf.mxu0  ;;  %v6627_v6 = vpop.f32.mrf.mxu1 }
 0x1de   : > { %v3391_v1 = vadd.f32 %v6627_v6, %v9415_v22 }
 0x1df   : > { %v9525_v54 = vpop.f32.mrf.mxu0  ;;  %v3346_v60 = vpop.f32.mrf.mxu1 }
 0x1e0   : > { %9845 = vst [vmem:[#allocation4_spill] sm:$0xff] %v9525_v54  ;;  %v9527_v37 = vadd.f32 %v6675_v13, %v3391_v1  ;;  %v3389_v36 = vadd.f32 %v3346_v60, %v9418_v29  ;;  %v3362_v13 = vadd.f32 %v9438_v18, %v9340_v4 }
 0x1e1   : > { %v9530_v20 = vpop.f32.mrf.mxu0  ;;  %v9532_v31 = vpop.f32.mrf.mxu1 }
 0x1e2   : > { %9846 = vst [vmem:[#allocation6_spill] sm:$0xff] %v9527_v37  ;;  %9847 = vst [vmem:[#allocation8_spill] sm:$0xff] %v9530_v20  ;;  %v9534_v57 = vadd.f32 %v3733_v8, %v3389_v36  ;;  %v3751_v20 = vadd.f32 %v9427_v33, %v3364_v0 }
 0x1e3   : > { %v9536_v55 = vpop.f32.mrf.mxu1 }
 0x1e4   : > { %9848 = vst [vmem:[#allocation10_spill] sm:$0xff] %v9534_v57  ;;  %v6743_v10 = vpop.f32.mrf.mxu0  ;;  %9849 = vst [vmem:[#allocation11_spill] sm:$0xff] %v9536_v55  ;;  %v3749_v57 = vadd.f32 %v9432_v28, %v3362_v13 }
 0x1e5   : > { %v6695_v6 = vpop.f32.mrf.mxu1 }
 0x1e6   : > { %v4873_v22 = vpop.f32.mrf.mxu0  ;;  %v4504_v1 = vadd.f32 %v6695_v6, %v9429_v52 }
 0x1e7   : > { %v4375_v60 = vpop.f32.mrf.mxu1 }
 0x1e8   : > { %v6744_v29 = vpop.f32.mrf.mxu0  ;;  %v5002_v54 = vadd.f32 %v6743_v10, %v4504_v1  ;;  %v4502_v8 = vadd.f32 %v4375_v60, %v9436_v38  ;;  %v3368_v38 = vadd.f32 %v9448_v39, %v9349_v32  ;;  %v3366_v1 = vadd.f32 %v9452_v40, %v9352_v48 }
 0x1e9   : > { %v6696_v49 = vpop.f32.mrf.mxu1 }
 0x1ea   : > { %v4876_v36 = vpop.f32.mrf.mxu0  ;;  %v5000_v4 = vadd.f32 %v4873_v22, %v4502_v8  ;;  %v4505_v18 = vadd.f32 %v6696_v49, %v3751_v20  ;;  %v5041_v37 = vadd.f32 %v9548_v50, %v5002_v54  ;;  %v3755_v48 = vadd.f32 %v9441_v42, %v3368_v38 }
 0x1eb   : > { %v4378_v6 = vpop.f32.mrf.mxu1  ;;  %v3753_v40 = vadd.f32 %v9446_v61, %v3366_v1  ;;  %v3372_v42 = vadd.f32 %v9462_v14, %v9361_v47 }
 0x1ec   : > { %v6747_v52 = vpop.f32.mrf.mxu0  ;;  %v5003_v33 = vadd.f32 %v6744_v29, %v4505_v18  ;;  %v4503_v0 = vadd.f32 %v4378_v6, %v3749_v57  ;;  %v5039_v55 = vadd.f32 %v9548_v50, %v5000_v4  ;;  %v5073_v29 = vmax.f32 %v5041_v37, 0.0 }
 0x1ed   : > { %v6699_v60 = vpop.f32.mrf.mxu1 }
 0x1ee   : > { %v4889_v10 = vpop.f32.mrf.mxu0  ;;  %v5042_v28 = vadd.f32 %v9548_v50, %v5003_v33  ;;  %v5001_v20 = vadd.f32 %v4876_v36, %v4503_v0  ;;  %v4508_v22 = vadd.f32 %v6699_v60, %v9443_v24  ;;  %v5071_v37 = vmax.f32 %v5039_v55, 0.0 }
 0x1ef   : > { %v4391_v54 = vpop.f32.mrf.mxu1 }
 0x1f0   : > { %v6748_v13 = vpop.f32.mrf.mxu0  ;;  %v5074_v57 = vmax.f32 %v5042_v28, 0.0  ;;  %v5040_v8 = vadd.f32 %v9548_v50, %v5001_v20  ;;  %v4506_v32 = vadd.f32 %v4391_v54, %v9450_v41  ;;  %v5006_v24 = vadd.f32 %v6747_v52, %v4508_v22 }
 0x1f1   : > { %v6700_v36 = vpop.f32.mrf.mxu1  ;;  %v3370_v22 = vadd.f32 %v9466_v7, %v9364_v34  ;;  %v3759_v54 = vadd.f32 %v9455_v58, %v3372_v42  ;;  %v3376_v58 = vadd.f32 %v9476_v35, %v9373_v2  ;;  %v3374_v42 = vadd.f32 %v9480_v30, %v9376_v17 }
 0x1f2   : > { %v4892_v39 = vpop.f32.mrf.mxu0  ;;  %v6038_v49 = vpack.c.bf16 %v5074_v57, %v5073_v29  ;;  %v5072_v4 = vmax.f32 %v5040_v8, 0.0  ;;  %v5004_v18 = vadd.f32 %v4889_v10, %v4506_v32  ;;  %v4509_v41 = vadd.f32 %v6700_v36, %v3755_v48 }
 0x1f3   : > { %v4394_v33 = vpop.f32.mrf.mxu1  ;;  %v5045_v1 = vadd.f32 %v9548_v50, %v5006_v24  ;;  %v3757_v7 = vadd.f32 %v9460_v26, %v3370_v22  ;;  %v3763_v35 = vadd.f32 %v9469_v45, %v3376_v58 }
 0x1f4   : > { %v6751_v6 = vpop.f32.mrf.mxu0  ;;  %6110 = vst [vmem:[%s9567_s8 + $0x8] sm:$0xff] %v6038_v49   ;;  %v6033_v61 = vpack.c.bf16 %v5072_v4, %v5071_v37  ;;  %v4507_v0 = vadd.f32 %v4394_v33, %v3753_v40  ;;  %v5007_v60 = vadd.f32 %v6748_v13, %v4509_v41  ;;  %v5043_v55 = vadd.f32 %v9548_v50, %v5004_v18 }
 0x1f5   : > { %v6703_v52 = vpop.f32.mrf.mxu1  ;;  %v5077_v32 = vmax.f32 %v5045_v1, 0.0 }
 0x1f6   : > { %v4905_v38 = vpop.f32.mrf.mxu0  ;;  %6034 = vst [vmem:[%s9567_s8] sm:$0xff] %v6033_v61   ;;  %v5005_v28 = vadd.f32 %v4892_v39, %v4507_v0  ;;  %v4512_v10 = vadd.f32 %v6703_v52, %v9457_v25  ;;  %v5046_v47 = vadd.f32 %v9548_v50, %v5007_v60  ;;  %v5075_v25 = vmax.f32 %v5043_v55, 0.0 }
 0x1f7   : > { %v4407_v14 = vpop.f32.mrf.mxu1 }
 0x1f8   : > { %v6752_v20 = vpop.f32.mrf.mxu0  ;;  %v5044_v29 = vadd.f32 %v9548_v50, %v5005_v28  ;;  %v5010_v57 = vadd.f32 %v6751_v6, %v4512_v10  ;;  %v4510_v13 = vadd.f32 %v4407_v14, %v9464_v51  ;;  %v5078_v39 = vmax.f32 %v5046_v47, 0.0 }
 0x1f9   : > { %v6704_v48 = vpop.f32.mrf.mxu1 }
 0x1fa   : > { %v4908_v8 = vpop.f32.mrf.mxu0  ;;  %v5076_v40 = vmax.f32 %v5044_v29, 0.0  ;;  %v4513_v24 = vadd.f32 %v6704_v48, %v3759_v54  ;;  %v6048_v36 = vpack.c.bf16 %v5078_v39, %v5077_v32  ;;  %v5008_v37 = vadd.f32 %v4905_v38, %v4510_v13 }
 0x1fb   : > { %v4410_v49 = vpop.f32.mrf.mxu1  ;;  %v5049_v51 = vadd.f32 %v9548_v50, %v5010_v57  ;;  %v3380_v32 = vadd.f32 %v9490_v63, %v9385_v44 }
 0x1fc   : > { %v6755_v34 = vpop.f32.mrf.mxu0  ;;  %v6043_v4 = vpack.c.bf16 %v5076_v40, %v5075_v25  ;;  %v5011_v18 = vadd.f32 %v6752_v20, %v4513_v24  ;;  %6112 = vst [vmem:[%s9567_s8 + $0x18] sm:$0xff] %v6048_v36   ;;  %v4511_v41 = vadd.f32 %v4410_v49, %v3757_v7  ;;  %v5047_v0 = vadd.f32 %v9548_v50, %v5008_v37 }
 0x1fd   : > { %v6707_v33 = vpop.f32.mrf.mxu1  ;;  %v5081_v60 = vmax.f32 %v5049_v51, 0.0  ;;  %v3761_v20 = vadd.f32 %v9474_v46, %v3374_v42  ;;  %v3378_v46 = vadd.f32 %v9494_v5, %v9388_v11  ;;  %v3767_v5 = vadd.f32 %v9483_v15, %v3380_v32 }
 0x1fe   : > { %v4921_v6 = vpop.f32.mrf.mxu0  ;;  %6111 = vst [vmem:[%s9567_s8 + $0x10] sm:$0xff] %v6043_v4   ;;  %v5050_v26 = vadd.f32 %v9548_v50, %v5011_v18  ;;  %v4516_v61 = vadd.f32 %v6707_v33, %v9471_v23  ;;  %v5009_v38 = vadd.f32 %v4908_v8, %v4511_v41  ;;  %v5079_v14 = vmax.f32 %v5047_v0, 0.0 }
 0x1ff   : > { %v4423_v1 = vpop.f32.mrf.mxu1  ;;  %v3765_v49 = vadd.f32 %v9488_v53, %v3378_v46 }
 0x200   : > { %v6756_v2 = vpop.f32.mrf.mxu0  ;;  %v5082_v52 = vmax.f32 %v5050_v26, 0.0  ;;  %v5014_v55 = vadd.f32 %v6755_v34, %v4516_v61  ;;  %v4514_v28 = vadd.f32 %v4423_v1, %v9478_v9  ;;  %v5048_v17 = vadd.f32 %v9548_v50, %v5009_v38 }
 0x201   : > { %v6708_v30 = vpop.f32.mrf.mxu1  ;;  %v3384_v61 = vadd.f32 %v9504_v12, %v9397_v27 }
 0x202   : > { %v4924_v10 = vpop.f32.mrf.mxu0  ;;  %v6058_v23 = vpack.c.bf16 %v5082_v52, %v5081_v60  ;;  %v5012_v22 = vadd.f32 %v4921_v6, %v4514_v28  ;;  %v4517_v47 = vadd.f32 %v6708_v30, %v3763_v35  ;;  %v5080_v54 = vmax.f32 %v5048_v17, 0.0  ;;  %v9850_v28 = vld [vmem:[#allocation13_spill] sm:$0xff] }
 0x203   : > { %v4426_v29 = vpop.f32.mrf.mxu1  ;;  %v5053_v57 = vadd.f32 %v9548_v50, %v5014_v55  ;;  %v3382_v55 = vadd.f32 %v9508_v3, %v9400_v43  ;;  %v9852_v3 = vld [vmem:[#allocation15_spill] sm:$0xff] }
 0x204   : > { %6114 = vst [vmem:[%s9567_s8 + $0x28] sm:$0xff] %v6058_v23   ;;  %v5015_v13 = vadd.f32 %v6756_v2, %v4517_v47  ;;  %v4515_v8 = vadd.f32 %v4426_v29, %v3761_v20  ;;  %v6053_v39 = vpack.c.bf16 %v5080_v54, %v5079_v14  ;;  %v5051_v25 = vadd.f32 %v9548_v50, %v5012_v22  ;;  %v9851_v20 = vld [vmem:[#allocation17_spill] sm:$0xff] }
 0x205   : > { %v6759_v45 = vpop.f32.mrf.mxu0  ;;  %v6711_v48 = vpop.f32.mrf.mxu1  ;;  %v5085_v36 = vmax.f32 %v5053_v57, 0.0  ;;  %v3769_v57 = vadd.f32 %v9852_v3, %v3382_v55  ;;  %v9859_v55 = vld [vmem:[#allocation18_spill] sm:$0xff] }
 0x206   : > { %v5054_v40 = vadd.f32 %v9548_v50, %v5015_v13  ;;  %v5013_v24 = vadd.f32 %v4924_v10, %v4515_v8  ;;  %v4520_v34 = vadd.f32 %v6711_v48, %v9485_v21  ;;  %6113 = vst [vmem:[%s9567_s8 + $0x20] sm:$0xff] %v6053_v39   ;;  %v5083_v18 = vmax.f32 %v5051_v25, 0.0  ;;  %v9853_v13 = vld [vmem:[#allocation3_spill] sm:$0xff] }
 0x207   : > { %v4937_v9 = vpop.f32.mrf.mxu0  ;;  %v4439_v58 = vpop.f32.mrf.mxu1  ;;  %v3771_v10 = vadd.f32 %v9850_v28, %v3384_v61  ;;  %v3388_v8 = vadd.f32 %v9518_v19, %v9853_v13 }
 0x208   : > { %v5086_v37 = vmax.f32 %v5054_v40, 0.0  ;;  %v5052_v44 = vadd.f32 %v9548_v50, %v5013_v24  ;;  %v4518_v63 = vadd.f32 %v4439_v58, %v9492_v59  ;;  %v5018_v4 = vadd.f32 %v6759_v45, %v4520_v34 }
 0x209   : > { %v6760_v7 = vpop.f32.mrf.mxu0  ;;  %v6712_v51 = vpop.f32.mrf.mxu1 }
 0x20a   : > { %v6068_v21 = vpack.c.bf16 %v5086_v37, %v5085_v36  ;;  %v5084_v6 = vmax.f32 %v5052_v44, 0.0  ;;  %v5016_v41 = vadd.f32 %v4937_v9, %v4518_v63  ;;  %v4521_v42 = vadd.f32 %v6712_v51, %v3767_v5  ;;  %v9855_v44 = vld [vmem:[#allocation20_spill] sm:$0xff] }
 0x20b   : > { %v4940_v11 = vpop.f32.mrf.mxu0  ;;  %v4442_v26 = vpop.f32.mrf.mxu1  ;;  %v5057_v15 = vadd.f32 %v9548_v50, %v5018_v4  ;;  %v3775_v63 = vadd.f32 %v9855_v44, %v3388_v8 }
 0x20c   : > { %6116 = vst [vmem:[%s9567_s8 + $0x38] sm:$0xff] %v6068_v21   ;;  %v6063_v59 = vpack.c.bf16 %v5084_v6, %v5083_v18  ;;  %v4519_v2 = vadd.f32 %v4442_v26, %v3765_v49  ;;  %v5019_v53 = vadd.f32 %v6760_v7, %v4521_v42  ;;  %v5055_v38 = vadd.f32 %v9548_v50, %v5016_v41  ;;  %v9854_v7 = vld [vmem:[#allocation7_spill] sm:$0xff]  ;;  %v9856_v21 = vld [vmem:[#allocation5_spill] sm:$0xff]  ;;  %v9857_v42 = vld [vmem:[#allocation2_spill] sm:$0xff] }
 0x20d   : > { %v6763_v33 = vpop.f32.mrf.mxu0  ;;  %v6715_v0 = vpop.f32.mrf.mxu1  ;;  %v5089_v47 = vmax.f32 %v5057_v15, 0.0  ;;  %v3386_v58 = vadd.f32 %v9522_v16, %v9854_v7 }
 0x20e   : > { %6115 = vst [vmem:[%s9567_s8 + $0x30] sm:$0xff] %v6063_v59   ;;  %v5017_v1 = vadd.f32 %v4940_v11, %v4519_v2  ;;  %v4524_v60 = vadd.f32 %v6715_v0, %v9499_v56  ;;  %v5058_v27 = vadd.f32 %v9548_v50, %v5019_v53  ;;  %v5087_v56 = vmax.f32 %v5055_v38, 0.0 }
 0x20f   : > { %v4953_v35 = vpop.f32.mrf.mxu0  ;;  %v4455_v12 = vpop.f32.mrf.mxu1  ;;  %v3773_v26 = vadd.f32 %v9857_v42, %v3386_v58 }
 0x210   : > { %v5056_v17 = vadd.f32 %v9548_v50, %v5017_v1  ;;  %v5022_v30 = vadd.f32 %v6763_v33, %v4524_v60  ;;  %v4522_v23 = vadd.f32 %v4455_v12, %v9851_v20  ;;  %v5090_v45 = vmax.f32 %v5058_v27, 0.0  ;;  %v9858_v60 = vld [vmem:[#allocation9_spill] sm:$0xff]  ;;  %v9860_v27 = vld [vmem:[#allocation11_spill] sm:$0xff] }
 0x211   : > { %v6764_v52 = vpop.f32.mrf.mxu0  ;;  %v6716_v14 = vpop.f32.mrf.mxu1  ;;  %v3390_v12 = vadd.f32 %v9860_v27, %v9859_v55 }
 0x212   : > { %v5088_v54 = vmax.f32 %v5056_v17, 0.0  ;;  %v4525_v29 = vadd.f32 %v6716_v14, %v3771_v10  ;;  %v6078_v9 = vpack.c.bf16 %v5090_v45, %v5089_v47  ;;  %v5020_v32 = vadd.f32 %v4953_v35, %v4522_v23 }
 0x213   : > { %v4956_v22 = vpop.f32.mrf.mxu0  ;;  %v4458_v46 = vpop.f32.mrf.mxu1  ;;  %v5061_v48 = vadd.f32 %v9548_v50, %v5022_v30 }
 0x214   : > { %v6073_v39 = vpack.c.bf16 %v5088_v54, %v5087_v56  ;;  %v5023_v25 = vadd.f32 %v6764_v52, %v4525_v29  ;;  %6118 = vst [vmem:[%s9567_s8 + $0x48] sm:$0xff] %v6078_v9   ;;  %v4523_v24 = vadd.f32 %v4458_v46, %v3769_v57  ;;  %v5059_v11 = vadd.f32 %v9548_v50, %v5020_v32  ;;  %v9862_v54 = vld [vmem:[#allocation10_spill] sm:$0xff]  ;;  %v9864_v57 = vld [vmem:[#allocation8_spill] sm:$0xff] }
 0x215   : > { %v6767_v43 = vpop.f32.mrf.mxu0  ;;  %v6719_v34 = vpop.f32.mrf.mxu1  ;;  %v5093_v4 = vmax.f32 %v5061_v48, 0.0  ;;  %v3392_v52 = vadd.f32 %v9532_v31, %v9858_v60  ;;  %v3777_v13 = vadd.f32 %v9864_v57, %v3390_v12 }
 0x216   : > { %6117 = vst [vmem:[%s9567_s8 + $0x40] sm:$0xff] %v6073_v39   ;;  %v5062_v36 = vadd.f32 %v9548_v50, %v5023_v25  ;;  %v4528_v37 = vadd.f32 %v6719_v34, %v9513_v62  ;;  %v5021_v5 = vadd.f32 %v4956_v22, %v4523_v24  ;;  %v5091_v35 = vmax.f32 %v5059_v11, 0.0  ;;  %v9861_v22 = vld [vmem:[#allocation6_spill] sm:$0xff] }
 0x217   : > { %v4969_v40 = vpop.f32.mrf.mxu0  ;;  %v4471_v49 = vpop.f32.mrf.mxu1 }
 0x218   : > { %v5094_v51 = vmax.f32 %v5062_v36, 0.0  ;;  %v5026_v18 = vadd.f32 %v6767_v43, %v4528_v37  ;;  %v4526_v6 = vadd.f32 %v4471_v49, %v9856_v21  ;;  %v5060_v16 = vadd.f32 %v9548_v50, %v5021_v5  ;;  %v9863_v43 = vld [vmem:[#allocation4_spill] sm:$0xff] }
 0x219   : > { %v6768_v19 = vpop.f32.mrf.mxu0  ;;  %v6720_v33 = vpop.f32.mrf.mxu1  ;;  %v3779_v3 = vadd.f32 %v9863_v43, %v3392_v52 }
 0x21a   : > { %v6088_v62 = vpack.c.bf16 %v5094_v51, %v5093_v4  ;;  %v5024_v61 = vadd.f32 %v4969_v40, %v4526_v6  ;;  %v4529_v59 = vadd.f32 %v6720_v33, %v3775_v63  ;;  %v5092_v15 = vmax.f32 %v5060_v16, 0.0 }
 0x21b   : > { %v4972_v41 = vpop.f32.mrf.mxu0  ;;  %v4474_v53 = vpop.f32.mrf.mxu1  ;;  %v5065_v0 = vadd.f32 %v9548_v50, %v5026_v18 }
 0x21c   : > { %6120 = vst [vmem:[%s9567_s8 + $0x58] sm:$0xff] %v6088_v62   ;;  %v5027_v38 = vadd.f32 %v6768_v19, %v4529_v59  ;;  %v4527_v1 = vadd.f32 %v4474_v53, %v3773_v26  ;;  %v6083_v28 = vpack.c.bf16 %v5092_v15, %v5091_v35  ;;  %v5063_v30 = vadd.f32 %v9548_v50, %v5024_v61 }
 0x21d   : > { %v6771_v2 = vpop.f32.mrf.mxu0  ;;  %v6723_v10 = vpop.f32.mrf.mxu1  ;;  %v5097_v14 = vmax.f32 %v5065_v0, 0.0 }
 0x21e   : > { %v5066_v20 = vadd.f32 %v9548_v50, %v5027_v38  ;;  %v5025_v23 = vadd.f32 %v4972_v41, %v4527_v1  ;;  %v4532_v47 = vadd.f32 %v6723_v10, %v9861_v22  ;;  %6119 = vst [vmem:[%s9567_s8 + $0x50] sm:$0xff] %v6083_v28   ;;  %v5095_v46 = vmax.f32 %v5063_v30, 0.0 }
 0x21f   : > { %v4985_v17 = vpop.f32.mrf.mxu0  ;;  %v4487_v45 = vpop.f32.mrf.mxu1 }
 0x220   : > { %v5098_v56 = vmax.f32 %v5066_v20, 0.0  ;;  %v5064_v31 = vadd.f32 %v9548_v50, %v5025_v23  ;;  %v4530_v29 = vadd.f32 %v4487_v45, %v9862_v54  ;;  %v5030_v8 = vadd.f32 %v6771_v2, %v4532_v47 }
 0x221   : > { %v6724_v9 = vpop.f32.mrf.mxu1  ;;  %v6772_v32 = vpop.f32.mrf.mxu0 }
 0x222   : > { %v6098_v39 = vpack.c.bf16 %v5098_v56, %v5097_v14  ;;  %v5096_v48 = vmax.f32 %v5064_v31, 0.0  ;;  %v5028_v25 = vadd.f32 %v4985_v17, %v4530_v29  ;;  %v4533_v40 = vadd.f32 %v6724_v9, %v3779_v3 }
 0x223   : > { %v4490_v24 = vpop.f32.mrf.mxu1  ;;  %v5069_v58 = vadd.f32 %v9548_v50, %v5030_v8  ;;  %v4988_v37 = vpop.f32.mrf.mxu0 }
 0x224   : > { %6122 = vst [vmem:[%s9567_s8 + $0x68] sm:$0xff] %v6098_v39   ;;  %v6093_v34 = vpack.c.bf16 %v5096_v48, %v5095_v46  ;;  %v4531_v7 = vadd.f32 %v4490_v24, %v3777_v13  ;;  %v5031_v36 = vadd.f32 %v6772_v32, %v4533_v40  ;;  %v5067_v19 = vadd.f32 %v9548_v50, %v5028_v25 }
 0x225   : > { %v5101_v5 = vmax.f32 %v5069_v58, 0.0 }
 0x226   : > { %6121 = vst [vmem:[%s9567_s8 + $0x60] sm:$0xff] %v6093_v34   ;;  %v5029_v44 = vadd.f32 %v4988_v37, %v4531_v7  ;;  %v5070_v63 = vadd.f32 %v9548_v50, %v5031_v36  ;;  %v5099_v4 = vmax.f32 %v5067_v19, 0.0 }
 0x228   : > { %v5068_v11 = vadd.f32 %v9548_v50, %v5029_v44  ;;  %v5102_v49 = vmax.f32 %v5070_v63, 0.0 }
 0x22a   : > { %v5100_v51 = vmax.f32 %v5068_v11, 0.0  ;;  %v6108_v18 = vpack.c.bf16 %v5102_v49, %v5101_v5 }
 0x22c   : > { %v6103_v21 = vpack.c.bf16 %v5100_v51, %v5099_v4  ;;  %6124 = vst [vmem:[%s9567_s8 + $0x78] sm:$0xff] %v6108_v18  }
 0x22e   : > { %6123 = vst [vmem:[%s9567_s8 + $0x70] sm:$0xff] %v6103_v21  }
 0x22f PF: > { %s13_s14 = sadd.s32 1, %s6965_s14   ;;  %s9865_s12 = smov %s6961_s13 }
 0x230   : > { %p10_p5 = scmp.ge.s32.totalorder %s13_s14, 4   ;;  %s9866_s13 = smov %s9868_s15 }
 0x232   :  { %12 = sbr.rel (!%p10_p5) target bundleno = 2 (0x2), region = 78 }

</bundles_post_ra>
